<compile_context>
chip_gen: v6e
topology: v6e:2x2x1
jax: 0.10.0
libtpu: 0.0.40
codegen_flags: <defaults>
</compile_context>

<pallas_src>
import jax
import jax.numpy as jnp
from jax.experimental import pallas as pl
from jax.experimental.pallas import tpu as pltpu

EPS = 1e-5                      # nn.GroupNorm default eps
GEMM_DTYPE = jnp.bfloat16       # MXU operand dtype (accumulation stays float32)
ACT_DTYPE = jnp.bfloat16        # inter-kernel activation dtype


def _round_up(x, m):
    return ((x + m - 1) // m) * m


def _detect_vmem_limit():
    # Generation-aware scoped-VMEM ceiling: ~40 MB on v7x (64 MiB/TC), ~80 MB on
    # v5e/v6e (128 MiB).  Falls back to a conservative value if the query fails.
    try:
        cap = int(pltpu.get_tpu_info().vmem_capacity_bytes)
    except Exception:
        cap = 64 * 1024 * 1024
    return max(32 * 1024 * 1024, min(cap * 5 // 8, 100 * 1024 * 1024))


VMEM_LIMIT = _detect_vmem_limit()


# --------------------------------- Pallas GEMM ---------------------------------

def _matmul_kernel(a_ref, b_ref, o_ref):
    o_ref[...] = jnp.dot(a_ref[...], b_ref[...],
                         preferred_element_type=jnp.float32).astype(o_ref.dtype)


def _pick_tile(total):
    # total is a multiple of 128; prefer 256/512 blocks but keep >=2 blocks per axis.
    for cand in (512, 256, 128):
        if total % cand == 0 and total // cand >= 2:
            return cand
    return 128


def pallas_matmul(a, b, out_dtype=ACT_DTYPE):
    """(M, K) @ (K, N) -> (M, N) in bf16, fp32 MXU accumulation.

    Operands are bf16 (cast only if needed: activations and prepared weights arrive
    bf16 and lane-aligned, so v1's extra pad/cast HBM copy is gone).  K stays whole
    (<= 9*C_in), so there is no cross-step accumulator and both grid axes are
    "parallel" (megacore sharding + double-buffered HBM<->VMEM pipelining).
    """
    M, K = a.shape
    N = b.shape[1]
    Mp, Np = _round_up(M, 128), _round_up(N, 128)

    if a.dtype != GEMM_DTYPE:
        a = a.astype(GEMM_DTYPE)
    if b.dtype != GEMM_DTYPE:
        b = b.astype(GEMM_DTYPE)
    if Mp != M:
        a = jnp.pad(a, ((0, Mp - M), (0, 0)))
    if Np != N:
        b = jnp.pad(b, ((0, 0), (0, Np - N)))

    tm, tn = _pick_tile(Mp), _pick_tile(Np)
    while tm > 128 and tm * K * 2 > (8 << 20):      # keep the A block under ~8 MB
        tm //= 2

    out = pl.pallas_call(
        _matmul_kernel,
        out_shape=jax.ShapeDtypeStruct((Mp, Np), out_dtype),
        grid=(Mp // tm, Np // tn),
        in_specs=[pl.BlockSpec((tm, K), lambda i, j: (i, 0)),
                  pl.BlockSpec((K, tn), lambda i, j: (0, j))],
        out_specs=pl.BlockSpec((tm, tn), lambda i, j: (i, j)),
        compiler_params=pltpu.CompilerParams(
            dimension_semantics=("parallel", "parallel"),
            vmem_limit_bytes=VMEM_LIMIT),
    )(a, b)

    if Mp != M or Np != N:
        out = out[:M, :N]
    return out


# -------------- fused GroupNorm (+ residual add) + SiLU, two-pass --------------

def _gn_stats_kernel(x_ref, s_ref, ss_ref):
    # grid = (N, HW // thw); hw axis is an "arbitrary" reduction axis and the
    # per-image (1, 1, C) sum / sum-of-squares outputs act as accumulators (P3).
    @pl.when(pl.program_id(1) == 0)
    def _():
        s_ref[...] = jnp.zeros_like(s_ref)
        ss_ref[...] = jnp.zeros_like(ss_ref)
    x = x_ref[0].astype(jnp.float32)                      # (thw, C)
    s_ref[0] += jnp.sum(x, axis=0, keepdims=True)
    ss_ref[0] += jnp.sum(x * x, axis=0, keepdims=True)


def _gn_apply_silu_kernel(x_ref, scale_ref, shift_ref, o_ref):
    x = x_ref[0].astype(jnp.float32)
    y = x * scale_ref[0] + shift_ref[0]
    o_ref[0] = (y * jax.nn.sigmoid(y)).astype(o_ref.dtype)      # SiLU


def _gn_apply_add_silu_kernel(x_ref, scale_ref, shift_ref, skip_ref, o_ref):
    x = x_ref[0].astype(jnp.float32)
    y = x * scale_ref[0] + shift_ref[0] + skip_ref[0].astype(jnp.float32)
    o_ref[0] = (y * jax.nn.sigmoid(y)).astype(o_ref.dtype)      # SiLU after residual


def _hw_tile(hw, c):
    # Largest divisor of HW that leaves >=2 grid steps and keeps a bf16 block
    # around ~4 MB (fits comfortably with double-buffering on v7x's 64 MiB VMEM).
    best = hw
    for cand in (2048, 1024, 512, 256, 128, 64, 32, 16, 8):
        if hw % cand == 0 and hw // cand >= 2:
            best = cand
            if cand * c * 2 <= (4 << 20):
                break
    return best


def pallas_groupnorm_silu(x, gamma, beta, num_groups, skip=None):
    """GroupNorm(+add)+SiLU on a (N, H*W, C) bf16 activation, returning bf16.

    Pass 1 (Pallas): HW-tiled per-channel fp32 sum / sum-of-squares accumulation.
    Glue (plain JAX, (N, C)-sized): group reduction -> per-channel scale / shift.
    Pass 2 (Pallas): y = x*scale + shift (+ skip); SiLU; bf16 write.
    Both passes run on a (N, HW/thw) grid so they pipeline and megacore-shard, and
    the per-step VMEM block stays a few MB regardless of H*W*C.
    """
    N, HW, C = x.shape
    G = num_groups
    Cpg = C // G
    thw = _hw_tile(HW, C)
    grid = (N, HW // thw)

    x_spec = pl.BlockSpec((1, thw, C), lambda n, i: (n, i, 0))
    vec_spec = pl.BlockSpec((1, 1, C), lambda n, i: (n, 0, 0))

    s, ss = pl.pallas_call(
        _gn_stats_kernel,
        out_shape=(jax.ShapeDtypeStruct((N, 1, C), jnp.float32),
                   jax.ShapeDtypeStruct((N, 1, C), jnp.float32)),
        grid=grid,
        in_specs=[x_spec],
        out_specs=[vec_spec, vec_spec],
        compiler_params=pltpu.CompilerParams(
            dimension_semantics=("parallel", "arbitrary"),
            vmem_limit_bytes=VMEM_LIMIT),
    )(x)

    # Tiny (N, C) fp32 glue: exact group statistics from the fp32 accumulators.
    # TODO(synk): switch to Welford / a centered second pass if |mean| >> std ever
    # makes the E[x^2] - mean^2 form cancellation-limited for this model.
    cnt = jnp.float32(HW * Cpg)
    mean_g = jnp.sum(s.reshape(N, G, Cpg), axis=-1) / cnt            # (N, G)
    ex2_g = jnp.sum(ss.reshape(N, G, Cpg), axis=-1) / cnt
    var_g = jnp.maximum(ex2_g - mean_g * mean_g, 0.0)
    rstd_g = jax.lax.rsqrt(var_g + EPS)
    mean_c = jnp.repeat(mean_g, Cpg, axis=-1)                        # (N, C)
    rstd_c = jnp.repeat(rstd_g, Cpg, axis=-1)
    g32 = gamma.astype(jnp.float32)[None, :]
    b32 = beta.astype(jnp.float32)[None, :]
    scale = (rstd_c * g32).reshape(N, 1, C)
    shift = (b32 - mean_c * rstd_c * g32).reshape(N, 1, C)

    cparams = pltpu.CompilerParams(
        dimension_semantics=("parallel", "parallel"),
        vmem_limit_bytes=VMEM_LIMIT)
    out_shape = jax.ShapeDtypeStruct((N, HW, C), ACT_DTYPE)
    if skip is None:
        return pl.pallas_call(
            _gn_apply_silu_kernel, out_shape=out_shape, grid=grid,
            in_specs=[x_spec, vec_spec, vec_spec], out_specs=x_spec,
            compiler_params=cparams,
        )(x, scale, shift)
    return pl.pallas_call(
        _gn_apply_add_silu_kernel, out_shape=out_shape, grid=grid,
        in_specs=[x_spec, vec_spec, vec_spec, x_spec], out_specs=x_spec,
        compiler_params=cparams,
    )(x, scale, shift, skip)


# ---------------------- conv lowering (bf16 im2col + GEMM) ----------------------

def _im2col_3x3(x_nhwc):
    # 3x3 window, stride=1, pad=1; column order = (tap_row, tap_col, channel).
    # Built directly on bf16 activations (single bf16 cols write, no fp32 copy).
    # TODO(synk): fold this tap gather into the GEMM kernel itself (in-VMEM shifted
    # windows of a spatially padded input) to remove the 9x HBM expansion entirely.
    N, H, W, C = x_nhwc.shape
    xp = jnp.pad(x_nhwc, ((0, 0), (1, 1), (1, 1), (0, 0)))
    taps = [xp[:, a:a + H, b:b + W, :] for a in range(3) for b in range(3)]
    cols = jnp.stack(taps, axis=3)                        # (N, H, W, 9, C) bf16
    return cols.reshape(N * H * W, 9 * C)


def conv2d_3x3_p1(x_nhwc, w_gemm, c_out):
    # x: NHWC bf16; w_gemm: (9*C_in, round_up(c_out, 128)) bf16, prepared at init.
    N, H, W, _ = x_nhwc.shape
    y = pallas_matmul(_im2col_3x3(x_nhwc), w_gemm)        # (N*H*W, c_out_padded)
    if y.shape[1] != c_out:
        # TODO(synk): for c_out like 112, keep the lane padding through GN (dead
        # group in the stats) instead of slicing right after the GEMM.
        y = y[:, :c_out]
    return y.reshape(N, H, W, c_out)


# ConvTranspose2d(k=4, s=2, p=1) via the 4-phase (sub-pixel) decomposition:
# out[2a+r, 2b+s] only reads input rows {a-1, a, a+1} / cols {b-1, b, b+1} with a
# fixed 2x2 subset of the 4x4 taps per phase, so all four phases share one
# 3x3/pad-1 im2col of the un-dilated input, and the four phase weight matrices are
# concatenated along the output-channel axis (all built once at init).
_TAP = {(0, 0): 3, (0, 1): 1, (1, 1): 2, (1, 2): 0}   # (out parity, im2col offset) -> tap


def _tconv_phase_weights(w_t):
    # w_t: (C_in, C_out, 4, 4) [PyTorch ConvTranspose2d layout]
    # -> (9*C_in, 4*C_out); K order = (tap_row, tap_col, c_in), out order = (r, s, c_out)
    C_in, C_out = w_t.shape[0], w_t.shape[1]
    B = jnp.zeros((3, 3, C_in, 2, 2, C_out), w_t.dtype)
    for (r, da), ky in _TAP.items():
        for (s, db), kx in _TAP.items():
            B = B.at[da, db, :, r, s, :].set(w_t[:, :, ky, kx])
    return B.reshape(9 * C_in, 4 * C_out)


def _depth_to_space2(y, N, H, W, C_out):
    # y: (N*H*W, 4*C_out) with channel order (r, s, c_out) -> (N, 2H, 2W, C_out)
    y = y.reshape(N, H, W, 2, 2, C_out)
    y = jnp.transpose(y, (0, 1, 3, 2, 4, 5))
    return y.reshape(N, 2 * H, 2 * W, C_out)


# ------------------------------------ module ------------------------------------

def _effective_groups(out_channels, num_groups):
    eff = min(num_groups, out_channels)
    if out_channels == 112:
        eff = 28                 # matches the reference module's hard-coded case
    if out_channels % eff != 0:
        raise ValueError(
            f"out_channels={out_channels} not divisible by num_groups={eff}")
    return eff


def _single_block_nhwc(prep, x_nhwc, num_groups):
    out_c = prep["gn1_gamma"].shape[0]
    eff_groups = _effective_groups(out_c, num_groups)
    N, H, W, _ = x_nhwc.shape

    if prep["w_up"] is not None:
        # Upsample path: conv1 and conv_skip (both ConvTranspose2d(4, s=2, p=1))
        # share the same 3x3/pad-1 im2col -> single fused GEMM over both weights.
        y = pallas_matmul(_im2col_3x3(x_nhwc), prep["w_up"])   # (N*H*W, >=8*out_c)
        h = _depth_to_space2(y[:, :4 * out_c], N, H, W, out_c)
        skip = _depth_to_space2(y[:, 4 * out_c:8 * out_c], N, H, W, out_c)
        H, W = 2 * H, 2 * W
    else:
        skip = x_nhwc
        h = conv2d_3x3_p1(x_nhwc, prep["w_conv1"], out_c)

    HW = H * W
    h = pallas_groupnorm_silu(h.reshape(N, HW, out_c),
                              prep["gn1_gamma"], prep["gn1_beta"], eff_groups)
    h = conv2d_3x3_p1(h.reshape(N, H, W, out_c), prep["w_conv2"], out_c)
    h = pallas_groupnorm_silu(h.reshape(N, HW, out_c),
                              prep["gn2_gamma"], prep["gn2_beta"], eff_groups,
                              skip=skip.reshape(N, HW, out_c))
    return h.reshape(N, H, W, out_c)


def resnet_single_transpose_block(prep, x_nchw, num_groups=32):
    x = jnp.transpose(x_nchw, (0, 2, 3, 1)).astype(ACT_DTYPE)   # NCHW->NHWC, bf16
    h = _single_block_nhwc(prep, x, num_groups)
    return jnp.transpose(h, (0, 3, 1, 2)).astype(jnp.float32)


def resnet_transpose_block(prep_list, x_nchw, num_groups=32):
    # ResnetTransposeBlock: chain of single blocks; activations stay NHWC/bf16.
    h = jnp.transpose(x_nchw, (0, 2, 3, 1)).astype(ACT_DTYPE)
    for p in prep_list:
        h = _single_block_nhwc(p, h, num_groups)
    # TODO(synk): the reference ResnetTransposeBlock appends a MultiHeadSelfAttention
    # whose class definition is not provided in the source spec; it is omitted here.
    return jnp.transpose(h, (0, 3, 1, 2)).astype(jnp.float32)


# ----------------------------- params: init + prepare -----------------------------

def init_single_block_params(key, in_channels, out_channels):
    def xavier(k, shape):
        fan_in = shape[1] * shape[2] * shape[3]
        fan_out = shape[0] * shape[2] * shape[3]
        bound = (6.0 / (fan_in + fan_out)) ** 0.5
        return jax.random.uniform(k, shape, jnp.float32, -bound, bound)

    k1, k2, k3 = jax.random.split(key, 3)
    raw = {}
    if in_channels > out_channels:
        raw["conv_skip"] = xavier(k1, (in_channels, out_channels, 4, 4))
        raw["conv1"] = xavier(k2, (in_channels, out_channels, 4, 4))
    else:
        raw["conv_skip"] = None
        raw["conv1"] = xavier(k2, (out_channels, out_channels, 3, 3))
    raw["conv2"] = xavier(k3, (out_channels, out_channels, 3, 3))
    raw["gn1_gamma"] = jnp.ones((out_channels,), jnp.float32)
    raw["gn1_beta"] = jnp.zeros((out_channels,), jnp.float32)
    raw["gn2_gamma"] = jnp.ones((out_channels,), jnp.float32)
    raw["gn2_beta"] = jnp.zeros((out_channels,), jnp.float32)
    return raw


def _pad_lanes(w2d):
    n = w2d.shape[1]
    n_p = _round_up(n, 128)
    if n_p != n:
        w2d = jnp.pad(w2d, ((0, 0), (0, n_p - n)))
    return w2d


def prepare_single_block_params(raw):
    """One-time (outside jit) weight transforms: PyTorch conv layouts -> GEMM-ready
    bf16 matrices (tap-major K, lane-padded N); the tconv 4-phase weights are built
    here and the conv1/conv_skip pair concatenated so the forward issues one GEMM."""
    out_c = raw["conv2"].shape[0]
    prep = {
        "gn1_gamma": raw["gn1_gamma"].astype(jnp.float32),
        "gn1_beta": raw["gn1_beta"].astype(jnp.float32),
        "gn2_gamma": raw["gn2_gamma"].astype(jnp.float32),
        "gn2_beta": raw["gn2_beta"].astype(jnp.float32),
    }
    if raw["conv_skip"] is not None:
        w_up = jnp.concatenate([_tconv_phase_weights(raw["conv1"]),
                                _tconv_phase_weights(raw["conv_skip"])], axis=1)
        prep["w_up"] = _pad_lanes(w_up).astype(GEMM_DTYPE)
        prep["w_conv1"] = None
    else:
        prep["w_up"] = None
        w1 = jnp.transpose(raw["conv1"], (2, 3, 1, 0)).reshape(-1, out_c)
        prep["w_conv1"] = _pad_lanes(w1).astype(GEMM_DTYPE)
    w2 = jnp.transpose(raw["conv2"], (2, 3, 1, 0)).reshape(-1, out_c)
    prep["w_conv2"] = _pad_lanes(w2).astype(GEMM_DTYPE)
    return prep


def init_block_params(key, in_channels, out_channels, num_blocks):
    keys = jax.random.split(key, num_blocks)
    blocks = [init_single_block_params(keys[0], in_channels, out_channels)]
    for i in range(1, num_blocks):
        blocks.append(init_single_block_params(keys[i], out_channels, out_channels))
    return [prepare_single_block_params(b) for b in blocks]


if __name__ == "__main__":
    key = jax.random.PRNGKey(0)
    k_param, k_x = jax.random.split(key)

    in_channels, out_channels = 256, 128    # in > out -> transpose (2x upsample) first block
    batch, H, W = 2, 8, 8
    num_blocks = 2                          # block 1 upsamples, block 2 refines (identity skip)

    params = init_block_params(k_param, in_channels, out_channels, num_blocks)
    x = jax.random.normal(k_x, (batch, in_channels, H, W), jnp.float32)

    fwd = jax.jit(lambda p, inp: resnet_transpose_block(p, inp, num_groups=32))
    out = jax.block_until_ready(fwd(params, x))

    assert out.shape == (batch, out_channels, 2 * H, 2 * W), out.shape
    assert bool(jnp.all(jnp.isfinite(out)))
    print("KERNEL_OK")
</pallas_src>

<mosaic_0001>
module attributes {stable_mosaic.version = 11 : i64} {
  func.func @_matmul_kernel(%arg0: i32, %arg1: i32, %arg2: memref<128x2304xbf16, #tpu.memory_space<vmem>>, %arg3: memref<2304x512xbf16, #tpu.memory_space<vmem>>, %arg4: memref<128x512xbf16, #tpu.memory_space<vmem>>) attributes {dimension_semantics = [#tpu.dimension_semantics<parallel>, #tpu.dimension_semantics<parallel>], iteration_bounds = array<i64: 1, 2>, scalar_prefetch = 0 : i64, scratch_operands = 0 : i64, tpu.core_type = #tpu.core_type<tc>, window_params = [{transform_indices = @transform_0, window_bounds = array<i64: 128, 2304>}, {transform_indices = @transform_1, window_bounds = array<i64: 2304, 512>}, {transform_indices = @transform_2, window_bounds = array<i64: 128, 512>}]} {
    %c0 = arith.constant 0 : index
    %c0_0 = arith.constant 0 : index
    %0 = vector.load %arg2[%c0, %c0_0] : memref<128x2304xbf16, #tpu.memory_space<vmem>>, vector<128x2304xbf16>
    %c0_1 = arith.constant 0 : index
    %c0_2 = arith.constant 0 : index
    %1 = vector.load %arg3[%c0_1, %c0_2] : memref<2304x512xbf16, #tpu.memory_space<vmem>>, vector<2304x512xbf16>
    %cst = arith.constant dense<0.000000e+00> : vector<128x512xf32>
    %2 = tpu.matmul %0, %1, %cst {dimension_numbers = #tpu.dot_dimension_numbers<[1], [0], [0], [1], [0, 0, 1, 1], [], []>} : vector<128x2304xbf16>, vector<2304x512xbf16>, vector<128x512xf32> -> vector<128x512xf32>
    %3 = arith.truncf %2 : vector<128x512xf32> to vector<128x512xbf16>
    %c0_3 = arith.constant 0 : index
    %c0_4 = arith.constant 0 : index
    %4 = vector.load %arg4[%c0_3, %c0_4] : memref<128x512xbf16, #tpu.memory_space<vmem>>, vector<128x512xbf16>
    tpu.vector_store %arg4[%c0_3, %c0_4], %3 {strides = array<i32>} : memref<128x512xbf16, #tpu.memory_space<vmem>>, vector<128x512xbf16>,
    return
  }
  func.func @transform_0(%arg0: i32, %arg1: i32) -> (i32, i32) {
    %c0_i32 = arith.constant 0 : i32
    %c0_i32_0 = arith.constant 0 : i32
    return %arg0, %c0_i32 : i32, i32
  }
  func.func @transform_1(%arg0: i32, %arg1: i32) -> (i32, i32) {
    %c0_i32 = arith.constant 0 : i32
    %c0_i32_0 = arith.constant 0 : i32
    return %c0_i32, %arg1 : i32, i32
  }
  func.func @transform_2(%arg0: i32, %arg1: i32) -> (i32, i32) {
    %c0_i32 = arith.constant 0 : i32
    return %arg0, %arg1 : i32, i32
  }
}

module attributes {stable_mosaic.version = 11 : i64} {
  func.func @_gn_stats_kernel(%arg0: i32, %arg1: i32, %arg2: memref<1x128x128xbf16, #tpu.memory_space<vmem>>, %arg3: memref<1x1x128xf32, #tpu.memory_space<vmem>>, %arg4: memref<1x1x128xf32, #tpu.memory_space<vmem>>) attributes {dimension_semantics = [#tpu.dimension_semantics<parallel>, #tpu.dimension_semantics<arbitrary>], iteration_bounds = array<i64: 2, 2>, scalar_prefetch = 0 : i64, scratch_operands = 0 : i64, tpu.core_type = #tpu.core_type<tc>, window_params = [{transform_indices = @transform_0, window_bounds = array<i64: 1, 128, 128>}, {transform_indices = @transform_1, window_bounds = array<i64: 1, 1, 128>}, {transform_indices = @transform_2, window_bounds = array<i64: 1, 1, 128>}]} {
    %c0_i32 = arith.constant 0 : i32
    %0 = arith.cmpi eq, %arg1, %c0_i32 : i32
    %1 = arith.extui %0 : i1 to i32
    %c0_i32_0 = arith.constant 0 : i32
    %2 = arith.cmpi ne, %1, %c0_i32_0 : i32
    scf.if %2 {
      %cst_16 = arith.constant 0.000000e+00 : f32
      %23 = vector.broadcast %cst_16 : f32 to vector<1x1x128xf32>
      %c0_17 = arith.constant 0 : index
      %c0_18 = arith.constant 0 : index
      %c0_19 = arith.constant 0 : index
      %24 = vector.load %arg3[%c0_17, %c0_18, %c0_19] : memref<1x1x128xf32, #tpu.memory_space<vmem>>, vector<1x1x128xf32>
      tpu.vector_store %arg3[%c0_17, %c0_18, %c0_19], %23 {strides = array<i32>} : memref<1x1x128xf32, #tpu.memory_space<vmem>>, vector<1x1x128xf32>,
      %cst_20 = arith.constant 0.000000e+00 : f32
      %25 = vector.broadcast %cst_20 : f32 to vector<1x1x128xf32>
      %c0_21 = arith.constant 0 : index
      %c0_22 = arith.constant 0 : index
      %c0_23 = arith.constant 0 : index
      %26 = vector.load %arg4[%c0_21, %c0_22, %c0_23] : memref<1x1x128xf32, #tpu.memory_space<vmem>>, vector<1x1x128xf32>
      tpu.vector_store %arg4[%c0_21, %c0_22, %c0_23], %25 {strides = array<i32>} : memref<1x1x128xf32, #tpu.memory_space<vmem>>, vector<1x1x128xf32>,
    } else {
    }
    %c0 = arith.constant 0 : index
    %c0_1 = arith.constant 0 : index
    %c0_2 = arith.constant 0 : index
    %3 = vector.load %arg2[%c0, %c0_1, %c0_2] : memref<1x128x128xbf16, #tpu.memory_space<vmem>>, vector<1x128x128xbf16>
    %4 = vector.shape_cast %3 : vector<1x128x128xbf16> to vector<128x128xbf16>
    %5 = arith.extf %4 : vector<128x128xbf16> to vector<128x128xf32>
    %c0_3 = arith.constant 0 : index
    %c0_4 = arith.constant 0 : index
    %c0_5 = arith.constant 0 : index
    %6 = vector.load %arg3[%c0_3, %c0_4, %c0_5] : memref<1x1x128xf32, #tpu.memory_space<vmem>>, vector<1x1x128xf32>
    %7 = vector.shape_cast %6 : vector<1x1x128xf32> to vector<1x128xf32>
    %cst = arith.constant dense<0.000000e+00> : vector<128xf32>
    %8 = vector.multi_reduction <add>, %5, %cst [0] : vector<128x128xf32> to vector<128xf32>
    %9 = vector.shape_cast %8 : vector<128xf32> to vector<1x128xf32>
    %10 = arith.addf %7, %9 : vector<1x128xf32>
    %c0_6 = arith.constant 0 : index
    %c0_7 = arith.constant 0 : index
    %c0_8 = arith.constant 0 : index
    %11 = vector.load %arg3[%c0_6, %c0_7, %c0_8] : memref<1x1x128xf32, #tpu.memory_space<vmem>>, vector<1x1x128xf32>
    %12 = vector.shape_cast %11 : vector<1x1x128xf32> to vector<1x128xf32>
    %13 = vector.shape_cast %10 : vector<1x128xf32> to vector<1x1x128xf32>
    tpu.vector_store %arg3[%c0_6, %c0_7, %c0_8], %13 {strides = array<i32>} : memref<1x1x128xf32, #tpu.memory_space<vmem>>, vector<1x1x128xf32>,
    %c0_9 = arith.constant 0 : index
    %c0_10 = arith.constant 0 : index
    %c0_11 = arith.constant 0 : index
    %14 = vector.load %arg4[%c0_9, %c0_10, %c0_11] : memref<1x1x128xf32, #tpu.memory_space<vmem>>, vector<1x1x128xf32>
    %15 = vector.shape_cast %14 : vector<1x1x128xf32> to vector<1x128xf32>
    %16 = arith.mulf %5, %5 : vector<128x128xf32>
    %cst_12 = arith.constant dense<0.000000e+00> : vector<128xf32>
    %17 = vector.multi_reduction <add>, %16, %cst_12 [0] : vector<128x128xf32> to vector<128xf32>
    %18 = vector.shape_cast %17 : vector<128xf32> to vector<1x128xf32>
    %19 = arith.addf %15, %18 : vector<1x128xf32>
    %c0_13 = arith.constant 0 : index
    %c0_14 = arith.constant 0 : index
    %c0_15 = arith.constant 0 : index
    %20 = vector.load %arg4[%c0_13, %c0_14, %c0_15] : memref<1x1x128xf32, #tpu.memory_space<vmem>>, vector<1x1x128xf32>
    %21 = vector.shape_cast %20 : vector<1x1x128xf32> to vector<1x128xf32>
    %22 = vector.shape_cast %19 : vector<1x128xf32> to vector<1x1x128xf32>
    tpu.vector_store %arg4[%c0_13, %c0_14, %c0_15], %22 {strides = array<i32>} : memref<1x1x128xf32, #tpu.memory_space<vmem>>, vector<1x1x128xf32>,
    return
  }
  func.func @transform_0(%arg0: i32, %arg1: i32) -> (i32, i32, i32) {
    %c0_i32 = arith.constant 0 : i32
    %c0_i32_0 = arith.constant 0 : i32
    return %arg0, %arg1, %c0_i32 : i32, i32, i32
  }
  func.func @transform_1(%arg0: i32, %arg1: i32) -> (i32, i32, i32) {
    %c0_i32 = arith.constant 0 : i32
    %c0_i32_0 = arith.constant 0 : i32
    %c0_i32_1 = arith.constant 0 : i32
    return %arg0, %c0_i32, %c0_i32_0 : i32, i32, i32
  }
  func.func @transform_2(%arg0: i32, %arg1: i32) -> (i32, i32, i32) {
    %c0_i32 = arith.constant 0 : i32
    %c0_i32_0 = arith.constant 0 : i32
    %c0_i32_1 = arith.constant 0 : i32
    return %arg0, %c0_i32, %c0_i32_0 : i32, i32, i32
  }
}

module attributes {stable_mosaic.version = 11 : i64} {
  func.func @_gn_apply_silu_kernel(%arg0: i32, %arg1: i32, %arg2: memref<1x128x128xbf16, #tpu.memory_space<vmem>>, %arg3: memref<1x1x128xf32, #tpu.memory_space<vmem>>, %arg4: memref<1x1x128xf32, #tpu.memory_space<vmem>>, %arg5: memref<1x128x128xbf16, #tpu.memory_space<vmem>>) attributes {dimension_semantics = [#tpu.dimension_semantics<parallel>, #tpu.dimension_semantics<parallel>], iteration_bounds = array<i64: 2, 2>, scalar_prefetch = 0 : i64, scratch_operands = 0 : i64, tpu.core_type = #tpu.core_type<tc>, window_params = [{transform_indices = @transform_0, window_bounds = array<i64: 1, 128, 128>}, {transform_indices = @transform_1, window_bounds = array<i64: 1, 1, 128>}, {transform_indices = @transform_2, window_bounds = array<i64: 1, 1, 128>}, {transform_indices = @transform_3, window_bounds = array<i64: 1, 128, 128>}]} {
    %c0 = arith.constant 0 : index
    %c0_0 = arith.constant 0 : index
    %c0_1 = arith.constant 0 : index
    %0 = vector.load %arg2[%c0, %c0_0, %c0_1] : memref<1x128x128xbf16, #tpu.memory_space<vmem>>, vector<1x128x128xbf16>
    %1 = vector.shape_cast %0 : vector<1x128x128xbf16> to vector<128x128xbf16>
    %2 = arith.extf %1 : vector<128x128xbf16> to vector<128x128xf32>
    %c0_2 = arith.constant 0 : index
    %c0_3 = arith.constant 0 : index
    %c0_4 = arith.constant 0 : index
    %3 = vector.load %arg3[%c0_2, %c0_3, %c0_4] : memref<1x1x128xf32, #tpu.memory_space<vmem>>, vector<1x1x128xf32>
    %4 = vector.shape_cast %3 : vector<1x1x128xf32> to vector<1x128xf32>
    %5 = vector.broadcast %4 : vector<1x128xf32> to vector<128x128xf32>
    %6 = arith.mulf %2, %5 : vector<128x128xf32>
    %c0_5 = arith.constant 0 : index
    %c0_6 = arith.constant 0 : index
    %c0_7 = arith.constant 0 : index
    %7 = vector.load %arg4[%c0_5, %c0_6, %c0_7] : memref<1x1x128xf32, #tpu.memory_space<vmem>>, vector<1x1x128xf32>
    %8 = vector.shape_cast %7 : vector<1x1x128xf32> to vector<1x128xf32>
    %9 = vector.broadcast %8 : vector<1x128xf32> to vector<128x128xf32>
    %10 = arith.addf %6, %9 : vector<128x128xf32>
    %11 = arith.negf %10 : vector<128x128xf32>
    %12 = math.exp %11 : vector<128x128xf32>
    %cst = arith.constant 1.000000e+00 : f32
    %13 = vector.broadcast %cst : f32 to vector<128x128xf32>
    %14 = arith.addf %13, %12 : vector<128x128xf32>
    %15 = arith.divf %13, %14 : vector<128x128xf32>
    %16 = arith.mulf %10, %15 : vector<128x128xf32>
    %17 = arith.truncf %16 : vector<128x128xf32> to vector<128x128xbf16>
    %c0_8 = arith.constant 0 : index
    %c0_9 = arith.constant 0 : index
    %c0_10 = arith.constant 0 : index
    %18 = vector.load %arg5[%c0_8, %c0_9, %c0_10] : memref<1x128x128xbf16, #tpu.memory_space<vmem>>, vector<1x128x128xbf16>
    %19 = vector.shape_cast %18 : vector<1x128x128xbf16> to vector<128x128xbf16>
    %20 = vector.shape_cast %17 : vector<128x128xbf16> to vector<1x128x128xbf16>
    tpu.vector_store %arg5[%c0_8, %c0_9, %c0_10], %20 {strides = array<i32>} : memref<1x128x128xbf16, #tpu.memory_space<vmem>>, vector<1x128x128xbf16>,
    return
  }
  func.func @transform_0(%arg0: i32, %arg1: i32) -> (i32, i32, i32) {
    %c0_i32 = arith.constant 0 : i32
    %c0_i32_0 = arith.constant 0 : i32
    return %arg0, %arg1, %c0_i32 : i32, i32, i32
  }
  func.func @transform_1(%arg0: i32, %arg1: i32) -> (i32, i32, i32) {
    %c0_i32 = arith.constant 0 : i32
    %c0_i32_0 = arith.constant 0 : i32
    %c0_i32_1 = arith.constant 0 : i32
    return %arg0, %c0_i32, %c0_i32_0 : i32, i32, i32
  }
  func.func @transform_2(%arg0: i32, %arg1: i32) -> (i32, i32, i32) {
    %c0_i32 = arith.constant 0 : i32
    %c0_i32_0 = arith.constant 0 : i32
    %c0_i32_1 = arith.constant 0 : i32
    return %arg0, %c0_i32, %c0_i32_0 : i32, i32, i32
  }
  func.func @transform_3(%arg0: i32, %arg1: i32) -> (i32, i32, i32) {
    %c0_i32 = arith.constant 0 : i32
    %c0_i32_0 = arith.constant 0 : i32
    return %arg0, %arg1, %c0_i32 : i32, i32, i32
  }
}

module attributes {stable_mosaic.version = 11 : i64} {
  func.func @_matmul_kernel(%arg0: i32, %arg1: i32, %arg2: memref<256x1152xbf16, #tpu.memory_space<vmem>>, %arg3: memref<1152x128xbf16, #tpu.memory_space<vmem>>, %arg4: memref<256x128xbf16, #tpu.memory_space<vmem>>) attributes {dimension_semantics = [#tpu.dimension_semantics<parallel>, #tpu.dimension_semantics<parallel>], iteration_bounds = array<i64: 2, 1>, scalar_prefetch = 0 : i64, scratch_operands = 0 : i64, tpu.core_type = #tpu.core_type<tc>, window_params = [{transform_indices = @transform_0, window_bounds = array<i64: 256, 1152>}, {transform_indices = @transform_1, window_bounds = array<i64: 1152, 128>}, {transform_indices = @transform_2, window_bounds = array<i64: 256, 128>}]} {
    %c0 = arith.constant 0 : index
    %c0_0 = arith.constant 0 : index
    %0 = vector.load %arg2[%c0, %c0_0] : memref<256x1152xbf16, #tpu.memory_space<vmem>>, vector<256x1152xbf16>
    %c0_1 = arith.constant 0 : index
    %c0_2 = arith.constant 0 : index
    %1 = vector.load %arg3[%c0_1, %c0_2] : memref<1152x128xbf16, #tpu.memory_space<vmem>>, vector<1152x128xbf16>
    %cst = arith.constant dense<0.000000e+00> : vector<256x128xf32>
    %2 = tpu.matmul %0, %1, %cst {dimension_numbers = #tpu.dot_dimension_numbers<[1], [0], [0], [1], [0, 0, 1, 1], [], []>} : vector<256x1152xbf16>, vector<1152x128xbf16>, vector<256x128xf32> -> vector<256x128xf32>
    %3 = arith.truncf %2 : vector<256x128xf32> to vector<256x128xbf16>
    %c0_3 = arith.constant 0 : index
    %c0_4 = arith.constant 0 : index
    %4 = vector.load %arg4[%c0_3, %c0_4] : memref<256x128xbf16, #tpu.memory_space<vmem>>, vector<256x128xbf16>
    tpu.vector_store %arg4[%c0_3, %c0_4], %3 {strides = array<i32>} : memref<256x128xbf16, #tpu.memory_space<vmem>>, vector<256x128xbf16>,
    return
  }
  func.func @transform_0(%arg0: i32, %arg1: i32) -> (i32, i32) {
    %c0_i32 = arith.constant 0 : i32
    %c0_i32_0 = arith.constant 0 : i32
    return %arg0, %c0_i32 : i32, i32
  }
  func.func @transform_1(%arg0: i32, %arg1: i32) -> (i32, i32) {
    %c0_i32 = arith.constant 0 : i32
    %c0_i32_0 = arith.constant 0 : i32
    return %c0_i32, %arg1 : i32, i32
  }
  func.func @transform_2(%arg0: i32, %arg1: i32) -> (i32, i32) {
    %c0_i32 = arith.constant 0 : i32
    return %arg0, %arg1 : i32, i32
  }
}

module attributes {stable_mosaic.version = 11 : i64} {
  func.func @_gn_apply_add_silu_kernel(%arg0: i32, %arg1: i32, %arg2: memref<1x128x128xbf16, #tpu.memory_space<vmem>>, %arg3: memref<1x1x128xf32, #tpu.memory_space<vmem>>, %arg4: memref<1x1x128xf32, #tpu.memory_space<vmem>>, %arg5: memref<1x128x128xbf16, #tpu.memory_space<vmem>>, %arg6: memref<1x128x128xbf16, #tpu.memory_space<vmem>>) attributes {dimension_semantics = [#tpu.dimension_semantics<parallel>, #tpu.dimension_semantics<parallel>], iteration_bounds = array<i64: 2, 2>, scalar_prefetch = 0 : i64, scratch_operands = 0 : i64, tpu.core_type = #tpu.core_type<tc>, window_params = [{transform_indices = @transform_0, window_bounds = array<i64: 1, 128, 128>}, {transform_indices = @transform_1, window_bounds = array<i64: 1, 1, 128>}, {transform_indices = @transform_2, window_bounds = array<i64: 1, 1, 128>}, {transform_indices = @transform_3, window_bounds = array<i64: 1, 128, 128>}, {transform_indices = @transform_4, window_bounds = array<i64: 1, 128, 128>}]} {
    %c0 = arith.constant 0 : index
    %c0_0 = arith.constant 0 : index
    %c0_1 = arith.constant 0 : index
    %0 = vector.load %arg2[%c0, %c0_0, %c0_1] : memref<1x128x128xbf16, #tpu.memory_space<vmem>>, vector<1x128x128xbf16>
    %1 = vector.shape_cast %0 : vector<1x128x128xbf16> to vector<128x128xbf16>
    %2 = arith.extf %1 : vector<128x128xbf16> to vector<128x128xf32>
    %c0_2 = arith.constant 0 : index
    %c0_3 = arith.constant 0 : index
    %c0_4 = arith.constant 0 : index
    %3 = vector.load %arg3[%c0_2, %c0_3, %c0_4] : memref<1x1x128xf32, #tpu.memory_space<vmem>>, vector<1x1x128xf32>
    %4 = vector.shape_cast %3 : vector<1x1x128xf32> to vector<1x128xf32>
    %5 = vector.broadcast %4 : vector<1x128xf32> to vector<128x128xf32>
    %6 = arith.mulf %2, %5 : vector<128x128xf32>
    %c0_5 = arith.constant 0 : index
    %c0_6 = arith.constant 0 : index
    %c0_7 = arith.constant 0 : index
    %7 = vector.load %arg4[%c0_5, %c0_6, %c0_7] : memref<1x1x128xf32, #tpu.memory_space<vmem>>, vector<1x1x128xf32>
    %8 = vector.shape_cast %7 : vector<1x1x128xf32> to vector<1x128xf32>
    %9 = vector.broadcast %8 : vector<1x128xf32> to vector<128x128xf32>
    %10 = arith.addf %6, %9 : vector<128x128xf32>
    %c0_8 = arith.constant 0 : index
    %c0_9 = arith.constant 0 : index
    %c0_10 = arith.constant 0 : index
    %11 = vector.load %arg5[%c0_8, %c0_9, %c0_10] : memref<1x128x128xbf16, #tpu.memory_space<vmem>>, vector<1x128x128xbf16>
    %12 = vector.shape_cast %11 : vector<1x128x128xbf16> to vector<128x128xbf16>
    %13 = arith.extf %12 : vector<128x128xbf16> to vector<128x128xf32>
    %14 = arith.addf %10, %13 : vector<128x128xf32>
    %15 = arith.negf %14 : vector<128x128xf32>
    %16 = math.exp %15 : vector<128x128xf32>
    %cst = arith.constant 1.000000e+00 : f32
    %17 = vector.broadcast %cst : f32 to vector<128x128xf32>
    %18 = arith.addf %17, %16 : vector<128x128xf32>
    %19 = arith.divf %17, %18 : vector<128x128xf32>
    %20 = arith.mulf %14, %19 : vector<128x128xf32>
    %21 = arith.truncf %20 : vector<128x128xf32> to vector<128x128xbf16>
    %c0_11 = arith.constant 0 : index
    %c0_12 = arith.constant 0 : index
    %c0_13 = arith.constant 0 : index
    %22 = vector.load %arg6[%c0_11, %c0_12, %c0_13] : memref<1x128x128xbf16, #tpu.memory_space<vmem>>, vector<1x128x128xbf16>
    %23 = vector.shape_cast %22 : vector<1x128x128xbf16> to vector<128x128xbf16>
    %24 = vector.shape_cast %21 : vector<128x128xbf16> to vector<1x128x128xbf16>
    tpu.vector_store %arg6[%c0_11, %c0_12, %c0_13], %24 {strides = array<i32>} : memref<1x128x128xbf16, #tpu.memory_space<vmem>>, vector<1x128x128xbf16>,
    return
  }
  func.func @transform_0(%arg0: i32, %arg1: i32) -> (i32, i32, i32) {
    %c0_i32 = arith.constant 0 : i32
    %c0_i32_0 = arith.constant 0 : i32
    return %arg0, %arg1, %c0_i32 : i32, i32, i32
  }
  func.func @transform_1(%arg0: i32, %arg1: i32) -> (i32, i32, i32) {
    %c0_i32 = arith.constant 0 : i32
    %c0_i32_0 = arith.constant 0 : i32
    %c0_i32_1 = arith.constant 0 : i32
    return %arg0, %c0_i32, %c0_i32_0 : i32, i32, i32
  }
  func.func @transform_2(%arg0: i32, %arg1: i32) -> (i32, i32, i32) {
    %c0_i32 = arith.constant 0 : i32
    %c0_i32_0 = arith.constant 0 : i32
    %c0_i32_1 = arith.constant 0 : i32
    return %arg0, %c0_i32, %c0_i32_0 : i32, i32, i32
  }
  func.func @transform_3(%arg0: i32, %arg1: i32) -> (i32, i32, i32) {
    %c0_i32 = arith.constant 0 : i32
    %c0_i32_0 = arith.constant 0 : i32
    return %arg0, %arg1, %c0_i32 : i32, i32, i32
  }
  func.func @transform_4(%arg0: i32, %arg1: i32) -> (i32, i32, i32) {
    %c0_i32 = arith.constant 0 : i32
    %c0_i32_0 = arith.constant 0 : i32
    return %arg0, %arg1, %c0_i32 : i32, i32, i32
  }
}

</mosaic_0001>

<bundles_post_ra>
// kernel: _lambda_.13
= control target key start
LH: loop header
LB: loop body
LE: loop exit
PB: predicated region body
PF: predicated region fallthrough
CT: control target
= control target key end

     0   :  { %s515_s9 = smov 0   ;;  %s517_s10 = smov 0   ;;  %s589_s0 = inlined_call_operand.vmem [shape: bf16[2,256,128], index: 0, kind: input, shape index: {}]   ;;  %s590_s1 = inlined_call_operand.vmem [shape: f32[2,1,128], index: 1, kind: output, shape index: {0}]   ;;  %s591_s2 = inlined_call_operand.vmem [shape: f32[2,1,128], index: 2, kind: output, shape index: {1}]  }
   0x1   :  { %s519_s11 = smov 0   ;;  %s521_s12 = smov 0  }
   0x2   :  { %s523_s13 = smov 0  }
   0x3 LB: > { %s22_s14 = sadd.s32 1, %s489_s11  ;;  %s25_s15 = sadd.s32 1, %s493_s12  ;;  %s497_s13 = sphi %s523_s13, %s13_s13   ;;  %s493_s12 = sphi %s521_s12, %s595_s12   ;;  %s489_s11 = sphi %s519_s11, %s594_s11   ;;  %s485_s10 = sphi %s517_s10, %s593_s10   ;;  %s481_s9 = sphi %s515_s9, %s592_s9  }
   0x4   : > { %p23_p0 = scmp.ge.s32.totalorder %s22_s14, 2  ;;  %p372_p1 = scmp.ge.s32.totalorder %s497_s13, 1 }
   0x5   : > { %p134_p2 = scmp.lt.s32.totalorder %s497_s13, 5 }
   0x6   : > { %s597_s14 = smov (%p23_p0, %s22_s14), 0  ;;  %s599_s15 = smov (!%p23_p0, %s25_s15), %s493_s12 }
   0x7   : > { %p135_p3 = pnand %p372_p1, %p134_p2  ;;  %p27_p4 = scmp.ge.s32.totalorder %s599_s15, 2 }
   0x8   : > { %s373_s16 = sshll.u32 (!%p135_p3), %s481_s9, 4  ;;  %p162_p5 = scmp.lt.s32.totalorder (!%p135_p3), %s485_s10, 1 }
   0x9   : > { %s601_s15 = smov (%p27_p4, %s599_s15), 0  ;;  %138 = sbr.rel (%p135_p3) target bundleno = 74 (0x4a), region = 24 }
   0xa   : > { %p164_p6 = scmp.lt.s32.totalorder (!%p135_p3), %s373_s16, 31  ;;  %p376_p7 = scmp.ne.s32.totalorder (!%p135_p3), %s481_s9, 0 }
   0xe   : > { %s603_s10 = smov (!%p162_p5, %s485_s10), 1  ;;  %s605_s16 = smov (!%p164_p6, %s373_s16), 31 }
   0xf   : > { %s374_s17 = sshll.u32 %s603_s10, 5  ;;  %s548_s20 = scalar_lea.vmem %s590_s1, %s603_s10 }
  0x10   : > { %s167_s21 = sadd.s32 %s374_s17, %s605_s16  ;;  %s553_s24 = scalar_lea.vmem %s591_s2, %s603_s10 }
  0x11   : > { %s375_s25 = sshll.u32 %s167_s21, 2  ;;  %180 = sbr.rel (%p376_p7) target bundleno = 24 (0x18), region = 28 }
  0x12   : > { %s558_s28 = scalar_lea.vmem %s589_s0, %s375_s25 }
  0x16   : > { %v499_v0 = vmov 0.0  }
  0x17   : > { %181 = vst [vmem:[%s548_s20] sm:$0x1] %v499_v0  ;;  %182 = vst [vmem:[%s553_s24] sm:$0x1] %v499_v0 }
  0x18 PF: > { %v380_v1 = vld [vmem:[%s558_s28] sm:$0xff]   ;;  %v411_v2 = vld [vmem:[%s558_s28 + $0x8] sm:$0xff]   ;;  %v412_v6 = vld [vmem:[%s558_s28 + $0x10] sm:$0xff]  }
  0x19   : > { %v381_v3 = vunpack.c.l.bf16 %v380_v1  ;;  %v382_v4 = vunpack.c.h.bf16 %v380_v1  ;;  %v385_v5 = vunpack.c.l.bf16 %v411_v2  ;;  %v386_v7 = vunpack.c.h.bf16 %v411_v2  ;;  %v413_v14 = vld [vmem:[%s558_s28 + $0x18] sm:$0xff]   ;;  %v414_v23 = vld [vmem:[%s558_s28 + $0x20] sm:$0xff]   ;;  %v415_v32 = vld [vmem:[%s558_s28 + $0x28] sm:$0xff]  }
  0x1a   : > { %v389_v11 = vunpack.c.l.bf16 %v412_v6  ;;  %v390_v15 = vunpack.c.h.bf16 %v412_v6  ;;  %v393_v19 = vunpack.c.l.bf16 %v413_v14  ;;  %v394_v24 = vunpack.c.h.bf16 %v413_v14  ;;  %v416_v41 = vld [vmem:[%s558_s28 + $0x30] sm:$0xff]   ;;  %v417_v50 = vld [vmem:[%s558_s28 + $0x38] sm:$0xff]  }
  0x1b   : > { %v216_v8 = vadd.f32 %v382_v4, %v381_v3  ;;  %v240_v9 = vmul.f32 %v381_v3, %v381_v3  ;;  %v241_v10 = vmul.f32 %v382_v4, %v382_v4  ;;  %v242_v13 = vmul.f32 %v385_v5, %v385_v5 }
  0x1c   : > { %v243_v17 = vmul.f32 %v386_v7, %v386_v7  ;;  %v244_v21 = vmul.f32 %v389_v11, %v389_v11  ;;  %v245_v26 = vmul.f32 %v390_v15, %v390_v15  ;;  %v397_v28 = vunpack.c.l.bf16 %v414_v23 }
  0x1d   : > { %v217_v12 = vadd.f32 %v385_v5, %v216_v8  ;;  %v256_v18 = vadd.f32 %v241_v10, %v240_v9  ;;  %v246_v30 = vmul.f32 %v393_v19, %v393_v19  ;;  %v398_v33 = vunpack.c.h.bf16 %v414_v23 }
  0x1e   : > { %v247_v35 = vmul.f32 %v394_v24, %v394_v24  ;;  %v401_v37 = vunpack.c.l.bf16 %v415_v32  ;;  %v248_v39 = vmul.f32 %v397_v28, %v397_v28  ;;  %v402_v42 = vunpack.c.h.bf16 %v415_v32 }
  0x1f   : > { %v218_v16 = vadd.f32 %v386_v7, %v217_v12  ;;  %v257_v22 = vadd.f32 %v256_v18, %v242_v13  ;;  %v249_v44 = vmul.f32 %v398_v33, %v398_v33  ;;  %v405_v46 = vunpack.c.l.bf16 %v416_v41 }
  0x20   : > { %v250_v48 = vmul.f32 %v401_v37, %v401_v37  ;;  %v406_v51 = vunpack.c.h.bf16 %v416_v41  ;;  %v251_v53 = vmul.f32 %v402_v42, %v402_v42  ;;  %v409_v55 = vunpack.c.l.bf16 %v417_v50 }
  0x21   : > { %v219_v20 = vadd.f32 %v389_v11, %v218_v16  ;;  %v258_v27 = vadd.f32 %v257_v22, %v243_v17  ;;  %v252_v57 = vmul.f32 %v405_v46, %v405_v46  ;;  %v410_v59 = vunpack.c.h.bf16 %v417_v50 }
  0x22   : > { %v253_v61 = vmul.f32 %v406_v51, %v406_v51  ;;  %v254_v0 = vmul.f32 %v409_v55, %v409_v55 }
  0x23   : > { %v220_v25 = vadd.f32 %v390_v15, %v219_v20  ;;  %v259_v31 = vadd.f32 %v258_v27, %v244_v21  ;;  %v255_v3 = vmul.f32 %v410_v59, %v410_v59  ;;  %v215_v15 = vld [vmem:[%s548_s20] sm:$0x1] }
  0x24   : > { %v239_v20 = vld [vmem:[%s553_s24] sm:$0x1] }
  0x25   : > { %v221_v29 = vadd.f32 %v393_v19, %v220_v25  ;;  %v260_v36 = vadd.f32 %v259_v31, %v245_v26 }
  0x27   : > { %v222_v34 = vadd.f32 %v394_v24, %v221_v29  ;;  %v261_v40 = vadd.f32 %v260_v36, %v246_v30 }
  0x29   : > { %v223_v38 = vadd.f32 %v397_v28, %v222_v34  ;;  %v262_v45 = vadd.f32 %v261_v40, %v247_v35 }
  0x2b   : > { %v224_v43 = vadd.f32 %v398_v33, %v223_v38  ;;  %v263_v49 = vadd.f32 %v262_v45, %v248_v39 }
  0x2d   : > { %v225_v47 = vadd.f32 %v401_v37, %v224_v43  ;;  %v264_v54 = vadd.f32 %v263_v49, %v249_v44 }
  0x2f   : > { %v226_v52 = vadd.f32 %v402_v42, %v225_v47  ;;  %v265_v58 = vadd.f32 %v264_v54, %v250_v48 }
  0x31   : > { %v227_v56 = vadd.f32 %v405_v46, %v226_v52  ;;  %v266_v62 = vadd.f32 %v265_v58, %v251_v53 }
  0x33   : > { %v228_v60 = vadd.f32 %v406_v51, %v227_v56  ;;  %v267_v1 = vadd.f32 %v266_v62, %v252_v57 }
  0x35   : > { %v229_v63 = vadd.f32 %v409_v55, %v228_v60  ;;  %v268_v4 = vadd.f32 %v267_v1, %v253_v61 }
  0x37   : > { %v230_v2 = vadd.f32 %v410_v59, %v229_v63  ;;  %v269_v6 = vadd.f32 %v268_v4, %v254_v0 }
  0x39   : > { %v231_v5 = vrot.slane %v230_v2, 4  ;;  %v270_v8 = vadd.f32 %v269_v6, %v255_v3 }
  0x3b   : > { %v232_v7 = vadd.f32 %v231_v5, %v230_v2  ;;  %v271_v10 = vrot.slane %v270_v8, 4 }
  0x3d   : > { %v233_v9 = vrot.slane %v232_v7, 2  ;;  %v272_v12 = vadd.f32 %v271_v10, %v270_v8 }
  0x3f   : > { %v234_v11 = vadd.f32 %v233_v9, %v232_v7  ;;  %v273_v14 = vrot.slane %v272_v12, 2 }
  0x41   : > { %v235_v13 = vrot.slane %v234_v11, 1  ;;  %v274_v17 = vadd.f32 %v273_v14, %v272_v12 }
  0x43   : > { %v236_v16 = vadd.f32 %v235_v13, %v234_v11  ;;  %v275_v19 = vrot.slane %v274_v17, 1 }
  0x45   : > { %v237_v18 = vadd.f32 %v236_v16, %v215_v15  ;;  %v276_v21 = vadd.f32 %v275_v19, %v274_v17 }
  0x47   : > { %238 = vst [vmem:[%s548_s20] sm:$0x1] %v237_v18  ;;  %v277_v22 = vadd.f32 %v276_v21, %v239_v20 }
  0x49   : > { %278 = vst [vmem:[%s553_s24] sm:$0x1] %v277_v22 }
  0x4a PF: > { %s13_s13 = sadd.s32 1, %s497_s13   ;;  %s592_s9 = smov %s489_s11 }
  0x4b   : > { %p10_p8 = scmp.ge.s32.totalorder %s13_s13, 6   ;;  %s593_s10 = smov %s493_s12 }
  0x4c   : > { %s594_s11 = smov %s597_s14  ;;  %s595_s12 = smov %s601_s15 }
  0x4d   :  { %12 = sbr.rel (!%p10_p8) target bundleno = 3 (0x3), region = 70 }

// kernel: _lambda_.14
= control target key start
LH: loop header
LB: loop body
LE: loop exit
PB: predicated region body
PF: predicated region fallthrough
CT: control target
= control target key end

     0   :  { %s929_s12 = smov 0   ;;  %s931_s13 = smov 0   ;;  %s1113_s0 = inlined_call_operand.vmem [shape: bf16[2,256,128], index: 0, kind: input, shape index: {}]   ;;  %s1114_s1 = inlined_call_operand.vmem [shape: f32[2,1,128], index: 1, kind: input, shape index: {}]   ;;  %s1115_s2 = inlined_call_operand.vmem [shape: f32[2,1,128], index: 2, kind: input, shape index: {}]   ;;  %s1116_s3 = inlined_call_operand.vmem [shape: bf16[2,256,128], index: 3, kind: output, shape index: {}]  }
   0x1   :  { %s933_s14 = smov 0   ;;  %s935_s15 = smov 0  }
   0x2   :  { %s937_s16 = smov 0  }
   0x3 LB: > { %s22_s17 = sadd.s32 1, %s899_s14  ;;  %s25_s18 = sadd.s32 1, %s903_s15  ;;  %s907_s16 = sphi %s937_s16, %s13_s16   ;;  %s903_s15 = sphi %s935_s15, %s1120_s15   ;;  %s899_s14 = sphi %s933_s14, %s1119_s14   ;;  %s895_s13 = sphi %s931_s13, %s1118_s13   ;;  %s891_s12 = sphi %s929_s12, %s1117_s12  }
   0x4   : > { %p23_p0 = scmp.ge.s32.totalorder %s22_s17, 2  ;;  %p620_p1 = scmp.ge.s32.totalorder %s907_s16, 1 }
   0x5   : > { %p174_p2 = scmp.lt.s32.totalorder %s907_s16, 5 }
   0x6   : > { %s1122_s17 = smov (%p23_p0, %s22_s17), 0  ;;  %s1124_s18 = smov (!%p23_p0, %s25_s18), %s903_s15 }
   0x7   : > { %p175_p3 = pnand %p620_p1, %p174_p2  ;;  %p27_p4 = scmp.ge.s32.totalorder %s1124_s18, 2 }
   0x8   : > { %s621_s19 = sshll.u32 (!%p175_p3), %s891_s12, 4  ;;  %p213_p5 = scmp.lt.s32.totalorder (!%p175_p3), %s895_s13, 1 }
   0x9   : > { %s1126_s18 = smov (%p27_p4, %s1124_s18), 0  ;;  %178 = sbr.rel (%p175_p3) target bundleno = 78 (0x4e), region = 32 }
   0xa   : > { %p215_p6 = scmp.lt.s32.totalorder (!%p175_p3), %s621_s19, 31 }
   0xe   : > { %s1128_s13 = smov (!%p213_p5, %s895_s13), 1  ;;  %s1130_s19 = smov (!%p215_p6, %s621_s19), 31 }
   0xf   : > { %s622_s20 = sshll.u32 %s1128_s13, 5  ;;  %s224_s23 = scalar_lea.vmem %s1114_s1, %s1128_s13 }
  0x10   : > { %s962_s24 = sadd.s32 %s622_s20, %s1130_s19  ;;  %s227_s4 = scalar_lea.vmem %s1115_s2, %s1128_s13  ;;  %v975_v0 = vld [vmem:[%s224_s23] ss:$0 sm:$0xff] }
  0x11   : > { %s623_s25 = sshll.u32 %s962_s24, 2  ;;  %v981_v9 = vld [vmem:[%s227_s4] ss:$0 sm:$0xff] }
  0x12   : > { %s970_s28 = scalar_lea.vmem %s1113_s0, %s623_s25  ;;  %s1074_s7 = scalar_lea.vmem %s1116_s3, %s623_s25 }
  0x13   : > { %v680_v1 = vld [vmem:[%s970_s28] sm:$0xff]   ;;  %v751_v2 = vld [vmem:[%s970_s28 + $0x8] sm:$0xff]   ;;  %v752_v3 = vld [vmem:[%s970_s28 + $0x10] sm:$0xff]  }
  0x14   : > { %v681_v4 = vunpack.c.l.bf16 %v680_v1  ;;  %v682_v5 = vunpack.c.h.bf16 %v680_v1  ;;  %v685_v6 = vunpack.c.l.bf16 %v751_v2  ;;  %v686_v7 = vunpack.c.h.bf16 %v751_v2  ;;  %v753_v8 = vld [vmem:[%s970_s28 + $0x18] sm:$0xff]   ;;  %v754_v22 = vld [vmem:[%s970_s28 + $0x20] sm:$0xff]   ;;  %v755_v31 = vld [vmem:[%s970_s28 + $0x28] sm:$0xff]  }
  0x15   : > { %v689_v10 = vunpack.c.l.bf16 %v752_v3  ;;  %v690_v11 = vunpack.c.h.bf16 %v752_v3  ;;  %v693_v12 = vunpack.c.l.bf16 %v753_v8  ;;  %v694_v13 = vunpack.c.h.bf16 %v753_v8  ;;  %v756_v32 = vld [vmem:[%s970_s28 + $0x30] sm:$0xff]   ;;  %v757_v53 = vld [vmem:[%s970_s28 + $0x38] sm:$0xff]  }
  0x16   : > { %v277_v14 = vmul.f32 %v681_v4, %v975_v0  ;;  %v278_v15 = vmul.f32 %v682_v5, %v975_v0  ;;  %v279_v16 = vmul.f32 %v685_v6, %v975_v0  ;;  %v280_v17 = vmul.f32 %v686_v7, %v975_v0 }
  0x17   : > { %v281_v18 = vmul.f32 %v689_v10, %v975_v0  ;;  %v282_v19 = vmul.f32 %v690_v11, %v975_v0  ;;  %v283_v20 = vmul.f32 %v693_v12, %v975_v0  ;;  %v284_v21 = vmul.f32 %v694_v13, %v975_v0 }
  0x18   : > { %v993_v23 = vadd.f32 %v981_v9, %v277_v14  ;;  %v996_v24 = vadd.f32 %v981_v9, %v278_v15  ;;  %v999_v25 = vadd.f32 %v981_v9, %v279_v16  ;;  %v1002_v26 = vadd.f32 %v981_v9, %v280_v17 }
  0x19   : > { %v1005_v27 = vadd.f32 %v981_v9, %v281_v18  ;;  %v1008_v28 = vadd.f32 %v981_v9, %v282_v19  ;;  %v1011_v29 = vadd.f32 %v981_v9, %v283_v20  ;;  %v1014_v30 = vadd.f32 %v981_v9, %v284_v21 }
  0x1a   : > { %v629_v33 = vmul.f32 -1.442695, %v993_v23  ;;  %v630_v34 = vmul.f32 -1.442695, %v996_v24  ;;  %v631_v35 = vmul.f32 -1.442695, %v999_v25  ;;  %v697_v36 = vunpack.c.l.bf16 %v754_v22 }
  0x1b   : > { %v632_v37 = vmul.f32 -1.442695, %v1002_v26  ;;  %v633_v38 = vmul.f32 -1.442695, %v1005_v27  ;;  %v634_v39 = vmul.f32 -1.442695, %v1008_v28  ;;  %v698_v40 = vunpack.c.h.bf16 %v754_v22 }
  0x1c   : > { %805 = vpow2.f32 %v629_v33  ;;  %v635_v41 = vmul.f32 -1.442695, %v1011_v29  ;;  %v636_v42 = vmul.f32 -1.442695, %v1014_v30  ;;  %v285_v43 = vmul.f32 %v697_v36, %v975_v0 }
  0x1d   : > { %807 = vpow2.f32 %v630_v34  ;;  %v286_v44 = vmul.f32 %v698_v40, %v975_v0  ;;  %v701_v45 = vunpack.c.l.bf16 %v755_v31  ;;  %v702_v46 = vunpack.c.h.bf16 %v755_v31 }
  0x1e   : > { %809 = vpow2.f32 %v631_v35  ;;  %v1029_v47 = vadd.f32 %v981_v9, %v285_v43  ;;  %v705_v48 = vunpack.c.l.bf16 %v756_v32  ;;  %v706_v49 = vunpack.c.h.bf16 %v756_v32 }
  0x1f   : > { %811 = vpow2.f32 %v632_v37  ;;  %v1032_v50 = vadd.f32 %v981_v9, %v286_v44  ;;  %v287_v51 = vmul.f32 %v701_v45, %v975_v0  ;;  %v288_v52 = vmul.f32 %v702_v46, %v975_v0 }
  0x20   : > { %813 = vpow2.f32 %v633_v38  ;;  %v637_v54 = vmul.f32 -1.442695, %v1029_v47  ;;  %v289_v55 = vmul.f32 %v705_v48, %v975_v0  ;;  %v290_v56 = vmul.f32 %v706_v49, %v975_v0 }
  0x21   : > { %815 = vpow2.f32 %v634_v39  ;;  %v638_v57 = vmul.f32 -1.442695, %v1032_v50  ;;  %v1042_v58 = vadd.f32 %v981_v9, %v287_v51  ;;  %v1045_v59 = vadd.f32 %v981_v9, %v288_v52 }
  0x22   : > { %817 = vpow2.f32 %v635_v41  ;;  %v1048_v60 = vadd.f32 %v981_v9, %v289_v55  ;;  %v1051_v61 = vadd.f32 %v981_v9, %v290_v56  ;;  %v709_v62 = vunpack.c.l.bf16 %v757_v53 }
  0x23   : > { %819 = vpow2.f32 %v636_v42  ;;  %v639_v63 = vmul.f32 -1.442695, %v1042_v58  ;;  %v640_v1 = vmul.f32 -1.442695, %v1045_v59  ;;  %v710_v2 = vunpack.c.h.bf16 %v757_v53 }
  0x24   : > { %821 = vpow2.f32 %v637_v54  ;;  %v641_v3 = vmul.f32 -1.442695, %v1048_v60  ;;  %v291_v4 = vmul.f32 %v709_v62, %v975_v0  ;;  %v642_v5 = vmul.f32 -1.442695, %v1051_v61 }
  0x25   : > { %823 = vpow2.f32 %v638_v57  ;;  %v292_v6 = vmul.f32 %v710_v2, %v975_v0 }
  0x26   : > { %825 = vpow2.f32 %v639_v63  ;;  %v1060_v7 = vadd.f32 %v981_v9, %v291_v4 }
  0x27   : > { %827 = vpow2.f32 %v640_v1  ;;  %v1063_v8 = vadd.f32 %v981_v9, %v292_v6 }
  0x28   : > { %829 = vpow2.f32 %v641_v3  ;;  %v643_v10 = vmul.f32 -1.442695, %v1060_v7 }
  0x29   : > { %v806_v11 = vpop.eup %805  ;;  %831 = vpow2.f32 %v642_v5  ;;  %v644_v12 = vmul.f32 -1.442695, %v1063_v8 }
  0x2a   : > { %v808_v13 = vpop.eup %807  ;;  %v364_v14 = vadd.f32 1.0, %v806_v11  ;;  %833 = vpow2.f32 %v643_v10 }
  0x2b   : > { %v810_v15 = vpop.eup %809  ;;  %v365_v0 = vadd.f32 1.0, %v808_v13  ;;  %835 = vpow2.f32 %v644_v12 }
  0x2c   : > { %v812_v16 = vpop.eup %811  ;;  %837 = vrcp.f32 %v364_v14  ;;  %v366_v17 = vadd.f32 1.0, %v810_v15 }
  0x2d   : > { %v814_v18 = vpop.eup %813  ;;  %839 = vrcp.f32 %v365_v0  ;;  %v367_v9 = vadd.f32 1.0, %v812_v16 }
  0x2e   : > { %v816_v19 = vpop.eup %815  ;;  %841 = vrcp.f32 %v366_v17  ;;  %v368_v20 = vadd.f32 1.0, %v814_v18 }
  0x2f   : > { %v818_v21 = vpop.eup %817  ;;  %843 = vrcp.f32 %v367_v9  ;;  %v369_v22 = vadd.f32 1.0, %v816_v19 }
  0x30   : > { %v820_v31 = vpop.eup %819  ;;  %845 = vrcp.f32 %v368_v20  ;;  %v370_v32 = vadd.f32 1.0, %v818_v21 }
  0x31   : > { %v822_v33 = vpop.eup %821  ;;  %847 = vrcp.f32 %v369_v22  ;;  %v371_v34 = vadd.f32 1.0, %v820_v31 }
  0x32   : > { %v824_v35 = vpop.eup %823  ;;  %849 = vrcp.f32 %v370_v32  ;;  %v372_v36 = vadd.f32 1.0, %v822_v33 }
  0x33   : > { %v826_v37 = vpop.eup %825  ;;  %851 = vrcp.f32 %v371_v34  ;;  %v373_v38 = vadd.f32 1.0, %v824_v35 }
  0x34   : > { %v828_v39 = vpop.eup %827  ;;  %853 = vrcp.f32 %v372_v36  ;;  %v374_v40 = vadd.f32 1.0, %v826_v37 }
  0x35   : > { %v830_v41 = vpop.eup %829  ;;  %855 = vrcp.f32 %v373_v38  ;;  %v375_v42 = vadd.f32 1.0, %v828_v39 }
  0x36   : > { %v832_v43 = vpop.eup %831  ;;  %857 = vrcp.f32 %v374_v40  ;;  %v376_v44 = vadd.f32 1.0, %v830_v41 }
  0x37   : > { %v834_v45 = vpop.eup %833  ;;  %859 = vrcp.f32 %v375_v42  ;;  %v377_v46 = vadd.f32 1.0, %v832_v43 }
  0x38   : > { %v836_v48 = vpop.eup %835  ;;  %861 = vrcp.f32 %v376_v44  ;;  %v378_v49 = vadd.f32 1.0, %v834_v45 }
  0x39   : > { %v838_v51 = vpop.eup %837  ;;  %863 = vrcp.f32 %v377_v46  ;;  %v379_v52 = vadd.f32 1.0, %v836_v48 }
  0x3a   : > { %v840_v53 = vpop.eup %839  ;;  %v412_v54 = vmul.f32 %v838_v51, %v993_v23  ;;  %865 = vrcp.f32 %v378_v49 }
  0x3b   : > { %v842_v55 = vpop.eup %841  ;;  %v413_v56 = vmul.f32 %v840_v53, %v996_v24  ;;  %867 = vrcp.f32 %v379_v52 }
  0x3c   : > { %v844_v57 = vpop.eup %843  ;;  %v414_v62 = vmul.f32 %v842_v55, %v999_v25 }
  0x3d   : > { %v846_v63 = vpop.eup %845  ;;  %v714_v1 = vpack.c.bf16 %v413_v56, %v412_v54  ;;  %v415_v23 = vmul.f32 %v844_v57, %v1002_v26 }
  0x3e   : > { %v848_v2 = vpop.eup %847  ;;  %v416_v24 = vmul.f32 %v846_v63, %v1005_v27 }
  0x3f   : > { %v850_v3 = vpop.eup %849  ;;  %715 = vst [vmem:[%s1074_s7] sm:$0xff] %v714_v1   ;;  %v719_v4 = vpack.c.bf16 %v415_v23, %v414_v62  ;;  %v417_v5 = vmul.f32 %v848_v2, %v1008_v28 }
  0x40   : > { %v852_v6 = vpop.eup %851  ;;  %v418_v10 = vmul.f32 %v850_v3, %v1011_v29 }
  0x41   : > { %v854_v11 = vpop.eup %853  ;;  %758 = vst [vmem:[%s1074_s7 + $0x8] sm:$0xff] %v719_v4   ;;  %v724_v25 = vpack.c.bf16 %v417_v5, %v416_v24  ;;  %v419_v12 = vmul.f32 %v852_v6, %v1014_v30 }
  0x42   : > { %v856_v26 = vpop.eup %855  ;;  %v420_v13 = vmul.f32 %v854_v11, %v1029_v47 }
  0x43   : > { %v858_v14 = vpop.eup %857  ;;  %759 = vst [vmem:[%s1074_s7 + $0x10] sm:$0xff] %v724_v25   ;;  %v729_v27 = vpack.c.bf16 %v419_v12, %v418_v10  ;;  %v421_v15 = vmul.f32 %v856_v26, %v1032_v50 }
  0x44   : > { %v860_v28 = vpop.eup %859  ;;  %v422_v0 = vmul.f32 %v858_v14, %v1042_v58 }
  0x45   : > { %v862_v29 = vpop.eup %861  ;;  %760 = vst [vmem:[%s1074_s7 + $0x18] sm:$0xff] %v729_v27   ;;  %v734_v16 = vpack.c.bf16 %v421_v15, %v420_v13  ;;  %v423_v30 = vmul.f32 %v860_v28, %v1045_v59 }
  0x46   : > { %v864_v17 = vpop.eup %863  ;;  %v424_v18 = vmul.f32 %v862_v29, %v1048_v60 }
  0x47   : > { %v866_v47 = vpop.eup %865  ;;  %761 = vst [vmem:[%s1074_s7 + $0x20] sm:$0xff] %v734_v16   ;;  %v739_v9 = vpack.c.bf16 %v423_v30, %v422_v0  ;;  %v425_v19 = vmul.f32 %v864_v17, %v1051_v61 }
  0x48   : > { %v868_v20 = vpop.eup %867  ;;  %v426_v50 = vmul.f32 %v866_v47, %v1060_v7 }
  0x49   : > { %762 = vst [vmem:[%s1074_s7 + $0x28] sm:$0xff] %v739_v9   ;;  %v744_v58 = vpack.c.bf16 %v425_v19, %v424_v18  ;;  %v427_v21 = vmul.f32 %v868_v20, %v1063_v8 }
  0x4b   : > { %763 = vst [vmem:[%s1074_s7 + $0x30] sm:$0xff] %v744_v58   ;;  %v749_v22 = vpack.c.bf16 %v427_v21, %v426_v50 }
  0x4d   : > { %764 = vst [vmem:[%s1074_s7 + $0x38] sm:$0xff] %v749_v22  }
  0x4e PF: > { %s13_s16 = sadd.s32 1, %s907_s16   ;;  %s1117_s12 = smov %s899_s14 }
  0x4f   : > { %p10_p7 = scmp.ge.s32.totalorder %s13_s16, 6   ;;  %s1118_s13 = smov %s903_s15 }
  0x50   : > { %s1119_s14 = smov %s1122_s17  ;;  %s1120_s15 = smov %s1126_s18 }
  0x51   :  { %12 = sbr.rel (!%p10_p7) target bundleno = 3 (0x3), region = 68 }

// kernel: _lambda_.12
= control target key start
LH: loop header
LB: loop body
LE: loop exit
PB: predicated region body
PF: predicated region fallthrough
CT: control target
= control target key end

     0   :  { %7 = vsyncpa [#allocation3], 0  ;;  %s11747_s0 = inlined_call_operand.vmem [shape: bf16[128,2304], index: 0, kind: input, shape index: {}]   ;;  %s11748_s1 = inlined_call_operand.hbm [shape: bf16[2304,1024], index: 1, kind: input, shape index: {}]   ;;  %s11749_s2 = inlined_call_operand.vmem [shape: bf16[128,1024], index: 2, kind: output, shape index: {}]  }
   0x1   :  { %9 = vsyncpa [#allocation3 + $0x1], 0  ;;  %s9141_s9 = smov 0   ;;  %s9143_s10 = smov 0  }
   0x2   :  { %s9145_s11 = smov 0   ;;  %s9147_s12 = smov 0  }
   0x3   :  { %s9149_s13 = smov 0   ;;  %s9151_s14 = smov 0  }
   0x4 LB: > { %s6958_s15 = sadd.s32 4294967295, %s9120_s14   ;;  %s24_s16 = sadd.s32 1, %s9116_s13  ;;  %s9120_s14 = sphi %s9151_s14, %s15_s14   ;;  %s9116_s13 = sphi %s9149_s13, %s11930_s13   ;;  %s9112_s12 = sphi %s9147_s12, %s11929_s12   ;;  %s9108_s11 = sphi %s9145_s11, %s11928_s11   ;;  %s9104_s10 = sphi %s9143_s10, %s11927_s10   ;;  %s9100_s9 = sphi %s9141_s9, %s11926_s9  }
   0x5   : > { %p25_p0 = scmp.ge.s32.totalorder %s24_s16, 2  ;;  %s60_s17 = sadd.s32 1, %s9108_s11 }
   0x6   : > { %p67_p1 = scmp.ne.s32.totalorder %s9108_s11, %s9104_s10  ;;  %p68_p2 = scmp.eq.s32.totalorder %s9120_s14, 0 }
   0x7   : > { %s11932_s16 = smov (%p25_p0, %s24_s16), 0  ;;  %p73_p4 = scmp.ne.s32.totalorder %s9104_s10, %s9100_s9 }
   0x8   : > { %p9177_p3 = por %p68_p2, %p67_p1  ;;  %s57_s19 = ssub.s32 %s9116_s13, %s11932_s16 }
   0x9   : > { %p74_p5 = scmp.eq.s32.totalorder %s6958_s15, 0  ;;  %p58_p6 = scmp.eq.s32.totalorder %s57_s19, 0 }
   0xa   : > { %p99_p7 = scmp.eq.s32.totalorder %s6958_s15, 1  ;;  %p7766_p10 = scmp.lt.s32.totalorder %s9120_s14, 2 }
   0xb   : > { %p9184_p8 = por %p74_p5, %p73_p4  ;;  %s135_s23 = sand.u32 1, %s9108_s11  }
   0xc   : > { %s9189_s21 = scalar_select %p58_p6, %s9108_s11, %s60_s17  }
   0xd   : > { %p9191_p9 = por %p99_p7, %p67_p1  ;;  %s7724_s24 = sshll.u32 %s9116_s13, 8 }
   0xe   : > { %s7758_s25 = smul.u32 4608, %s135_s23  ;;  %s145_s28 = scalar_lea.hbm %s11748_s1, %s7724_s24 }
   0xf   : > { %p9203_p11 = pnand %p7766_p10, %p9177_p3  ;;  %p6965_p12 = scmp.ge.s32.totalorder %s9120_s14, 1 }
  0x10   : > { %s139_s30 = scalar_lea.vmem [#allocation2], %s7758_s25  ;;  %s136_s4 = scalar_lea.sflag [#allocation3], %s135_s23 }
  0x11   : > { %s146_s3 = sshll.u32 %s139_s30, 4  ;;  %p9044_p13 = pneg %p9203_p11  ;;  %s147_s3 = int_to_ptr.vmem [resolvable:$true] %s146_s3 }
  0x12   : > { %s9055_s5 = scalar_lea.vmem %s147_s3, 73728  ;;  %s9122_s6 = smov [#allocation2]  }
  0x13   : > { %p9056_p0 = scmp.ne.s32.totalorder %s147_s3, %s9055_s5  ;;  %s9060_s7 = sshll.u32 %s9122_s6, 4  ;;  %s9061_s7 = int_to_ptr.vmem [resolvable:$false] %s9060_s7 }
  0x14   : > { %s9062_s8 = scalar_lea.vmem %s9061_s7, 147456  ;;  %p9063_p3 = scmp.lt.s32.totalorder %s147_s3, %s9061_s7 }
  0x15   : > { %p9058_p1 = pnand %p9056_p0, %p9044_p13  ;;  %p9064_p4 = scmp.lt.s32.totalorder %s9062_s8, %s9055_s5 }
  0x17   : > { %p9059_p2 = pneg %p9058_p1  ;;  %p9065_p5 = por %p9064_p4, %p9063_p3 }
  0x19   : > { %p9066_p6 = pnand %p9065_p5, %p9059_p2 }
  0x1b   : > { %9069 = shalt.err (!%p9066_p6)
}
  0x1c   : > { %s9123_s9 = smov 512   ;;  %s9124_s15 = smov 256  }
  0x1d   : > { %s9125_s17 = smov 16   ;;  %p154_p7 = scmp.lt.s32.totalorder %s9120_s14, 3 }
  0x1e   : > { %7765 = dma.hbm_to_vmem [thread:$0]  (!%p9203_p11), %s145_s28, 73728, %s147_s3, %s136_s4, %s9123_s9, %s9124_s15, %s9125_s17  }
  0x1f   : > { %p155_p10 = pnand %p6965_p12, %p154_p7 }
  0x21   : > { %158 = sbr.rel (%p155_p10) target bundleno = 890 (0x37a), region = 28 }
  0x26   : > { %s9216_s18 = sand.u32 1, %s9104_s10  }
  0x27   : > { %s7759_s19 = smul.u32 4608, %s9216_s18  ;;  %s161_s23 = scalar_lea.sflag [#allocation3], %s9216_s18 }
  0x29   : > { %s9220_s24 = scalar_lea.vmem [#allocation2], %s7759_s19 }
  0x2a   : > { %9095 = dma.done.wait (%p9184_p8), %s161_s23, 73728  }
  0x2b   : > { %9097 = vsyncadd (%p9184_p8), %s161_s23, 4294893568  ;;  %v7818_v0 = vld [vmem:[%s9220_s24 + $0xe4] ss:$16 sps:$4 sm:$0xff]   ;;  %v7822_v2 = vld [vmem:[%s9220_s24 + $0xe0] ss:$16 sps:$4 sm:$0xff]   ;;  %s6966_s30 = sshll.u32 %s9216_s18, 8 }
  0x2c   : > { %v7820_v1 = vld [vmem:[%s9220_s24 + $0x2e4] ss:$16 sps:$4 sm:$0xff]   ;;  %4520 = vmatprep.subr.bf16.mxu0 %v7818_v0  ;;  %v7823_v3 = vld [vmem:[%s9220_s24 + $0x2e0] ss:$16 sps:$4 sm:$0xff]   ;;  %s10853_s7 = scalar_lea.vmem [#allocation4], %s6966_s30  ;;  %s7757_s17 = sshll.u32 (%p9191_p9), %s9112_s12, 4 }
  0x2d   : > { %4633 = vmatprep.subr.bf16.mxu1 %v7820_v1  ;;  %v7824_v4 = vld [vmem:[%s9220_s24 + $0xc4] ss:$16 sps:$4 sm:$0xff]   ;;  %4521 = vmatpush1.bf16.msra.mxu0 %v7822_v2  ;;  %v7828_v6 = vld [vmem:[%s9220_s24 + $0xc0] ss:$16 sps:$4 sm:$0xff]   ;;  %s11666_s20 = scalar_lea.vmem (%p9191_p9), %s11749_s2, %s7757_s17 }
  0x2e   : > { %4634 = vmatpush1.bf16.msra.mxu1 %v7823_v3  ;;  %v7826_v5 = vld [vmem:[%s9220_s24 + $0x2c4] ss:$16 sps:$4 sm:$0xff]   ;;  %4522 = vmatprep.subr.bf16.mxu0 %v7824_v4  ;;  %v7829_v7 = vld [vmem:[%s9220_s24 + $0x2c0] ss:$16 sps:$4 sm:$0xff]  }
  0x2f   : > { %4635 = vmatprep.subr.bf16.mxu1 %v7826_v5  ;;  %v7830_v8 = vld [vmem:[%s9220_s24 + $0xa4] ss:$16 sps:$4 sm:$0xff]   ;;  %v7834_v10 = vld [vmem:[%s9220_s24 + $0xa0] ss:$16 sps:$4 sm:$0xff]  }
  0x30   : > { %v7832_v9 = vld [vmem:[%s9220_s24 + $0x2a4] ss:$16 sps:$4 sm:$0xff]   ;;  %v7835_v11 = vld [vmem:[%s9220_s24 + $0x2a0] ss:$16 sps:$4 sm:$0xff]  }
  0x31   : > { %4523 = vmatpush1.bf16.msra.mxu0 %v7828_v6  ;;  %v7836_v12 = vld [vmem:[%s9220_s24 + $0x84] ss:$16 sps:$4 sm:$0xff]   ;;  %v7840_v14 = vld [vmem:[%s9220_s24 + $0x80] ss:$16 sps:$4 sm:$0xff]  }
  0x32   : > { %4636 = vmatpush1.bf16.msra.mxu1 %v7829_v7  ;;  %4524 = vmatprep.subr.bf16.mxu0 %v7830_v8  ;;  %v7838_v13 = vld [vmem:[%s9220_s24 + $0x284] ss:$16 sps:$4 sm:$0xff]   ;;  %v7841_v15 = vld [vmem:[%s9220_s24 + $0x280] ss:$16 sps:$4 sm:$0xff]  }
  0x33   : > { %4637 = vmatprep.subr.bf16.mxu1 %v7832_v9  ;;  %v7842_v16 = vld [vmem:[%s9220_s24 + $0x64] ss:$16 sps:$4 sm:$0xff]   ;;  %v7846_v18 = vld [vmem:[%s9220_s24 + $0x60] ss:$16 sps:$4 sm:$0xff]  }
  0x34   : > { %v7844_v17 = vld [vmem:[%s9220_s24 + $0x264] ss:$16 sps:$4 sm:$0xff]   ;;  %v7847_v19 = vld [vmem:[%s9220_s24 + $0x260] ss:$16 sps:$4 sm:$0xff]  }
  0x35   : > { %4525 = vmatpush1.bf16.msra.mxu0 %v7834_v10  ;;  %v7848_v20 = vld [vmem:[%s9220_s24 + $0x44] ss:$16 sps:$4 sm:$0xff]   ;;  %v7852_v22 = vld [vmem:[%s9220_s24 + $0x40] ss:$16 sps:$4 sm:$0xff]  }
  0x36   : > { %4638 = vmatpush1.bf16.msra.mxu1 %v7835_v11  ;;  %4526 = vmatprep.subr.bf16.mxu0 %v7836_v12  ;;  %v7850_v21 = vld [vmem:[%s9220_s24 + $0x244] ss:$16 sps:$4 sm:$0xff]   ;;  %v7853_v23 = vld [vmem:[%s9220_s24 + $0x240] ss:$16 sps:$4 sm:$0xff]  }
  0x37   : > { %4639 = vmatprep.subr.bf16.mxu1 %v7838_v13  ;;  %v7854_v24 = vld [vmem:[%s9220_s24 + $0x24] ss:$16 sps:$4 sm:$0xff]   ;;  %v7858_v26 = vld [vmem:[%s9220_s24 + $0x20] ss:$16 sps:$4 sm:$0xff]  }
  0x38   : > { %v7856_v25 = vld [vmem:[%s9220_s24 + $0x224] ss:$16 sps:$4 sm:$0xff]   ;;  %v7859_v27 = vld [vmem:[%s9220_s24 + $0x220] ss:$16 sps:$4 sm:$0xff]  }
  0x39   : > { %4527 = vmatpush1.bf16.msra.mxu0 %v7840_v14  ;;  %v7860_v28 = vld [vmem:[%s9220_s24 + $0x4] ss:$16 sps:$4 sm:$0xff]   ;;  %v7864_v30 = vld [vmem:[%s9220_s24] ss:$16 sps:$4 sm:$0xff]  }
  0x3a   : > { %4640 = vmatpush1.bf16.msra.mxu1 %v7841_v15  ;;  %4528 = vmatprep.subr.bf16.mxu0 %v7842_v16  ;;  %v7862_v29 = vld [vmem:[%s9220_s24 + $0x204] ss:$16 sps:$4 sm:$0xff]   ;;  %v7865_v31 = vld [vmem:[%s9220_s24 + $0x200] ss:$16 sps:$4 sm:$0xff]  }
  0x3b   : > { %4641 = vmatprep.subr.bf16.mxu1 %v7844_v17  ;;  %v7866_v32 = vld [vmem:[%s9220_s24 + $0x1e4] ss:$16 sps:$4 sm:$0xff]   ;;  %v7870_v34 = vld [vmem:[%s9220_s24 + $0x1e0] ss:$16 sps:$4 sm:$0xff]  }
  0x3c   : > { %v7868_v33 = vld [vmem:[%s9220_s24 + $0x3e4] ss:$16 sps:$4 sm:$0xff]   ;;  %v7871_v35 = vld [vmem:[%s9220_s24 + $0x3e0] ss:$16 sps:$4 sm:$0xff]  }
  0x3d   : > { %4529 = vmatpush1.bf16.msra.mxu0 %v7846_v18  ;;  %v7872_v36 = vld [vmem:[%s9220_s24 + $0x1c4] ss:$16 sps:$4 sm:$0xff]   ;;  %v7876_v38 = vld [vmem:[%s9220_s24 + $0x1c0] ss:$16 sps:$4 sm:$0xff]  }
  0x3e   : > { %4642 = vmatpush1.bf16.msra.mxu1 %v7847_v19  ;;  %4530 = vmatprep.subr.bf16.mxu0 %v7848_v20  ;;  %v7874_v37 = vld [vmem:[%s9220_s24 + $0x3c4] ss:$16 sps:$4 sm:$0xff]   ;;  %v7877_v39 = vld [vmem:[%s9220_s24 + $0x3c0] ss:$16 sps:$4 sm:$0xff]  }
  0x3f   : > { %4643 = vmatprep.subr.bf16.mxu1 %v7850_v21  ;;  %v7878_v40 = vld [vmem:[%s9220_s24 + $0x1a4] ss:$16 sps:$4 sm:$0xff]   ;;  %v7882_v42 = vld [vmem:[%s9220_s24 + $0x1a0] ss:$16 sps:$4 sm:$0xff]  }
  0x40   : > { %v7880_v41 = vld [vmem:[%s9220_s24 + $0x3a4] ss:$16 sps:$4 sm:$0xff]   ;;  %v7883_v43 = vld [vmem:[%s9220_s24 + $0x3a0] ss:$16 sps:$4 sm:$0xff]  }
  0x41   : > { %4531 = vmatpush1.bf16.msra.mxu0 %v7852_v22  ;;  %v7884_v44 = vld [vmem:[%s9220_s24 + $0x184] ss:$16 sps:$4 sm:$0xff]   ;;  %v7888_v46 = vld [vmem:[%s9220_s24 + $0x180] ss:$16 sps:$4 sm:$0xff]  }
  0x42   : > { %4644 = vmatpush1.bf16.msra.mxu1 %v7853_v23  ;;  %4532 = vmatprep.subr.bf16.mxu0 %v7854_v24  ;;  %v7886_v45 = vld [vmem:[%s9220_s24 + $0x384] ss:$16 sps:$4 sm:$0xff]   ;;  %v7889_v47 = vld [vmem:[%s9220_s24 + $0x380] ss:$16 sps:$4 sm:$0xff]  }
  0x43   : > { %4645 = vmatprep.subr.bf16.mxu1 %v7856_v25  ;;  %v7890_v48 = vld [vmem:[%s9220_s24 + $0x164] ss:$16 sps:$4 sm:$0xff]   ;;  %v7894_v52 = vld [vmem:[%s9220_s24 + $0x160] ss:$16 sps:$4 sm:$0xff]  }
  0x44   : > { %v7916_v49 = vld [vmem:[%s11747_s0 + $0x4] ss:$72 sps:$4 sm:$0xff]   ;;  %v7895_v53 = vld [vmem:[%s9220_s24 + $0x360] ss:$16 sps:$4 sm:$0xff]   ;;  %v7932_v10 = vld [vmem:[%s11747_s0 + $0x94] ss:$72 sps:$4 sm:$0xff]  }
  0x45   : > { %4533 = vmatpush1.bf16.msra.mxu0 %v7858_v26  ;;  %v7892_v50 = vld [vmem:[%s9220_s24 + $0x364] ss:$16 sps:$4 sm:$0xff]   ;;  %4552 = vmatprep.mubr.bf16.mxu0 %v7916_v49  ;;  %v7900_v56 = vld [vmem:[%s9220_s24 + $0x140] ss:$16 sps:$4 sm:$0xff]  }
  0x46   : > { %4646 = vmatpush1.bf16.msra.mxu1 %v7859_v27  ;;  %4534 = vmatprep.subr.bf16.mxu0 %v7860_v28  ;;  %v7919_v51 = vld [vmem:[%s11747_s0 + $0xc] ss:$72 sps:$4 sm:$0xff]   ;;  %v7901_v57 = vld [vmem:[%s9220_s24 + $0x340] ss:$16 sps:$4 sm:$0xff]   ;;  %v7934_v11 = vld [vmem:[%s11747_s0 + $0x9c] ss:$72 sps:$4 sm:$0xff]  }
  0x47   : > { %4647 = vmatprep.subr.bf16.mxu1 %v7862_v29  ;;  %4665 = vmatprep.mubr.bf16.mxu1 %v7919_v51  ;;  %v7896_v54 = vld [vmem:[%s9220_s24 + $0x144] ss:$16 sps:$4 sm:$0xff]   ;;  %v7906_v60 = vld [vmem:[%s9220_s24 + $0x120] ss:$16 sps:$4 sm:$0xff]  }
  0x48   : > { %v7898_v55 = vld [vmem:[%s9220_s24 + $0x344] ss:$16 sps:$4 sm:$0xff]   ;;  %v7907_v61 = vld [vmem:[%s9220_s24 + $0x320] ss:$16 sps:$4 sm:$0xff]  }
  0x49   : > { %4535 = vmatpush1.bf16.msra.mxu0 %v7864_v30  ;;  %v7902_v58 = vld [vmem:[%s9220_s24 + $0x124] ss:$16 sps:$4 sm:$0xff]   ;;  %v7912_v0 = vld [vmem:[%s9220_s24 + $0x100] ss:$16 sps:$4 sm:$0xff]  }
  0x4a   : > { %4648 = vmatpush1.bf16.msra.mxu1 %v7865_v31  ;;  %4536 = vmatprep.subr.bf16.mxu0 %v7866_v32  ;;  %v7904_v59 = vld [vmem:[%s9220_s24 + $0x324] ss:$16 sps:$4 sm:$0xff]   ;;  %v7913_v1 = vld [vmem:[%s9220_s24 + $0x300] ss:$16 sps:$4 sm:$0xff]  }
  0x4b   : > { %4649 = vmatprep.subr.bf16.mxu1 %v7868_v33  ;;  %v7908_v62 = vld [vmem:[%s9220_s24 + $0x104] ss:$16 sps:$4 sm:$0xff]   ;;  %v7914_v4 = vld [vmem:[%s11747_s0] ss:$72 sps:$4 sm:$0xff]   ;;  %v7936_v16 = vld [vmem:[%s11747_s0 + $0x90] ss:$72 sps:$4 sm:$0xff]  }
  0x4c   : > { %v7910_v63 = vld [vmem:[%s9220_s24 + $0x304] ss:$16 sps:$4 sm:$0xff]   ;;  %v7917_v5 = vld [vmem:[%s11747_s0 + $0x8] ss:$72 sps:$4 sm:$0xff]   ;;  %v7937_v17 = vld [vmem:[%s11747_s0 + $0x98] ss:$72 sps:$4 sm:$0xff]  }
  0x4d   : > { %4537 = vmatpush2.bf16.msra.mxu0 %v7870_v34  ;;  %v7922_v2 = vld [vmem:[%s9220_s24 + $0x4e4] ss:$16 sps:$4 sm:$0xff]   ;;  %v7920_v6 = vld [vmem:[%s9220_s24 + $0x4e0] ss:$16 sps:$4 sm:$0xff]  }
  0x4e   : > { %4650 = vmatpush2.bf16.msra.mxu1 %v7871_v35  ;;  %4538 = vmatprep.subr.bf16.mxu0 %v7872_v36  ;;  %v7925_v3 = vld [vmem:[%s9220_s24 + $0x6e4] ss:$16 sps:$4 sm:$0xff]   ;;  %v7923_v7 = vld [vmem:[%s9220_s24 + $0x6e0] ss:$16 sps:$4 sm:$0xff]  }
  0x4f   : > { %4651 = vmatprep.subr.bf16.mxu1 %v7874_v37  ;;  %v7928_v8 = vld [vmem:[%s9220_s24 + $0x4c4] ss:$16 sps:$4 sm:$0xff]   ;;  %v7926_v12 = vld [vmem:[%s9220_s24 + $0x4c0] ss:$16 sps:$4 sm:$0xff]  }
  0x50   : > { %v7931_v9 = vld [vmem:[%s9220_s24 + $0x6c4] ss:$16 sps:$4 sm:$0xff]   ;;  %v7929_v13 = vld [vmem:[%s9220_s24 + $0x6c0] ss:$16 sps:$4 sm:$0xff]  }
  0x51   : > { %4539 = vmatpush2.bf16.msra.mxu0 %v7876_v38  ;;  %v7940_v14 = vld [vmem:[%s9220_s24 + $0x4a4] ss:$16 sps:$4 sm:$0xff]   ;;  %v7938_v18 = vld [vmem:[%s9220_s24 + $0x4a0] ss:$16 sps:$4 sm:$0xff]  }
  0x52   : > { %4652 = vmatpush2.bf16.msra.mxu1 %v7877_v39  ;;  %4540 = vmatprep.subr.bf16.mxu0 %v7878_v40  ;;  %v7943_v15 = vld [vmem:[%s9220_s24 + $0x6a4] ss:$16 sps:$4 sm:$0xff]   ;;  %v7941_v19 = vld [vmem:[%s9220_s24 + $0x6a0] ss:$16 sps:$4 sm:$0xff]  }
  0x53   : > { %4653 = vmatprep.subr.bf16.mxu1 %v7880_v41  ;;  %v7946_v20 = vld [vmem:[%s9220_s24 + $0x484] ss:$16 sps:$4 sm:$0xff]   ;;  %v7944_v24 = vld [vmem:[%s9220_s24 + $0x480] ss:$16 sps:$4 sm:$0xff]  }
  0x54   : > { %v7949_v21 = vld [vmem:[%s9220_s24 + $0x684] ss:$16 sps:$4 sm:$0xff]   ;;  %v7947_v25 = vld [vmem:[%s9220_s24 + $0x680] ss:$16 sps:$4 sm:$0xff]  }
  0x55   : > { %4541 = vmatpush2.bf16.msra.mxu0 %v7882_v42  ;;  %v7950_v22 = vld [vmem:[%s11747_s0 + $0x124] ss:$72 sps:$4 sm:$0xff]   ;;  %v7954_v28 = vld [vmem:[%s11747_s0 + $0x120] ss:$72 sps:$4 sm:$0xff]   ;;  %v7968_v34 = vld [vmem:[%s11747_s0 + $0x1b4] ss:$72 sps:$4 sm:$0xff]  }
  0x56   : > { %4654 = vmatpush2.bf16.msra.mxu1 %v7883_v43  ;;  %4542 = vmatprep.subr.bf16.mxu0 %v7884_v44  ;;  %v7952_v23 = vld [vmem:[%s11747_s0 + $0x12c] ss:$72 sps:$4 sm:$0xff]   ;;  %v7955_v29 = vld [vmem:[%s11747_s0 + $0x128] ss:$72 sps:$4 sm:$0xff]   ;;  %v7970_v35 = vld [vmem:[%s11747_s0 + $0x1bc] ss:$72 sps:$4 sm:$0xff]  }
  0x57   : > { %4655 = vmatprep.subr.bf16.mxu1 %v7886_v45  ;;  %v7958_v26 = vld [vmem:[%s9220_s24 + $0x464] ss:$16 sps:$4 sm:$0xff]   ;;  %v7956_v30 = vld [vmem:[%s9220_s24 + $0x460] ss:$16 sps:$4 sm:$0xff]  }
  0x58   : > { %v7961_v27 = vld [vmem:[%s9220_s24 + $0x664] ss:$16 sps:$4 sm:$0xff]   ;;  %v7959_v31 = vld [vmem:[%s9220_s24 + $0x660] ss:$16 sps:$4 sm:$0xff]  }
  0x59   : > { %4543 = vmatpush2.bf16.msra.mxu0 %v7888_v46  ;;  %v7964_v32 = vld [vmem:[%s9220_s24 + $0x444] ss:$16 sps:$4 sm:$0xff]   ;;  %v7962_v36 = vld [vmem:[%s9220_s24 + $0x440] ss:$16 sps:$4 sm:$0xff]  }
  0x5a   : > { %4656 = vmatpush2.bf16.msra.mxu1 %v7889_v47  ;;  %4544 = vmatprep.subr.bf16.mxu0 %v7890_v48  ;;  %v7967_v33 = vld [vmem:[%s9220_s24 + $0x644] ss:$16 sps:$4 sm:$0xff]   ;;  %v7965_v37 = vld [vmem:[%s9220_s24 + $0x640] ss:$16 sps:$4 sm:$0xff]  }
  0x5b   : > { %4657 = vmatprep.subr.bf16.mxu1 %v7892_v50  ;;  %v7976_v38 = vld [vmem:[%s9220_s24 + $0x424] ss:$16 sps:$4 sm:$0xff]   ;;  %v7972_v40 = vld [vmem:[%s11747_s0 + $0x1b0] ss:$72 sps:$4 sm:$0xff]  }
  0x5c   : > { %v7979_v39 = vld [vmem:[%s9220_s24 + $0x624] ss:$16 sps:$4 sm:$0xff]   ;;  %v7973_v41 = vld [vmem:[%s11747_s0 + $0x1b8] ss:$72 sps:$4 sm:$0xff]  }
  0x5d   : > { %4545 = vmatpush2.bf16.msra.mxu0 %v7894_v52  ;;  %v7974_v42 = vld [vmem:[%s9220_s24 + $0x420] ss:$16 sps:$4 sm:$0xff]   ;;  %v7982_v44 = vld [vmem:[%s9220_s24 + $0x404] ss:$16 sps:$4 sm:$0xff]  }
  0x5e   : > { %4658 = vmatpush2.bf16.msra.mxu1 %v7895_v53  ;;  %4546 = vmatprep.subr.bf16.mxu0 %v7896_v54  ;;  %v7977_v43 = vld [vmem:[%s9220_s24 + $0x620] ss:$16 sps:$4 sm:$0xff]   ;;  %v7985_v45 = vld [vmem:[%s9220_s24 + $0x604] ss:$16 sps:$4 sm:$0xff]  }
  0x5f   : > { %4659 = vmatprep.subr.bf16.mxu1 %v7898_v55  ;;  %v7986_v46 = vld [vmem:[%s11747_s0 + $0x244] ss:$72 sps:$4 sm:$0xff]   ;;  %v7980_v48 = vld [vmem:[%s9220_s24 + $0x400] ss:$16 sps:$4 sm:$0xff]  }
  0x60   : > { %v7988_v47 = vld [vmem:[%s11747_s0 + $0x24c] ss:$72 sps:$4 sm:$0xff]   ;;  %v7983_v49 = vld [vmem:[%s9220_s24 + $0x600] ss:$16 sps:$4 sm:$0xff]  }
  0x61   : > { %4547 = vmatpush2.bf16.msra.mxu0 %v7900_v56  ;;  %v7994_v50 = vld [vmem:[%s9220_s24 + $0x5e4] ss:$16 sps:$4 sm:$0xff]   ;;  %v7990_v52 = vld [vmem:[%s11747_s0 + $0x240] ss:$72 sps:$4 sm:$0xff]  }
  0x62   : > { %4660 = vmatpush2.bf16.msra.mxu1 %v7901_v57  ;;  %4548 = vmatprep.subr.bf16.mxu0 %v7902_v58  ;;  %v7997_v51 = vld [vmem:[%s9220_s24 + $0x7e4] ss:$16 sps:$4 sm:$0xff]   ;;  %v7991_v53 = vld [vmem:[%s11747_s0 + $0x248] ss:$72 sps:$4 sm:$0xff]  }
  0x63   : > { %4661 = vmatprep.subr.bf16.mxu1 %v7904_v59  ;;  %v7992_v54 = vld [vmem:[%s9220_s24 + $0x5e0] ss:$16 sps:$4 sm:$0xff]   ;;  %v8000_v56 = vld [vmem:[%s9220_s24 + $0x5c4] ss:$16 sps:$4 sm:$0xff]  }
  0x64   : > { %v7995_v55 = vld [vmem:[%s9220_s24 + $0x7e0] ss:$16 sps:$4 sm:$0xff]   ;;  %v8003_v57 = vld [vmem:[%s9220_s24 + $0x7c4] ss:$16 sps:$4 sm:$0xff]  }
  0x65   : > { %4549 = vmatpush2.bf16.msra.mxu0 %v7906_v60  ;;  %v8004_v58 = vld [vmem:[%s11747_s0 + $0x2d4] ss:$72 sps:$4 sm:$0xff]   ;;  %v7998_v60 = vld [vmem:[%s9220_s24 + $0x5c0] ss:$16 sps:$4 sm:$0xff]  }
  0x66   : > { %4662 = vmatpush2.bf16.msra.mxu1 %v7907_v61  ;;  %4550 = vmatprep.subr.bf16.mxu0 %v7908_v62  ;;  %v8006_v59 = vld [vmem:[%s11747_s0 + $0x2dc] ss:$72 sps:$4 sm:$0xff]   ;;  %v8001_v61 = vld [vmem:[%s9220_s24 + $0x7c0] ss:$16 sps:$4 sm:$0xff]  }
  0x67   : > { %4663 = vmatprep.subr.bf16.mxu1 %v7910_v63  ;;  %v8012_v62 = vld [vmem:[%s9220_s24 + $0x5a4] ss:$16 sps:$4 sm:$0xff]  }
  0x68   : > { %v8015_v63 = vld [vmem:[%s9220_s24 + $0x7a4] ss:$16 sps:$4 sm:$0xff]  }
  0x69   : > { %4551 = vmatpush2.bf16.msra.mxu0 %v7912_v0  ;;  %v8008_v0 = vld [vmem:[%s11747_s0 + $0x2d0] ss:$72 sps:$4 sm:$0xff]  }
  0x6a   : > { %4664 = vmatpush2.bf16.msra.mxu1 %v7913_v1  ;;  %4746 = vmatprep.subr.bf16.mxu0 %v7922_v2  ;;  %v8009_v1 = vld [vmem:[%s11747_s0 + $0x2d8] ss:$72 sps:$4 sm:$0xff]  }
  0x6b   : > { %4859 = vmatprep.subr.bf16.mxu1 %v7925_v3  ;;  %v8010_v2 = vld [vmem:[%s9220_s24 + $0x5a0] ss:$16 sps:$4 sm:$0xff]  }
  0x6c   : > { %4553 = vmatmul.mubr.bf16.vlgmr.msra.gmra.mxu0 %v7914_v4  ;;  %v8013_v3 = vld [vmem:[%s9220_s24 + $0x7a0] ss:$16 sps:$4 sm:$0xff]   ;;  %v8018_v4 = vld [vmem:[%s9220_s24 + $0x584] ss:$16 sps:$4 sm:$0xff]  }
  0x6d   : > { %4666 = vmatmul.mubr.bf16.vlgmr.msra.gmra.mxu1 %v7917_v5  ;;  %4747 = vmatpush1.bf16.msra.mxu0 %v7920_v6  ;;  %v8021_v5 = vld [vmem:[%s9220_s24 + $0x784] ss:$16 sps:$4 sm:$0xff]  }
  0x6e   : > { %4860 = vmatpush1.bf16.msra.mxu1 %v7923_v7  ;;  %4748 = vmatprep.subr.bf16.mxu0 %v7928_v8  ;;  %v8022_v6 = vld [vmem:[%s11747_s0 + $0x364] ss:$72 sps:$4 sm:$0xff]   ;;  %v8016_v8 = vld [vmem:[%s9220_s24 + $0x580] ss:$16 sps:$4 sm:$0xff]  }
  0x6f   : > { %4861 = vmatprep.subr.bf16.mxu1 %v7931_v9  ;;  %4562 = vmatprep.mubr.bf16.mxu0 %v7932_v10  ;;  %v8024_v7 = vld [vmem:[%s11747_s0 + $0x36c] ss:$72 sps:$4 sm:$0xff]   ;;  %v8019_v9 = vld [vmem:[%s9220_s24 + $0x780] ss:$16 sps:$4 sm:$0xff]  }
  0x70   : > { %4675 = vmatprep.mubr.bf16.mxu1 %v7934_v11  ;;  %v8030_v10 = vld [vmem:[%s9220_s24 + $0x564] ss:$16 sps:$4 sm:$0xff]  }
  0x71   : > { %4749 = vmatpush1.bf16.msra.mxu0 %v7926_v12  ;;  %v8033_v11 = vld [vmem:[%s9220_s24 + $0x764] ss:$16 sps:$4 sm:$0xff]   ;;  %v8026_v12 = vld [vmem:[%s11747_s0 + $0x360] ss:$72 sps:$4 sm:$0xff]  }
  0x72   : > { %4862 = vmatpush1.bf16.msra.mxu1 %v7929_v13  ;;  %4750 = vmatprep.subr.bf16.mxu0 %v7940_v14  ;;  %v8027_v13 = vld [vmem:[%s11747_s0 + $0x368] ss:$72 sps:$4 sm:$0xff]  }
  0x73   : > { %4863 = vmatprep.subr.bf16.mxu1 %v7943_v15  ;;  %v8028_v14 = vld [vmem:[%s9220_s24 + $0x560] ss:$16 sps:$4 sm:$0xff]  }
  0x74   : > { %4563 = vmatmul.mubr.bf16.gmra.mxu0 %v7936_v16  ;;  %v8031_v15 = vld [vmem:[%s9220_s24 + $0x760] ss:$16 sps:$4 sm:$0xff]   ;;  %v8036_v16 = vld [vmem:[%s9220_s24 + $0x544] ss:$16 sps:$4 sm:$0xff]  }
  0x75   : > { %4676 = vmatmul.mubr.bf16.gmra.mxu1 %v7937_v17  ;;  %4751 = vmatpush1.bf16.msra.mxu0 %v7938_v18  ;;  %v8039_v17 = vld [vmem:[%s9220_s24 + $0x744] ss:$16 sps:$4 sm:$0xff]  }
  0x76   : > { %4864 = vmatpush1.bf16.msra.mxu1 %v7941_v19  ;;  %4752 = vmatprep.subr.bf16.mxu0 %v7946_v20  ;;  %v8040_v18 = vld [vmem:[%s11747_s0 + $0x3f4] ss:$72 sps:$4 sm:$0xff]   ;;  %v8034_v20 = vld [vmem:[%s9220_s24 + $0x540] ss:$16 sps:$4 sm:$0xff]  }
  0x77   : > { %4865 = vmatprep.subr.bf16.mxu1 %v7949_v21  ;;  %4572 = vmatprep.mubr.bf16.mxu0 %v7950_v22  ;;  %v8042_v19 = vld [vmem:[%s11747_s0 + $0x3fc] ss:$72 sps:$4 sm:$0xff]   ;;  %v8037_v21 = vld [vmem:[%s9220_s24 + $0x740] ss:$16 sps:$4 sm:$0xff]  }
  0x78   : > { %4685 = vmatprep.mubr.bf16.mxu1 %v7952_v23  ;;  %v8048_v22 = vld [vmem:[%s9220_s24 + $0x524] ss:$16 sps:$4 sm:$0xff]  }
  0x79   : > { %4753 = vmatpush1.bf16.msra.mxu0 %v7944_v24  ;;  %v8051_v23 = vld [vmem:[%s9220_s24 + $0x724] ss:$16 sps:$4 sm:$0xff]   ;;  %v8044_v24 = vld [vmem:[%s11747_s0 + $0x3f0] ss:$72 sps:$4 sm:$0xff]  }
  0x7a   : > { %4866 = vmatpush1.bf16.msra.mxu1 %v7947_v25  ;;  %4754 = vmatprep.subr.bf16.mxu0 %v7958_v26  ;;  %v8045_v25 = vld [vmem:[%s11747_s0 + $0x3f8] ss:$72 sps:$4 sm:$0xff]  }
  0x7b   : > { %4867 = vmatprep.subr.bf16.mxu1 %v7961_v27  ;;  %v8046_v26 = vld [vmem:[%s9220_s24 + $0x520] ss:$16 sps:$4 sm:$0xff]  }
  0x7c   : > { %4573 = vmatmul.mubr.bf16.gmra.mxu0 %v7954_v28  ;;  %v8049_v27 = vld [vmem:[%s9220_s24 + $0x720] ss:$16 sps:$4 sm:$0xff]   ;;  %v8054_v28 = vld [vmem:[%s9220_s24 + $0x504] ss:$16 sps:$4 sm:$0xff]  }
  0x7d   : > { %4686 = vmatmul.mubr.bf16.gmra.mxu1 %v7955_v29  ;;  %4755 = vmatpush1.bf16.msra.mxu0 %v7956_v30  ;;  %v8057_v29 = vld [vmem:[%s9220_s24 + $0x704] ss:$16 sps:$4 sm:$0xff]  }
  0x7e   : > { %4868 = vmatpush1.bf16.msra.mxu1 %v7959_v31  ;;  %4756 = vmatprep.subr.bf16.mxu0 %v7964_v32  ;;  %v8060_v30 = vld [vmem:[%s11747_s0 + $0x14] ss:$72 sps:$4 sm:$0xff]   ;;  %v8052_v32 = vld [vmem:[%s9220_s24 + $0x500] ss:$16 sps:$4 sm:$0xff]  }
  0x7f   : > { %4869 = vmatprep.subr.bf16.mxu1 %v7967_v33  ;;  %4582 = vmatprep.mubr.bf16.mxu0 %v7968_v34  ;;  %v8063_v31 = vld [vmem:[%s11747_s0 + $0x1c] ss:$72 sps:$4 sm:$0xff]   ;;  %v8055_v33 = vld [vmem:[%s9220_s24 + $0x700] ss:$16 sps:$4 sm:$0xff]  }
  0x80   : > { %4695 = vmatprep.mubr.bf16.mxu1 %v7970_v35  ;;  %v8066_v34 = vld [vmem:[%s9220_s24 + $0x8e4] ss:$16 sps:$4 sm:$0xff]  }
  0x81   : > { %4757 = vmatpush1.bf16.msra.mxu0 %v7962_v36  ;;  %v8069_v35 = vld [vmem:[%s9220_s24 + $0xae4] ss:$16 sps:$4 sm:$0xff]   ;;  %v8058_v36 = vld [vmem:[%s11747_s0 + $0x10] ss:$72 sps:$4 sm:$0xff]  }
  0x82   : > { %4870 = vmatpush1.bf16.msra.mxu1 %v7965_v37  ;;  %4758 = vmatprep.subr.bf16.mxu0 %v7976_v38  ;;  %v8061_v37 = vld [vmem:[%s11747_s0 + $0x18] ss:$72 sps:$4 sm:$0xff]  }
  0x83   : > { %4871 = vmatprep.subr.bf16.mxu1 %v7979_v39  ;;  %v8064_v38 = vld [vmem:[%s9220_s24 + $0x8e0] ss:$16 sps:$4 sm:$0xff]  }
  0x84   : > { %4583 = vmatmul.mubr.bf16.gmra.mxu0 %v7972_v40  ;;  %v8067_v39 = vld [vmem:[%s9220_s24 + $0xae0] ss:$16 sps:$4 sm:$0xff]   ;;  %v8072_v40 = vld [vmem:[%s9220_s24 + $0x8c4] ss:$16 sps:$4 sm:$0xff]  }
  0x85   : > { %4696 = vmatmul.mubr.bf16.gmra.mxu1 %v7973_v41  ;;  %4759 = vmatpush1.bf16.msra.mxu0 %v7974_v42  ;;  %v8075_v41 = vld [vmem:[%s9220_s24 + $0xac4] ss:$16 sps:$4 sm:$0xff]  }
  0x86   : > { %4872 = vmatpush1.bf16.msra.mxu1 %v7977_v43  ;;  %4760 = vmatprep.subr.bf16.mxu0 %v7982_v44  ;;  %v8076_v42 = vld [vmem:[%s11747_s0 + $0xa4] ss:$72 sps:$4 sm:$0xff]   ;;  %v8070_v44 = vld [vmem:[%s9220_s24 + $0x8c0] ss:$16 sps:$4 sm:$0xff]  }
  0x87   : > { %4873 = vmatprep.subr.bf16.mxu1 %v7985_v45  ;;  %4592 = vmatprep.mubr.bf16.mxu0 %v7986_v46  ;;  %v8078_v43 = vld [vmem:[%s11747_s0 + $0xac] ss:$72 sps:$4 sm:$0xff]   ;;  %v8073_v45 = vld [vmem:[%s9220_s24 + $0xac0] ss:$16 sps:$4 sm:$0xff]  }
  0x88   : > { %4705 = vmatprep.mubr.bf16.mxu1 %v7988_v47  ;;  %v8084_v46 = vld [vmem:[%s9220_s24 + $0x8a4] ss:$16 sps:$4 sm:$0xff]  }
  0x89   : > { %4761 = vmatpush1.bf16.msra.mxu0 %v7980_v48  ;;  %v8087_v47 = vld [vmem:[%s9220_s24 + $0xaa4] ss:$16 sps:$4 sm:$0xff]   ;;  %v8080_v48 = vld [vmem:[%s11747_s0 + $0xa0] ss:$72 sps:$4 sm:$0xff]  }
  0x8a   : > { %4874 = vmatpush1.bf16.msra.mxu1 %v7983_v49  ;;  %4762 = vmatprep.subr.bf16.mxu0 %v7994_v50  ;;  %v8081_v49 = vld [vmem:[%s11747_s0 + $0xa8] ss:$72 sps:$4 sm:$0xff]  }
  0x8b   : > { %4875 = vmatprep.subr.bf16.mxu1 %v7997_v51  ;;  %v8082_v50 = vld [vmem:[%s9220_s24 + $0x8a0] ss:$16 sps:$4 sm:$0xff]  }
  0x8c   : > { %4593 = vmatmul.mubr.bf16.gmra.mxu0 %v7990_v52  ;;  %v8085_v51 = vld [vmem:[%s9220_s24 + $0xaa0] ss:$16 sps:$4 sm:$0xff]   ;;  %v8090_v52 = vld [vmem:[%s9220_s24 + $0x884] ss:$16 sps:$4 sm:$0xff]  }
  0x8d   : > { %4706 = vmatmul.mubr.bf16.gmra.mxu1 %v7991_v53  ;;  %4763 = vmatpush2.bf16.msra.mxu0 %v7992_v54  ;;  %v8093_v53 = vld [vmem:[%s9220_s24 + $0xa84] ss:$16 sps:$4 sm:$0xff]  }
  0x8e   : > { %4876 = vmatpush2.bf16.msra.mxu1 %v7995_v55  ;;  %4764 = vmatprep.subr.bf16.mxu0 %v8000_v56  ;;  %v8094_v54 = vld [vmem:[%s11747_s0 + $0x134] ss:$72 sps:$4 sm:$0xff]   ;;  %v8088_v56 = vld [vmem:[%s9220_s24 + $0x880] ss:$16 sps:$4 sm:$0xff]  }
  0x8f   : > { %4877 = vmatprep.subr.bf16.mxu1 %v8003_v57  ;;  %4602 = vmatprep.mubr.bf16.mxu0 %v8004_v58  ;;  %v8096_v55 = vld [vmem:[%s11747_s0 + $0x13c] ss:$72 sps:$4 sm:$0xff]   ;;  %v8091_v57 = vld [vmem:[%s9220_s24 + $0xa80] ss:$16 sps:$4 sm:$0xff]  }
  0x90   : > { %4715 = vmatprep.mubr.bf16.mxu1 %v8006_v59  ;;  %v8102_v58 = vld [vmem:[%s9220_s24 + $0x864] ss:$16 sps:$4 sm:$0xff]  }
  0x91   : > { %4765 = vmatpush2.bf16.msra.mxu0 %v7998_v60  ;;  %v8105_v59 = vld [vmem:[%s9220_s24 + $0xa64] ss:$16 sps:$4 sm:$0xff]   ;;  %v8098_v60 = vld [vmem:[%s11747_s0 + $0x130] ss:$72 sps:$4 sm:$0xff]  }
  0x92   : > { %4878 = vmatpush2.bf16.msra.mxu1 %v8001_v61  ;;  %4766 = vmatprep.subr.bf16.mxu0 %v8012_v62  ;;  %v8099_v61 = vld [vmem:[%s11747_s0 + $0x138] ss:$72 sps:$4 sm:$0xff]  }
  0x93   : > { %4879 = vmatprep.subr.bf16.mxu1 %v8015_v63  ;;  %v8100_v62 = vld [vmem:[%s9220_s24 + $0x860] ss:$16 sps:$4 sm:$0xff]  }
  0x94   : > { %4603 = vmatmul.mubr.bf16.gmra.mxu0 %v8008_v0  ;;  %v8103_v63 = vld [vmem:[%s9220_s24 + $0xa60] ss:$16 sps:$4 sm:$0xff]   ;;  %v8108_v0 = vld [vmem:[%s9220_s24 + $0x844] ss:$16 sps:$4 sm:$0xff]  }
  0x95   : > { %4716 = vmatmul.mubr.bf16.gmra.mxu1 %v8009_v1  ;;  %4767 = vmatpush2.bf16.msra.mxu0 %v8010_v2  ;;  %v8111_v1 = vld [vmem:[%s9220_s24 + $0xa44] ss:$16 sps:$4 sm:$0xff]  }
  0x96   : > { %4880 = vmatpush2.bf16.msra.mxu1 %v8013_v3  ;;  %4768 = vmatprep.subr.bf16.mxu0 %v8018_v4  ;;  %v8112_v2 = vld [vmem:[%s11747_s0 + $0x1c4] ss:$72 sps:$4 sm:$0xff]   ;;  %v8106_v4 = vld [vmem:[%s9220_s24 + $0x840] ss:$16 sps:$4 sm:$0xff]  }
  0x97   : > { %4881 = vmatprep.subr.bf16.mxu1 %v8021_v5  ;;  %4612 = vmatprep.mubr.bf16.mxu0 %v8022_v6  ;;  %v8114_v3 = vld [vmem:[%s11747_s0 + $0x1cc] ss:$72 sps:$4 sm:$0xff]   ;;  %v8109_v5 = vld [vmem:[%s9220_s24 + $0xa40] ss:$16 sps:$4 sm:$0xff]  }
  0x98   : > { %4725 = vmatprep.mubr.bf16.mxu1 %v8024_v7  ;;  %v8120_v6 = vld [vmem:[%s9220_s24 + $0x824] ss:$16 sps:$4 sm:$0xff]  }
  0x99   : > { %4769 = vmatpush2.bf16.msra.mxu0 %v8016_v8  ;;  %v8123_v7 = vld [vmem:[%s9220_s24 + $0xa24] ss:$16 sps:$4 sm:$0xff]   ;;  %v8116_v8 = vld [vmem:[%s11747_s0 + $0x1c0] ss:$72 sps:$4 sm:$0xff]  }
  0x9a   : > { %4882 = vmatpush2.bf16.msra.mxu1 %v8019_v9  ;;  %4770 = vmatprep.subr.bf16.mxu0 %v8030_v10  ;;  %v8117_v9 = vld [vmem:[%s11747_s0 + $0x1c8] ss:$72 sps:$4 sm:$0xff]  }
  0x9b   : > { %4883 = vmatprep.subr.bf16.mxu1 %v8033_v11  ;;  %v8118_v10 = vld [vmem:[%s9220_s24 + $0x820] ss:$16 sps:$4 sm:$0xff]  }
  0x9c   : > { %4613 = vmatmul.mubr.bf16.gmra.mxu0 %v8026_v12  ;;  %v8121_v11 = vld [vmem:[%s9220_s24 + $0xa20] ss:$16 sps:$4 sm:$0xff]   ;;  %v8126_v12 = vld [vmem:[%s9220_s24 + $0x804] ss:$16 sps:$4 sm:$0xff]  }
  0x9d   : > { %4726 = vmatmul.mubr.bf16.gmra.mxu1 %v8027_v13  ;;  %4771 = vmatpush2.bf16.msra.mxu0 %v8028_v14  ;;  %v8129_v13 = vld [vmem:[%s9220_s24 + $0xa04] ss:$16 sps:$4 sm:$0xff]  }
  0x9e   : > { %4884 = vmatpush2.bf16.msra.mxu1 %v8031_v15  ;;  %4772 = vmatprep.subr.bf16.mxu0 %v8036_v16  ;;  %v8130_v14 = vld [vmem:[%s11747_s0 + $0x254] ss:$72 sps:$4 sm:$0xff]   ;;  %v8124_v16 = vld [vmem:[%s9220_s24 + $0x800] ss:$16 sps:$4 sm:$0xff]  }
  0x9f   : > { %4885 = vmatprep.subr.bf16.mxu1 %v8039_v17  ;;  %4622 = vmatprep.mubr.bf16.mxu0 %v8040_v18  ;;  %v8132_v15 = vld [vmem:[%s11747_s0 + $0x25c] ss:$72 sps:$4 sm:$0xff]   ;;  %v8127_v17 = vld [vmem:[%s9220_s24 + $0xa00] ss:$16 sps:$4 sm:$0xff]  }
  0xa0   : > { %4735 = vmatprep.mubr.bf16.mxu1 %v8042_v19  ;;  %v8138_v18 = vld [vmem:[%s9220_s24 + $0x9e4] ss:$16 sps:$4 sm:$0xff]  }
  0xa1   : > { %4773 = vmatpush2.bf16.msra.mxu0 %v8034_v20  ;;  %v8141_v19 = vld [vmem:[%s9220_s24 + $0xbe4] ss:$16 sps:$4 sm:$0xff]   ;;  %v8134_v20 = vld [vmem:[%s11747_s0 + $0x250] ss:$72 sps:$4 sm:$0xff]  }
  0xa2   : > { %4886 = vmatpush2.bf16.msra.mxu1 %v8037_v21  ;;  %4774 = vmatprep.subr.bf16.mxu0 %v8048_v22  ;;  %v8135_v21 = vld [vmem:[%s11747_s0 + $0x258] ss:$72 sps:$4 sm:$0xff]  }
  0xa3   : > { %4887 = vmatprep.subr.bf16.mxu1 %v8051_v23  ;;  %v8136_v22 = vld [vmem:[%s9220_s24 + $0x9e0] ss:$16 sps:$4 sm:$0xff]  }
  0xa4   : > { %4623 = vmatmul.mubr.bf16.gmra.mxu0 %v8044_v24  ;;  %v8139_v23 = vld [vmem:[%s9220_s24 + $0xbe0] ss:$16 sps:$4 sm:$0xff]   ;;  %v8144_v24 = vld [vmem:[%s9220_s24 + $0x9c4] ss:$16 sps:$4 sm:$0xff]  }
  0xa5   : > { %4736 = vmatmul.mubr.bf16.gmra.mxu1 %v8045_v25  ;;  %4775 = vmatpush2.bf16.msra.mxu0 %v8046_v26  ;;  %v8147_v25 = vld [vmem:[%s9220_s24 + $0xbc4] ss:$16 sps:$4 sm:$0xff]  }
  0xa6   : > { %4888 = vmatpush2.bf16.msra.mxu1 %v8049_v27  ;;  %4776 = vmatprep.subr.bf16.mxu0 %v8054_v28  ;;  %v8148_v26 = vld [vmem:[%s11747_s0 + $0x2e4] ss:$72 sps:$4 sm:$0xff]   ;;  %v8142_v28 = vld [vmem:[%s9220_s24 + $0x9c0] ss:$16 sps:$4 sm:$0xff]  }
  0xa7   : > { %4889 = vmatprep.subr.bf16.mxu1 %v8057_v29  ;;  %4778 = vmatprep.mubr.bf16.mxu0 %v8060_v30  ;;  %v8150_v27 = vld [vmem:[%s11747_s0 + $0x2ec] ss:$72 sps:$4 sm:$0xff]   ;;  %v8145_v29 = vld [vmem:[%s9220_s24 + $0xbc0] ss:$16 sps:$4 sm:$0xff]  }
  0xa8   : > { %4891 = vmatprep.mubr.bf16.mxu1 %v8063_v31  ;;  %v8156_v30 = vld [vmem:[%s9220_s24 + $0x9a4] ss:$16 sps:$4 sm:$0xff]  }
  0xa9   : > { %4777 = vmatpush2.bf16.msra.mxu0 %v8052_v32  ;;  %v8159_v31 = vld [vmem:[%s9220_s24 + $0xba4] ss:$16 sps:$4 sm:$0xff]   ;;  %v8152_v32 = vld [vmem:[%s11747_s0 + $0x2e0] ss:$72 sps:$4 sm:$0xff]  }
  0xaa   : > { %4890 = vmatpush2.bf16.msra.mxu1 %v8055_v33  ;;  %4972 = vmatprep.subr.bf16.mxu0 %v8066_v34  ;;  %v8153_v33 = vld [vmem:[%s11747_s0 + $0x2e8] ss:$72 sps:$4 sm:$0xff]  }
  0xab   : > { %5085 = vmatprep.subr.bf16.mxu1 %v8069_v35  ;;  %v8154_v34 = vld [vmem:[%s9220_s24 + $0x9a0] ss:$16 sps:$4 sm:$0xff]  }
  0xac   : > { %4779 = vmatmul.mubr.bf16.vlgmr.msra.gmra.mxu0 %v8058_v36  ;;  %v8157_v35 = vld [vmem:[%s9220_s24 + $0xba0] ss:$16 sps:$4 sm:$0xff]   ;;  %v8162_v36 = vld [vmem:[%s9220_s24 + $0x984] ss:$16 sps:$4 sm:$0xff]  }
  0xad   : > { %4892 = vmatmul.mubr.bf16.vlgmr.msra.gmra.mxu1 %v8061_v37  ;;  %4973 = vmatpush1.bf16.msra.mxu0 %v8064_v38  ;;  %v8165_v37 = vld [vmem:[%s9220_s24 + $0xb84] ss:$16 sps:$4 sm:$0xff]  }
  0xae   : > { %5086 = vmatpush1.bf16.msra.mxu1 %v8067_v39  ;;  %4974 = vmatprep.subr.bf16.mxu0 %v8072_v40  ;;  %v8166_v38 = vld [vmem:[%s11747_s0 + $0x374] ss:$72 sps:$4 sm:$0xff]   ;;  %v8160_v40 = vld [vmem:[%s9220_s24 + $0x980] ss:$16 sps:$4 sm:$0xff]  }
  0xaf   : > { %5087 = vmatprep.subr.bf16.mxu1 %v8075_v41  ;;  %4788 = vmatprep.mubr.bf16.mxu0 %v8076_v42  ;;  %v8168_v39 = vld [vmem:[%s11747_s0 + $0x37c] ss:$72 sps:$4 sm:$0xff]   ;;  %v8163_v41 = vld [vmem:[%s9220_s24 + $0xb80] ss:$16 sps:$4 sm:$0xff]  }
  0xb0   : > { %4901 = vmatprep.mubr.bf16.mxu1 %v8078_v43  ;;  %v8174_v42 = vld [vmem:[%s9220_s24 + $0x964] ss:$16 sps:$4 sm:$0xff]  }
  0xb1   : > { %4975 = vmatpush1.bf16.msra.mxu0 %v8070_v44  ;;  %v8177_v43 = vld [vmem:[%s9220_s24 + $0xb64] ss:$16 sps:$4 sm:$0xff]   ;;  %v8170_v44 = vld [vmem:[%s11747_s0 + $0x370] ss:$72 sps:$4 sm:$0xff]  }
  0xb2   : > { %5088 = vmatpush1.bf16.msra.mxu1 %v8073_v45  ;;  %4976 = vmatprep.subr.bf16.mxu0 %v8084_v46  ;;  %v8171_v45 = vld [vmem:[%s11747_s0 + $0x378] ss:$72 sps:$4 sm:$0xff]  }
  0xb3   : > { %5089 = vmatprep.subr.bf16.mxu1 %v8087_v47  ;;  %v8172_v46 = vld [vmem:[%s9220_s24 + $0x960] ss:$16 sps:$4 sm:$0xff]  }
  0xb4   : > { %4789 = vmatmul.mubr.bf16.gmra.mxu0 %v8080_v48  ;;  %v8175_v47 = vld [vmem:[%s9220_s24 + $0xb60] ss:$16 sps:$4 sm:$0xff]   ;;  %v8180_v48 = vld [vmem:[%s9220_s24 + $0x944] ss:$16 sps:$4 sm:$0xff]  }
  0xb5   : > { %4902 = vmatmul.mubr.bf16.gmra.mxu1 %v8081_v49  ;;  %4977 = vmatpush1.bf16.msra.mxu0 %v8082_v50  ;;  %v8183_v49 = vld [vmem:[%s9220_s24 + $0xb44] ss:$16 sps:$4 sm:$0xff]  }
  0xb6   : > { %5090 = vmatpush1.bf16.msra.mxu1 %v8085_v51  ;;  %4978 = vmatprep.subr.bf16.mxu0 %v8090_v52  ;;  %v8184_v50 = vld [vmem:[%s11747_s0 + $0x404] ss:$72 sps:$4 sm:$0xff]   ;;  %v8178_v52 = vld [vmem:[%s9220_s24 + $0x940] ss:$16 sps:$4 sm:$0xff]  }
  0xb7   : > { %5091 = vmatprep.subr.bf16.mxu1 %v8093_v53  ;;  %4798 = vmatprep.mubr.bf16.mxu0 %v8094_v54  ;;  %v8186_v51 = vld [vmem:[%s11747_s0 + $0x40c] ss:$72 sps:$4 sm:$0xff]   ;;  %v8181_v53 = vld [vmem:[%s9220_s24 + $0xb40] ss:$16 sps:$4 sm:$0xff]  }
  0xb8   : > { %4911 = vmatprep.mubr.bf16.mxu1 %v8096_v55  ;;  %v8192_v54 = vld [vmem:[%s9220_s24 + $0x924] ss:$16 sps:$4 sm:$0xff]  }
  0xb9   : > { %4979 = vmatpush1.bf16.msra.mxu0 %v8088_v56  ;;  %v8195_v55 = vld [vmem:[%s9220_s24 + $0xb24] ss:$16 sps:$4 sm:$0xff]   ;;  %v8188_v56 = vld [vmem:[%s11747_s0 + $0x400] ss:$72 sps:$4 sm:$0xff]  }
  0xba   : > { %5092 = vmatpush1.bf16.msra.mxu1 %v8091_v57  ;;  %4980 = vmatprep.subr.bf16.mxu0 %v8102_v58  ;;  %v8189_v57 = vld [vmem:[%s11747_s0 + $0x408] ss:$72 sps:$4 sm:$0xff]  }
  0xbb   : > { %5093 = vmatprep.subr.bf16.mxu1 %v8105_v59  ;;  %v8190_v58 = vld [vmem:[%s9220_s24 + $0x920] ss:$16 sps:$4 sm:$0xff]  }
  0xbc   : > { %4799 = vmatmul.mubr.bf16.gmra.mxu0 %v8098_v60  ;;  %v8193_v59 = vld [vmem:[%s9220_s24 + $0xb20] ss:$16 sps:$4 sm:$0xff]   ;;  %v8198_v60 = vld [vmem:[%s9220_s24 + $0x904] ss:$16 sps:$4 sm:$0xff]  }
  0xbd   : > { %4912 = vmatmul.mubr.bf16.gmra.mxu1 %v8099_v61  ;;  %4981 = vmatpush1.bf16.msra.mxu0 %v8100_v62  ;;  %v8201_v61 = vld [vmem:[%s9220_s24 + $0xb04] ss:$16 sps:$4 sm:$0xff]  }
  0xbe   : > { %5094 = vmatpush1.bf16.msra.mxu1 %v8103_v63  ;;  %4982 = vmatprep.subr.bf16.mxu0 %v8108_v0  ;;  %v8204_v62 = vld [vmem:[%s11747_s0 + $0x24] ss:$72 sps:$4 sm:$0xff]   ;;  %v8196_v0 = vld [vmem:[%s9220_s24 + $0x900] ss:$16 sps:$4 sm:$0xff]  }
  0xbf   : > { %5095 = vmatprep.subr.bf16.mxu1 %v8111_v1  ;;  %4808 = vmatprep.mubr.bf16.mxu0 %v8112_v2  ;;  %v8207_v63 = vld [vmem:[%s11747_s0 + $0x2c] ss:$72 sps:$4 sm:$0xff]   ;;  %v8199_v1 = vld [vmem:[%s9220_s24 + $0xb00] ss:$16 sps:$4 sm:$0xff]  }
  0xc0   : > { %4921 = vmatprep.mubr.bf16.mxu1 %v8114_v3  ;;  %v8210_v2 = vld [vmem:[%s9220_s24 + $0xce4] ss:$16 sps:$4 sm:$0xff]  }
  0xc1   : > { %4983 = vmatpush1.bf16.msra.mxu0 %v8106_v4  ;;  %v8213_v3 = vld [vmem:[%s9220_s24 + $0xee4] ss:$16 sps:$4 sm:$0xff]   ;;  %v8202_v4 = vld [vmem:[%s11747_s0 + $0x20] ss:$72 sps:$4 sm:$0xff]  }
  0xc2   : > { %5096 = vmatpush1.bf16.msra.mxu1 %v8109_v5  ;;  %4984 = vmatprep.subr.bf16.mxu0 %v8120_v6  ;;  %v8205_v5 = vld [vmem:[%s11747_s0 + $0x28] ss:$72 sps:$4 sm:$0xff]  }
  0xc3   : > { %5097 = vmatprep.subr.bf16.mxu1 %v8123_v7  ;;  %v8208_v6 = vld [vmem:[%s9220_s24 + $0xce0] ss:$16 sps:$4 sm:$0xff]  }
  0xc4   : > { %4809 = vmatmul.mubr.bf16.gmra.mxu0 %v8116_v8  ;;  %v8211_v7 = vld [vmem:[%s9220_s24 + $0xee0] ss:$16 sps:$4 sm:$0xff]   ;;  %v8216_v8 = vld [vmem:[%s9220_s24 + $0xcc4] ss:$16 sps:$4 sm:$0xff]  }
  0xc5   : > { %4922 = vmatmul.mubr.bf16.gmra.mxu1 %v8117_v9  ;;  %4985 = vmatpush1.bf16.msra.mxu0 %v8118_v10  ;;  %v8219_v9 = vld [vmem:[%s9220_s24 + $0xec4] ss:$16 sps:$4 sm:$0xff]  }
  0xc6   : > { %5098 = vmatpush1.bf16.msra.mxu1 %v8121_v11  ;;  %4986 = vmatprep.subr.bf16.mxu0 %v8126_v12  ;;  %v8220_v10 = vld [vmem:[%s11747_s0 + $0xb4] ss:$72 sps:$4 sm:$0xff]   ;;  %v8214_v12 = vld [vmem:[%s9220_s24 + $0xcc0] ss:$16 sps:$4 sm:$0xff]  }
  0xc7   : > { %5099 = vmatprep.subr.bf16.mxu1 %v8129_v13  ;;  %4818 = vmatprep.mubr.bf16.mxu0 %v8130_v14  ;;  %v8222_v11 = vld [vmem:[%s11747_s0 + $0xbc] ss:$72 sps:$4 sm:$0xff]   ;;  %v8217_v13 = vld [vmem:[%s9220_s24 + $0xec0] ss:$16 sps:$4 sm:$0xff]  }
  0xc8   : > { %4931 = vmatprep.mubr.bf16.mxu1 %v8132_v15  ;;  %v8228_v14 = vld [vmem:[%s9220_s24 + $0xca4] ss:$16 sps:$4 sm:$0xff]  }
  0xc9   : > { %4987 = vmatpush1.bf16.msra.mxu0 %v8124_v16  ;;  %v8231_v15 = vld [vmem:[%s9220_s24 + $0xea4] ss:$16 sps:$4 sm:$0xff]   ;;  %v8224_v16 = vld [vmem:[%s11747_s0 + $0xb0] ss:$72 sps:$4 sm:$0xff]  }
  0xca   : > { %5100 = vmatpush1.bf16.msra.mxu1 %v8127_v17  ;;  %4988 = vmatprep.subr.bf16.mxu0 %v8138_v18  ;;  %v8225_v17 = vld [vmem:[%s11747_s0 + $0xb8] ss:$72 sps:$4 sm:$0xff]  }
  0xcb   : > { %5101 = vmatprep.subr.bf16.mxu1 %v8141_v19  ;;  %v8226_v18 = vld [vmem:[%s9220_s24 + $0xca0] ss:$16 sps:$4 sm:$0xff]  }
  0xcc   : > { %4819 = vmatmul.mubr.bf16.gmra.mxu0 %v8134_v20  ;;  %v8229_v19 = vld [vmem:[%s9220_s24 + $0xea0] ss:$16 sps:$4 sm:$0xff]   ;;  %v8234_v20 = vld [vmem:[%s9220_s24 + $0xc84] ss:$16 sps:$4 sm:$0xff]  }
  0xcd   : > { %4932 = vmatmul.mubr.bf16.gmra.mxu1 %v8135_v21  ;;  %4989 = vmatpush2.bf16.msra.mxu0 %v8136_v22  ;;  %v8237_v21 = vld [vmem:[%s9220_s24 + $0xe84] ss:$16 sps:$4 sm:$0xff]  }
  0xce   : > { %5102 = vmatpush2.bf16.msra.mxu1 %v8139_v23  ;;  %4990 = vmatprep.subr.bf16.mxu0 %v8144_v24  ;;  %v8238_v22 = vld [vmem:[%s11747_s0 + $0x144] ss:$72 sps:$4 sm:$0xff]   ;;  %v8232_v24 = vld [vmem:[%s9220_s24 + $0xc80] ss:$16 sps:$4 sm:$0xff]  }
  0xcf   : > { %5103 = vmatprep.subr.bf16.mxu1 %v8147_v25  ;;  %4828 = vmatprep.mubr.bf16.mxu0 %v8148_v26  ;;  %v8240_v23 = vld [vmem:[%s11747_s0 + $0x14c] ss:$72 sps:$4 sm:$0xff]   ;;  %v8235_v25 = vld [vmem:[%s9220_s24 + $0xe80] ss:$16 sps:$4 sm:$0xff]  }
  0xd0   : > { %4941 = vmatprep.mubr.bf16.mxu1 %v8150_v27  ;;  %v8246_v26 = vld [vmem:[%s9220_s24 + $0xc64] ss:$16 sps:$4 sm:$0xff]  }
  0xd1   : > { %4991 = vmatpush2.bf16.msra.mxu0 %v8142_v28  ;;  %v8249_v27 = vld [vmem:[%s9220_s24 + $0xe64] ss:$16 sps:$4 sm:$0xff]   ;;  %v8242_v28 = vld [vmem:[%s11747_s0 + $0x140] ss:$72 sps:$4 sm:$0xff]  }
  0xd2   : > { %5104 = vmatpush2.bf16.msra.mxu1 %v8145_v29  ;;  %4992 = vmatprep.subr.bf16.mxu0 %v8156_v30  ;;  %v8243_v29 = vld [vmem:[%s11747_s0 + $0x148] ss:$72 sps:$4 sm:$0xff]  }
  0xd3   : > { %5105 = vmatprep.subr.bf16.mxu1 %v8159_v31  ;;  %v8244_v30 = vld [vmem:[%s9220_s24 + $0xc60] ss:$16 sps:$4 sm:$0xff]  }
  0xd4   : > { %4829 = vmatmul.mubr.bf16.gmra.mxu0 %v8152_v32  ;;  %v8247_v31 = vld [vmem:[%s9220_s24 + $0xe60] ss:$16 sps:$4 sm:$0xff]   ;;  %v8252_v32 = vld [vmem:[%s9220_s24 + $0xc44] ss:$16 sps:$4 sm:$0xff]  }
  0xd5   : > { %4942 = vmatmul.mubr.bf16.gmra.mxu1 %v8153_v33  ;;  %4993 = vmatpush2.bf16.msra.mxu0 %v8154_v34  ;;  %v8255_v33 = vld [vmem:[%s9220_s24 + $0xe44] ss:$16 sps:$4 sm:$0xff]  }
  0xd6   : > { %5106 = vmatpush2.bf16.msra.mxu1 %v8157_v35  ;;  %4994 = vmatprep.subr.bf16.mxu0 %v8162_v36  ;;  %v8256_v34 = vld [vmem:[%s11747_s0 + $0x1d4] ss:$72 sps:$4 sm:$0xff]   ;;  %v8250_v36 = vld [vmem:[%s9220_s24 + $0xc40] ss:$16 sps:$4 sm:$0xff]  }
  0xd7   : > { %5107 = vmatprep.subr.bf16.mxu1 %v8165_v37  ;;  %4838 = vmatprep.mubr.bf16.mxu0 %v8166_v38  ;;  %v8258_v35 = vld [vmem:[%s11747_s0 + $0x1dc] ss:$72 sps:$4 sm:$0xff]   ;;  %v8253_v37 = vld [vmem:[%s9220_s24 + $0xe40] ss:$16 sps:$4 sm:$0xff]  }
  0xd8   : > { %4951 = vmatprep.mubr.bf16.mxu1 %v8168_v39  ;;  %v8264_v38 = vld [vmem:[%s9220_s24 + $0xc24] ss:$16 sps:$4 sm:$0xff]  }
  0xd9   : > { %4995 = vmatpush2.bf16.msra.mxu0 %v8160_v40  ;;  %v8267_v39 = vld [vmem:[%s9220_s24 + $0xe24] ss:$16 sps:$4 sm:$0xff]   ;;  %v8260_v40 = vld [vmem:[%s11747_s0 + $0x1d0] ss:$72 sps:$4 sm:$0xff]  }
  0xda   : > { %5108 = vmatpush2.bf16.msra.mxu1 %v8163_v41  ;;  %4996 = vmatprep.subr.bf16.mxu0 %v8174_v42  ;;  %v8261_v41 = vld [vmem:[%s11747_s0 + $0x1d8] ss:$72 sps:$4 sm:$0xff]  }
  0xdb   : > { %5109 = vmatprep.subr.bf16.mxu1 %v8177_v43  ;;  %v8262_v42 = vld [vmem:[%s9220_s24 + $0xc20] ss:$16 sps:$4 sm:$0xff]  }
  0xdc   : > { %4839 = vmatmul.mubr.bf16.gmra.mxu0 %v8170_v44  ;;  %v8265_v43 = vld [vmem:[%s9220_s24 + $0xe20] ss:$16 sps:$4 sm:$0xff]   ;;  %v8270_v44 = vld [vmem:[%s9220_s24 + $0xc04] ss:$16 sps:$4 sm:$0xff]  }
  0xdd   : > { %4952 = vmatmul.mubr.bf16.gmra.mxu1 %v8171_v45  ;;  %4997 = vmatpush2.bf16.msra.mxu0 %v8172_v46  ;;  %v8273_v45 = vld [vmem:[%s9220_s24 + $0xe04] ss:$16 sps:$4 sm:$0xff]  }
  0xde   : > { %5110 = vmatpush2.bf16.msra.mxu1 %v8175_v47  ;;  %4998 = vmatprep.subr.bf16.mxu0 %v8180_v48  ;;  %v8274_v46 = vld [vmem:[%s11747_s0 + $0x264] ss:$72 sps:$4 sm:$0xff]   ;;  %v8268_v48 = vld [vmem:[%s9220_s24 + $0xc00] ss:$16 sps:$4 sm:$0xff]  }
  0xdf   : > { %5111 = vmatprep.subr.bf16.mxu1 %v8183_v49  ;;  %4848 = vmatprep.mubr.bf16.mxu0 %v8184_v50  ;;  %v8276_v47 = vld [vmem:[%s11747_s0 + $0x26c] ss:$72 sps:$4 sm:$0xff]   ;;  %v8271_v49 = vld [vmem:[%s9220_s24 + $0xe00] ss:$16 sps:$4 sm:$0xff]  }
  0xe0   : > { %4961 = vmatprep.mubr.bf16.mxu1 %v8186_v51  ;;  %v8282_v50 = vld [vmem:[%s9220_s24 + $0xde4] ss:$16 sps:$4 sm:$0xff]  }
  0xe1   : > { %4999 = vmatpush2.bf16.msra.mxu0 %v8178_v52  ;;  %v8285_v51 = vld [vmem:[%s9220_s24 + $0xfe4] ss:$16 sps:$4 sm:$0xff]   ;;  %v8278_v52 = vld [vmem:[%s11747_s0 + $0x260] ss:$72 sps:$4 sm:$0xff]  }
  0xe2   : > { %5112 = vmatpush2.bf16.msra.mxu1 %v8181_v53  ;;  %5000 = vmatprep.subr.bf16.mxu0 %v8192_v54  ;;  %v8279_v53 = vld [vmem:[%s11747_s0 + $0x268] ss:$72 sps:$4 sm:$0xff]  }
  0xe3   : > { %5113 = vmatprep.subr.bf16.mxu1 %v8195_v55  ;;  %v8280_v54 = vld [vmem:[%s9220_s24 + $0xde0] ss:$16 sps:$4 sm:$0xff]  }
  0xe4   : > { %4849 = vmatmul.mubr.bf16.gmra.mxu0 %v8188_v56  ;;  %v8283_v55 = vld [vmem:[%s9220_s24 + $0xfe0] ss:$16 sps:$4 sm:$0xff]   ;;  %v8288_v56 = vld [vmem:[%s9220_s24 + $0xdc4] ss:$16 sps:$4 sm:$0xff]  }
  0xe5   : > { %4962 = vmatmul.mubr.bf16.gmra.mxu1 %v8189_v57  ;;  %5001 = vmatpush2.bf16.msra.mxu0 %v8190_v58  ;;  %v8291_v57 = vld [vmem:[%s9220_s24 + $0xfc4] ss:$16 sps:$4 sm:$0xff]  }
  0xe6   : > { %5114 = vmatpush2.bf16.msra.mxu1 %v8193_v59  ;;  %5002 = vmatprep.subr.bf16.mxu0 %v8198_v60  ;;  %v8292_v58 = vld [vmem:[%s11747_s0 + $0x2f4] ss:$72 sps:$4 sm:$0xff]   ;;  %v8286_v60 = vld [vmem:[%s9220_s24 + $0xdc0] ss:$16 sps:$4 sm:$0xff]  }
  0xe7   : > { %5115 = vmatprep.subr.bf16.mxu1 %v8201_v61  ;;  %5004 = vmatprep.mubr.bf16.mxu0 %v8204_v62  ;;  %v8294_v59 = vld [vmem:[%s11747_s0 + $0x2fc] ss:$72 sps:$4 sm:$0xff]   ;;  %v8289_v61 = vld [vmem:[%s9220_s24 + $0xfc0] ss:$16 sps:$4 sm:$0xff]  }
  0xe8   : > { %5117 = vmatprep.mubr.bf16.mxu1 %v8207_v63  ;;  %v8300_v62 = vld [vmem:[%s9220_s24 + $0xda4] ss:$16 sps:$4 sm:$0xff]  }
  0xe9   : > { %5003 = vmatpush2.bf16.msra.mxu0 %v8196_v0  ;;  %v8303_v63 = vld [vmem:[%s9220_s24 + $0xfa4] ss:$16 sps:$4 sm:$0xff]   ;;  %v8296_v0 = vld [vmem:[%s11747_s0 + $0x2f0] ss:$72 sps:$4 sm:$0xff]  }
  0xea   : > { %5116 = vmatpush2.bf16.msra.mxu1 %v8199_v1  ;;  %5198 = vmatprep.subr.bf16.mxu0 %v8210_v2  ;;  %v8297_v1 = vld [vmem:[%s11747_s0 + $0x2f8] ss:$72 sps:$4 sm:$0xff]  }
  0xeb   : > { %5311 = vmatprep.subr.bf16.mxu1 %v8213_v3  ;;  %v8298_v2 = vld [vmem:[%s9220_s24 + $0xda0] ss:$16 sps:$4 sm:$0xff]  }
  0xec   : > { %5005 = vmatmul.mubr.bf16.vlgmr.msra.gmra.mxu0 %v8202_v4  ;;  %v8301_v3 = vld [vmem:[%s9220_s24 + $0xfa0] ss:$16 sps:$4 sm:$0xff]   ;;  %v8306_v4 = vld [vmem:[%s9220_s24 + $0xd84] ss:$16 sps:$4 sm:$0xff]  }
  0xed   : > { %5118 = vmatmul.mubr.bf16.vlgmr.msra.gmra.mxu1 %v8205_v5  ;;  %5199 = vmatpush1.bf16.msra.mxu0 %v8208_v6  ;;  %v8309_v5 = vld [vmem:[%s9220_s24 + $0xf84] ss:$16 sps:$4 sm:$0xff]  }
  0xee   : > { %5312 = vmatpush1.bf16.msra.mxu1 %v8211_v7  ;;  %5200 = vmatprep.subr.bf16.mxu0 %v8216_v8  ;;  %v8310_v6 = vld [vmem:[%s11747_s0 + $0x384] ss:$72 sps:$4 sm:$0xff]   ;;  %v8304_v8 = vld [vmem:[%s9220_s24 + $0xd80] ss:$16 sps:$4 sm:$0xff]  }
  0xef   : > { %5313 = vmatprep.subr.bf16.mxu1 %v8219_v9  ;;  %5014 = vmatprep.mubr.bf16.mxu0 %v8220_v10  ;;  %v8312_v7 = vld [vmem:[%s11747_s0 + $0x38c] ss:$72 sps:$4 sm:$0xff]   ;;  %v8307_v9 = vld [vmem:[%s9220_s24 + $0xf80] ss:$16 sps:$4 sm:$0xff]  }
  0xf0   : > { %5127 = vmatprep.mubr.bf16.mxu1 %v8222_v11  ;;  %v8318_v10 = vld [vmem:[%s9220_s24 + $0xd64] ss:$16 sps:$4 sm:$0xff]  }
  0xf1   : > { %5201 = vmatpush1.bf16.msra.mxu0 %v8214_v12  ;;  %v8321_v11 = vld [vmem:[%s9220_s24 + $0xf64] ss:$16 sps:$4 sm:$0xff]   ;;  %v8314_v12 = vld [vmem:[%s11747_s0 + $0x380] ss:$72 sps:$4 sm:$0xff]  }
  0xf2   : > { %5314 = vmatpush1.bf16.msra.mxu1 %v8217_v13  ;;  %5202 = vmatprep.subr.bf16.mxu0 %v8228_v14  ;;  %v8315_v13 = vld [vmem:[%s11747_s0 + $0x388] ss:$72 sps:$4 sm:$0xff]  }
  0xf3   : > { %5315 = vmatprep.subr.bf16.mxu1 %v8231_v15  ;;  %v8316_v14 = vld [vmem:[%s9220_s24 + $0xd60] ss:$16 sps:$4 sm:$0xff]  }
  0xf4   : > { %5015 = vmatmul.mubr.bf16.gmra.mxu0 %v8224_v16  ;;  %v8319_v15 = vld [vmem:[%s9220_s24 + $0xf60] ss:$16 sps:$4 sm:$0xff]   ;;  %v8324_v16 = vld [vmem:[%s9220_s24 + $0xd44] ss:$16 sps:$4 sm:$0xff]  }
  0xf5   : > { %5128 = vmatmul.mubr.bf16.gmra.mxu1 %v8225_v17  ;;  %5203 = vmatpush1.bf16.msra.mxu0 %v8226_v18  ;;  %v8327_v17 = vld [vmem:[%s9220_s24 + $0xf44] ss:$16 sps:$4 sm:$0xff]  }
  0xf6   : > { %5316 = vmatpush1.bf16.msra.mxu1 %v8229_v19  ;;  %5204 = vmatprep.subr.bf16.mxu0 %v8234_v20  ;;  %v8328_v18 = vld [vmem:[%s11747_s0 + $0x414] ss:$72 sps:$4 sm:$0xff]   ;;  %v8322_v20 = vld [vmem:[%s9220_s24 + $0xd40] ss:$16 sps:$4 sm:$0xff]  }
  0xf7   : > { %5317 = vmatprep.subr.bf16.mxu1 %v8237_v21  ;;  %5024 = vmatprep.mubr.bf16.mxu0 %v8238_v22  ;;  %v8330_v19 = vld [vmem:[%s11747_s0 + $0x41c] ss:$72 sps:$4 sm:$0xff]   ;;  %v8325_v21 = vld [vmem:[%s9220_s24 + $0xf40] ss:$16 sps:$4 sm:$0xff]  }
  0xf8   : > { %5137 = vmatprep.mubr.bf16.mxu1 %v8240_v23  ;;  %v8336_v22 = vld [vmem:[%s9220_s24 + $0xd24] ss:$16 sps:$4 sm:$0xff]  }
  0xf9   : > { %5205 = vmatpush1.bf16.msra.mxu0 %v8232_v24  ;;  %v8339_v23 = vld [vmem:[%s9220_s24 + $0xf24] ss:$16 sps:$4 sm:$0xff]   ;;  %v8332_v24 = vld [vmem:[%s11747_s0 + $0x410] ss:$72 sps:$4 sm:$0xff]  }
  0xfa   : > { %5318 = vmatpush1.bf16.msra.mxu1 %v8235_v25  ;;  %5206 = vmatprep.subr.bf16.mxu0 %v8246_v26  ;;  %v8333_v25 = vld [vmem:[%s11747_s0 + $0x418] ss:$72 sps:$4 sm:$0xff]  }
  0xfb   : > { %5319 = vmatprep.subr.bf16.mxu1 %v8249_v27  ;;  %v8334_v26 = vld [vmem:[%s9220_s24 + $0xd20] ss:$16 sps:$4 sm:$0xff]  }
  0xfc   : > { %5025 = vmatmul.mubr.bf16.gmra.mxu0 %v8242_v28  ;;  %v8337_v27 = vld [vmem:[%s9220_s24 + $0xf20] ss:$16 sps:$4 sm:$0xff]   ;;  %v8342_v28 = vld [vmem:[%s9220_s24 + $0xd04] ss:$16 sps:$4 sm:$0xff]  }
  0xfd   : > { %5138 = vmatmul.mubr.bf16.gmra.mxu1 %v8243_v29  ;;  %5207 = vmatpush1.bf16.msra.mxu0 %v8244_v30  ;;  %v8345_v29 = vld [vmem:[%s9220_s24 + $0xf04] ss:$16 sps:$4 sm:$0xff]  }
  0xfe   : > { %5320 = vmatpush1.bf16.msra.mxu1 %v8247_v31  ;;  %5208 = vmatprep.subr.bf16.mxu0 %v8252_v32  ;;  %v8348_v30 = vld [vmem:[%s11747_s0 + $0x34] ss:$72 sps:$4 sm:$0xff]   ;;  %v8340_v32 = vld [vmem:[%s9220_s24 + $0xd00] ss:$16 sps:$4 sm:$0xff]  }
  0xff   : > { %5321 = vmatprep.subr.bf16.mxu1 %v8255_v33  ;;  %5034 = vmatprep.mubr.bf16.mxu0 %v8256_v34  ;;  %v8351_v31 = vld [vmem:[%s11747_s0 + $0x3c] ss:$72 sps:$4 sm:$0xff]   ;;  %v8343_v33 = vld [vmem:[%s9220_s24 + $0xf00] ss:$16 sps:$4 sm:$0xff]  }
 0x100   : > { %5147 = vmatprep.mubr.bf16.mxu1 %v8258_v35  ;;  %v8354_v34 = vld [vmem:[%s9220_s24 + $0x10e4] ss:$16 sps:$4 sm:$0xff]   ;;  %v8357_v35 = vld [vmem:[%s9220_s24 + $0xec] ss:$16 sps:$4 sm:$0xff]  }
 0x101   : > { %5209 = vmatpush1.bf16.msra.mxu0 %v8250_v36  ;;  %v8346_v36 = vld [vmem:[%s11747_s0 + $0x30] ss:$72 sps:$4 sm:$0xff]  }
 0x102   : > { %5322 = vmatpush1.bf16.msra.mxu1 %v8253_v37  ;;  %5210 = vmatprep.subr.bf16.mxu0 %v8264_v38  ;;  %v8349_v37 = vld [vmem:[%s11747_s0 + $0x38] ss:$72 sps:$4 sm:$0xff]  }
 0x103   : > { %5323 = vmatprep.subr.bf16.mxu1 %v8267_v39  ;;  %v8352_v38 = vld [vmem:[%s9220_s24 + $0x10e0] ss:$16 sps:$4 sm:$0xff]   ;;  %v8355_v39 = vld [vmem:[%s9220_s24 + $0xe8] ss:$16 sps:$4 sm:$0xff]  }
 0x104   : > { %5035 = vmatmul.mubr.bf16.gmra.mxu0 %v8260_v40  ;;  %v8360_v40 = vld [vmem:[%s9220_s24 + $0x10c4] ss:$16 sps:$4 sm:$0xff]  }
 0x105   : > { %5148 = vmatmul.mubr.bf16.gmra.mxu1 %v8261_v41  ;;  %5211 = vmatpush1.bf16.msra.mxu0 %v8262_v42  ;;  %v8363_v41 = vld [vmem:[%s9220_s24 + $0xcc] ss:$16 sps:$4 sm:$0xff]  }
 0x106   : > { %5324 = vmatpush1.bf16.msra.mxu1 %v8265_v43  ;;  %5212 = vmatprep.subr.bf16.mxu0 %v8270_v44  ;;  %v8364_v42 = vld [vmem:[%s11747_s0 + $0xc4] ss:$72 sps:$4 sm:$0xff]  }
 0x107   : > { %5325 = vmatprep.subr.bf16.mxu1 %v8273_v45  ;;  %5044 = vmatprep.mubr.bf16.mxu0 %v8274_v46  ;;  %v8366_v43 = vld [vmem:[%s11747_s0 + $0xcc] ss:$72 sps:$4 sm:$0xff]   ;;  %v8358_v46 = vld [vmem:[%s9220_s24 + $0x10c0] ss:$16 sps:$4 sm:$0xff]  }
 0x108   : > { %5157 = vmatprep.mubr.bf16.mxu1 %v8276_v47 }
 0x109   : > { %5213 = vmatpush1.bf16.msra.mxu0 %v8268_v48  ;;  %v8361_v48 = vld [vmem:[%s9220_s24 + $0xc8] ss:$16 sps:$4 sm:$0xff]  }
 0x10a   : > { %5326 = vmatpush1.bf16.msra.mxu1 %v8271_v49  ;;  %5214 = vmatprep.subr.bf16.mxu0 %v8282_v50  ;;  %v8372_v49 = vld [vmem:[%s9220_s24 + $0x10a4] ss:$16 sps:$4 sm:$0xff]  }
 0x10b   : > { %5327 = vmatprep.subr.bf16.mxu1 %v8285_v51 }
 0x10c   : > { %5045 = vmatmul.mubr.bf16.gmra.mxu0 %v8278_v52  ;;  %v8375_v52 = vld [vmem:[%s9220_s24 + $0xac] ss:$16 sps:$4 sm:$0xff]  }
 0x10d   : > { %5158 = vmatmul.mubr.bf16.gmra.mxu1 %v8279_v53  ;;  %5215 = vmatpush2.bf16.msra.mxu0 %v8280_v54  ;;  %v8368_v54 = vld [vmem:[%s11747_s0 + $0xc0] ss:$72 sps:$4 sm:$0xff]  }
 0x10e   : > { %5328 = vmatpush2.bf16.msra.mxu1 %v8283_v55  ;;  %5216 = vmatprep.subr.bf16.mxu0 %v8288_v56  ;;  %v8369_v55 = vld [vmem:[%s11747_s0 + $0xc8] ss:$72 sps:$4 sm:$0xff]  }
 0x10f   : > { %5329 = vmatprep.subr.bf16.mxu1 %v8291_v57  ;;  %5054 = vmatprep.mubr.bf16.mxu0 %v8292_v58  ;;  %v8370_v58 = vld [vmem:[%s9220_s24 + $0x10a0] ss:$16 sps:$4 sm:$0xff]  }
 0x110   : > { %5167 = vmatprep.mubr.bf16.mxu1 %v8294_v59  ;;  %v8373_v59 = vld [vmem:[%s9220_s24 + $0xa8] ss:$16 sps:$4 sm:$0xff]  }
 0x111   : > { %5217 = vmatpush2.bf16.msra.mxu0 %v8286_v60 }
 0x112   : > { %5330 = vmatpush2.bf16.msra.mxu1 %v8289_v61  ;;  %5218 = vmatprep.subr.bf16.mxu0 %v8300_v62  ;;  %v8378_v61 = vld [vmem:[%s9220_s24 + $0x1084] ss:$16 sps:$4 sm:$0xff]  }
 0x113   : > { %5331 = vmatprep.subr.bf16.mxu1 %v8303_v63 }
 0x114   : > { %5055 = vmatmul.mubr.bf16.gmra.mxu0 %v8296_v0  ;;  %v8381_v0 = vld [vmem:[%s9220_s24 + $0x8c] ss:$16 sps:$4 sm:$0xff]  }
 0x115   : > { %5168 = vmatmul.mubr.bf16.gmra.mxu1 %v8297_v1  ;;  %5219 = vmatpush2.bf16.msra.mxu0 %v8298_v2  ;;  %v8382_v2 = vld [vmem:[%s11747_s0 + $0x154] ss:$72 sps:$4 sm:$0xff]  }
 0x116   : > { %5332 = vmatpush2.bf16.msra.mxu1 %v8301_v3  ;;  %5220 = vmatprep.subr.bf16.mxu0 %v8306_v4  ;;  %v8384_v3 = vld [vmem:[%s11747_s0 + $0x15c] ss:$72 sps:$4 sm:$0xff]  }
 0x117   : > { %5333 = vmatprep.subr.bf16.mxu1 %v8309_v5  ;;  %5064 = vmatprep.mubr.bf16.mxu0 %v8310_v6  ;;  %v8376_v6 = vld [vmem:[%s9220_s24 + $0x1080] ss:$16 sps:$4 sm:$0xff]  }
 0x118   : > { %5177 = vmatprep.mubr.bf16.mxu1 %v8312_v7  ;;  %v8379_v7 = vld [vmem:[%s9220_s24 + $0x88] ss:$16 sps:$4 sm:$0xff]  }
 0x119   : > { %5221 = vmatpush2.bf16.msra.mxu0 %v8304_v8 }
 0x11a   : > { %5334 = vmatpush2.bf16.msra.mxu1 %v8307_v9  ;;  %5222 = vmatprep.subr.bf16.mxu0 %v8318_v10  ;;  %v8390_v9 = vld [vmem:[%s9220_s24 + $0x1064] ss:$16 sps:$4 sm:$0xff]  }
 0x11b   : > { %5335 = vmatprep.subr.bf16.mxu1 %v8321_v11 }
 0x11c   : > { %5065 = vmatmul.mubr.bf16.gmra.mxu0 %v8314_v12  ;;  %v8393_v12 = vld [vmem:[%s9220_s24 + $0x6c] ss:$16 sps:$4 sm:$0xff]  }
 0x11d   : > { %5178 = vmatmul.mubr.bf16.gmra.mxu1 %v8315_v13  ;;  %5223 = vmatpush2.bf16.msra.mxu0 %v8316_v14  ;;  %v8386_v14 = vld [vmem:[%s11747_s0 + $0x150] ss:$72 sps:$4 sm:$0xff]  }
 0x11e   : > { %5336 = vmatpush2.bf16.msra.mxu1 %v8319_v15  ;;  %5224 = vmatprep.subr.bf16.mxu0 %v8324_v16  ;;  %v8387_v15 = vld [vmem:[%s11747_s0 + $0x158] ss:$72 sps:$4 sm:$0xff]  }
 0x11f   : > { %5337 = vmatprep.subr.bf16.mxu1 %v8327_v17  ;;  %5074 = vmatprep.mubr.bf16.mxu0 %v8328_v18  ;;  %v8388_v18 = vld [vmem:[%s9220_s24 + $0x1060] ss:$16 sps:$4 sm:$0xff]  }
 0x120   : > { %5187 = vmatprep.mubr.bf16.mxu1 %v8330_v19  ;;  %v8391_v19 = vld [vmem:[%s9220_s24 + $0x68] ss:$16 sps:$4 sm:$0xff]  }
 0x121   : > { %5225 = vmatpush2.bf16.msra.mxu0 %v8322_v20 }
 0x122   : > { %5338 = vmatpush2.bf16.msra.mxu1 %v8325_v21  ;;  %5226 = vmatprep.subr.bf16.mxu0 %v8336_v22  ;;  %v8396_v21 = vld [vmem:[%s9220_s24 + $0x1044] ss:$16 sps:$4 sm:$0xff]  }
 0x123   : > { %5339 = vmatprep.subr.bf16.mxu1 %v8339_v23 }
 0x124   : > { %5075 = vmatmul.mubr.bf16.gmra.mxu0 %v8332_v24  ;;  %v8399_v24 = vld [vmem:[%s9220_s24 + $0x4c] ss:$16 sps:$4 sm:$0xff]  }
 0x125   : > { %5188 = vmatmul.mubr.bf16.gmra.mxu1 %v8333_v25  ;;  %5227 = vmatpush2.bf16.msra.mxu0 %v8334_v26  ;;  %v8400_v26 = vld [vmem:[%s11747_s0 + $0x1e4] ss:$72 sps:$4 sm:$0xff]  }
 0x126   : > { %5340 = vmatpush2.bf16.msra.mxu1 %v8337_v27  ;;  %5228 = vmatprep.subr.bf16.mxu0 %v8342_v28  ;;  %v8402_v27 = vld [vmem:[%s11747_s0 + $0x1ec] ss:$72 sps:$4 sm:$0xff]  }
 0x127   : > { %5341 = vmatprep.subr.bf16.mxu1 %v8345_v29  ;;  %5230 = vmatprep.mubr.bf16.mxu0 %v8348_v30  ;;  %v8394_v30 = vld [vmem:[%s9220_s24 + $0x1040] ss:$16 sps:$4 sm:$0xff]  }
 0x128   : > { %5343 = vmatprep.mubr.bf16.mxu1 %v8351_v31  ;;  %v8397_v31 = vld [vmem:[%s9220_s24 + $0x48] ss:$16 sps:$4 sm:$0xff]  }
 0x129   : > { %5229 = vmatpush2.bf16.msra.mxu0 %v8340_v32 }
 0x12a   : > { %5342 = vmatpush2.bf16.msra.mxu1 %v8343_v33  ;;  %5424 = vmatprep.subr.bf16.mxu0 %v8354_v34  ;;  %v8408_v33 = vld [vmem:[%s9220_s24 + $0x1024] ss:$16 sps:$4 sm:$0xff]  }
 0x12b   : > { %5537 = vmatprep.subr.bf16.mxu1 %v8357_v35 }
 0x12c   : > { %v4554_v44 = vpop.f32.mrf.mxu0  ;;  %5231 = vmatmul.mubr.bf16.vlgmr.msra.gmra.mxu0 %v8346_v36  ;;  %v8411_v36 = vld [vmem:[%s9220_s24 + $0x2c] ss:$16 sps:$4 sm:$0xff]  }
 0x12d   : > { %v4667_v45 = vpop.f32.mrf.mxu1  ;;  %5344 = vmatmul.mubr.bf16.vlgmr.msra.gmra.mxu1 %v8349_v37  ;;  %5425 = vmatpush1.bf16.msra.mxu0 %v8352_v38  ;;  %v8404_v38 = vld [vmem:[%s11747_s0 + $0x1e0] ss:$72 sps:$4 sm:$0xff]  }
 0x12e   : > { %v9795_v47 = vadd.f32 %v4667_v45, %v4554_v44  ;;  %5538 = vmatpush1.bf16.msra.mxu1 %v8355_v39  ;;  %v4556_v50 = vpop.f32.mrf.mxu0  ;;  %5426 = vmatprep.subr.bf16.mxu0 %v8360_v40  ;;  %v8405_v39 = vld [vmem:[%s11747_s0 + $0x1e8] ss:$72 sps:$4 sm:$0xff]   ;;  %v8414_v45 = vld [vmem:[%s9220_s24 + $0x1004] ss:$16 sps:$4 sm:$0xff]  }
 0x12f   : > { %v4669_v51 = vpop.f32.mrf.mxu1  ;;  %5539 = vmatprep.subr.bf16.mxu1 %v8363_v41  ;;  %5240 = vmatprep.mubr.bf16.mxu0 %v8364_v42  ;;  %v8406_v42 = vld [vmem:[%s9220_s24 + $0x1020] ss:$16 sps:$4 sm:$0xff]  }
 0x130   : > { %v9800_v53 = vadd.f32 %v4669_v51, %v4556_v50  ;;  %5353 = vmatprep.mubr.bf16.mxu1 %v8366_v43  ;;  %v4558_v56 = vpop.f32.mrf.mxu0  ;;  %v8409_v43 = vld [vmem:[%s9220_s24 + $0x28] ss:$16 sps:$4 sm:$0xff]   ;;  %v8420_v51 = vld [vmem:[%s11747_s0 + $0x274] ss:$72 sps:$4 sm:$0xff]  }
 0x131   : > { %v4671_v57 = vpop.f32.mrf.mxu1  ;;  %5427 = vmatpush1.bf16.msra.mxu0 %v8358_v46 }
 0x132   : > { %v9810_v60 = vadd.f32 %v4671_v57, %v4558_v56  ;;  %5540 = vmatpush1.bf16.msra.mxu1 %v8361_v48  ;;  %v4560_v62 = vpop.f32.mrf.mxu0  ;;  %5428 = vmatprep.subr.bf16.mxu0 %v8372_v49  ;;  %v8417_v49 = vld [vmem:[%s9220_s24 + $0xc] ss:$16 sps:$4 sm:$0xff]   ;;  %v8412_v56 = vld [vmem:[%s9220_s24 + $0x1000] ss:$16 sps:$4 sm:$0xff]   ;;  %v8415_v57 = vld [vmem:[%s9220_s24 + $0x8] ss:$16 sps:$4 sm:$0xff]  }
 0x133   : > { %v4673_v63 = vpop.f32.mrf.mxu1  ;;  %5541 = vmatprep.subr.bf16.mxu1 %v8375_v52  ;;  %v8423_v52 = vld [vmem:[%s11747_s0 + $0x27c] ss:$72 sps:$4 sm:$0xff]  }
 0x134   : > { %v9814_v1 = vadd.f32 %v4673_v63, %v4560_v62  ;;  %v4564_v4 = vpop.f32.mrf.mxu0  ;;  %5241 = vmatmul.mubr.bf16.gmra.mxu0 %v8368_v54  ;;  %v8429_v63 = vld [vmem:[%s9220_s24 + $0x1ec] ss:$16 sps:$4 sm:$0xff]  }
 0x135   : > { %v4677_v5 = vpop.f32.mrf.mxu1  ;;  %5354 = vmatmul.mubr.bf16.gmra.mxu1 %v8369_v55  ;;  %5429 = vmatpush1.bf16.msra.mxu0 %v8370_v58 }
 0x136   : > { %v9824_v8 = vadd.f32 %v4677_v5, %v4564_v4  ;;  %5542 = vmatpush1.bf16.msra.mxu1 %v8373_v59  ;;  %v4566_v10 = vpop.f32.mrf.mxu0  ;;  %5430 = vmatprep.subr.bf16.mxu0 %v8378_v61  ;;  %v8426_v59 = vld [vmem:[%s9220_s24 + $0x11e4] ss:$16 sps:$4 sm:$0xff]  }
 0x137   : > { %v4679_v11 = vpop.f32.mrf.mxu1  ;;  %5543 = vmatprep.subr.bf16.mxu1 %v8381_v0  ;;  %5250 = vmatprep.mubr.bf16.mxu0 %v8382_v2  ;;  %v8418_v2 = vld [vmem:[%s11747_s0 + $0x270] ss:$72 sps:$4 sm:$0xff]  }
 0x138   : > { %v9828_v13 = vadd.f32 %v4679_v11, %v4566_v10  ;;  %5363 = vmatprep.mubr.bf16.mxu1 %v8384_v3  ;;  %v4568_v16 = vpop.f32.mrf.mxu0  ;;  %v8421_v3 = vld [vmem:[%s11747_s0 + $0x278] ss:$72 sps:$4 sm:$0xff]   ;;  %v8432_v10 = vld [vmem:[%s9220_s24 + $0x11c4] ss:$16 sps:$4 sm:$0xff]  }
 0x139   : > { %v4681_v17 = vpop.f32.mrf.mxu1  ;;  %5431 = vmatpush1.bf16.msra.mxu0 %v8376_v6  ;;  %v8424_v6 = vld [vmem:[%s9220_s24 + $0x11e0] ss:$16 sps:$4 sm:$0xff]  }
 0x13a   : > { %v9838_v20 = vadd.f32 %v4681_v17, %v4568_v16  ;;  %5544 = vmatpush1.bf16.msra.mxu1 %v8379_v7  ;;  %v4570_v22 = vpop.f32.mrf.mxu0  ;;  %5432 = vmatprep.subr.bf16.mxu0 %v8390_v9  ;;  %v8427_v7 = vld [vmem:[%s9220_s24 + $0x1e8] ss:$16 sps:$4 sm:$0xff]   ;;  %v8438_v16 = vld [vmem:[%s11747_s0 + $0x304] ss:$72 sps:$4 sm:$0xff]  }
 0x13b   : > { %v4683_v23 = vpop.f32.mrf.mxu1  ;;  %5545 = vmatprep.subr.bf16.mxu1 %v8393_v12  ;;  %v8441_v17 = vld [vmem:[%s11747_s0 + $0x30c] ss:$72 sps:$4 sm:$0xff]  }
 0x13c   : > { %v9842_v25 = vadd.f32 %v4683_v23, %v4570_v22  ;;  %v4574_v28 = vpop.f32.mrf.mxu0  ;;  %5251 = vmatmul.mubr.bf16.gmra.mxu0 %v8386_v14  ;;  %v8435_v14 = vld [vmem:[%s9220_s24 + $0x1cc] ss:$16 sps:$4 sm:$0xff]   ;;  %v8433_v22 = vld [vmem:[%s9220_s24 + $0x1c8] ss:$16 sps:$4 sm:$0xff]  }
 0x13d   : > { %v4687_v29 = vpop.f32.mrf.mxu1  ;;  %5364 = vmatmul.mubr.bf16.gmra.mxu1 %v8387_v15  ;;  %5433 = vmatpush1.bf16.msra.mxu0 %v8388_v18 }
 0x13e   : > { %v9852_v32 = vadd.f32 %v4687_v29, %v4574_v28  ;;  %5546 = vmatpush1.bf16.msra.mxu1 %v8391_v19  ;;  %v4576_v34 = vpop.f32.mrf.mxu0  ;;  %5434 = vmatprep.subr.bf16.mxu0 %v8396_v21  ;;  %v8430_v21 = vld [vmem:[%s9220_s24 + $0x11c0] ss:$16 sps:$4 sm:$0xff]   ;;  %v8447_v28 = vld [vmem:[%s9220_s24 + $0x1ac] ss:$16 sps:$4 sm:$0xff]  }
 0x13f   : > { %v4689_v35 = vpop.f32.mrf.mxu1  ;;  %5547 = vmatprep.subr.bf16.mxu1 %v8399_v24  ;;  %5260 = vmatprep.mubr.bf16.mxu0 %v8400_v26  ;;  %v8444_v24 = vld [vmem:[%s9220_s24 + $0x11a4] ss:$16 sps:$4 sm:$0xff]  }
 0x140   : > { %v9856_v37 = vadd.f32 %v4689_v35, %v4576_v34  ;;  %5373 = vmatprep.mubr.bf16.mxu1 %v8402_v27  ;;  %v4578_v40 = vpop.f32.mrf.mxu0  ;;  %v8442_v35 = vld [vmem:[%s9220_s24 + $0x11a0] ss:$16 sps:$4 sm:$0xff]  }
 0x141   : > { %v4691_v41 = vpop.f32.mrf.mxu1  ;;  %5435 = vmatpush1.bf16.msra.mxu0 %v8394_v30  ;;  %v8436_v30 = vld [vmem:[%s11747_s0 + $0x300] ss:$72 sps:$4 sm:$0xff]  }
 0x142   : > { %v9866_v44 = vadd.f32 %v4691_v41, %v4578_v40  ;;  %5548 = vmatpush1.bf16.msra.mxu1 %v8397_v31  ;;  %v4580_v46 = vpop.f32.mrf.mxu0  ;;  %5436 = vmatprep.subr.bf16.mxu0 %v8408_v33  ;;  %v8439_v31 = vld [vmem:[%s11747_s0 + $0x308] ss:$72 sps:$4 sm:$0xff]  }
 0x143   : > { %v4693_v48 = vpop.f32.mrf.mxu1  ;;  %5549 = vmatprep.subr.bf16.mxu1 %v8411_v36  ;;  %v8445_v36 = vld [vmem:[%s9220_s24 + $0x1a8] ss:$16 sps:$4 sm:$0xff]  }
 0x144   : > { %v9870_v50 = vadd.f32 %v4693_v48, %v4580_v46  ;;  %v4584_v54 = vpop.f32.mrf.mxu0  ;;  %5261 = vmatmul.mubr.bf16.gmra.mxu0 %v8404_v38  ;;  %v8459_v46 = vld [vmem:[%s11747_s0 + $0x39c] ss:$72 sps:$4 sm:$0xff]  }
 0x145   : > { %v4697_v55 = vpop.f32.mrf.mxu1  ;;  %5374 = vmatmul.mubr.bf16.gmra.mxu1 %v8405_v39  ;;  %5437 = vmatpush1.bf16.msra.mxu0 %v8406_v42  ;;  %v8450_v39 = vld [vmem:[%s9220_s24 + $0x1184] ss:$16 sps:$4 sm:$0xff]   ;;  %v8453_v42 = vld [vmem:[%s9220_s24 + $0x18c] ss:$16 sps:$4 sm:$0xff]  }
 0x146   : > { %v9880_v58 = vadd.f32 %v4697_v55, %v4584_v54  ;;  %5550 = vmatpush1.bf16.msra.mxu1 %v8409_v43  ;;  %v4586_v61 = vpop.f32.mrf.mxu0  ;;  %5438 = vmatprep.subr.bf16.mxu0 %v8414_v45  ;;  %v8456_v45 = vld [vmem:[%s11747_s0 + $0x394] ss:$72 sps:$4 sm:$0xff]  }
 0x147   : > { %v4699_v62 = vpop.f32.mrf.mxu1  ;;  %5551 = vmatprep.subr.bf16.mxu1 %v8417_v49  ;;  %5270 = vmatprep.mubr.bf16.mxu0 %v8420_v51  ;;  %v8448_v51 = vld [vmem:[%s9220_s24 + $0x1180] ss:$16 sps:$4 sm:$0xff]   ;;  %v8462_v55 = vld [vmem:[%s9220_s24 + $0x1164] ss:$16 sps:$4 sm:$0xff]  }
 0x148   : > { %v9884_v0 = vadd.f32 %v4699_v62, %v4586_v61  ;;  %5383 = vmatprep.mubr.bf16.mxu1 %v8423_v52  ;;  %v4588_v4 = vpop.f32.mrf.mxu0  ;;  %v8451_v52 = vld [vmem:[%s9220_s24 + $0x188] ss:$16 sps:$4 sm:$0xff]  }
 0x149   : > { %v4701_v5 = vpop.f32.mrf.mxu1  ;;  %5439 = vmatpush1.bf16.msra.mxu0 %v8412_v56  ;;  %v8454_v62 = vld [vmem:[%s11747_s0 + $0x390] ss:$72 sps:$4 sm:$0xff]  }
 0x14a   : > { %v9894_v9 = vadd.f32 %v4701_v5, %v4588_v4  ;;  %5552 = vmatpush1.bf16.msra.mxu1 %v8415_v57  ;;  %v4590_v11 = vpop.f32.mrf.mxu0  ;;  %5440 = vmatprep.subr.bf16.mxu0 %v8426_v59  ;;  %v8465_v59 = vld [vmem:[%s9220_s24 + $0x16c] ss:$16 sps:$4 sm:$0xff]   ;;  %v8460_v4 = vld [vmem:[%s9220_s24 + $0x1160] ss:$16 sps:$4 sm:$0xff]   ;;  %v8463_v5 = vld [vmem:[%s9220_s24 + $0x168] ss:$16 sps:$4 sm:$0xff]  }
 0x14b   : > { %v4703_v12 = vpop.f32.mrf.mxu1  ;;  %5553 = vmatprep.subr.bf16.mxu1 %v8429_v63  ;;  %v8457_v63 = vld [vmem:[%s11747_s0 + $0x398] ss:$72 sps:$4 sm:$0xff]  }
 0x14c   : > { %v9898_v15 = vadd.f32 %v4703_v12, %v4590_v11  ;;  %v4594_v18 = vpop.f32.mrf.mxu0  ;;  %5271 = vmatmul.mubr.bf16.gmra.mxu0 %v8418_v2  ;;  %v8471_v12 = vld [vmem:[%s9220_s24 + $0x14c] ss:$16 sps:$4 sm:$0xff]  }
 0x14d   : > { %v4707_v19 = vpop.f32.mrf.mxu1  ;;  %5384 = vmatmul.mubr.bf16.gmra.mxu1 %v8421_v3  ;;  %5441 = vmatpush2.bf16.msra.mxu0 %v8424_v6 }
 0x14e   : > { %v9908_v23 = vadd.f32 %v4707_v19, %v4594_v18  ;;  %5554 = vmatpush2.bf16.msra.mxu1 %v8427_v7  ;;  %v4596_v26 = vpop.f32.mrf.mxu0  ;;  %5442 = vmatprep.subr.bf16.mxu0 %v8432_v10  ;;  %v8468_v7 = vld [vmem:[%s9220_s24 + $0x1144] ss:$16 sps:$4 sm:$0xff]  }
 0x14f   : > { %v4709_v27 = vpop.f32.mrf.mxu1  ;;  %5555 = vmatprep.subr.bf16.mxu1 %v8435_v14  ;;  %5280 = vmatprep.mubr.bf16.mxu0 %v8438_v16  ;;  %v8474_v16 = vld [vmem:[%s11747_s0 + $0x424] ss:$72 sps:$4 sm:$0xff]  }
 0x150   : > { %v9912_v29 = vadd.f32 %v4709_v27, %v4596_v26  ;;  %5393 = vmatprep.mubr.bf16.mxu1 %v8441_v17  ;;  %v4598_v33 = vpop.f32.mrf.mxu0  ;;  %v8477_v17 = vld [vmem:[%s11747_s0 + $0x42c] ss:$72 sps:$4 sm:$0xff]  }
 0x151   : > { %v4711_v34 = vpop.f32.mrf.mxu1  ;;  %5443 = vmatpush2.bf16.msra.mxu0 %v8430_v21  ;;  %v8466_v21 = vld [vmem:[%s9220_s24 + $0x1140] ss:$16 sps:$4 sm:$0xff]   ;;  %v8480_v26 = vld [vmem:[%s9220_s24 + $0x1124] ss:$16 sps:$4 sm:$0xff]  }
 0x152   : > { %v9922_v38 = vadd.f32 %v4711_v34, %v4598_v33  ;;  %5556 = vmatpush2.bf16.msra.mxu1 %v8433_v22  ;;  %v4600_v40 = vpop.f32.mrf.mxu0  ;;  %5444 = vmatprep.subr.bf16.mxu0 %v8444_v24  ;;  %v8469_v22 = vld [vmem:[%s9220_s24 + $0x148] ss:$16 sps:$4 sm:$0xff]  }
 0x153   : > { %v4713_v41 = vpop.f32.mrf.mxu1  ;;  %5557 = vmatprep.subr.bf16.mxu1 %v8447_v28  ;;  %v8472_v33 = vld [vmem:[%s11747_s0 + $0x420] ss:$72 sps:$4 sm:$0xff]  }
 0x154   : > { %v9926_v43 = vadd.f32 %v4713_v41, %v4600_v40  ;;  %v4604_v48 = vpop.f32.mrf.mxu0  ;;  %5281 = vmatmul.mubr.bf16.gmra.mxu0 %v8436_v30  ;;  %v8483_v30 = vld [vmem:[%s9220_s24 + $0x12c] ss:$16 sps:$4 sm:$0xff]   ;;  %v8475_v34 = vld [vmem:[%s11747_s0 + $0x428] ss:$72 sps:$4 sm:$0xff]  }
 0x155   : > { %v4717_v49 = vpop.f32.mrf.mxu1  ;;  %5394 = vmatmul.mubr.bf16.gmra.mxu1 %v8439_v31  ;;  %5445 = vmatpush2.bf16.msra.mxu0 %v8442_v35  ;;  %v8481_v40 = vld [vmem:[%s9220_s24 + $0x128] ss:$16 sps:$4 sm:$0xff]  }
 0x156   : > { %v9936_v54 = vadd.f32 %v4717_v49, %v4604_v48  ;;  %5558 = vmatpush2.bf16.msra.mxu1 %v8445_v36  ;;  %v4606_v56 = vpop.f32.mrf.mxu0  ;;  %5446 = vmatprep.subr.bf16.mxu0 %v8450_v39  ;;  %v8478_v39 = vld [vmem:[%s9220_s24 + $0x1120] ss:$16 sps:$4 sm:$0xff]   ;;  %v8489_v48 = vld [vmem:[%s9220_s24 + $0x10c] ss:$16 sps:$4 sm:$0xff]  }
 0x157   : > { %v4719_v57 = vpop.f32.mrf.mxu1  ;;  %5559 = vmatprep.subr.bf16.mxu1 %v8453_v42  ;;  %5290 = vmatprep.mubr.bf16.mxu0 %v8456_v45  ;;  %v8486_v42 = vld [vmem:[%s9220_s24 + $0x1104] ss:$16 sps:$4 sm:$0xff]  }
 0x158   : > { %v9940_v61 = vadd.f32 %v4719_v57, %v4606_v56  ;;  %5403 = vmatprep.mubr.bf16.mxu1 %v8459_v46  ;;  %v4608_v2 = vpop.f32.mrf.mxu0  ;;  %v8484_v56 = vld [vmem:[%s9220_s24 + $0x1100] ss:$16 sps:$4 sm:$0xff]   ;;  %v8487_v57 = vld [vmem:[%s9220_s24 + $0x108] ss:$16 sps:$4 sm:$0xff]  }
 0x159   : > { %v4721_v3 = vpop.f32.mrf.mxu1  ;;  %5447 = vmatpush2.bf16.msra.mxu0 %v8448_v51  ;;  %v8492_v51 = vld [vmem:[%s11747_s0 + $0x44] ss:$72 sps:$4 sm:$0xff]  }
 0x15a   : > { %v9950_v6 = vadd.f32 %v4721_v3, %v4608_v2  ;;  %5560 = vmatpush2.bf16.msra.mxu1 %v8451_v52  ;;  %v4610_v10 = vpop.f32.mrf.mxu0  ;;  %5448 = vmatprep.subr.bf16.mxu0 %v8462_v55  ;;  %v8498_v3 = vld [vmem:[%s9220_s24 + $0x4ec] ss:$16 sps:$4 sm:$0xff]  }
 0x15b   : > { %v4723_v11 = vpop.f32.mrf.mxu1  ;;  %5561 = vmatprep.subr.bf16.mxu1 %v8465_v59 }
 0x15c   : > { %v9954_v14 = vadd.f32 %v4723_v11, %v4610_v10  ;;  %v4614_v18 = vpop.f32.mrf.mxu0  ;;  %5291 = vmatmul.mubr.bf16.gmra.mxu0 %v8454_v62  ;;  %v8495_v62 = vld [vmem:[%s9220_s24 + $0x2ec] ss:$16 sps:$4 sm:$0xff]  }
 0x15d   : > { %v4727_v19 = vpop.f32.mrf.mxu1  ;;  %5404 = vmatmul.mubr.bf16.gmra.mxu1 %v8457_v63  ;;  %5449 = vmatpush2.bf16.msra.mxu0 %v8460_v4 }
 0x15e   : > { %v9964_v24 = vadd.f32 %v4727_v19, %v4614_v18  ;;  %5562 = vmatpush2.bf16.msra.mxu1 %v8463_v5  ;;  %v4616_v27 = vpop.f32.mrf.mxu0  ;;  %5450 = vmatprep.subr.bf16.mxu0 %v8468_v7  ;;  %v8490_v5 = vld [vmem:[%s11747_s0 + $0x40] ss:$72 sps:$4 sm:$0xff]   ;;  %v8898_v7 = vld [vmem:[%s11747_s0 + $0x4] ss:$72 sps:$4 sm:$0xff]  }
 0x15f   : > { %v4729_v28 = vpop.f32.mrf.mxu1  ;;  %5563 = vmatprep.subr.bf16.mxu1 %v8471_v12  ;;  %5300 = vmatprep.mubr.bf16.mxu0 %v8474_v16  ;;  %v8493_v12 = vld [vmem:[%s9220_s24 + $0x2e8] ss:$16 sps:$4 sm:$0xff]   ;;  %v8501_v18 = vld [vmem:[%s9220_s24 + $0x2cc] ss:$16 sps:$4 sm:$0xff]  }
 0x160   : > { %v9968_v31 = vadd.f32 %v4729_v28, %v4616_v27  ;;  %5413 = vmatprep.mubr.bf16.mxu1 %v8477_v17  ;;  %v4618_v35 = vpop.f32.mrf.mxu0  ;;  %v8496_v16 = vld [vmem:[%s9220_s24 + $0x4e8] ss:$16 sps:$4 sm:$0xff]   ;;  %v8507_v27 = vld [vmem:[%s11747_s0 + $0xd4] ss:$72 sps:$4 sm:$0xff]  }
 0x161   : > { %v4731_v36 = vpop.f32.mrf.mxu1  ;;  %5451 = vmatpush2.bf16.msra.mxu0 %v8466_v21 }
 0x162   : > { %v9978_v41 = vadd.f32 %v4731_v36, %v4618_v35  ;;  %5564 = vmatpush2.bf16.msra.mxu1 %v8469_v22  ;;  %v4620_v45 = vpop.f32.mrf.mxu0  ;;  %5452 = vmatprep.subr.bf16.mxu0 %v8480_v26  ;;  %v8504_v22 = vld [vmem:[%s9220_s24 + $0x4cc] ss:$16 sps:$4 sm:$0xff]   ;;  %v8502_v35 = vld [vmem:[%s9220_s24 + $0x4c8] ss:$16 sps:$4 sm:$0xff]  }
 0x163   : > { %v4733_v46 = vpop.f32.mrf.mxu1  ;;  %5565 = vmatprep.subr.bf16.mxu1 %v8483_v30 }
 0x164   : > { %v9982_v49 = vadd.f32 %v4733_v46, %v4620_v45  ;;  %v4624_v52 = vpop.f32.mrf.mxu0  ;;  %5301 = vmatmul.mubr.bf16.gmra.mxu0 %v8472_v33  ;;  %v8899_v33 = vld [vmem:[%s11747_s0] ss:$72 sps:$4 sm:$0xff]   ;;  %v8513_v45 = vld [vmem:[%s9220_s24 + $0x4ac] ss:$16 sps:$4 sm:$0xff]  }
 0x165   : > { %v4737_v55 = vpop.f32.mrf.mxu1  ;;  %5414 = vmatmul.mubr.bf16.gmra.mxu1 %v8475_v34  ;;  %5453 = vmatpush2.bf16.msra.mxu0 %v8478_v39  ;;  %v8499_v34 = vld [vmem:[%s9220_s24 + $0x2c8] ss:$16 sps:$4 sm:$0xff]   ;;  %v8510_v39 = vld [vmem:[%s9220_s24 + $0x2ac] ss:$16 sps:$4 sm:$0xff]  }
 0x166   : > { %v9989_v59 = vadd.f32 %v4737_v55, %v4624_v52  ;;  %5566 = vmatpush2.bf16.msra.mxu1 %v8481_v40  ;;  %v4626_v63 = vpop.f32.mrf.mxu0  ;;  %5454 = vmatprep.subr.bf16.mxu0 %v8486_v42 }
 0x167   : > { %v4739_v2 = vpop.f32.mrf.mxu1  ;;  %5567 = vmatprep.subr.bf16.mxu1 %v8489_v48  ;;  %5456 = vmatprep.mubr.bf16.mxu0 %v8492_v51  ;;  %v8505_v51 = vld [vmem:[%s11747_s0 + $0xd0] ss:$72 sps:$4 sm:$0xff]  }
 0x168   : > { %v9993_v4 = vadd.f32 %v4739_v2, %v4626_v63  ;;  %5569 = vmatprep.mubr.bf16.mxu1 %v8898_v7  ;;  %v4628_v10 = vpop.f32.mrf.mxu0 }
 0x169   : > { %v4741_v11 = vpop.f32.mrf.mxu1  ;;  %5455 = vmatpush2.bf16.msra.mxu0 %v8484_v56  ;;  %v8508_v56 = vld [vmem:[%s9220_s24 + $0x2a8] ss:$16 sps:$4 sm:$0xff]  }
 0x16a   : > { %v10003_v17 = vadd.f32 %v4741_v11, %v4628_v10  ;;  %5568 = vmatpush2.bf16.msra.mxu1 %v8487_v57  ;;  %v4630_v19 = vpop.f32.mrf.mxu0  ;;  %5650 = vmatprep.subr.bf16.mxu0 %v8495_v62  ;;  %v8511_v57 = vld [vmem:[%s9220_s24 + $0x4a8] ss:$16 sps:$4 sm:$0xff]   ;;  %v8522_v11 = vld [vmem:[%s11747_s0 + $0x164] ss:$72 sps:$4 sm:$0xff]  }
 0x16b   : > { %v4743_v21 = vpop.f32.mrf.mxu1  ;;  %5763 = vmatprep.subr.bf16.mxu1 %v8498_v3 }
 0x16c   : > { %v10007_v26 = vadd.f32 %v4743_v21, %v4630_v19  ;;  %v4780_v28 = vpop.f32.mrf.mxu0  ;;  %5457 = vmatmul.mubr.bf16.vlgmr.msra.gmra.mxu0 %v8490_v5  ;;  %v8519_v5 = vld [vmem:[%s9220_s24 + $0x48c] ss:$16 sps:$4 sm:$0xff]   ;;  %v8517_v19 = vld [vmem:[%s9220_s24 + $0x488] ss:$16 sps:$4 sm:$0xff]  }
 0x16d   : > { %v4893_v30 = vpop.f32.mrf.mxu1  ;;  %5570 = vmatmul.mubr.bf16.vlgmr.msra.gmra.mxu1 %v8899_v33  ;;  %v4781_v36 = vadd.f32 %v4780_v28, %v9795_v47  ;;  %5651 = vmatpush1.bf16.msra.mxu0 %v8493_v12  ;;  %v8900_v47 = vld [vmem:[%s11747_s0 + $0x94] ss:$72 sps:$4 sm:$0xff]  }
 0x16e   : > { %5764 = vmatpush1.bf16.msra.mxu1 %v8496_v16  ;;  %v4782_v40 = vpop.f32.mrf.mxu0  ;;  %5652 = vmatprep.subr.bf16.mxu0 %v8501_v18  ;;  %v8901_v16 = vld [vmem:[%s11747_s0 + $0x90] ss:$72 sps:$4 sm:$0xff]  }
 0x16f   : > { %v4895_v42 = vpop.f32.mrf.mxu1  ;;  %5765 = vmatprep.subr.bf16.mxu1 %v8504_v22  ;;  %v10020_v46 = vadd.f32 %v4893_v30, %v4781_v36  ;;  %v4783_v48 = vadd.f32 %v4782_v40, %v9800_v53  ;;  %5466 = vmatprep.mubr.bf16.mxu0 %v8507_v27  ;;  %v8516_v53 = vld [vmem:[%s9220_s24 + $0x28c] ss:$16 sps:$4 sm:$0xff]   ;;  %v8514_v18 = vld [vmem:[%s9220_s24 + $0x288] ss:$16 sps:$4 sm:$0xff]  }
 0x170   : > { %5579 = vmatprep.mubr.bf16.mxu1 %v8900_v47  ;;  %v4784_v52 = vpop.f32.mrf.mxu0  ;;  %v8528_v30 = vld [vmem:[%s9220_s24 + $0x46c] ss:$16 sps:$4 sm:$0xff]   ;;  %v8523_v40 = vld [vmem:[%s9220_s24 + $0x268] ss:$16 sps:$4 sm:$0xff]  }
 0x171   : > { %v4897_v55 = vpop.f32.mrf.mxu1  ;;  %v10031_v62 = vadd.f32 %v4895_v42, %v4783_v48  ;;  %v4785_v63 = vadd.f32 %v4784_v52, %v9810_v60  ;;  %5653 = vmatpush1.bf16.msra.mxu0 %v8499_v34  ;;  %v8526_v42 = vld [vmem:[%s9220_s24 + $0x468] ss:$16 sps:$4 sm:$0xff]   ;;  %v8534_v52 = vld [vmem:[%s9220_s24 + $0x44c] ss:$16 sps:$4 sm:$0xff]  }
 0x172   : > { %5766 = vmatpush1.bf16.msra.mxu1 %v8502_v35  ;;  %v4786_v2 = vpop.f32.mrf.mxu0  ;;  %5654 = vmatprep.subr.bf16.mxu0 %v8510_v39  ;;  %v8520_v35 = vld [vmem:[%s11747_s0 + $0x160] ss:$72 sps:$4 sm:$0xff]  }
 0x173   : > { %v4899_v3 = vpop.f32.mrf.mxu1  ;;  %5767 = vmatprep.subr.bf16.mxu1 %v8513_v45  ;;  %v10036_v7 = vadd.f32 %v4897_v55, %v4785_v63  ;;  %v4787_v10 = vadd.f32 %v4786_v2, %v9814_v1  ;;  %v8525_v1 = vld [vmem:[%s9220_s24 + $0x26c] ss:$16 sps:$4 sm:$0xff]   ;;  %v8529_v2 = vld [vmem:[%s9220_s24 + $0x248] ss:$16 sps:$4 sm:$0xff]  }
 0x174   : > { %v4790_v60 = vpop.f32.mrf.mxu0  ;;  %5467 = vmatmul.mubr.bf16.gmra.mxu0 %v8505_v51 }
 0x175   : > { %v4903_v12 = vpop.f32.mrf.mxu1  ;;  %5580 = vmatmul.mubr.bf16.gmra.mxu1 %v8901_v16  ;;  %v10047_v21 = vadd.f32 %v4899_v3, %v4787_v10  ;;  %v4791_v22 = vadd.f32 %v4790_v60, %v9824_v8  ;;  %5655 = vmatpush1.bf16.msra.mxu0 %v8508_v56  ;;  %v8902_v8 = vld [vmem:[%s11747_s0 + $0x124] ss:$72 sps:$4 sm:$0xff]   ;;  %v8532_v3 = vld [vmem:[%s9220_s24 + $0x448] ss:$16 sps:$4 sm:$0xff]  }
 0x176   : > { %5768 = vmatpush1.bf16.msra.mxu1 %v8511_v57  ;;  %v4792_v27 = vpop.f32.mrf.mxu0  ;;  %5656 = vmatprep.subr.bf16.mxu0 %v8516_v53  ;;  %v8537_v57 = vld [vmem:[%s11747_s0 + $0x1f4] ss:$72 sps:$4 sm:$0xff]   ;;  %v8903_v53 = vld [vmem:[%s11747_s0 + $0x120] ss:$72 sps:$4 sm:$0xff]  }
 0x177   : > { %v4905_v28 = vpop.f32.mrf.mxu1  ;;  %5769 = vmatprep.subr.bf16.mxu1 %v8519_v5  ;;  %v10052_v33 = vadd.f32 %v4903_v12, %v4791_v22  ;;  %v4793_v34 = vadd.f32 %v4792_v27, %v9828_v13  ;;  %5476 = vmatprep.mubr.bf16.mxu0 %v8522_v11  ;;  %v8531_v13 = vld [vmem:[%s9220_s24 + $0x24c] ss:$16 sps:$4 sm:$0xff]   ;;  %v8538_v27 = vld [vmem:[%s9220_s24 + $0x228] ss:$16 sps:$4 sm:$0xff]  }
 0x178   : > { %5589 = vmatprep.mubr.bf16.mxu1 %v8902_v8  ;;  %v4794_v36 = vpop.f32.mrf.mxu0  ;;  %v8543_v12 = vld [vmem:[%s9220_s24 + $0x42c] ss:$16 sps:$4 sm:$0xff]  }
 0x179   : > { %v4907_v39 = vpop.f32.mrf.mxu1  ;;  %v10063_v45 = vadd.f32 %v4905_v28, %v4793_v34  ;;  %v4795_v48 = vadd.f32 %v4794_v36, %v9838_v20  ;;  %5657 = vmatpush1.bf16.msra.mxu0 %v8514_v18  ;;  %v8541_v28 = vld [vmem:[%s9220_s24 + $0x428] ss:$16 sps:$4 sm:$0xff]   ;;  %v8549_v36 = vld [vmem:[%s9220_s24 + $0x40c] ss:$16 sps:$4 sm:$0xff]  }
 0x17a   : > { %5770 = vmatpush1.bf16.msra.mxu1 %v8517_v19  ;;  %v4796_v51 = vpop.f32.mrf.mxu0  ;;  %5658 = vmatprep.subr.bf16.mxu0 %v8525_v1  ;;  %v8535_v19 = vld [vmem:[%s11747_s0 + $0x1f0] ss:$72 sps:$4 sm:$0xff]  }
 0x17b   : > { %v4909_v47 = vpop.f32.mrf.mxu1  ;;  %5771 = vmatprep.subr.bf16.mxu1 %v8528_v30  ;;  %v10068_v55 = vadd.f32 %v4907_v39, %v4795_v48  ;;  %v4797_v56 = vadd.f32 %v4796_v51, %v9842_v25  ;;  %v8540_v25 = vld [vmem:[%s9220_s24 + $0x22c] ss:$16 sps:$4 sm:$0xff]   ;;  %v8544_v51 = vld [vmem:[%s9220_s24 + $0x208] ss:$16 sps:$4 sm:$0xff]  }
 0x17c   : > { %v4800_v20 = vpop.f32.mrf.mxu0  ;;  %5477 = vmatmul.mubr.bf16.gmra.mxu0 %v8520_v35 }
 0x17d   : > { %v4913_v63 = vpop.f32.mrf.mxu1  ;;  %5590 = vmatmul.mubr.bf16.gmra.mxu1 %v8903_v53  ;;  %v10079_v5 = vadd.f32 %v4909_v47, %v4797_v56  ;;  %v4801_v10 = vadd.f32 %v4800_v20, %v9852_v32  ;;  %5659 = vmatpush1.bf16.msra.mxu0 %v8523_v40  ;;  %v8904_v32 = vld [vmem:[%s11747_s0 + $0x1b4] ss:$72 sps:$4 sm:$0xff]   ;;  %v8547_v47 = vld [vmem:[%s9220_s24 + $0x408] ss:$16 sps:$4 sm:$0xff]  }
 0x17e   : > { %5772 = vmatpush1.bf16.msra.mxu1 %v8526_v42  ;;  %v4802_v11 = vpop.f32.mrf.mxu0  ;;  %5660 = vmatprep.subr.bf16.mxu0 %v8531_v13  ;;  %v8552_v42 = vld [vmem:[%s11747_s0 + $0x284] ss:$72 sps:$4 sm:$0xff]   ;;  %v8905_v13 = vld [vmem:[%s11747_s0 + $0x1b0] ss:$72 sps:$4 sm:$0xff]  }
 0x17f   : > { %v4915_v60 = vpop.f32.mrf.mxu1  ;;  %5773 = vmatprep.subr.bf16.mxu1 %v8534_v52  ;;  %v10084_v16 = vadd.f32 %v4913_v63, %v4801_v10  ;;  %v4803_v18 = vadd.f32 %v4802_v11, %v9856_v37  ;;  %5486 = vmatprep.mubr.bf16.mxu0 %v8537_v57  ;;  %v8546_v37 = vld [vmem:[%s9220_s24 + $0x20c] ss:$16 sps:$4 sm:$0xff]   ;;  %v8553_v11 = vld [vmem:[%s9220_s24 + $0x3e8] ss:$16 sps:$4 sm:$0xff]  }
 0x180   : > { %5599 = vmatprep.mubr.bf16.mxu1 %v8904_v32  ;;  %v4804_v22 = vpop.f32.mrf.mxu0  ;;  %v8558_v63 = vld [vmem:[%s9220_s24 + $0x5ec] ss:$16 sps:$4 sm:$0xff]  }
 0x181   : > { %v4917_v1 = vpop.f32.mrf.mxu1  ;;  %v10095_v30 = vadd.f32 %v4915_v60, %v4803_v18  ;;  %v4805_v34 = vadd.f32 %v4804_v22, %v9866_v44  ;;  %5661 = vmatpush1.bf16.msra.mxu0 %v8529_v2  ;;  %v8556_v60 = vld [vmem:[%s9220_s24 + $0x5e8] ss:$16 sps:$4 sm:$0xff]   ;;  %v8564_v22 = vld [vmem:[%s9220_s24 + $0x5cc] ss:$16 sps:$4 sm:$0xff]  }
 0x182   : > { %5774 = vmatpush1.bf16.msra.mxu1 %v8532_v3  ;;  %v4806_v35 = vpop.f32.mrf.mxu0  ;;  %5662 = vmatprep.subr.bf16.mxu0 %v8540_v25  ;;  %v8550_v3 = vld [vmem:[%s11747_s0 + $0x280] ss:$72 sps:$4 sm:$0xff]  }
 0x183   : > { %v4919_v8 = vpop.f32.mrf.mxu1  ;;  %5775 = vmatprep.subr.bf16.mxu1 %v8543_v12  ;;  %v10100_v39 = vadd.f32 %v4917_v1, %v4805_v34  ;;  %v4807_v40 = vadd.f32 %v4806_v35, %v9870_v50  ;;  %v8555_v50 = vld [vmem:[%s9220_s24 + $0x3ec] ss:$16 sps:$4 sm:$0xff]   ;;  %v8559_v35 = vld [vmem:[%s9220_s24 + $0x3c8] ss:$16 sps:$4 sm:$0xff]  }
 0x184   : > { %v4810_v44 = vpop.f32.mrf.mxu0  ;;  %5487 = vmatmul.mubr.bf16.gmra.mxu0 %v8535_v19 }
 0x185   : > { %v4923_v48 = vpop.f32.mrf.mxu1  ;;  %5600 = vmatmul.mubr.bf16.gmra.mxu1 %v8905_v13  ;;  %v10111_v52 = vadd.f32 %v4919_v8, %v4807_v40  ;;  %v4811_v56 = vadd.f32 %v4810_v44, %v9880_v58  ;;  %5663 = vmatpush1.bf16.msra.mxu0 %v8538_v27  ;;  %v8906_v58 = vld [vmem:[%s11747_s0 + $0x244] ss:$72 sps:$4 sm:$0xff]   ;;  %v8562_v8 = vld [vmem:[%s9220_s24 + $0x5c8] ss:$16 sps:$4 sm:$0xff]  }
 0x186   : > { %5776 = vmatpush1.bf16.msra.mxu1 %v8541_v28  ;;  %v4812_v57 = vpop.f32.mrf.mxu0  ;;  %5664 = vmatprep.subr.bf16.mxu0 %v8546_v37  ;;  %v8567_v28 = vld [vmem:[%s11747_s0 + $0x314] ss:$72 sps:$4 sm:$0xff]   ;;  %v8907_v37 = vld [vmem:[%s11747_s0 + $0x240] ss:$72 sps:$4 sm:$0xff]  }
 0x187   : > { %v4925_v20 = vpop.f32.mrf.mxu1  ;;  %5777 = vmatprep.subr.bf16.mxu1 %v8549_v36  ;;  %v10116_v53 = vadd.f32 %v4923_v48, %v4811_v56  ;;  %v4813_v2 = vadd.f32 %v4812_v57, %v9884_v0  ;;  %5496 = vmatprep.mubr.bf16.mxu0 %v8552_v42  ;;  %v8561_v0 = vld [vmem:[%s9220_s24 + $0x3cc] ss:$16 sps:$4 sm:$0xff]   ;;  %v8568_v57 = vld [vmem:[%s9220_s24 + $0x3a8] ss:$16 sps:$4 sm:$0xff]  }
 0x188   : > { %5609 = vmatprep.mubr.bf16.mxu1 %v8906_v58  ;;  %v4814_v10 = vpop.f32.mrf.mxu0  ;;  %v8573_v48 = vld [vmem:[%s9220_s24 + $0x5ac] ss:$16 sps:$4 sm:$0xff]  }
 0x189   : > { %v4927_v25 = vpop.f32.mrf.mxu1  ;;  %v10127_v12 = vadd.f32 %v4925_v20, %v4813_v2  ;;  %v4815_v18 = vadd.f32 %v4814_v10, %v9894_v9  ;;  %5665 = vmatpush1.bf16.msra.mxu0 %v8544_v51  ;;  %v8571_v20 = vld [vmem:[%s9220_s24 + $0x5a8] ss:$16 sps:$4 sm:$0xff]   ;;  %v8579_v10 = vld [vmem:[%s9220_s24 + $0x58c] ss:$16 sps:$4 sm:$0xff]  }
 0x18a   : > { %5778 = vmatpush1.bf16.msra.mxu1 %v8547_v47  ;;  %v4816_v19 = vpop.f32.mrf.mxu0  ;;  %5666 = vmatprep.subr.bf16.mxu0 %v8555_v50  ;;  %v8565_v47 = vld [vmem:[%s11747_s0 + $0x310] ss:$72 sps:$4 sm:$0xff]  }
 0x18b   : > { %v4929_v32 = vpop.f32.mrf.mxu1  ;;  %5779 = vmatprep.subr.bf16.mxu1 %v8558_v63  ;;  %v10132_v1 = vadd.f32 %v4927_v25, %v4815_v18  ;;  %v4817_v27 = vadd.f32 %v4816_v19, %v9898_v15  ;;  %v8570_v15 = vld [vmem:[%s9220_s24 + $0x3ac] ss:$16 sps:$4 sm:$0xff]   ;;  %v8574_v19 = vld [vmem:[%s9220_s24 + $0x388] ss:$16 sps:$4 sm:$0xff]  }
 0x18c   : > { %v4820_v9 = vpop.f32.mrf.mxu0  ;;  %5497 = vmatmul.mubr.bf16.gmra.mxu0 %v8550_v3 }
 0x18d   : > { %v4933_v34 = vpop.f32.mrf.mxu1  ;;  %5610 = vmatmul.mubr.bf16.gmra.mxu1 %v8907_v37  ;;  %v10143_v36 = vadd.f32 %v4929_v32, %v4817_v27  ;;  %v4821_v40 = vadd.f32 %v4820_v9, %v9908_v23  ;;  %5667 = vmatpush2.bf16.msra.mxu0 %v8553_v11  ;;  %v8908_v23 = vld [vmem:[%s11747_s0 + $0x2d4] ss:$72 sps:$4 sm:$0xff]   ;;  %v8577_v32 = vld [vmem:[%s9220_s24 + $0x588] ss:$16 sps:$4 sm:$0xff]  }
 0x18e   : > { %5780 = vmatpush2.bf16.msra.mxu1 %v8556_v60  ;;  %v4822_v42 = vpop.f32.mrf.mxu0  ;;  %5668 = vmatprep.subr.bf16.mxu0 %v8561_v0  ;;  %v8582_v60 = vld [vmem:[%s11747_s0 + $0x3a4] ss:$72 sps:$4 sm:$0xff]   ;;  %v8909_v0 = vld [vmem:[%s11747_s0 + $0x2d0] ss:$72 sps:$4 sm:$0xff]  }
 0x18f   : > { %v4935_v44 = vpop.f32.mrf.mxu1  ;;  %5781 = vmatprep.subr.bf16.mxu1 %v8564_v22  ;;  %v10148_v13 = vadd.f32 %v4933_v34, %v4821_v40  ;;  %v4823_v51 = vadd.f32 %v4822_v42, %v9912_v29  ;;  %5506 = vmatprep.mubr.bf16.mxu0 %v8567_v28  ;;  %v8576_v29 = vld [vmem:[%s9220_s24 + $0x38c] ss:$16 sps:$4 sm:$0xff]   ;;  %v8583_v42 = vld [vmem:[%s9220_s24 + $0x368] ss:$16 sps:$4 sm:$0xff]  }
 0x190   : > { %5619 = vmatprep.mubr.bf16.mxu1 %v8908_v23  ;;  %v4824_v56 = vpop.f32.mrf.mxu0  ;;  %v8588_v34 = vld [vmem:[%s9220_s24 + $0x56c] ss:$16 sps:$4 sm:$0xff]  }
 0x191   : > { %v4937_v50 = vpop.f32.mrf.mxu1  ;;  %v10159_v63 = vadd.f32 %v4935_v44, %v4823_v51  ;;  %v4825_v2 = vadd.f32 %v4824_v56, %v9922_v38  ;;  %5669 = vmatpush2.bf16.msra.mxu0 %v8559_v35  ;;  %v8586_v44 = vld [vmem:[%s9220_s24 + $0x568] ss:$16 sps:$4 sm:$0xff]   ;;  %v8594_v56 = vld [vmem:[%s9220_s24 + $0x54c] ss:$16 sps:$4 sm:$0xff]  }
 0x192   : > { %5782 = vmatpush2.bf16.msra.mxu1 %v8562_v8  ;;  %v4826_v3 = vpop.f32.mrf.mxu0  ;;  %5670 = vmatprep.subr.bf16.mxu0 %v8570_v15  ;;  %v8580_v8 = vld [vmem:[%s11747_s0 + $0x3a0] ss:$72 sps:$4 sm:$0xff]  }
 0x193   : > { %v4939_v58 = vpop.f32.mrf.mxu1  ;;  %5783 = vmatprep.subr.bf16.mxu1 %v8573_v48  ;;  %v10164_v25 = vadd.f32 %v4937_v50, %v4825_v2  ;;  %v4827_v11 = vadd.f32 %v4826_v3, %v9926_v43  ;;  %v8585_v43 = vld [vmem:[%s9220_s24 + $0x36c] ss:$16 sps:$4 sm:$0xff]   ;;  %v8589_v3 = vld [vmem:[%s9220_s24 + $0x348] ss:$16 sps:$4 sm:$0xff]  }
 0x194   : > { %v4830_v38 = vpop.f32.mrf.mxu0  ;;  %5507 = vmatmul.mubr.bf16.gmra.mxu0 %v8565_v47 }
 0x195   : > { %v4943_v18 = vpop.f32.mrf.mxu1  ;;  %5620 = vmatmul.mubr.bf16.gmra.mxu1 %v8909_v0  ;;  %v10175_v22 = vadd.f32 %v4939_v58, %v4827_v11  ;;  %v4831_v27 = vadd.f32 %v4830_v38, %v9936_v54  ;;  %5671 = vmatpush2.bf16.msra.mxu0 %v8568_v57  ;;  %v8910_v54 = vld [vmem:[%s11747_s0 + $0x364] ss:$72 sps:$4 sm:$0xff]   ;;  %v8592_v58 = vld [vmem:[%s9220_s24 + $0x548] ss:$16 sps:$4 sm:$0xff]  }
 0x196   : > { %5784 = vmatpush2.bf16.msra.mxu1 %v8571_v20  ;;  %v4832_v28 = vpop.f32.mrf.mxu0  ;;  %5672 = vmatprep.subr.bf16.mxu0 %v8576_v29  ;;  %v8597_v20 = vld [vmem:[%s11747_s0 + $0x434] ss:$72 sps:$4 sm:$0xff]   ;;  %v8911_v29 = vld [vmem:[%s11747_s0 + $0x360] ss:$72 sps:$4 sm:$0xff]  }
 0x197   : > { %v4945_v9 = vpop.f32.mrf.mxu1  ;;  %5785 = vmatprep.subr.bf16.mxu1 %v8579_v10  ;;  %v10180_v37 = vadd.f32 %v4943_v18, %v4831_v27  ;;  %v4833_v35 = vadd.f32 %v4832_v28, %v9940_v61  ;;  %5516 = vmatprep.mubr.bf16.mxu0 %v8582_v60  ;;  %v8591_v61 = vld [vmem:[%s9220_s24 + $0x34c] ss:$16 sps:$4 sm:$0xff]   ;;  %v8598_v28 = vld [vmem:[%s9220_s24 + $0x328] ss:$16 sps:$4 sm:$0xff]  }
 0x198   : > { %5629 = vmatprep.mubr.bf16.mxu1 %v8910_v54  ;;  %v4834_v40 = vpop.f32.mrf.mxu0  ;;  %v8603_v18 = vld [vmem:[%s9220_s24 + $0x52c] ss:$16 sps:$4 sm:$0xff]  }
 0x199   : > { %v4947_v15 = vpop.f32.mrf.mxu1  ;;  %v10191_v48 = vadd.f32 %v4945_v9, %v4833_v35  ;;  %v4835_v51 = vadd.f32 %v4834_v40, %v9950_v6  ;;  %5673 = vmatpush2.bf16.msra.mxu0 %v8574_v19  ;;  %v8601_v9 = vld [vmem:[%s9220_s24 + $0x528] ss:$16 sps:$4 sm:$0xff]   ;;  %v8609_v40 = vld [vmem:[%s9220_s24 + $0x50c] ss:$16 sps:$4 sm:$0xff]  }
 0x19a   : > { %5786 = vmatpush2.bf16.msra.mxu1 %v8577_v32  ;;  %v4836_v47 = vpop.f32.mrf.mxu0  ;;  %5674 = vmatprep.subr.bf16.mxu0 %v8585_v43  ;;  %v8595_v32 = vld [vmem:[%s11747_s0 + $0x430] ss:$72 sps:$4 sm:$0xff]  }
 0x19b   : > { %v4949_v23 = vpop.f32.mrf.mxu1  ;;  %5787 = vmatprep.subr.bf16.mxu1 %v8588_v34  ;;  %v10196_v50 = vadd.f32 %v4947_v15, %v4835_v51  ;;  %v4837_v57 = vadd.f32 %v4836_v47, %v9954_v14  ;;  %v8600_v14 = vld [vmem:[%s9220_s24 + $0x32c] ss:$16 sps:$4 sm:$0xff]   ;;  %v8607_v47 = vld [vmem:[%s9220_s24 + $0x508] ss:$16 sps:$4 sm:$0xff]  }
 0x19c   : > { %v4840_v6 = vpop.f32.mrf.mxu0  ;;  %5517 = vmatmul.mubr.bf16.gmra.mxu0 %v8580_v8 }
 0x19d   : > { %v4953_v2 = vpop.f32.mrf.mxu1  ;;  %5630 = vmatmul.mubr.bf16.gmra.mxu1 %v8911_v29  ;;  %v10207_v10 = vadd.f32 %v4949_v23, %v4837_v57  ;;  %v4841_v11 = vadd.f32 %v4840_v6, %v9964_v24  ;;  %5675 = vmatpush2.bf16.msra.mxu0 %v8583_v42  ;;  %v8912_v24 = vld [vmem:[%s11747_s0 + $0x3f4] ss:$72 sps:$4 sm:$0xff]  }
 0x19e   : > { %5788 = vmatpush2.bf16.msra.mxu1 %v8586_v44  ;;  %v4842_v60 = vpop.f32.mrf.mxu0  ;;  %5676 = vmatprep.subr.bf16.mxu0 %v8591_v61  ;;  %v8604_v61 = vld [vmem:[%s9220_s24 + $0x308] ss:$16 sps:$4 sm:$0xff]   ;;  %v8615_v6 = vld [vmem:[%s9220_s24 + $0x8ec] ss:$16 sps:$4 sm:$0xff]  }
 0x19f   : > { %v4955_v38 = vpop.f32.mrf.mxu1  ;;  %5789 = vmatprep.subr.bf16.mxu1 %v8594_v56  ;;  %v10212_v0 = vadd.f32 %v4953_v2, %v4841_v11  ;;  %v4843_v19 = vadd.f32 %v4842_v60, %v9968_v31  ;;  %5526 = vmatprep.mubr.bf16.mxu0 %v8597_v20  ;;  %v8606_v31 = vld [vmem:[%s9220_s24 + $0x30c] ss:$16 sps:$4 sm:$0xff]   ;;  %v8613_v60 = vld [vmem:[%s9220_s24 + $0x8e8] ss:$16 sps:$4 sm:$0xff]  }
 0x1a0   : > { %5639 = vmatprep.mubr.bf16.mxu1 %v8912_v24  ;;  %v4844_v27 = vpop.f32.mrf.mxu0  ;;  %v8621_v24 = vld [vmem:[%s9220_s24 + $0x8cc] ss:$16 sps:$4 sm:$0xff]  }
 0x1a1   : > { %v4957_v43 = vpop.f32.mrf.mxu1  ;;  %v10223_v34 = vadd.f32 %v4955_v38, %v4843_v19  ;;  %v4845_v35 = vadd.f32 %v4844_v27, %v9978_v41  ;;  %5677 = vmatpush2.bf16.msra.mxu0 %v8589_v3  ;;  %v8913_v41 = vld [vmem:[%s11747_s0 + $0x3f0] ss:$72 sps:$4 sm:$0xff]   ;;  %v8914_v3 = vld [vmem:[%s11747_s0 + $0xc] ss:$72 sps:$4 sm:$0xff]  }
 0x1a2   : > { %5790 = vmatpush2.bf16.msra.mxu1 %v8592_v58  ;;  %v4846_v8 = vpop.f32.mrf.mxu0  ;;  %5678 = vmatprep.subr.bf16.mxu0 %v8600_v14  ;;  %v8610_v14 = vld [vmem:[%s9220_s24 + $0x6e8] ss:$16 sps:$4 sm:$0xff]  }
 0x1a3   : > { %v4959_v54 = vpop.f32.mrf.mxu1  ;;  %5791 = vmatprep.subr.bf16.mxu1 %v8603_v18  ;;  %v10228_v15 = vadd.f32 %v4957_v43, %v4845_v35  ;;  %v4847_v42 = vadd.f32 %v4846_v8, %v9982_v49  ;;  %v8612_v49 = vld [vmem:[%s9220_s24 + $0x6ec] ss:$16 sps:$4 sm:$0xff]   ;;  %v8917_v35 = vld [vmem:[%s11747_s0 + $0x10] ss:$72 sps:$4 sm:$0xff]  }
 0x1a4   : > { %v4850_v44 = vpop.f32.mrf.mxu0  ;;  %5527 = vmatmul.mubr.bf16.gmra.mxu0 %v8595_v32  ;;  %v8619_v8 = vld [vmem:[%s9220_s24 + $0x8c8] ss:$16 sps:$4 sm:$0xff]  }
 0x1a5   : > { %v4963_v51 = vpop.f32.mrf.mxu1  ;;  %5640 = vmatmul.mubr.bf16.gmra.mxu1 %v8913_v41  ;;  %v10236_v23 = vadd.f32 %v4959_v54, %v4847_v42  ;;  %v4851_v56 = vadd.f32 %v4850_v44, %v9989_v59  ;;  %5679 = vmatpush2.bf16.msra.mxu0 %v8598_v28  ;;  %v8915_v59 = vld [vmem:[%s11747_s0 + $0x14] ss:$72 sps:$4 sm:$0xff]  }
 0x1a6   : > { %5792 = vmatpush2.bf16.msra.mxu1 %v8601_v9  ;;  %v4852_v57 = vpop.f32.mrf.mxu0  ;;  %5680 = vmatprep.subr.bf16.mxu0 %v8606_v31  ;;  %v8616_v31 = vld [vmem:[%s9220_s24 + $0x6c8] ss:$16 sps:$4 sm:$0xff]  }
 0x1a7   : > { %v4965_v20 = vpop.f32.mrf.mxu1  ;;  %5793 = vmatprep.subr.bf16.mxu1 %v8609_v40  ;;  %v10241_v2 = vadd.f32 %v4963_v51, %v4851_v56  ;;  %v4853_v29 = vadd.f32 %v4852_v57, %v9993_v4  ;;  %5682 = vmatprep.mubr.bf16.mxu0 %v8914_v3  ;;  %v8618_v4 = vld [vmem:[%s9220_s24 + $0x6cc] ss:$16 sps:$4 sm:$0xff]   ;;  %v8622_v57 = vld [vmem:[%s9220_s24 + $0x6a8] ss:$16 sps:$4 sm:$0xff]  }
 0x1a8   : > { %5795 = vmatprep.mubr.bf16.mxu1 %v8915_v59  ;;  %v4854_v58 = vpop.f32.mrf.mxu0  ;;  %v8627_v51 = vld [vmem:[%s9220_s24 + $0x8ac] ss:$16 sps:$4 sm:$0xff]  }
 0x1a9   : > { %v4967_v11 = vpop.f32.mrf.mxu1  ;;  %v10252_v38 = vadd.f32 %v4965_v20, %v4853_v29  ;;  %v4855_v18 = vadd.f32 %v4854_v58, %v10003_v17  ;;  %5681 = vmatpush2.bf16.msra.mxu0 %v8604_v61  ;;  %v8916_v17 = vld [vmem:[%s11747_s0 + $0x8] ss:$72 sps:$4 sm:$0xff]   ;;  %v8633_v58 = vld [vmem:[%s9220_s24 + $0x88c] ss:$16 sps:$4 sm:$0xff]  }
 0x1aa   : > { %5794 = vmatpush2.bf16.msra.mxu1 %v8607_v47  ;;  %v4856_v19 = vpop.f32.mrf.mxu0  ;;  %5876 = vmatprep.subr.bf16.mxu0 %v8612_v49  ;;  %v8918_v47 = vld [vmem:[%s11747_s0 + $0x9c] ss:$72 sps:$4 sm:$0xff]   ;;  %v8625_v20 = vld [vmem:[%s9220_s24 + $0x8a8] ss:$16 sps:$4 sm:$0xff]  }
 0x1ab   : > { %v4969_v32 = vpop.f32.mrf.mxu1  ;;  %5989 = vmatprep.subr.bf16.mxu1 %v8615_v6  ;;  %v10257_v27 = vadd.f32 %v4967_v11, %v4855_v18  ;;  %v4857_v43 = vadd.f32 %v4856_v19, %v10007_v26  ;;  %v8624_v26 = vld [vmem:[%s9220_s24 + $0x6ac] ss:$16 sps:$4 sm:$0xff]   ;;  %v8628_v19 = vld [vmem:[%s9220_s24 + $0x688] ss:$16 sps:$4 sm:$0xff]  }
 0x1ac   : > { %v5006_v28 = vpop.f32.mrf.mxu0  ;;  %5683 = vmatmul.mubr.bf16.vlgmr.msra.gmra.mxu0 %v8916_v17  ;;  %v8639_v17 = vld [vmem:[%s9220_s24 + $0x86c] ss:$16 sps:$4 sm:$0xff]  }
 0x1ad   : > { %v5119_v9 = vpop.f32.mrf.mxu1  ;;  %5796 = vmatmul.mubr.bf16.vlgmr.msra.gmra.mxu1 %v8917_v35  ;;  %v10268_v54 = vadd.f32 %v4969_v32, %v4857_v43  ;;  %v5007_v40 = vadd.f32 %v5006_v28, %v10020_v46  ;;  %5877 = vmatpush1.bf16.msra.mxu0 %v8610_v14  ;;  %v8919_v46 = vld [vmem:[%s11747_s0 + $0xa4] ss:$72 sps:$4 sm:$0xff]   ;;  %v8631_v32 = vld [vmem:[%s9220_s24 + $0x888] ss:$16 sps:$4 sm:$0xff]  }
 0x1ae   : > { %5990 = vmatpush1.bf16.msra.mxu1 %v8613_v60  ;;  %v5008_v42 = vpop.f32.mrf.mxu0  ;;  %5878 = vmatprep.subr.bf16.mxu0 %v8618_v4  ;;  %v8921_v4 = vld [vmem:[%s11747_s0 + $0xa0] ss:$72 sps:$4 sm:$0xff]  }
 0x1af   : > { %v5121_v44 = vpop.f32.mrf.mxu1  ;;  %5991 = vmatprep.subr.bf16.mxu1 %v8621_v24  ;;  %v10273_v41 = vadd.f32 %v5119_v9, %v5007_v40  ;;  %v5009_v61 = vadd.f32 %v5008_v42, %v10031_v62  ;;  %5692 = vmatprep.mubr.bf16.mxu0 %v8918_v47  ;;  %v8630_v62 = vld [vmem:[%s9220_s24 + $0x68c] ss:$16 sps:$4 sm:$0xff]   ;;  %v8634_v42 = vld [vmem:[%s9220_s24 + $0x668] ss:$16 sps:$4 sm:$0xff]  }
 0x1b0   : > { %5805 = vmatprep.mubr.bf16.mxu1 %v8919_v46  ;;  %v5010_v56 = vpop.f32.mrf.mxu0 }
 0x1b1   : > { %v5123_v49 = vpop.f32.mrf.mxu1  ;;  %v10284_v6 = vadd.f32 %v5121_v44, %v5009_v61  ;;  %v5011_v29 = vadd.f32 %v5010_v56, %v10036_v7  ;;  %5879 = vmatpush1.bf16.msra.mxu0 %v8616_v31  ;;  %v8920_v7 = vld [vmem:[%s11747_s0 + $0x98] ss:$72 sps:$4 sm:$0xff]   ;;  %v8645_v56 = vld [vmem:[%s9220_s24 + $0x84c] ss:$16 sps:$4 sm:$0xff]  }
 0x1b2   : > { %5992 = vmatpush1.bf16.msra.mxu1 %v8619_v8  ;;  %v5012_v3 = vpop.f32.mrf.mxu0  ;;  %5880 = vmatprep.subr.bf16.mxu0 %v8624_v26  ;;  %v8922_v8 = vld [vmem:[%s11747_s0 + $0x12c] ss:$72 sps:$4 sm:$0xff]   ;;  %v8637_v44 = vld [vmem:[%s9220_s24 + $0x868] ss:$16 sps:$4 sm:$0xff]  }
 0x1b3   : > { %v5125_v59 = vpop.f32.mrf.mxu1  ;;  %5993 = vmatprep.subr.bf16.mxu1 %v8627_v51  ;;  %v10289_v11 = vadd.f32 %v5123_v49, %v5011_v29  ;;  %v5013_v14 = vadd.f32 %v5012_v3, %v10047_v21  ;;  %v8636_v21 = vld [vmem:[%s9220_s24 + $0x66c] ss:$16 sps:$4 sm:$0xff]   ;;  %v8640_v3 = vld [vmem:[%s9220_s24 + $0x648] ss:$16 sps:$4 sm:$0xff]  }
 0x1b4   : > { %v5016_v60 = vpop.f32.mrf.mxu0  ;;  %5693 = vmatmul.mubr.bf16.gmra.mxu0 %v8920_v7  ;;  %v8651_v7 = vld [vmem:[%s9220_s24 + $0x82c] ss:$16 sps:$4 sm:$0xff]  }
 0x1b5   : > { %v5129_v18 = vpop.f32.mrf.mxu1  ;;  %5806 = vmatmul.mubr.bf16.gmra.mxu1 %v8921_v4  ;;  %v10300_v24 = vadd.f32 %v5125_v59, %v5013_v14  ;;  %v5017_v43 = vadd.f32 %v5016_v60, %v10052_v33  ;;  %5881 = vmatpush1.bf16.msra.mxu0 %v8622_v57  ;;  %v8923_v33 = vld [vmem:[%s11747_s0 + $0x134] ss:$72 sps:$4 sm:$0xff]   ;;  %v8643_v59 = vld [vmem:[%s9220_s24 + $0x848] ss:$16 sps:$4 sm:$0xff]  }
 0x1b6   : > { %5994 = vmatpush1.bf16.msra.mxu1 %v8625_v20  ;;  %v5018_v28 = vpop.f32.mrf.mxu0  ;;  %5882 = vmatprep.subr.bf16.mxu0 %v8630_v62  ;;  %v8925_v62 = vld [vmem:[%s11747_s0 + $0x130] ss:$72 sps:$4 sm:$0xff]  }
 0x1b7   : > { %v5131_v9 = vpop.f32.mrf.mxu1  ;;  %5995 = vmatprep.subr.bf16.mxu1 %v8633_v58  ;;  %v10305_v35 = vadd.f32 %v5129_v18, %v5017_v43  ;;  %v5019_v31 = vadd.f32 %v5018_v28, %v10063_v45  ;;  %5702 = vmatprep.mubr.bf16.mxu0 %v8922_v8  ;;  %v8642_v45 = vld [vmem:[%s9220_s24 + $0x64c] ss:$16 sps:$4 sm:$0xff]   ;;  %v8646_v28 = vld [vmem:[%s9220_s24 + $0x628] ss:$16 sps:$4 sm:$0xff]  }
 0x1b8   : > { %5815 = vmatprep.mubr.bf16.mxu1 %v8923_v33  ;;  %v5020_v40 = vpop.f32.mrf.mxu0 }
 0x1b9   : > { %v5133_v26 = vpop.f32.mrf.mxu1  ;;  %v10316_v51 = vadd.f32 %v5131_v9, %v5019_v31  ;;  %v5021_v61 = vadd.f32 %v5020_v40, %v10068_v55  ;;  %5883 = vmatpush1.bf16.msra.mxu0 %v8628_v19  ;;  %v8924_v55 = vld [vmem:[%s11747_s0 + $0x128] ss:$72 sps:$4 sm:$0xff]   ;;  %v8657_v40 = vld [vmem:[%s9220_s24 + $0x80c] ss:$16 sps:$4 sm:$0xff]  }
 0x1ba   : > { %5996 = vmatpush1.bf16.msra.mxu1 %v8631_v32  ;;  %v5022_v47 = vpop.f32.mrf.mxu0  ;;  %5884 = vmatprep.subr.bf16.mxu0 %v8636_v21  ;;  %v8926_v32 = vld [vmem:[%s11747_s0 + $0x1bc] ss:$72 sps:$4 sm:$0xff]   ;;  %v8649_v9 = vld [vmem:[%s9220_s24 + $0x828] ss:$16 sps:$4 sm:$0xff]  }
 0x1bb   : > { %v5135_v46 = vpop.f32.mrf.mxu1  ;;  %5997 = vmatprep.subr.bf16.mxu1 %v8639_v17  ;;  %v10321_v49 = vadd.f32 %v5133_v26, %v5021_v61  ;;  %v5023_v57 = vadd.f32 %v5022_v47, %v10079_v5  ;;  %v8648_v5 = vld [vmem:[%s9220_s24 + $0x62c] ss:$16 sps:$4 sm:$0xff]   ;;  %v8652_v47 = vld [vmem:[%s9220_s24 + $0x608] ss:$16 sps:$4 sm:$0xff]  }
 0x1bc   : > { %v5026_v20 = vpop.f32.mrf.mxu0  ;;  %5703 = vmatmul.mubr.bf16.gmra.mxu0 %v8924_v55  ;;  %v8663_v55 = vld [vmem:[%s9220_s24 + $0x9ec] ss:$16 sps:$4 sm:$0xff]  }
 0x1bd   : > { %v5139_v29 = vpop.f32.mrf.mxu1  ;;  %5816 = vmatmul.mubr.bf16.gmra.mxu1 %v8925_v62  ;;  %v10332_v58 = vadd.f32 %v5135_v46, %v5023_v57  ;;  %v5027_v14 = vadd.f32 %v5026_v20, %v10084_v16  ;;  %5885 = vmatpush1.bf16.msra.mxu0 %v8634_v42  ;;  %v8927_v16 = vld [vmem:[%s11747_s0 + $0x1c4] ss:$72 sps:$4 sm:$0xff]   ;;  %v8655_v46 = vld [vmem:[%s9220_s24 + $0x808] ss:$16 sps:$4 sm:$0xff]  }
 0x1be   : > { %5998 = vmatpush1.bf16.msra.mxu1 %v8637_v44  ;;  %v5028_v60 = vpop.f32.mrf.mxu0  ;;  %5886 = vmatprep.subr.bf16.mxu0 %v8642_v45  ;;  %v8929_v45 = vld [vmem:[%s11747_s0 + $0x1c0] ss:$72 sps:$4 sm:$0xff]  }
 0x1bf   : > { %v5141_v18 = vpop.f32.mrf.mxu1  ;;  %5999 = vmatprep.subr.bf16.mxu1 %v8645_v56  ;;  %v10337_v4 = vadd.f32 %v5139_v29, %v5027_v14  ;;  %v5029_v19 = vadd.f32 %v5028_v60, %v10095_v30  ;;  %5712 = vmatprep.mubr.bf16.mxu0 %v8926_v32  ;;  %v8654_v30 = vld [vmem:[%s9220_s24 + $0x60c] ss:$16 sps:$4 sm:$0xff]   ;;  %v8658_v60 = vld [vmem:[%s9220_s24 + $0x7e8] ss:$16 sps:$4 sm:$0xff]  }
 0x1c0   : > { %5825 = vmatprep.mubr.bf16.mxu1 %v8927_v16  ;;  %v5030_v43 = vpop.f32.mrf.mxu0 }
 0x1c1   : > { %v5143_v21 = vpop.f32.mrf.mxu1  ;;  %v10348_v17 = vadd.f32 %v5141_v18, %v5029_v19  ;;  %v5031_v31 = vadd.f32 %v5030_v43, %v10100_v39  ;;  %5887 = vmatpush1.bf16.msra.mxu0 %v8640_v3  ;;  %v8928_v39 = vld [vmem:[%s11747_s0 + $0x1b8] ss:$72 sps:$4 sm:$0xff]   ;;  %v8669_v43 = vld [vmem:[%s9220_s24 + $0x9cc] ss:$16 sps:$4 sm:$0xff]  }
 0x1c2   : > { %6000 = vmatpush1.bf16.msra.mxu1 %v8643_v59  ;;  %v5032_v8 = vpop.f32.mrf.mxu0  ;;  %5888 = vmatprep.subr.bf16.mxu0 %v8648_v5  ;;  %v8930_v59 = vld [vmem:[%s11747_s0 + $0x24c] ss:$72 sps:$4 sm:$0xff]   ;;  %v8661_v18 = vld [vmem:[%s9220_s24 + $0x9e8] ss:$16 sps:$4 sm:$0xff]  }
 0x1c3   : > { %v5145_v33 = vpop.f32.mrf.mxu1  ;;  %6001 = vmatprep.subr.bf16.mxu1 %v8651_v7  ;;  %v10353_v26 = vadd.f32 %v5143_v21, %v5031_v31  ;;  %v5033_v42 = vadd.f32 %v5032_v8, %v10111_v52  ;;  %v8660_v52 = vld [vmem:[%s9220_s24 + $0x7ec] ss:$16 sps:$4 sm:$0xff]   ;;  %v8664_v8 = vld [vmem:[%s9220_s24 + $0x7c8] ss:$16 sps:$4 sm:$0xff]  }
 0x1c4   : > { %v5036_v44 = vpop.f32.mrf.mxu0  ;;  %5713 = vmatmul.mubr.bf16.gmra.mxu0 %v8928_v39  ;;  %v8675_v39 = vld [vmem:[%s9220_s24 + $0x9ac] ss:$16 sps:$4 sm:$0xff]  }
 0x1c5   : > { %v5149_v61 = vpop.f32.mrf.mxu1  ;;  %5826 = vmatmul.mubr.bf16.gmra.mxu1 %v8929_v45  ;;  %v10364_v56 = vadd.f32 %v5145_v33, %v5033_v42  ;;  %v5037_v57 = vadd.f32 %v5036_v44, %v10116_v53  ;;  %5889 = vmatpush1.bf16.msra.mxu0 %v8646_v28  ;;  %v8931_v53 = vld [vmem:[%s11747_s0 + $0x254] ss:$72 sps:$4 sm:$0xff]   ;;  %v8667_v33 = vld [vmem:[%s9220_s24 + $0x9c8] ss:$16 sps:$4 sm:$0xff]  }
 0x1c6   : > { %6002 = vmatpush1.bf16.msra.mxu1 %v8649_v9  ;;  %v5038_v20 = vpop.f32.mrf.mxu0  ;;  %5890 = vmatprep.subr.bf16.mxu0 %v8654_v30  ;;  %v8933_v30 = vld [vmem:[%s11747_s0 + $0x250] ss:$72 sps:$4 sm:$0xff]  }
 0x1c7   : > { %v5151_v29 = vpop.f32.mrf.mxu1  ;;  %6003 = vmatprep.subr.bf16.mxu1 %v8657_v40  ;;  %v10369_v62 = vadd.f32 %v5149_v61, %v5037_v57  ;;  %v5039_v3 = vadd.f32 %v5038_v20, %v10127_v12  ;;  %5722 = vmatprep.mubr.bf16.mxu0 %v8930_v59  ;;  %v8666_v12 = vld [vmem:[%s9220_s24 + $0x7cc] ss:$16 sps:$4 sm:$0xff]   ;;  %v8670_v20 = vld [vmem:[%s9220_s24 + $0x7a8] ss:$16 sps:$4 sm:$0xff]  }
 0x1c8   : > { %5835 = vmatprep.mubr.bf16.mxu1 %v8931_v53  ;;  %v5040_v14 = vpop.f32.mrf.mxu0 }
 0x1c9   : > { %v5153_v5 = vpop.f32.mrf.mxu1  ;;  %v10380_v7 = vadd.f32 %v5151_v29, %v5039_v3  ;;  %v5041_v19 = vadd.f32 %v5040_v14, %v10132_v1  ;;  %5891 = vmatpush1.bf16.msra.mxu0 %v8652_v47  ;;  %v8932_v1 = vld [vmem:[%s11747_s0 + $0x248] ss:$72 sps:$4 sm:$0xff]   ;;  %v8681_v14 = vld [vmem:[%s9220_s24 + $0x98c] ss:$16 sps:$4 sm:$0xff]  }
 0x1ca   : > { %6004 = vmatpush1.bf16.msra.mxu1 %v8655_v46  ;;  %v5042_v32 = vpop.f32.mrf.mxu0  ;;  %5892 = vmatprep.subr.bf16.mxu0 %v8660_v52  ;;  %v8934_v46 = vld [vmem:[%s11747_s0 + $0x2dc] ss:$72 sps:$4 sm:$0xff]   ;;  %v8673_v29 = vld [vmem:[%s9220_s24 + $0x9a8] ss:$16 sps:$4 sm:$0xff]  }
 0x1cb   : > { %v5155_v16 = vpop.f32.mrf.mxu1  ;;  %6005 = vmatprep.subr.bf16.mxu1 %v8663_v55  ;;  %v10385_v21 = vadd.f32 %v5153_v5, %v5041_v19  ;;  %v5043_v28 = vadd.f32 %v5042_v32, %v10143_v36  ;;  %v8672_v36 = vld [vmem:[%s9220_s24 + $0x7ac] ss:$16 sps:$4 sm:$0xff]   ;;  %v8676_v32 = vld [vmem:[%s9220_s24 + $0x788] ss:$16 sps:$4 sm:$0xff]  }
 0x1cc   : > { %v5046_v9 = vpop.f32.mrf.mxu0  ;;  %5723 = vmatmul.mubr.bf16.gmra.mxu0 %v8932_v1  ;;  %v8687_v1 = vld [vmem:[%s9220_s24 + $0x96c] ss:$16 sps:$4 sm:$0xff]  }
 0x1cd   : > { %v5159_v31 = vpop.f32.mrf.mxu1  ;;  %5836 = vmatmul.mubr.bf16.gmra.mxu1 %v8933_v30  ;;  %v10396_v40 = vadd.f32 %v5155_v16, %v5043_v28  ;;  %v5047_v42 = vadd.f32 %v5046_v9, %v10148_v13  ;;  %5893 = vmatpush2.bf16.msra.mxu0 %v8658_v60  ;;  %v8935_v13 = vld [vmem:[%s11747_s0 + $0x2e4] ss:$72 sps:$4 sm:$0xff]   ;;  %v8679_v16 = vld [vmem:[%s9220_s24 + $0x988] ss:$16 sps:$4 sm:$0xff]  }
 0x1ce   : > { %6006 = vmatpush2.bf16.msra.mxu1 %v8661_v18  ;;  %v5048_v44 = vpop.f32.mrf.mxu0  ;;  %5894 = vmatprep.subr.bf16.mxu0 %v8666_v12  ;;  %v8937_v12 = vld [vmem:[%s11747_s0 + $0x2e0] ss:$72 sps:$4 sm:$0xff]  }
 0x1cf   : > { %v5161_v61 = vpop.f32.mrf.mxu1  ;;  %6007 = vmatprep.subr.bf16.mxu1 %v8669_v43  ;;  %v10401_v45 = vadd.f32 %v5159_v31, %v5047_v42  ;;  %v5049_v47 = vadd.f32 %v5048_v44, %v10159_v63  ;;  %5732 = vmatprep.mubr.bf16.mxu0 %v8934_v46  ;;  %v8678_v63 = vld [vmem:[%s9220_s24 + $0x78c] ss:$16 sps:$4 sm:$0xff]   ;;  %v8682_v44 = vld [vmem:[%s9220_s24 + $0x768] ss:$16 sps:$4 sm:$0xff]  }
 0x1d0   : > { %5845 = vmatprep.mubr.bf16.mxu1 %v8935_v13  ;;  %v5050_v57 = vpop.f32.mrf.mxu0 }
 0x1d1   : > { %v5163_v52 = vpop.f32.mrf.mxu1  ;;  %v10412_v55 = vadd.f32 %v5161_v61, %v5049_v47  ;;  %v5051_v3 = vadd.f32 %v5050_v57, %v10164_v25  ;;  %5895 = vmatpush2.bf16.msra.mxu0 %v8664_v8  ;;  %v8936_v25 = vld [vmem:[%s11747_s0 + $0x2d8] ss:$72 sps:$4 sm:$0xff]   ;;  %v8693_v57 = vld [vmem:[%s9220_s24 + $0x94c] ss:$16 sps:$4 sm:$0xff]  }
 0x1d2   : > { %6008 = vmatpush2.bf16.msra.mxu1 %v8667_v33  ;;  %v5052_v59 = vpop.f32.mrf.mxu0  ;;  %5896 = vmatprep.subr.bf16.mxu0 %v8672_v36  ;;  %v8938_v33 = vld [vmem:[%s11747_s0 + $0x36c] ss:$72 sps:$4 sm:$0xff]   ;;  %v8685_v61 = vld [vmem:[%s9220_s24 + $0x968] ss:$16 sps:$4 sm:$0xff]  }
 0x1d3   : > { %v5165_v53 = vpop.f32.mrf.mxu1  ;;  %6009 = vmatprep.subr.bf16.mxu1 %v8675_v39  ;;  %v10417_v5 = vadd.f32 %v5163_v52, %v5051_v3  ;;  %v5053_v60 = vadd.f32 %v5052_v59, %v10175_v22  ;;  %v8684_v22 = vld [vmem:[%s9220_s24 + $0x76c] ss:$16 sps:$4 sm:$0xff]   ;;  %v8688_v59 = vld [vmem:[%s9220_s24 + $0x748] ss:$16 sps:$4 sm:$0xff]  }
 0x1d4   : > { %v5056_v18 = vpop.f32.mrf.mxu0  ;;  %5733 = vmatmul.mubr.bf16.gmra.mxu0 %v8936_v25  ;;  %v8699_v25 = vld [vmem:[%s9220_s24 + $0x92c] ss:$16 sps:$4 sm:$0xff]  }
 0x1d5   : > { %11754 = vst [vmem:[#allocation6_spill] sm:$0xff] %v10417_v5  ;;  %v5169_v19 = vpop.f32.mrf.mxu1  ;;  %5846 = vmatmul.mubr.bf16.gmra.mxu1 %v8937_v12  ;;  %v10428_v43 = vadd.f32 %v5165_v53, %v5053_v60  ;;  %v5057_v28 = vadd.f32 %v5056_v18, %v10180_v37  ;;  %5897 = vmatpush2.bf16.msra.mxu0 %v8670_v20  ;;  %v8939_v37 = vld [vmem:[%s11747_s0 + $0x374] ss:$72 sps:$4 sm:$0xff]   ;;  %v8691_v53 = vld [vmem:[%s9220_s24 + $0x948] ss:$16 sps:$4 sm:$0xff]  }
 0x1d6   : > { %6010 = vmatpush2.bf16.msra.mxu1 %v8673_v29  ;;  %v5058_v9 = vpop.f32.mrf.mxu0  ;;  %5898 = vmatprep.subr.bf16.mxu0 %v8678_v63  ;;  %v8941_v63 = vld [vmem:[%s11747_s0 + $0x370] ss:$72 sps:$4 sm:$0xff]  }
 0x1d7   : > { %11755 = vst [vmem:[#allocation7_spill] sm:$0xff] %v10428_v43  ;;  %v5171_v31 = vpop.f32.mrf.mxu1  ;;  %6011 = vmatprep.subr.bf16.mxu1 %v8681_v14  ;;  %v10433_v30 = vadd.f32 %v5169_v19, %v5057_v28  ;;  %v5059_v8 = vadd.f32 %v5058_v9, %v10191_v48  ;;  %5742 = vmatprep.mubr.bf16.mxu0 %v8938_v33  ;;  %v8690_v48 = vld [vmem:[%s9220_s24 + $0x74c] ss:$16 sps:$4 sm:$0xff]   ;;  %v8694_v9 = vld [vmem:[%s9220_s24 + $0x728] ss:$16 sps:$4 sm:$0xff]  }
 0x1d8   : > { %5855 = vmatprep.mubr.bf16.mxu1 %v8939_v37  ;;  %v5060_v42 = vpop.f32.mrf.mxu0  ;;  %v8768_v43 = vld [vmem:[%s9220_s24 + $0xbac] ss:$16 sps:$4 sm:$0xff]  }
 0x1d9   : > { %11756 = vst [vmem:[#allocation8_spill] sm:$0xff] %v10433_v30  ;;  %v5173_v36 = vpop.f32.mrf.mxu1  ;;  %v10444_v39 = vadd.f32 %v5171_v31, %v5059_v8  ;;  %v5061_v47 = vadd.f32 %v5060_v42, %v10196_v50  ;;  %5899 = vmatpush2.bf16.msra.mxu0 %v8676_v32  ;;  %v8940_v50 = vld [vmem:[%s11747_s0 + $0x368] ss:$72 sps:$4 sm:$0xff]   ;;  %v8705_v42 = vld [vmem:[%s9220_s24 + $0x90c] ss:$16 sps:$4 sm:$0xff]  }
 0x1da   : > { %6012 = vmatpush2.bf16.msra.mxu1 %v8679_v16  ;;  %v5062_v46 = vpop.f32.mrf.mxu0  ;;  %5900 = vmatprep.subr.bf16.mxu0 %v8684_v22  ;;  %v8942_v16 = vld [vmem:[%s11747_s0 + $0x3fc] ss:$72 sps:$4 sm:$0xff]   ;;  %v8697_v31 = vld [vmem:[%s9220_s24 + $0x928] ss:$16 sps:$4 sm:$0xff]  }
 0x1db   : > { %11757 = vst [vmem:[#allocation9_spill] sm:$0xff] %v10444_v39  ;;  %v5175_v13 = vpop.f32.mrf.mxu1  ;;  %6013 = vmatprep.subr.bf16.mxu1 %v8687_v1  ;;  %v10449_v52 = vadd.f32 %v5173_v36, %v5061_v47  ;;  %v5063_v20 = vadd.f32 %v5062_v46, %v10207_v10  ;;  %v8696_v10 = vld [vmem:[%s9220_s24 + $0x72c] ss:$16 sps:$4 sm:$0xff]   ;;  %v8700_v46 = vld [vmem:[%s9220_s24 + $0x708] ss:$16 sps:$4 sm:$0xff]  }
 0x1dc   : > { %v5066_v29 = vpop.f32.mrf.mxu0  ;;  %5743 = vmatmul.mubr.bf16.gmra.mxu0 %v8940_v50  ;;  %v8711_v50 = vld [vmem:[%s9220_s24 + $0xcec] ss:$16 sps:$4 sm:$0xff]  }
 0x1dd   : > { %11758 = vst [vmem:[#allocation10_spill] sm:$0xff] %v10449_v52  ;;  %v5179_v3 = vpop.f32.mrf.mxu1  ;;  %5856 = vmatmul.mubr.bf16.gmra.mxu1 %v8941_v63  ;;  %v10460_v14 = vadd.f32 %v5175_v13, %v5063_v20  ;;  %v5067_v60 = vadd.f32 %v5066_v29, %v10212_v0  ;;  %5901 = vmatpush2.bf16.msra.mxu0 %v8682_v44  ;;  %v8943_v0 = vld [vmem:[%s11747_s0 + $0x404] ss:$72 sps:$4 sm:$0xff]   ;;  %v8703_v13 = vld [vmem:[%s9220_s24 + $0x908] ss:$16 sps:$4 sm:$0xff]  }
 0x1de   : > { %6014 = vmatpush2.bf16.msra.mxu1 %v8685_v61  ;;  %v5068_v18 = vpop.f32.mrf.mxu0  ;;  %5902 = vmatprep.subr.bf16.mxu0 %v8690_v48  ;;  %v8945_v48 = vld [vmem:[%s11747_s0 + $0x400] ss:$72 sps:$4 sm:$0xff]  }
 0x1df   : > { %11759 = vst [vmem:[#allocation11_spill] sm:$0xff] %v10460_v14  ;;  %v5181_v19 = vpop.f32.mrf.mxu1  ;;  %6015 = vmatprep.subr.bf16.mxu1 %v8693_v57  ;;  %v10465_v12 = vadd.f32 %v5179_v3, %v5067_v60  ;;  %v5069_v32 = vadd.f32 %v5068_v18, %v10223_v34  ;;  %5752 = vmatprep.mubr.bf16.mxu0 %v8942_v16  ;;  %v8702_v34 = vld [vmem:[%s9220_s24 + $0x70c] ss:$16 sps:$4 sm:$0xff]   ;;  %v8706_v18 = vld [vmem:[%s9220_s24 + $0xae8] ss:$16 sps:$4 sm:$0xff]  }
 0x1e0   : > { %5865 = vmatprep.mubr.bf16.mxu1 %v8943_v0  ;;  %v5070_v28 = vpop.f32.mrf.mxu0  ;;  %v8765_v14 = vld [vmem:[%s9220_s24 + $0xdcc] ss:$16 sps:$4 sm:$0xff]  }
 0x1e1   : > { %11760 = vst [vmem:[#allocation12_spill] sm:$0xff] %v10465_v12  ;;  %v5183_v22 = vpop.f32.mrf.mxu1  ;;  %v10476_v1 = vadd.f32 %v5181_v19, %v5069_v32  ;;  %v5071_v8 = vadd.f32 %v5070_v28, %v10228_v15  ;;  %5903 = vmatpush2.bf16.msra.mxu0 %v8688_v59  ;;  %v8944_v15 = vld [vmem:[%s11747_s0 + $0x3f8] ss:$72 sps:$4 sm:$0xff]   ;;  %v8717_v28 = vld [vmem:[%s9220_s24 + $0xccc] ss:$16 sps:$4 sm:$0xff]  }
 0x1e2   : > { %6016 = vmatpush2.bf16.msra.mxu1 %v8691_v53  ;;  %v5072_v33 = vpop.f32.mrf.mxu0  ;;  %5904 = vmatprep.subr.bf16.mxu0 %v8696_v10  ;;  %v8946_v53 = vld [vmem:[%s11747_s0 + $0x1c] ss:$72 sps:$4 sm:$0xff]   ;;  %v8709_v19 = vld [vmem:[%s9220_s24 + $0xce8] ss:$16 sps:$4 sm:$0xff]  }
 0x1e3   : > { %11761 = vst [vmem:[#allocation13_spill] sm:$0xff] %v10476_v1  ;;  %v5185_v37 = vpop.f32.mrf.mxu1  ;;  %6017 = vmatprep.subr.bf16.mxu1 %v8699_v25  ;;  %v10481_v36 = vadd.f32 %v5183_v22, %v5071_v8  ;;  %v5073_v44 = vadd.f32 %v5072_v33, %v10236_v23  ;;  %v8708_v23 = vld [vmem:[%s9220_s24 + $0xaec] ss:$16 sps:$4 sm:$0xff]   ;;  %v8712_v33 = vld [vmem:[%s9220_s24 + $0xac8] ss:$16 sps:$4 sm:$0xff]  }
 0x1e4   : > { %v5076_v61 = vpop.f32.mrf.mxu0  ;;  %5753 = vmatmul.mubr.bf16.gmra.mxu0 %v8944_v15  ;;  %v8950_v15 = vld [vmem:[%s11747_s0 + $0xac] ss:$72 sps:$4 sm:$0xff]  }
 0x1e5   : > { %11762 = vst [vmem:[#allocation14_spill] sm:$0xff] %v10481_v36  ;;  %v5189_v47 = vpop.f32.mrf.mxu1  ;;  %5866 = vmatmul.mubr.bf16.gmra.mxu1 %v8945_v48  ;;  %v10492_v57 = vadd.f32 %v5185_v37, %v5073_v44  ;;  %v5077_v20 = vadd.f32 %v5076_v61, %v10241_v2  ;;  %5905 = vmatpush2.bf16.msra.mxu0 %v8694_v9  ;;  %v8947_v2 = vld [vmem:[%s11747_s0 + $0x24] ss:$72 sps:$4 sm:$0xff]   ;;  %v8715_v37 = vld [vmem:[%s9220_s24 + $0xcc8] ss:$16 sps:$4 sm:$0xff]  }
 0x1e6   : > { %6018 = vmatpush2.bf16.msra.mxu1 %v8697_v31  ;;  %v5078_v29 = vpop.f32.mrf.mxu0  ;;  %5906 = vmatprep.subr.bf16.mxu0 %v8702_v34  ;;  %v8949_v34 = vld [vmem:[%s11747_s0 + $0x20] ss:$72 sps:$4 sm:$0xff]   ;;  %v8951_v48 = vld [vmem:[%s11747_s0 + $0xb4] ss:$72 sps:$4 sm:$0xff]  }
 0x1e7   : > { %11763 = vst [vmem:[#allocation15_spill] sm:$0xff] %v10492_v57  ;;  %v5191_v3 = vpop.f32.mrf.mxu1  ;;  %6019 = vmatprep.subr.bf16.mxu1 %v8705_v42  ;;  %v10497_v63 = vadd.f32 %v5189_v47, %v5077_v20  ;;  %v5079_v59 = vadd.f32 %v5078_v29, %v10252_v38  ;;  %5908 = vmatprep.mubr.bf16.mxu0 %v8946_v53  ;;  %v8714_v38 = vld [vmem:[%s9220_s24 + $0xacc] ss:$16 sps:$4 sm:$0xff]   ;;  %v8718_v20 = vld [vmem:[%s9220_s24 + $0xaa8] ss:$16 sps:$4 sm:$0xff]  }
 0x1e8   : > { %6021 = vmatprep.mubr.bf16.mxu1 %v8947_v2  ;;  %v5080_v60 = vpop.f32.mrf.mxu0  ;;  %v8723_v47 = vld [vmem:[%s9220_s24 + $0xcac] ss:$16 sps:$4 sm:$0xff]  }
 0x1e9   : > { %11764 = vst [vmem:[#allocation16_spill] sm:$0xff] %v10497_v63  ;;  %v5193_v10 = vpop.f32.mrf.mxu1  ;;  %v10508_v25 = vadd.f32 %v5191_v3, %v5079_v59  ;;  %v5081_v32 = vadd.f32 %v5080_v60, %v10257_v27  ;;  %5907 = vmatpush2.bf16.msra.mxu0 %v8700_v46  ;;  %v8948_v27 = vld [vmem:[%s11747_s0 + $0x18] ss:$72 sps:$4 sm:$0xff]   ;;  %v8726_v29 = vld [vmem:[%s9220_s24 + $0xa8c] ss:$16 sps:$4 sm:$0xff]  }
 0x1ea   : > { %6020 = vmatpush2.bf16.msra.mxu1 %v8703_v13  ;;  %v5082_v16 = vpop.f32.mrf.mxu0  ;;  %6102 = vmatprep.subr.bf16.mxu0 %v8708_v23  ;;  %v8721_v23 = vld [vmem:[%s9220_s24 + $0xca8] ss:$16 sps:$4 sm:$0xff]   ;;  %v8729_v59 = vld [vmem:[%s9220_s24 + $0xc8c] ss:$16 sps:$4 sm:$0xff]  }
 0x1eb   : > { %11765 = vst [vmem:[#allocation17_spill] sm:$0xff] %v10508_v25  ;;  %v5195_v0 = vpop.f32.mrf.mxu1  ;;  %6215 = vmatprep.subr.bf16.mxu1 %v8711_v50  ;;  %v10513_v22 = vadd.f32 %v5193_v10, %v5081_v32  ;;  %v5083_v9 = vadd.f32 %v5082_v16, %v10268_v54  ;;  %v8720_v54 = vld [vmem:[%s9220_s24 + $0xaac] ss:$16 sps:$4 sm:$0xff]   ;;  %v8952_v60 = vld [vmem:[%s11747_s0 + $0xa8] ss:$72 sps:$4 sm:$0xff]  }
 0x1ec   : > { %v10516_v31 = vpop.f32.mrf.mxu0  ;;  %5909 = vmatmul.mubr.bf16.vlgmr.msra.gmra.mxu0 %v8948_v27  ;;  %v8953_v10 = vld [vmem:[%s11747_s0 + $0xb0] ss:$72 sps:$4 sm:$0xff]   ;;  %v8732_v32 = vld [vmem:[%s9220_s24 + $0xa6c] ss:$16 sps:$4 sm:$0xff]  }
 0x1ed   : > { %11766 = vst [vmem:[#allocation18_spill] sm:$0xff] %v10513_v22  ;;  %v10518_v8 = vpop.f32.mrf.mxu1  ;;  %6022 = vmatmul.mubr.bf16.vlgmr.msra.gmra.mxu1 %v8949_v34  ;;  %v10528_v42 = vadd.f32 %v5195_v0, %v5083_v9  ;;  %6103 = vmatpush1.bf16.msra.mxu0 %v8706_v18  ;;  %v8724_v18 = vld [vmem:[%s9220_s24 + $0xa88] ss:$16 sps:$4 sm:$0xff]   ;;  %v8735_v0 = vld [vmem:[%s9220_s24 + $0xc6c] ss:$16 sps:$4 sm:$0xff]  }
 0x1ee   : > { %6216 = vmatpush1.bf16.msra.mxu1 %v8709_v19  ;;  %v10531_v44 = vpop.f32.mrf.mxu0  ;;  %6104 = vmatprep.subr.bf16.mxu0 %v8714_v38  ;;  %v8727_v19 = vld [vmem:[%s9220_s24 + $0xc88] ss:$16 sps:$4 sm:$0xff]   ;;  %v8955_v9 = vld [vmem:[%s11747_s0 + $0x144] ss:$72 sps:$4 sm:$0xff]  }
 0x1ef   : > { %11767 = vst [vmem:[#allocation19_spill] sm:$0xff] %v10528_v42  ;;  %v10533_v61 = vpop.f32.mrf.mxu1  ;;  %6217 = vmatprep.subr.bf16.mxu1 %v8717_v28  ;;  %5918 = vmatprep.mubr.bf16.mxu0 %v8950_v15  ;;  %v8954_v28 = vld [vmem:[%s11747_s0 + $0x13c] ss:$72 sps:$4 sm:$0xff]   ;;  %v8960_v25 = vld [vmem:[%s11747_s0 + $0x1c8] ss:$72 sps:$4 sm:$0xff]  }
 0x1f0   : > { %6031 = vmatprep.mubr.bf16.mxu1 %v8951_v48  ;;  %v10542_v46 = vpop.f32.mrf.mxu0  ;;  %v8741_v48 = vld [vmem:[%s9220_s24 + $0xc4c] ss:$16 sps:$4 sm:$0xff]   ;;  %v8751_v63 = vld [vmem:[%s9220_s24 + $0xc08] ss:$16 sps:$4 sm:$0xff]  }
 0x1f1   : > { %v10544_v13 = vpop.f32.mrf.mxu1  ;;  %6105 = vmatpush1.bf16.msra.mxu0 %v8712_v33  ;;  %v8730_v33 = vld [vmem:[%s9220_s24 + $0xa68] ss:$16 sps:$4 sm:$0xff]   ;;  %v8753_v42 = vld [vmem:[%s9220_s24 + $0xc0c] ss:$16 sps:$4 sm:$0xff]  }
 0x1f2   : > { %6218 = vmatpush1.bf16.msra.mxu1 %v8715_v37  ;;  %v10549_v3 = vpop.f32.mrf.mxu0  ;;  %6106 = vmatprep.subr.bf16.mxu0 %v8720_v54  ;;  %v8733_v37 = vld [vmem:[%s9220_s24 + $0xc68] ss:$16 sps:$4 sm:$0xff]   ;;  %v8738_v54 = vld [vmem:[%s9220_s24 + $0xa4c] ss:$16 sps:$4 sm:$0xff]  }
 0x1f3   : > { %v10551_v50 = vpop.f32.mrf.mxu1  ;;  %6219 = vmatprep.subr.bf16.mxu1 %v8723_v47 }
 0x1f4   : > { %v10554_v53 = vpop.f32.mrf.mxu0  ;;  %5919 = vmatmul.mubr.bf16.gmra.mxu0 %v8952_v60  ;;  %v8736_v60 = vld [vmem:[%s9220_s24 + $0xa48] ss:$16 sps:$4 sm:$0xff]  }
 0x1f5   : > { %v10556_v2 = vpop.f32.mrf.mxu1  ;;  %6032 = vmatmul.mubr.bf16.gmra.mxu1 %v8953_v10  ;;  %6107 = vmatpush1.bf16.msra.mxu0 %v8718_v20  ;;  %v8739_v10 = vld [vmem:[%s9220_s24 + $0xc48] ss:$16 sps:$4 sm:$0xff]  }
 0x1f6   : > { %6220 = vmatpush1.bf16.msra.mxu1 %v8721_v23  ;;  %v10567_v38 = vpop.f32.mrf.mxu0  ;;  %6108 = vmatprep.subr.bf16.mxu0 %v8726_v29  ;;  %v8956_v29 = vld [vmem:[%s11747_s0 + $0x138] ss:$72 sps:$4 sm:$0xff]  }
 0x1f7   : > { %v10569_v16 = vpop.f32.mrf.mxu1  ;;  %6221 = vmatprep.subr.bf16.mxu1 %v8729_v59  ;;  %5928 = vmatprep.mubr.bf16.mxu0 %v8954_v28  ;;  %v8957_v59 = vld [vmem:[%s11747_s0 + $0x140] ss:$72 sps:$4 sm:$0xff]   ;;  %v8958_v28 = vld [vmem:[%s11747_s0 + $0x1cc] ss:$72 sps:$4 sm:$0xff]  }
 0x1f8   : > { %6041 = vmatprep.mubr.bf16.mxu1 %v8955_v9  ;;  %v10578_v27 = vpop.f32.mrf.mxu0  ;;  %v8959_v9 = vld [vmem:[%s11747_s0 + $0x1d4] ss:$72 sps:$4 sm:$0xff]  }
 0x1f9   : > { %v10580_v34 = vpop.f32.mrf.mxu1  ;;  %6109 = vmatpush1.bf16.msra.mxu0 %v8724_v18  ;;  %v8744_v18 = vld [vmem:[%s9220_s24 + $0xa2c] ss:$16 sps:$4 sm:$0xff]  }
 0x1fa   : > { %6222 = vmatpush1.bf16.msra.mxu1 %v8727_v19  ;;  %v10585_v47 = vpop.f32.mrf.mxu0  ;;  %6110 = vmatprep.subr.bf16.mxu0 %v8732_v32 }
 0x1fb   : > { %v10587_v15 = vpop.f32.mrf.mxu1  ;;  %6223 = vmatprep.subr.bf16.mxu1 %v8735_v0  ;;  %v8747_v0 = vld [vmem:[%s9220_s24 + $0xc2c] ss:$16 sps:$4 sm:$0xff]  }
 0x1fc   : > { %v10590_v20 = vpop.f32.mrf.mxu0  ;;  %5929 = vmatmul.mubr.bf16.gmra.mxu0 %v8956_v29  ;;  %v8742_v29 = vld [vmem:[%s9220_s24 + $0xa28] ss:$16 sps:$4 sm:$0xff]  }
 0x1fd   : > { %v10592_v23 = vpop.f32.mrf.mxu1  ;;  %6042 = vmatmul.mubr.bf16.gmra.mxu1 %v8957_v59  ;;  %6111 = vmatpush1.bf16.msra.mxu0 %v8730_v33 }
 0x1fe   : > { %6224 = vmatpush1.bf16.msra.mxu1 %v8733_v37  ;;  %v10603_v19 = vpop.f32.mrf.mxu0  ;;  %6112 = vmatprep.subr.bf16.mxu0 %v8738_v54  ;;  %v8745_v54 = vld [vmem:[%s9220_s24 + $0xc28] ss:$16 sps:$4 sm:$0xff]  }
 0x1ff   : > { %v10605_v32 = vpop.f32.mrf.mxu1  ;;  %6225 = vmatprep.subr.bf16.mxu1 %v8741_v48  ;;  %5938 = vmatprep.mubr.bf16.mxu0 %v8958_v28  ;;  %v8750_v48 = vld [vmem:[%s9220_s24 + $0xa0c] ss:$16 sps:$4 sm:$0xff]  }
 0x200   : > { %6051 = vmatprep.mubr.bf16.mxu1 %v8959_v9  ;;  %v10614_v33 = vpop.f32.mrf.mxu0 }
 0x201   : > { %v10616_v37 = vpop.f32.mrf.mxu1  ;;  %6113 = vmatpush1.bf16.msra.mxu0 %v8736_v60  ;;  %v8961_v60 = vld [vmem:[%s11747_s0 + $0x1d0] ss:$72 sps:$4 sm:$0xff]  }
 0x202   : > { %6226 = vmatpush1.bf16.msra.mxu1 %v8739_v10  ;;  %v10621_v59 = vpop.f32.mrf.mxu0  ;;  %6114 = vmatprep.subr.bf16.mxu0 %v8744_v18  ;;  %v8748_v10 = vld [vmem:[%s9220_s24 + $0xa08] ss:$16 sps:$4 sm:$0xff]   ;;  %v8756_v18 = vld [vmem:[%s9220_s24 + $0xbec] ss:$16 sps:$4 sm:$0xff]  }
 0x203   : > { %v10623_v28 = vpop.f32.mrf.mxu1  ;;  %6227 = vmatprep.subr.bf16.mxu1 %v8747_v0 }
 0x204   : > { %v10626_v9 = vpop.f32.mrf.mxu0  ;;  %5939 = vmatmul.mubr.bf16.gmra.mxu0 %v8960_v25  ;;  %v8759_v25 = vld [vmem:[%s9220_s24 + $0xdec] ss:$16 sps:$4 sm:$0xff]  }
 0x205   : > { %v10628_v22 = vpop.f32.mrf.mxu1  ;;  %6052 = vmatmul.mubr.bf16.gmra.mxu1 %v8961_v60  ;;  %6115 = vmatpush1.bf16.msra.mxu0 %v8742_v29  ;;  %v8962_v60 = vld [vmem:[%s11747_s0 + $0x25c] ss:$72 sps:$4 sm:$0xff]  }
 0x206   : > { %6228 = vmatpush1.bf16.msra.mxu1 %v8745_v54  ;;  %v10639_v0 = vpop.f32.mrf.mxu0  ;;  %6116 = vmatprep.subr.bf16.mxu0 %v8750_v48  ;;  %v8963_v29 = vld [vmem:[%s11747_s0 + $0x264] ss:$72 sps:$4 sm:$0xff]   ;;  %v8757_v48 = vld [vmem:[%s9220_s24 + $0xde8] ss:$16 sps:$4 sm:$0xff]  }
 0x207   : > { %v10641_v57 = vpop.f32.mrf.mxu1  ;;  %6229 = vmatprep.subr.bf16.mxu1 %v8753_v42  ;;  %5948 = vmatprep.mubr.bf16.mxu0 %v8962_v60  ;;  %v8754_v42 = vld [vmem:[%s9220_s24 + $0xbe8] ss:$16 sps:$4 sm:$0xff]   ;;  %v8762_v60 = vld [vmem:[%s9220_s24 + $0xbcc] ss:$16 sps:$4 sm:$0xff]  }
 0x208   : > { %6061 = vmatprep.mubr.bf16.mxu1 %v8963_v29  ;;  %v10650_v54 = vpop.f32.mrf.mxu0 }
 0x209   : > { %v10652_v36 = vpop.f32.mrf.mxu1  ;;  %6117 = vmatpush1.bf16.msra.mxu0 %v8748_v10  ;;  %v8965_v10 = vld [vmem:[%s11747_s0 + $0x260] ss:$72 sps:$4 sm:$0xff]  }
 0x20a   : > { %6230 = vmatpush1.bf16.msra.mxu1 %v8751_v63  ;;  %v10656_v1 = vpop.f32.mrf.mxu0  ;;  %6118 = vmatprep.subr.bf16.mxu0 %v8756_v18  ;;  %v8964_v63 = vld [vmem:[%s11747_s0 + $0x258] ss:$72 sps:$4 sm:$0xff]  }
 0x20b   : > { %v10658_v12 = vpop.f32.mrf.mxu1  ;;  %6231 = vmatprep.subr.bf16.mxu1 %v8759_v25  ;;  %v8760_v18 = vld [vmem:[%s9220_s24 + $0xbc8] ss:$16 sps:$4 sm:$0xff]  }
 0x20c   : > { %11768 = vst [vmem:[#allocation20_spill] sm:$0xff] %v10658_v12  ;;  %v10662_v29 = vpop.f32.mrf.mxu0  ;;  %5949 = vmatmul.mubr.bf16.gmra.mxu0 %v8964_v63  ;;  %v8763_v25 = vld [vmem:[%s9220_s24 + $0xdc8] ss:$16 sps:$4 sm:$0xff]   ;;  %v8771_v63 = vld [vmem:[%s9220_s24 + $0xdac] ss:$16 sps:$4 sm:$0xff]  }
 0x20d   : > { %v10664_v52 = vpop.f32.mrf.mxu1  ;;  %6062 = vmatmul.mubr.bf16.gmra.mxu1 %v8965_v10  ;;  %6119 = vmatpush2.bf16.msra.mxu0 %v8754_v42  ;;  %v8966_v10 = vld [vmem:[%s11747_s0 + $0x2ec] ss:$72 sps:$4 sm:$0xff]  }
 0x20e   : > { %11769 = vst [vmem:[#allocation21_spill] sm:$0xff] %v10664_v52  ;;  %6232 = vmatpush2.bf16.msra.mxu1 %v8757_v48  ;;  %v10674_v39 = vpop.f32.mrf.mxu0  ;;  %6120 = vmatprep.subr.bf16.mxu0 %v8762_v60  ;;  %v8967_v42 = vld [vmem:[%s11747_s0 + $0x2f4] ss:$72 sps:$4 sm:$0xff]   ;;  %v8769_v60 = vld [vmem:[%s9220_s24 + $0xda8] ss:$16 sps:$4 sm:$0xff]  }
 0x20f   : > { %v10676_v30 = vpop.f32.mrf.mxu1  ;;  %6233 = vmatprep.subr.bf16.mxu1 %v8765_v14  ;;  %5958 = vmatprep.mubr.bf16.mxu0 %v8966_v10  ;;  %v8766_v14 = vld [vmem:[%s9220_s24 + $0xba8] ss:$16 sps:$4 sm:$0xff]   ;;  %v8774_v10 = vld [vmem:[%s9220_s24 + $0xb8c] ss:$16 sps:$4 sm:$0xff]  }
 0x210   : > { %11770 = vst [vmem:[#allocation22_spill] sm:$0xff] %v10676_v30  ;;  %6071 = vmatprep.mubr.bf16.mxu1 %v8967_v42  ;;  %v10686_v48 = vpop.f32.mrf.mxu0  ;;  %v8777_v12 = vld [vmem:[%s9220_s24 + $0xd8c] ss:$16 sps:$4 sm:$0xff]  }
 0x211   : > { %11771 = vst [vmem:[#allocation23_spill] sm:$0xff] %v10686_v48  ;;  %v10688_v5 = vpop.f32.mrf.mxu1  ;;  %6121 = vmatpush2.bf16.msra.mxu0 %v8760_v18  ;;  %v8968_v18 = vld [vmem:[%s11747_s0 + $0x2e8] ss:$72 sps:$4 sm:$0xff]  }
 0x212   : > { %11772 = vst [vmem:[#allocation24_spill] sm:$0xff] %v10688_v5  ;;  %6234 = vmatpush2.bf16.msra.mxu1 %v8763_v25  ;;  %v10692_v30 = vpop.f32.mrf.mxu0  ;;  %6122 = vmatprep.subr.bf16.mxu0 %v8768_v43  ;;  %v8969_v25 = vld [vmem:[%s11747_s0 + $0x2f0] ss:$72 sps:$4 sm:$0xff]  }
 0x213   : > { %11773 = vst [vmem:[#allocation25_spill] sm:$0xff] %v10692_v30  ;;  %v10694_v52 = vpop.f32.mrf.mxu1  ;;  %6235 = vmatprep.subr.bf16.mxu1 %v8771_v63  ;;  %v8772_v43 = vld [vmem:[%s9220_s24 + $0xb88] ss:$16 sps:$4 sm:$0xff]   ;;  %v8789_v30 = vld [vmem:[%s9220_s24 + $0xd4c] ss:$16 sps:$4 sm:$0xff]  }
 0x214   : > { %11774 = vst [vmem:[#allocation26_spill] sm:$0xff] %v10694_v52  ;;  %v10698_v42 = vpop.f32.mrf.mxu0  ;;  %5959 = vmatmul.mubr.bf16.gmra.mxu0 %v8968_v18  ;;  %v8775_v63 = vld [vmem:[%s9220_s24 + $0xd88] ss:$16 sps:$4 sm:$0xff]   ;;  %v8783_v18 = vld [vmem:[%s9220_s24 + $0xd6c] ss:$16 sps:$4 sm:$0xff]  }
 0x215   : > { %11775 = vst [vmem:[#allocation27_spill] sm:$0xff] %v10698_v42  ;;  %v10700_v48 = vpop.f32.mrf.mxu1  ;;  %6072 = vmatmul.mubr.bf16.gmra.mxu1 %v8969_v25  ;;  %6123 = vmatpush2.bf16.msra.mxu0 %v8766_v14  ;;  %v8970_v25 = vld [vmem:[%s11747_s0 + $0x37c] ss:$72 sps:$4 sm:$0xff]  }
 0x216   : > { %11776 = vst [vmem:[#allocation28_spill] sm:$0xff] %v10700_v48  ;;  %6236 = vmatpush2.bf16.msra.mxu1 %v8769_v60  ;;  %v10710_v52 = vpop.f32.mrf.mxu0  ;;  %6124 = vmatprep.subr.bf16.mxu0 %v8774_v10  ;;  %v8780_v48 = vld [vmem:[%s9220_s24 + $0xb6c] ss:$16 sps:$4 sm:$0xff]   ;;  %v8781_v10 = vld [vmem:[%s9220_s24 + $0xd68] ss:$16 sps:$4 sm:$0xff]  }
 0x217   : > { %11777 = vst [vmem:[#allocation29_spill] sm:$0xff] %v10710_v52  ;;  %v10712_v5 = vpop.f32.mrf.mxu1  ;;  %6237 = vmatprep.subr.bf16.mxu1 %v8777_v12  ;;  %5968 = vmatprep.mubr.bf16.mxu0 %v8970_v25  ;;  %v8971_v14 = vld [vmem:[%s11747_s0 + $0x384] ss:$72 sps:$4 sm:$0xff]   ;;  %v8778_v12 = vld [vmem:[%s9220_s24 + $0xb68] ss:$16 sps:$4 sm:$0xff]  }
 0x218   : > { %11778 = vst [vmem:[#allocation30_spill] sm:$0xff] %v10712_v5  ;;  %6081 = vmatprep.mubr.bf16.mxu1 %v8971_v14  ;;  %v10722_v60 = vpop.f32.mrf.mxu0  ;;  %v8786_v25 = vld [vmem:[%s9220_s24 + $0xb4c] ss:$16 sps:$4 sm:$0xff]  }
 0x219   : > { %11779 = vst [vmem:[#allocation31_spill] sm:$0xff] %v10722_v60  ;;  %v10724_v52 = vpop.f32.mrf.mxu1  ;;  %6125 = vmatpush2.bf16.msra.mxu0 %v8772_v43  ;;  %v8972_v43 = vld [vmem:[%s11747_s0 + $0x378] ss:$72 sps:$4 sm:$0xff]  }
 0x21a   : > { %11780 = vst [vmem:[#allocation32_spill] sm:$0xff] %v10724_v52  ;;  %6238 = vmatpush2.bf16.msra.mxu1 %v8775_v63  ;;  %v10728_v5 = vpop.f32.mrf.mxu0  ;;  %6126 = vmatprep.subr.bf16.mxu0 %v8780_v48  ;;  %v8973_v63 = vld [vmem:[%s11747_s0 + $0x380] ss:$72 sps:$4 sm:$0xff]  }
 0x21b   : > { %11781 = vst [vmem:[#allocation33_spill] sm:$0xff] %v10728_v5  ;;  %v10730_v42 = vpop.f32.mrf.mxu1  ;;  %6239 = vmatprep.subr.bf16.mxu1 %v8783_v18  ;;  %v8784_v48 = vld [vmem:[%s9220_s24 + $0xb48] ss:$16 sps:$4 sm:$0xff]   ;;  %v8801_v5 = vld [vmem:[%s9220_s24 + $0xd0c] ss:$16 sps:$4 sm:$0xff]  }
 0x21c   : > { %11782 = vst [vmem:[#allocation34_spill] sm:$0xff] %v10730_v42  ;;  %v10734_v14 = vpop.f32.mrf.mxu0  ;;  %5969 = vmatmul.mubr.bf16.gmra.mxu0 %v8972_v43  ;;  %v8787_v18 = vld [vmem:[%s9220_s24 + $0xd48] ss:$16 sps:$4 sm:$0xff]   ;;  %v8795_v43 = vld [vmem:[%s9220_s24 + $0xd2c] ss:$16 sps:$4 sm:$0xff]  }
 0x21d   : > { %11783 = vst [vmem:[#allocation35_spill] sm:$0xff] %v10734_v14  ;;  %v10736_v60 = vpop.f32.mrf.mxu1  ;;  %6082 = vmatmul.mubr.bf16.gmra.mxu1 %v8973_v63  ;;  %6127 = vmatpush2.bf16.msra.mxu0 %v8778_v12  ;;  %v8974_v63 = vld [vmem:[%s11747_s0 + $0x40c] ss:$72 sps:$4 sm:$0xff]  }
 0x21e   : > { %11784 = vst [vmem:[#allocation36_spill] sm:$0xff] %v10736_v60  ;;  %6240 = vmatpush2.bf16.msra.mxu1 %v8781_v10  ;;  %v10746_v42 = vpop.f32.mrf.mxu0  ;;  %6128 = vmatprep.subr.bf16.mxu0 %v8786_v25  ;;  %v8792_v60 = vld [vmem:[%s9220_s24 + $0xb2c] ss:$16 sps:$4 sm:$0xff]   ;;  %v8793_v25 = vld [vmem:[%s9220_s24 + $0xd28] ss:$16 sps:$4 sm:$0xff]  }
 0x21f   : > { %11785 = vst [vmem:[#allocation37_spill] sm:$0xff] %v10746_v42  ;;  %v10748_v52 = vpop.f32.mrf.mxu1  ;;  %6241 = vmatprep.subr.bf16.mxu1 %v8789_v30  ;;  %5978 = vmatprep.mubr.bf16.mxu0 %v8974_v63  ;;  %v8975_v12 = vld [vmem:[%s11747_s0 + $0x414] ss:$72 sps:$4 sm:$0xff]   ;;  %v8790_v30 = vld [vmem:[%s9220_s24 + $0xb28] ss:$16 sps:$4 sm:$0xff]  }
 0x220   : > { %11786 = vst [vmem:[#allocation38_spill] sm:$0xff] %v10748_v52  ;;  %6091 = vmatprep.mubr.bf16.mxu1 %v8975_v12  ;;  %v10758_v10 = vpop.f32.mrf.mxu0  ;;  %v8798_v63 = vld [vmem:[%s9220_s24 + $0xb0c] ss:$16 sps:$4 sm:$0xff]  }
 0x221   : > { %11787 = vst [vmem:[#allocation39_spill] sm:$0xff] %v10758_v10  ;;  %v10760_v42 = vpop.f32.mrf.mxu1  ;;  %6129 = vmatpush2.bf16.msra.mxu0 %v8784_v48  ;;  %v8976_v48 = vld [vmem:[%s11747_s0 + $0x408] ss:$72 sps:$4 sm:$0xff]  }
 0x222   : > { %11788 = vst [vmem:[#allocation40_spill] sm:$0xff] %v10760_v42  ;;  %6242 = vmatpush2.bf16.msra.mxu1 %v8787_v18  ;;  %v10764_v52 = vpop.f32.mrf.mxu0  ;;  %6130 = vmatprep.subr.bf16.mxu0 %v8792_v60  ;;  %v8977_v18 = vld [vmem:[%s11747_s0 + $0x410] ss:$72 sps:$4 sm:$0xff]  }
 0x223   : > { %11789 = vst [vmem:[#allocation41_spill] sm:$0xff] %v10764_v52  ;;  %v10766_v14 = vpop.f32.mrf.mxu1  ;;  %6243 = vmatprep.subr.bf16.mxu1 %v8795_v43  ;;  %v8796_v60 = vld [vmem:[%s9220_s24 + $0xb08] ss:$16 sps:$4 sm:$0xff]  }
 0x224   : > { %11790 = vst [vmem:[#allocation42_spill] sm:$0xff] %v10766_v14  ;;  %v10770_v12 = vpop.f32.mrf.mxu0  ;;  %5979 = vmatmul.mubr.bf16.gmra.mxu0 %v8976_v48  ;;  %v8799_v43 = vld [vmem:[%s9220_s24 + $0xd08] ss:$16 sps:$4 sm:$0xff]   ;;  %v8978_v48 = vld [vmem:[%s11747_s0 + $0x2c] ss:$72 sps:$4 sm:$0xff]  }
 0x225   : > { %11791 = vst [vmem:[#allocation43_spill] sm:$0xff] %v10770_v12  ;;  %v10772_v10 = vpop.f32.mrf.mxu1  ;;  %6092 = vmatmul.mubr.bf16.gmra.mxu1 %v8977_v18  ;;  %6131 = vmatpush2.bf16.msra.mxu0 %v8790_v30  ;;  %v8807_v12 = vld [vmem:[%s9220_s24 + $0x10ec] ss:$16 sps:$4 sm:$0xff]  }
 0x226   : > { %11792 = vst [vmem:[#allocation44_spill] sm:$0xff] %v10772_v10  ;;  %6244 = vmatpush2.bf16.msra.mxu1 %v8793_v25  ;;  %v10782_v14 = vpop.f32.mrf.mxu0  ;;  %6132 = vmatprep.subr.bf16.mxu0 %v8798_v63  ;;  %v8804_v10 = vld [vmem:[%s9220_s24 + $0xeec] ss:$16 sps:$4 sm:$0xff]   ;;  %v5233_v25 = vadd.f32 %v10516_v31, %v10273_v41  ;;  %v5235_v63 = vadd.f32 %v10531_v44, %v10284_v6  ;;  %v8980_v6 = vld [vmem:[%s11747_s0 + $0x28] ss:$72 sps:$4 sm:$0xff]  }
 0x227   : > { %11793 = vst [vmem:[#allocation45_spill] sm:$0xff] %v10782_v14  ;;  %v10784_v42 = vpop.f32.mrf.mxu1  ;;  %6245 = vmatprep.subr.bf16.mxu1 %v8801_v5  ;;  %6134 = vmatprep.mubr.bf16.mxu0 %v8978_v48  ;;  %v8979_v30 = vld [vmem:[%s11747_s0 + $0x34] ss:$72 sps:$4 sm:$0xff]   ;;  %v8805_v48 = vld [vmem:[%s9220_s24 + $0x10e8] ss:$16 sps:$4 sm:$0xff]  }
 0x228   : > { %11794 = vst [vmem:[#allocation46_spill] sm:$0xff] %v10784_v42  ;;  %6247 = vmatprep.mubr.bf16.mxu1 %v8979_v30  ;;  %v10796_v18 = vpop.f32.mrf.mxu0  ;;  %v8802_v42 = vld [vmem:[%s9220_s24 + $0xee8] ss:$16 sps:$4 sm:$0xff]   ;;  %v8810_v41 = vld [vmem:[%s9220_s24 + $0xecc] ss:$16 sps:$4 sm:$0xff]   ;;  %v5346_v30 = vadd.f32 %v10518_v8, %v5233_v25  ;;  %v5237_v8 = vadd.f32 %v10542_v46, %v10289_v11  ;;  %v5243_v46 = vadd.f32 %v10554_v53, %v10305_v35 }
 0x229   : > { %11795 = vst [vmem:[#allocation47_spill] sm:$0xff] %v10796_v18  ;;  %v10798_v5 = vpop.f32.mrf.mxu1  ;;  %6133 = vmatpush2.bf16.msra.mxu0 %v8796_v60  ;;  %v8813_v31 = vld [vmem:[%s9220_s24 + $0x10cc] ss:$16 sps:$4 sm:$0xff]   ;;  %v8981_v44 = vld [vmem:[%s11747_s0 + $0x30] ss:$72 sps:$4 sm:$0xff]  }
 0x22a   : > { %11796 = vst [vmem:[#allocation48_spill] sm:$0xff] %v10798_v5  ;;  %6246 = vmatpush2.bf16.msra.mxu1 %v8799_v43  ;;  %v10804_v14 = vpop.f32.mrf.mxu0  ;;  %6328 = vmatprep.subr.bf16.mxu0 %v8804_v10  ;;  %v5348_v10 = vadd.f32 %v10533_v61, %v5235_v63  ;;  %v8808_v60 = vld [vmem:[%s9220_s24 + $0xec8] ss:$16 sps:$4 sm:$0xff]   ;;  %v8982_v11 = vld [vmem:[%s11747_s0 + $0xbc] ss:$72 sps:$4 sm:$0xff]   ;;  %v5356_v53 = vadd.f32 %v10556_v2, %v5243_v46 }
 0x22b   : > { %v10806_v52 = vpop.f32.mrf.mxu1  ;;  %6441 = vmatprep.subr.bf16.mxu1 %v8807_v12  ;;  %v5239_v12 = vadd.f32 %v10549_v3, %v10300_v24  ;;  %v8811_v43 = vld [vmem:[%s9220_s24 + $0x10c8] ss:$16 sps:$4 sm:$0xff]   ;;  %v8983_v24 = vld [vmem:[%s11747_s0 + $0xc4] ss:$72 sps:$4 sm:$0xff]   ;;  %v5245_v3 = vadd.f32 %v10567_v38, %v10316_v51  ;;  %v5247_v2 = vadd.f32 %v10578_v27, %v10321_v49  ;;  %v8987_v27 = vld [vmem:[%s11747_s0 + $0x154] ss:$72 sps:$4 sm:$0xff]  }
 0x22c   : > { %v5458_v5 = vpop.f32.mrf.mxu0  ;;  %6135 = vmatmul.mubr.bf16.vlgmr.msra.gmra.mxu0 %v8980_v6  ;;  %v8822_v35 = vld [vmem:[%s9220_s24 + $0xe8c] ss:$16 sps:$4 sm:$0xff]  }
 0x22d   : > { %v10811_v18 = vpop.f32.mrf.mxu1  ;;  %6248 = vmatmul.mubr.bf16.vlgmr.msra.gmra.mxu1 %v8981_v44  ;;  %6329 = vmatpush1.bf16.msra.mxu0 %v8802_v42  ;;  %v8819_v44 = vld [vmem:[%s9220_s24 + $0x10ac] ss:$16 sps:$4 sm:$0xff]   ;;  %v5459_v61 = vadd.f32 %v5458_v5, %v5346_v30  ;;  %v8814_v30 = vld [vmem:[%s9220_s24 + $0xea8] ss:$16 sps:$4 sm:$0xff]   ;;  %v5358_v38 = vadd.f32 %v10569_v16, %v5245_v3  ;;  %v5249_v16 = vadd.f32 %v10585_v47, %v10332_v58 }
 0x22e   : > { %11797 = vst [vmem:[#allocation49_spill] sm:$0xff] %v10811_v18  ;;  %6442 = vmatpush1.bf16.msra.mxu1 %v8805_v48  ;;  %v5460_v25 = vpop.f32.mrf.mxu0  ;;  %6330 = vmatprep.subr.bf16.mxu0 %v8810_v41  ;;  %v8816_v18 = vld [vmem:[%s9220_s24 + $0xeac] ss:$16 sps:$4 sm:$0xff]   ;;  %v5350_v48 = vadd.f32 %v10544_v13, %v5237_v8  ;;  %v5352_v41 = vadd.f32 %v10551_v50, %v5239_v12 }
 0x22f   : > { %v10827_v6 = vpop.f32.mrf.mxu1  ;;  %6443 = vmatprep.subr.bf16.mxu1 %v8813_v31  ;;  %v5461_v63 = vadd.f32 %v5460_v25, %v5348_v10  ;;  %6144 = vmatprep.mubr.bf16.mxu0 %v8982_v11  ;;  %v8817_v10 = vld [vmem:[%s9220_s24 + $0x10a8] ss:$16 sps:$4 sm:$0xff]   ;;  %v8825_v51 = vld [vmem:[%s9220_s24 + $0x108c] ss:$16 sps:$4 sm:$0xff]   ;;  %v5253_v47 = vadd.f32 %v10590_v20, %v10337_v4 }
 0x230   : > { %6257 = vmatprep.mubr.bf16.mxu1 %v8983_v24  ;;  %v5462_v42 = vpop.f32.mrf.mxu0  ;;  %v8828_v46 = vld [vmem:[%s9220_s24 + $0xe6c] ss:$16 sps:$4 sm:$0xff]  }
 0x231   : > { %v10841_v5 = vpop.f32.mrf.mxu1  ;;  %v7725_v31 = vpack.c.bf16 %v5461_v63, %v5459_v61  ;;  %6331 = vmatpush1.bf16.msra.mxu0 %v8808_v60  ;;  %v5463_v13 = vadd.f32 %v5462_v42, %v5350_v48  ;;  %v8985_v60 = vld [vmem:[%s11747_s0 + $0xc0] ss:$72 sps:$4 sm:$0xff]   ;;  %v8831_v3 = vld [vmem:[%s9220_s24 + $0x106c] ss:$16 sps:$4 sm:$0xff]   ;;  %v5255_v48 = vadd.f32 %v10603_v19, %v10348_v17 }
 0x232   : > { %6444 = vmatpush1.bf16.msra.mxu1 %v8811_v43  ;;  %v5464_v25 = vpop.f32.mrf.mxu0  ;;  %6332 = vmatprep.subr.bf16.mxu0 %v8816_v18  ;;  %v8984_v18 = vld [vmem:[%s11747_s0 + $0xb8] ss:$72 sps:$4 sm:$0xff]   ;;  %v8986_v58 = vld [vmem:[%s11747_s0 + $0x14c] ss:$72 sps:$4 sm:$0xff]  }
 0x233   : > { %v10847_v11 = vpop.f32.mrf.mxu1  ;;  %6445 = vmatprep.subr.bf16.mxu1 %v8819_v44  ;;  %6746 = vst [vmem:[%s10853_s7] sm:$0xff] %v7725_v31  ;;  %v5465_v50 = vadd.f32 %v5464_v25, %v5352_v41  ;;  %v8820_v44 = vld [vmem:[%s9220_s24 + $0xe88] ss:$16 sps:$4 sm:$0xff]   ;;  %v8834_v4 = vld [vmem:[%s9220_s24 + $0xe4c] ss:$16 sps:$4 sm:$0xff]  }
 0x234   : > { %v5468_v8 = vpop.f32.mrf.mxu0  ;;  %6145 = vmatmul.mubr.bf16.gmra.mxu0 %v8984_v18  ;;  %v8823_v61 = vld [vmem:[%s9220_s24 + $0x1088] ss:$16 sps:$4 sm:$0xff]   ;;  %v8837_v17 = vld [vmem:[%s9220_s24 + $0x104c] ss:$16 sps:$4 sm:$0xff]  }
 0x235   : > { %v10858_v12 = vpop.f32.mrf.mxu1  ;;  %6258 = vmatmul.mubr.bf16.gmra.mxu1 %v8985_v60  ;;  %v7727_v43 = vpack.c.bf16 %v5465_v50, %v5463_v13  ;;  %6333 = vmatpush1.bf16.msra.mxu0 %v8814_v30  ;;  %v5469_v42 = vadd.f32 %v5468_v8, %v5356_v53  ;;  %v5360_v30 = vadd.f32 %v10580_v34, %v5247_v2  ;;  %v8988_v8 = vld [vmem:[%s11747_s0 + $0x148] ss:$72 sps:$4 sm:$0xff]  }
 0x236   : > { %6446 = vmatpush1.bf16.msra.mxu1 %v8817_v10  ;;  %v5470_v63 = vpop.f32.mrf.mxu0  ;;  %6334 = vmatprep.subr.bf16.mxu0 %v8822_v35  ;;  %v5362_v10 = vadd.f32 %v10587_v15, %v5249_v16  ;;  %v8826_v35 = vld [vmem:[%s9220_s24 + $0xe68] ss:$16 sps:$4 sm:$0xff]   ;;  %v5366_v34 = vadd.f32 %v10592_v23, %v5253_v47  ;;  %v5368_v15 = vadd.f32 %v10605_v32, %v5255_v48 }
 0x237   : > { %v10872_v24 = vpop.f32.mrf.mxu1  ;;  %6447 = vmatprep.subr.bf16.mxu1 %v8825_v51  ;;  %6748 = vst [vmem:[%s10853_s7 + $0x10] sm:$0xff] %v7727_v43  ;;  %v5471_v49 = vadd.f32 %v5470_v63, %v5358_v38  ;;  %6154 = vmatprep.mubr.bf16.mxu0 %v8986_v58  ;;  %v8829_v51 = vld [vmem:[%s9220_s24 + $0x1068] ss:$16 sps:$4 sm:$0xff]   ;;  %v5257_v23 = vadd.f32 %v10614_v33, %v10353_v26  ;;  %v8843_v63 = vld [vmem:[%s9220_s24 + $0x102c] ss:$16 sps:$4 sm:$0xff]  }
 0x238   : > { %6267 = vmatprep.mubr.bf16.mxu1 %v8987_v27  ;;  %v5472_v41 = vpop.f32.mrf.mxu0  ;;  %v8989_v18 = vld [vmem:[%s11747_s0 + $0x150] ss:$72 sps:$4 sm:$0xff]   ;;  %v5259_v32 = vadd.f32 %v10621_v59, %v10364_v56  ;;  %v8990_v56 = vld [vmem:[%s11747_s0 + $0x1dc] ss:$72 sps:$4 sm:$0xff]   ;;  %v5263_v59 = vadd.f32 %v10626_v9, %v10369_v62 }
 0x239   : > { %v10887_v31 = vpop.f32.mrf.mxu1  ;;  %v7729_v25 = vpack.c.bf16 %v5471_v49, %v5469_v42  ;;  %6335 = vmatpush1.bf16.msra.mxu0 %v8820_v44  ;;  %v5473_v20 = vadd.f32 %v5472_v41, %v5360_v30  ;;  %v8832_v2 = vld [vmem:[%s9220_s24 + $0xe48] ss:$16 sps:$4 sm:$0xff]   ;;  %v8991_v33 = vld [vmem:[%s11747_s0 + $0x1e4] ss:$72 sps:$4 sm:$0xff]   ;;  %v5370_v58 = vadd.f32 %v10616_v37, %v5257_v23 }
 0x23a   : > { %6448 = vmatpush1.bf16.msra.mxu1 %v8823_v61  ;;  %v5474_v13 = vpop.f32.mrf.mxu0  ;;  %6336 = vmatprep.subr.bf16.mxu0 %v8828_v46  ;;  %v8835_v16 = vld [vmem:[%s9220_s24 + $0x1048] ss:$16 sps:$4 sm:$0xff]   ;;  %v8840_v61 = vld [vmem:[%s9220_s24 + $0xe2c] ss:$16 sps:$4 sm:$0xff]   ;;  %v5372_v27 = vadd.f32 %v10623_v28, %v5259_v32  ;;  %v5376_v37 = vadd.f32 %v10628_v22, %v5263_v59  ;;  %v5267_v22 = vadd.f32 %v10650_v54, %v10385_v21 }
 0x23b   : > { %v10893_v50 = vpop.f32.mrf.mxu1  ;;  %6449 = vmatprep.subr.bf16.mxu1 %v8831_v3  ;;  %6750 = vst [vmem:[%s10853_s7 + $0x20] sm:$0xff] %v7729_v25  ;;  %v5475_v19 = vadd.f32 %v5474_v13, %v5362_v10  ;;  %v5265_v3 = vadd.f32 %v10639_v0, %v10380_v7  ;;  %v8838_v48 = vld [vmem:[%s9220_s24 + $0xe28] ss:$16 sps:$4 sm:$0xff]   ;;  %v8846_v62 = vld [vmem:[%s9220_s24 + $0xe0c] ss:$16 sps:$4 sm:$0xff]   ;;  %v5273_v54 = vadd.f32 %v10662_v29, %v10401_v45 }
 0x23c   : > { %v5478_v53 = vpop.f32.mrf.mxu0  ;;  %6155 = vmatmul.mubr.bf16.gmra.mxu0 %v8988_v8  ;;  %v8841_v41 = vld [vmem:[%s9220_s24 + $0x1028] ss:$16 sps:$4 sm:$0xff]   ;;  %v8849_v7 = vld [vmem:[%s9220_s24 + $0x100c] ss:$16 sps:$4 sm:$0xff]  }
 0x23d   : > { %v10900_v38 = vpop.f32.mrf.mxu1  ;;  %6268 = vmatmul.mubr.bf16.gmra.mxu1 %v8989_v18  ;;  %v7731_v60 = vpack.c.bf16 %v5475_v19, %v5473_v20  ;;  %6337 = vmatpush1.bf16.msra.mxu0 %v8826_v35  ;;  %v5479_v46 = vadd.f32 %v5478_v53, %v5366_v34  ;;  %v5378_v28 = vadd.f32 %v10641_v57, %v5265_v3  ;;  %v8993_v13 = vld [vmem:[%s11747_s0 + $0x1e0] ss:$72 sps:$4 sm:$0xff]   ;;  %v8855_v53 = vld [vmem:[%s9220_s24 + $0x11ec] ss:$16 sps:$4 sm:$0xff]  }
 0x23e   : > { %6450 = vmatpush1.bf16.msra.mxu1 %v8829_v51  ;;  %v5480_v43 = vpop.f32.mrf.mxu0  ;;  %6338 = vmatprep.subr.bf16.mxu0 %v8834_v4  ;;  %v8992_v51 = vld [vmem:[%s11747_s0 + $0x1d8] ss:$72 sps:$4 sm:$0xff]   ;;  %v5269_v57 = vadd.f32 %v10656_v1, %v10396_v40  ;;  %v8994_v40 = vld [vmem:[%s11747_s0 + $0x26c] ss:$72 sps:$4 sm:$0xff]   ;;  %v5275_v18 = vadd.f32 %v10674_v39, %v10412_v55 }
 0x23f   : > { %v10914_v44 = vpop.f32.mrf.mxu1  ;;  %6451 = vmatprep.subr.bf16.mxu1 %v8837_v17  ;;  %6752 = vst [vmem:[%s10853_s7 + $0x30] sm:$0xff] %v7731_v60  ;;  %v5481_v26 = vadd.f32 %v5480_v43, %v5368_v15  ;;  %6164 = vmatprep.mubr.bf16.mxu0 %v8990_v56  ;;  %v8844_v17 = vld [vmem:[%s9220_s24 + $0xe08] ss:$16 sps:$4 sm:$0xff]   ;;  %v8852_v15 = vld [vmem:[%s9220_s24 + $0xfec] ss:$16 sps:$4 sm:$0xff]   ;;  %v5380_v60 = vadd.f32 %v10652_v36, %v5267_v22 }
 0x240   : > { %6277 = vmatprep.mubr.bf16.mxu1 %v8991_v33  ;;  %v5482_v42 = vpop.f32.mrf.mxu0  ;;  %v8847_v20 = vld [vmem:[%s9220_s24 + $0x1008] ss:$16 sps:$4 sm:$0xff]   ;;  %v8995_v1 = vld [vmem:[%s11747_s0 + $0x274] ss:$72 sps:$4 sm:$0xff]   ;;  %v11800_v33 = vld [vmem:[#allocation22_spill] sm:$0xff] }
 0x241   : > { %v10929_v49 = vpop.f32.mrf.mxu1  ;;  %v7733_v47 = vpack.c.bf16 %v5481_v26, %v5479_v46  ;;  %6339 = vmatpush1.bf16.msra.mxu0 %v8832_v2  ;;  %v5483_v9 = vadd.f32 %v5482_v42, %v5370_v58  ;;  %v11798_v2 = vld [vmem:[#allocation20_spill] sm:$0xff]  ;;  %v8858_v45 = vld [vmem:[%s9220_s24 + $0xfcc] ss:$16 sps:$4 sm:$0xff]   ;;  %v5388_v59 = vadd.f32 %v11800_v33, %v5275_v18 }
 0x242   : > { %6452 = vmatpush1.bf16.msra.mxu1 %v8835_v16  ;;  %v5484_v30 = vpop.f32.mrf.mxu0  ;;  %6340 = vmatprep.subr.bf16.mxu0 %v8840_v61  ;;  %v5382_v16 = vadd.f32 %v11798_v2, %v5269_v57  ;;  %v8850_v61 = vld [vmem:[%s9220_s24 + $0xfe8] ss:$16 sps:$4 sm:$0xff]   ;;  %v8861_v55 = vld [vmem:[%s9220_s24 + $0x11cc] ss:$16 sps:$4 sm:$0xff]  }
 0x243   : > { %v10935_v10 = vpop.f32.mrf.mxu1  ;;  %6453 = vmatprep.subr.bf16.mxu1 %v8843_v63  ;;  %6754 = vst [vmem:[%s10853_s7 + $0x40] sm:$0xff] %v7733_v47  ;;  %v5485_v0 = vadd.f32 %v5484_v30, %v5372_v27  ;;  %v8853_v63 = vld [vmem:[%s9220_s24 + $0x11e8] ss:$16 sps:$4 sm:$0xff]   ;;  %v11801_v47 = vld [vmem:[#allocation6_spill] sm:$0xff] }
 0x244   : > { %v5488_v25 = vpop.f32.mrf.mxu0  ;;  %6165 = vmatmul.mubr.bf16.gmra.mxu0 %v8992_v51  ;;  %v11799_v36 = vld [vmem:[#allocation21_spill] sm:$0xff]  ;;  %v8996_v58 = vld [vmem:[%s11747_s0 + $0x268] ss:$72 sps:$4 sm:$0xff]  }
 0x245   : > { %v10942_v35 = vpop.f32.mrf.mxu1  ;;  %6278 = vmatmul.mubr.bf16.gmra.mxu1 %v8993_v13  ;;  %v7735_v4 = vpack.c.bf16 %v5485_v0, %v5483_v9  ;;  %6341 = vmatpush1.bf16.msra.mxu0 %v8838_v48  ;;  %v5489_v8 = vadd.f32 %v5488_v25, %v5376_v37  ;;  %v5386_v56 = vadd.f32 %v11799_v36, %v5273_v54  ;;  %v8997_v27 = vld [vmem:[%s11747_s0 + $0x270] ss:$72 sps:$4 sm:$0xff]   ;;  %v11802_v48 = vld [vmem:[#allocation23_spill] sm:$0xff] }
 0x246   : > { %6454 = vmatpush1.bf16.msra.mxu1 %v8841_v41  ;;  %v5490_v19 = vpop.f32.mrf.mxu0  ;;  %6342 = vmatprep.subr.bf16.mxu0 %v8846_v62  ;;  %v5277_v41 = vadd.f32 %v11802_v48, %v11801_v47  ;;  %v11803_v30 = vld [vmem:[#allocation7_spill] sm:$0xff]  ;;  %v11804_v62 = vld [vmem:[#allocation25_spill] sm:$0xff]  ;;  %v11809_v54 = vld [vmem:[#allocation24_spill] sm:$0xff] }
 0x247   : > { %v10956_v34 = vpop.f32.mrf.mxu1  ;;  %6455 = vmatprep.subr.bf16.mxu1 %v8849_v7  ;;  %6756 = vst [vmem:[%s10853_s7 + $0x50] sm:$0xff] %v7735_v4  ;;  %v5491_v21 = vadd.f32 %v5490_v19, %v5378_v28  ;;  %6174 = vmatprep.mubr.bf16.mxu0 %v8994_v40  ;;  %v5279_v7 = vadd.f32 %v11804_v62, %v11803_v30  ;;  %v8856_v0 = vld [vmem:[%s9220_s24 + $0xfc8] ss:$16 sps:$4 sm:$0xff]   ;;  %v8864_v51 = vld [vmem:[%s9220_s24 + $0xfac] ss:$16 sps:$4 sm:$0xff]   ;;  %v11813_v47 = vld [vmem:[#allocation10_spill] sm:$0xff] }
 0x248   : > { %6287 = vmatprep.mubr.bf16.mxu1 %v8995_v1  ;;  %v5492_v23 = vpop.f32.mrf.mxu0  ;;  %v8859_v37 = vld [vmem:[%s9220_s24 + $0x11c8] ss:$16 sps:$4 sm:$0xff]   ;;  %v8867_v13 = vld [vmem:[%s9220_s24 + $0x11ac] ss:$16 sps:$4 sm:$0xff]   ;;  %v5390_v18 = vadd.f32 %v11809_v54, %v5277_v41 }
 0x249   : > { %v10971_v32 = vpop.f32.mrf.mxu1  ;;  %v7737_v43 = vpack.c.bf16 %v5491_v21, %v5489_v8  ;;  %6343 = vmatpush1.bf16.msra.mxu0 %v8844_v17  ;;  %v5493_v39 = vadd.f32 %v5492_v23, %v5380_v60  ;;  %v8998_v4 = vld [vmem:[%s11747_s0 + $0x2fc] ss:$72 sps:$4 sm:$0xff]   ;;  %v11806_v19 = vld [vmem:[#allocation27_spill] sm:$0xff] }
 0x24a   : > { %6456 = vmatpush1.bf16.msra.mxu1 %v8847_v20  ;;  %v5494_v46 = vpop.f32.mrf.mxu0  ;;  %6344 = vmatprep.subr.bf16.mxu0 %v8852_v15  ;;  %v8999_v17 = vld [vmem:[%s11747_s0 + $0x304] ss:$72 sps:$4 sm:$0xff]   ;;  %v11805_v20 = vld [vmem:[#allocation8_spill] sm:$0xff]  ;;  %v11808_v8 = vld [vmem:[#allocation29_spill] sm:$0xff] }
 0x24b   : > { %v10977_v26 = vpop.f32.mrf.mxu1  ;;  %6457 = vmatprep.subr.bf16.mxu1 %v8855_v53  ;;  %6758 = vst [vmem:[%s10853_s7 + $0x60] sm:$0xff] %v7737_v43  ;;  %v5495_v29 = vadd.f32 %v5494_v46, %v5382_v16  ;;  %v5283_v15 = vadd.f32 %v11806_v19, %v11805_v20  ;;  %v11807_v53 = vld [vmem:[#allocation9_spill] sm:$0xff]  ;;  %v11810_v23 = vld [vmem:[#allocation26_spill] sm:$0xff]  ;;  %v11814_v48 = vld [vmem:[#allocation31_spill] sm:$0xff] }
 0x24c   : > { %v5498_v3 = vpop.f32.mrf.mxu0  ;;  %6175 = vmatmul.mubr.bf16.gmra.mxu0 %v8996_v58  ;;  %v5285_v21 = vadd.f32 %v11808_v8, %v11807_v53  ;;  %v5392_v60 = vadd.f32 %v11810_v23, %v5279_v7  ;;  %v8862_v16 = vld [vmem:[%s9220_s24 + $0xfa8] ss:$16 sps:$4 sm:$0xff]   ;;  %v8870_v46 = vld [vmem:[%s9220_s24 + $0xf8c] ss:$16 sps:$4 sm:$0xff]   ;;  %v5287_v41 = vadd.f32 %v11814_v48, %v11813_v47  ;;  %v11817_v19 = vld [vmem:[#allocation12_spill] sm:$0xff] }
 0x24d   : > { %v10984_v42 = vpop.f32.mrf.mxu1  ;;  %6288 = vmatmul.mubr.bf16.gmra.mxu1 %v8997_v27  ;;  %v7739_v9 = vpack.c.bf16 %v5495_v29, %v5493_v39  ;;  %6345 = vmatpush2.bf16.msra.mxu0 %v8850_v61  ;;  %v5499_v22 = vadd.f32 %v5498_v3, %v5386_v56  ;;  %v8865_v43 = vld [vmem:[%s9220_s24 + $0x11a8] ss:$16 sps:$4 sm:$0xff]   ;;  %v11811_v29 = vld [vmem:[#allocation28_spill] sm:$0xff]  ;;  %v11812_v56 = vld [vmem:[#allocation30_spill] sm:$0xff] }
 0x24e   : > { %6458 = vmatpush2.bf16.msra.mxu1 %v8853_v63  ;;  %v5500_v28 = vpop.f32.mrf.mxu0  ;;  %6346 = vmatprep.subr.bf16.mxu0 %v8858_v45  ;;  %v8873_v45 = vld [vmem:[%s9220_s24 + $0x118c] ss:$16 sps:$4 sm:$0xff]   ;;  %v5396_v36 = vadd.f32 %v11811_v29, %v5283_v15  ;;  %v5398_v33 = vadd.f32 %v11812_v56, %v5285_v21  ;;  %v9000_v58 = vld [vmem:[%s11747_s0 + $0x2f8] ss:$72 sps:$4 sm:$0xff]   ;;  %v11821_v23 = vld [vmem:[#allocation32_spill] sm:$0xff] }
 0x24f   : > { %v10998_v25 = vpop.f32.mrf.mxu1  ;;  %6459 = vmatprep.subr.bf16.mxu1 %v8861_v55  ;;  %6760 = vst [vmem:[%s10853_s7 + $0x70] sm:$0xff] %v7739_v9  ;;  %v5501_v57 = vadd.f32 %v5500_v28, %v5388_v59  ;;  %6184 = vmatprep.mubr.bf16.mxu0 %v8998_v4  ;;  %v9001_v27 = vld [vmem:[%s11747_s0 + $0x300] ss:$72 sps:$4 sm:$0xff]   ;;  %v11816_v62 = vld [vmem:[#allocation33_spill] sm:$0xff] }
 0x250   : > { %6297 = vmatprep.mubr.bf16.mxu1 %v8999_v17  ;;  %v5502_v40 = vpop.f32.mrf.mxu0  ;;  %v11815_v30 = vld [vmem:[#allocation11_spill] sm:$0xff]  ;;  %v9003_v20 = vld [vmem:[%s11747_s0 + $0x394] ss:$72 sps:$4 sm:$0xff]  }
 0x251   : > { %v11013_v1 = vpop.f32.mrf.mxu1  ;;  %v7741_v2 = vpack.c.bf16 %v5501_v57, %v5499_v22  ;;  %6347 = vmatpush2.bf16.msra.mxu0 %v8856_v0  ;;  %v5503_v55 = vadd.f32 %v5502_v40, %v5390_v18  ;;  %v5289_v7 = vadd.f32 %v11816_v62, %v11815_v30  ;;  %v8868_v0 = vld [vmem:[%s9220_s24 + $0xf88] ss:$16 sps:$4 sm:$0xff]   ;;  %v8879_v22 = vld [vmem:[%s9220_s24 + $0x116c] ss:$16 sps:$4 sm:$0xff]   ;;  %v11825_v62 = vld [vmem:[#allocation14_spill] sm:$0xff] }
 0x252   : > { %6460 = vmatpush2.bf16.msra.mxu1 %v8859_v37  ;;  %v5504_v61 = vpop.f32.mrf.mxu0  ;;  %6348 = vmatprep.subr.bf16.mxu0 %v8864_v51  ;;  %v8871_v37 = vld [vmem:[%s9220_s24 + $0x1188] ss:$16 sps:$4 sm:$0xff]   ;;  %v9002_v17 = vld [vmem:[%s11747_s0 + $0x38c] ss:$72 sps:$4 sm:$0xff]  }
 0x253   : > { %v11019_v63 = vpop.f32.mrf.mxu1  ;;  %6461 = vmatprep.subr.bf16.mxu1 %v8867_v13  ;;  %6762 = vst [vmem:[%s10853_s7 + $0x80] sm:$0xff] %v7741_v2  ;;  %v5505_v39 = vadd.f32 %v5504_v61, %v5392_v60  ;;  %v8876_v13 = vld [vmem:[%s9220_s24 + $0xf6c] ss:$16 sps:$4 sm:$0xff]   ;;  %v5400_v60 = vadd.f32 %v11821_v23, %v5287_v41  ;;  %v11822_v2 = vld [vmem:[#allocation34_spill] sm:$0xff]  ;;  %v8874_v61 = vld [vmem:[%s9220_s24 + $0xf68] ss:$16 sps:$4 sm:$0xff]  }
 0x254   : > { %v5508_v59 = vpop.f32.mrf.mxu0  ;;  %6185 = vmatmul.mubr.bf16.gmra.mxu0 %v9000_v58  ;;  %v11818_v15 = vld [vmem:[#allocation35_spill] sm:$0xff]  ;;  %v11819_v8 = vld [vmem:[#allocation13_spill] sm:$0xff]  ;;  %v11824_v58 = vld [vmem:[#allocation38_spill] sm:$0xff] }
 0x255   : > { %v11026_v3 = vpop.f32.mrf.mxu1  ;;  %6298 = vmatmul.mubr.bf16.gmra.mxu1 %v9001_v27  ;;  %v7743_v9 = vpack.c.bf16 %v5505_v39, %v5503_v55  ;;  %6349 = vmatpush2.bf16.msra.mxu0 %v8862_v16  ;;  %v5509_v57 = vadd.f32 %v5508_v59, %v5396_v36  ;;  %v5293_v53 = vadd.f32 %v11818_v15, %v11817_v19  ;;  %v11820_v21 = vld [vmem:[#allocation37_spill] sm:$0xff]  ;;  %v9004_v41 = vld [vmem:[%s11747_s0 + $0x388] ss:$72 sps:$4 sm:$0xff]  }
 0x256   : > { %6462 = vmatpush2.bf16.msra.mxu1 %v8865_v43  ;;  %v5510_v28 = vpop.f32.mrf.mxu0  ;;  %6350 = vmatprep.subr.bf16.mxu0 %v8870_v46  ;;  %v5295_v40 = vadd.f32 %v11820_v21, %v11819_v8  ;;  %v5402_v16 = vadd.f32 %v11822_v2, %v5289_v7  ;;  %v8877_v46 = vld [vmem:[%s9220_s24 + $0x1168] ss:$16 sps:$4 sm:$0xff]   ;;  %v8882_v39 = vld [vmem:[%s9220_s24 + $0xf4c] ss:$16 sps:$4 sm:$0xff]  }
 0x257   : > { %v11040_v51 = vpop.f32.mrf.mxu1  ;;  %6463 = vmatprep.subr.bf16.mxu1 %v8873_v45  ;;  %6764 = vst [vmem:[%s10853_s7 + $0x90] sm:$0xff] %v7743_v9  ;;  %v5511_v4 = vadd.f32 %v5510_v28, %v5398_v33  ;;  %6194 = vmatprep.mubr.bf16.mxu0 %v9002_v17  ;;  %v8885_v29 = vld [vmem:[%s9220_s24 + $0x114c] ss:$16 sps:$4 sm:$0xff]   ;;  %v11823_v33 = vld [vmem:[#allocation36_spill] sm:$0xff] }
 0x258   : > { %6307 = vmatprep.mubr.bf16.mxu1 %v9003_v20  ;;  %v5512_v54 = vpop.f32.mrf.mxu0  ;;  %v5406_v59 = vadd.f32 %v11823_v33, %v5293_v53  ;;  %v5408_v27 = vadd.f32 %v11824_v58, %v5295_v40  ;;  %v9005_v30 = vld [vmem:[%s11747_s0 + $0x390] ss:$72 sps:$4 sm:$0xff]   ;;  %v11826_v7 = vld [vmem:[#allocation39_spill] sm:$0xff]  ;;  %v9006_v8 = vld [vmem:[%s11747_s0 + $0x41c] ss:$72 sps:$4 sm:$0xff]  }
 0x259   : > { %v11055_v18 = vpop.f32.mrf.mxu1  ;;  %v7745_v43 = vpack.c.bf16 %v5511_v4, %v5509_v57  ;;  %6351 = vmatpush2.bf16.msra.mxu0 %v8868_v0  ;;  %v5513_v36 = vadd.f32 %v5512_v54, %v5400_v60  ;;  %v5297_v9 = vadd.f32 %v11826_v7, %v11825_v62  ;;  %v11827_v0 = vld [vmem:[#allocation15_spill] sm:$0xff]  ;;  %v11829_v40 = vld [vmem:[#allocation16_spill] sm:$0xff]  ;;  %v11831_v60 = vld [vmem:[#allocation17_spill] sm:$0xff] }
 0x25a   : > { %6464 = vmatpush2.bf16.msra.mxu1 %v8871_v37  ;;  %v5514_v45 = vpop.f32.mrf.mxu0  ;;  %6352 = vmatprep.subr.bf16.mxu0 %v8876_v13  ;;  %v11828_v37 = vld [vmem:[#allocation41_spill] sm:$0xff]  ;;  %v9007_v21 = vld [vmem:[%s11747_s0 + $0x424] ss:$72 sps:$4 sm:$0xff]   ;;  %v11835_v62 = vld [vmem:[#allocation44_spill] sm:$0xff] }
 0x25b   : > { %v11061_v55 = vpop.f32.mrf.mxu1  ;;  %6465 = vmatprep.subr.bf16.mxu1 %v8879_v22  ;;  %6766 = vst [vmem:[%s10853_s7 + $0xa0] sm:$0xff] %v7745_v43  ;;  %v5515_v56 = vadd.f32 %v5514_v45, %v5402_v16  ;;  %v5299_v28 = vadd.f32 %v11828_v37, %v11827_v0  ;;  %v8880_v22 = vld [vmem:[%s9220_s24 + $0xf48] ss:$16 sps:$4 sm:$0xff]   ;;  %v8888_v20 = vld [vmem:[%s9220_s24 + $0xf2c] ss:$16 sps:$4 sm:$0xff]  }
 0x25c   : > { %v5518_v47 = vpop.f32.mrf.mxu0  ;;  %6195 = vmatmul.mubr.bf16.gmra.mxu0 %v9004_v41  ;;  %v8883_v57 = vld [vmem:[%s9220_s24 + $0x1148] ss:$16 sps:$4 sm:$0xff]   ;;  %v8891_v19 = vld [vmem:[%s9220_s24 + $0x112c] ss:$16 sps:$4 sm:$0xff]  }
 0x25d   : > { %v11068_v48 = vpop.f32.mrf.mxu1  ;;  %6308 = vmatmul.mubr.bf16.gmra.mxu1 %v9005_v30  ;;  %v7747_v13 = vpack.c.bf16 %v5515_v56, %v5513_v36  ;;  %6353 = vmatpush2.bf16.msra.mxu0 %v8874_v61  ;;  %v5519_v15 = vadd.f32 %v5518_v47, %v5406_v59  ;;  %v11830_v54 = vld [vmem:[#allocation43_spill] sm:$0xff]  ;;  %v11832_v2 = vld [vmem:[#allocation45_spill] sm:$0xff] }
 0x25e   : > { %6466 = vmatpush2.bf16.msra.mxu1 %v8877_v46  ;;  %v5520_v4 = vpop.f32.mrf.mxu0  ;;  %6354 = vmatprep.subr.bf16.mxu0 %v8882_v39  ;;  %v5303_v23 = vadd.f32 %v11830_v54, %v11829_v40  ;;  %v5305_v16 = vadd.f32 %v11832_v2, %v11831_v60  ;;  %v11833_v46 = vld [vmem:[#allocation40_spill] sm:$0xff]  ;;  %v11834_v39 = vld [vmem:[#allocation42_spill] sm:$0xff]  ;;  %v8886_v56 = vld [vmem:[%s9220_s24 + $0xf28] ss:$16 sps:$4 sm:$0xff]  }
 0x25f   : > { %v11082_v17 = vpop.f32.mrf.mxu1  ;;  %6467 = vmatprep.subr.bf16.mxu1 %v8885_v29  ;;  %6768 = vst [vmem:[%s10853_s7 + $0xb0] sm:$0xff] %v7747_v13  ;;  %v5521_v53 = vadd.f32 %v5520_v4, %v5408_v27  ;;  %6204 = vmatprep.mubr.bf16.mxu0 %v9006_v8  ;;  %v5410_v45 = vadd.f32 %v11833_v46, %v5297_v9  ;;  %v8889_v33 = vld [vmem:[%s9220_s24 + $0x1128] ss:$16 sps:$4 sm:$0xff]   ;;  %v8894_v27 = vld [vmem:[%s9220_s24 + $0xf0c] ss:$16 sps:$4 sm:$0xff]   ;;  %v11836_v9 = vld [vmem:[#allocation46_spill] sm:$0xff] }
 0x260   : > { %6317 = vmatprep.mubr.bf16.mxu1 %v9007_v21  ;;  %v5522_v43 = vpop.f32.mrf.mxu0  ;;  %v5412_v29 = vadd.f32 %v11834_v39, %v5299_v28  ;;  %v8897_v47 = vld [vmem:[%s9220_s24 + $0x110c] ss:$16 sps:$4 sm:$0xff]   ;;  %v5416_v7 = vadd.f32 %v11835_v62, %v5303_v23  ;;  %v5418_v0 = vadd.f32 %v11836_v9, %v5305_v16  ;;  %v9008_v13 = vld [vmem:[%s11747_s0 + $0x418] ss:$72 sps:$4 sm:$0xff]   ;;  %v11840_v46 = vld [vmem:[#allocation48_spill] sm:$0xff] }
 0x261   : > { %v11097_v61 = vpop.f32.mrf.mxu1  ;;  %v7749_v36 = vpack.c.bf16 %v5521_v53, %v5519_v15  ;;  %6355 = vmatpush2.bf16.msra.mxu0 %v8880_v22  ;;  %v5523_v41 = vadd.f32 %v5522_v43, %v5410_v45  ;;  %v9009_v22 = vld [vmem:[%s11747_s0 + $0x420] ss:$72 sps:$4 sm:$0xff]   ;;  %v9010_v2 = vld [vmem:[%s11747_s0 + $0x3c] ss:$72 sps:$4 sm:$0xff]   ;;  %v9014_v9 = vld [vmem:[%s11747_s0 + $0xcc] ss:$72 sps:$4 sm:$0xff]  }
 0x262   : > { %6468 = vmatpush2.bf16.msra.mxu1 %v8883_v57  ;;  %v5524_v59 = vpop.f32.mrf.mxu0  ;;  %6356 = vmatprep.subr.bf16.mxu0 %v8888_v20  ;;  %v11837_v57 = vld [vmem:[#allocation18_spill] sm:$0xff]  ;;  %v11838_v4 = vld [vmem:[#allocation47_spill] sm:$0xff]  ;;  %v11841_v62 = vld [vmem:[#allocation49_spill] sm:$0xff] }
 0x263   : > { %v11103_v58 = vpop.f32.mrf.mxu1  ;;  %6469 = vmatprep.subr.bf16.mxu1 %v8891_v19  ;;  %6770 = vst [vmem:[%s10853_s7 + $0xc0] sm:$0xff] %v7749_v36  ;;  %v5525_v30 = vadd.f32 %v5524_v59, %v5412_v29  ;;  %v5307_v20 = vadd.f32 %v11838_v4, %v11837_v57  ;;  %v11839_v19 = vld [vmem:[#allocation19_spill] sm:$0xff] }
 0x264   : > { %v5528_v37 = vpop.f32.mrf.mxu0  ;;  %6205 = vmatmul.mubr.bf16.gmra.mxu0 %v9008_v13  ;;  %v5309_v15 = vadd.f32 %v10804_v14, %v11839_v19  ;;  %v8892_v8 = vld [vmem:[%s9220_s24 + $0xf08] ss:$16 sps:$4 sm:$0xff]   ;;  %v9011_v14 = vld [vmem:[%s11747_s0 + $0x44] ss:$72 sps:$4 sm:$0xff]  }
 0x265   : > { %v11110_v28 = vpop.f32.mrf.mxu1  ;;  %6318 = vmatmul.mubr.bf16.gmra.mxu1 %v9009_v22  ;;  %v7751_v53 = vpack.c.bf16 %v5525_v30, %v5523_v41  ;;  %6357 = vmatpush2.bf16.msra.mxu0 %v8886_v56  ;;  %v8895_v21 = vld [vmem:[%s9220_s24 + $0x1108] ss:$16 sps:$4 sm:$0xff]   ;;  %v5529_v23 = vadd.f32 %v5528_v37, %v5416_v7  ;;  %v5420_v45 = vadd.f32 %v11840_v46, %v5307_v20 }
 0x266   : > { %6470 = vmatpush2.bf16.msra.mxu1 %v8889_v33  ;;  %v5530_v40 = vpop.f32.mrf.mxu0  ;;  %6358 = vmatprep.subr.bf16.mxu0 %v8894_v27  ;;  %v5422_v39 = vadd.f32 %v10806_v52, %v5309_v15  ;;  %v9012_v41 = vld [vmem:[%s11747_s0 + $0x38] ss:$72 sps:$4 sm:$0xff]  }
 0x267   : > { %v11124_v54 = vpop.f32.mrf.mxu1  ;;  %6471 = vmatprep.subr.bf16.mxu1 %v8897_v47  ;;  %6772 = vst [vmem:[%s10853_s7 + $0xd0] sm:$0xff] %v7751_v53  ;;  %v5531_v60 = vadd.f32 %v5530_v40, %v5418_v0  ;;  %6360 = vmatprep.mubr.bf16.mxu0 %v9010_v2  ;;  %v9013_v52 = vld [vmem:[%s11747_s0 + $0x40] ss:$72 sps:$4 sm:$0xff]   ;;  %v9015_v0 = vld [vmem:[%s11747_s0 + $0xd4] ss:$72 sps:$4 sm:$0xff]  }
 0x268   : > { %6473 = vmatprep.mubr.bf16.mxu1 %v9011_v14  ;;  %v5532_v16 = vpop.f32.mrf.mxu0  ;;  %v9016_v2 = vld [vmem:[%s11747_s0 + $0xc8] ss:$72 sps:$4 sm:$0xff]  }
 0x269   : > { %v11133_v43 = vpop.f32.mrf.mxu1  ;;  %v7753_v29 = vpack.c.bf16 %v5531_v60, %v5529_v23  ;;  %6359 = vmatpush2.bf16.msra.mxu0 %v8892_v8  ;;  %v5533_v33 = vadd.f32 %v5532_v16, %v5420_v45  ;;  %v9019_v16 = vld [vmem:[%s11747_s0 + $0x164] ss:$72 sps:$4 sm:$0xff]  }
 0x26a   : > { %6472 = vmatpush2.bf16.msra.mxu1 %v8895_v21  ;;  %v5534_v36 = vpop.f32.mrf.mxu0 }
 0x26b   : > { %v11137_v56 = vpop.f32.mrf.mxu1  ;;  %6774 = vst [vmem:[%s10853_s7 + $0xe0] sm:$0xff] %v7753_v29  ;;  %v5535_v59 = vadd.f32 %v5534_v36, %v5422_v39 }
 0x26c   : > { %v5684_v27 = vpop.f32.mrf.mxu0  ;;  %6361 = vmatmul.mubr.bf16.vlgmr.msra.gmra.mxu0 %v9012_v41 }
 0x26d   : > { %v5797_v47 = vpop.f32.mrf.mxu1  ;;  %6474 = vmatmul.mubr.bf16.vlgmr.msra.gmra.mxu1 %v9013_v52  ;;  %v7755_v30 = vpack.c.bf16 %v5535_v59, %v5533_v33  ;;  %v5685_v7 = vadd.f32 %v5684_v27, %v11841_v62  ;;  %6370 = vmatprep.mubr.bf16.mxu0 %v9014_v9 }
 0x26e   : > { %6483 = vmatprep.mubr.bf16.mxu1 %v9015_v0  ;;  %v5686_v37 = vpop.f32.mrf.mxu0  ;;  %v9023_v0 = vld [vmem:[%s11747_s0 + $0x1f4] ss:$72 sps:$4 sm:$0xff]  }
 0x26f   : > { %v5799_v13 = vpop.f32.mrf.mxu1  ;;  %6776 = vst [vmem:[%s10853_s7 + $0xf0] sm:$0xff] %v7755_v30  ;;  %v11154_v22 = vadd.f32 %v5797_v47, %v5685_v7  ;;  %v5687_v57 = vadd.f32 %v5686_v37, %v10827_v6  ;;  %v9017_v6 = vld [vmem:[%s11747_s0 + $0xd0] ss:$72 sps:$4 sm:$0xff]  }
 0x270   : > { %v5688_v4 = vpop.f32.mrf.mxu0  ;;  %v9020_v7 = vld [vmem:[%s11747_s0 + $0x158] ss:$72 sps:$4 sm:$0xff]  }
 0x271   : > { %v5801_v20 = vpop.f32.mrf.mxu1  ;;  %v11157_v19 = vadd.f32 %v5799_v13, %v5687_v57  ;;  %v5689_v15 = vadd.f32 %v5688_v4, %v10841_v5 }
 0x272   : > { %v5690_v53 = vpop.f32.mrf.mxu0 }
 0x273   : > { %v5803_v8 = vpop.f32.mrf.mxu1  ;;  %v11160_v21 = vadd.f32 %v5801_v20, %v5689_v15  ;;  %v5691_v40 = vadd.f32 %v5690_v53, %v10847_v11  ;;  %v9018_v11 = vld [vmem:[%s11747_s0 + $0x15c] ss:$72 sps:$4 sm:$0xff]  }
 0x274   : > { %v5694_v23 = vpop.f32.mrf.mxu0  ;;  %6371 = vmatmul.mubr.bf16.gmra.mxu0 %v9016_v2 }
 0x275   : > { %v5807_v60 = vpop.f32.mrf.mxu1  ;;  %6484 = vmatmul.mubr.bf16.gmra.mxu1 %v9017_v6  ;;  %v11169_v14 = vadd.f32 %v5803_v8, %v5691_v40  ;;  %v5695_v5 = vadd.f32 %v5694_v23, %v10858_v12  ;;  %6380 = vmatprep.mubr.bf16.mxu0 %v9018_v11 }
 0x276   : > { %6493 = vmatprep.mubr.bf16.mxu1 %v9019_v16  ;;  %v5696_v46 = vpop.f32.mrf.mxu0  ;;  %v9027_v16 = vld [vmem:[%s11747_s0 + $0x284] ss:$72 sps:$4 sm:$0xff]  }
 0x277   : > { %v5809_v45 = vpop.f32.mrf.mxu1  ;;  %v11178_v39 = vadd.f32 %v5807_v60, %v5695_v5  ;;  %v5697_v29 = vadd.f32 %v5696_v46, %v10872_v24  ;;  %v9021_v24 = vld [vmem:[%s11747_s0 + $0x160] ss:$72 sps:$4 sm:$0xff]  }
 0x278   : > { %v5698_v36 = vpop.f32.mrf.mxu0  ;;  %v9024_v5 = vld [vmem:[%s11747_s0 + $0x1e8] ss:$72 sps:$4 sm:$0xff]  }
 0x279   : > { %v5811_v33 = vpop.f32.mrf.mxu1  ;;  %v11181_v59 = vadd.f32 %v5809_v45, %v5697_v29  ;;  %v5699_v12 = vadd.f32 %v5698_v36, %v10887_v31 }
 0x27a   : > { %v5700_v27 = vpop.f32.mrf.mxu0 }
 0x27b   : > { %v5813_v47 = vpop.f32.mrf.mxu1  ;;  %v11184_v41 = vadd.f32 %v5811_v33, %v5699_v12  ;;  %v5701_v52 = vadd.f32 %v5700_v27, %v10893_v50  ;;  %v9022_v50 = vld [vmem:[%s11747_s0 + $0x1ec] ss:$72 sps:$4 sm:$0xff]  }
 0x27c   : > { %v5704_v30 = vpop.f32.mrf.mxu0  ;;  %6381 = vmatmul.mubr.bf16.gmra.mxu0 %v9020_v7 }
 0x27d   : > { %v5817_v62 = vpop.f32.mrf.mxu1  ;;  %6494 = vmatmul.mubr.bf16.gmra.mxu1 %v9021_v24  ;;  %v11193_v9 = vadd.f32 %v5813_v47, %v5701_v52  ;;  %v5705_v31 = vadd.f32 %v5704_v30, %v10900_v38  ;;  %6390 = vmatprep.mubr.bf16.mxu0 %v9022_v50 }
 0x27e   : > { %6503 = vmatprep.mubr.bf16.mxu1 %v9023_v0  ;;  %v5706_v37 = vpop.f32.mrf.mxu0  ;;  %v9031_v0 = vld [vmem:[%s11747_s0 + $0x314] ss:$72 sps:$4 sm:$0xff]  }
 0x27f   : > { %v5819_v13 = vpop.f32.mrf.mxu1  ;;  %v11202_v57 = vadd.f32 %v5817_v62, %v5705_v31  ;;  %v5707_v4 = vadd.f32 %v5706_v37, %v10914_v44  ;;  %v9025_v44 = vld [vmem:[%s11747_s0 + $0x1f0] ss:$72 sps:$4 sm:$0xff]  }
 0x280   : > { %v5708_v20 = vpop.f32.mrf.mxu0  ;;  %v9028_v31 = vld [vmem:[%s11747_s0 + $0x278] ss:$72 sps:$4 sm:$0xff]  }
 0x281   : > { %v5821_v15 = vpop.f32.mrf.mxu1  ;;  %v11205_v53 = vadd.f32 %v5819_v13, %v5707_v4  ;;  %v5709_v38 = vadd.f32 %v5708_v20, %v10929_v49 }
 0x282   : > { %v5710_v8 = vpop.f32.mrf.mxu0 }
 0x283   : > { %v5823_v40 = vpop.f32.mrf.mxu1  ;;  %v11208_v23 = vadd.f32 %v5821_v15, %v5709_v38  ;;  %v5711_v60 = vadd.f32 %v5710_v8, %v10935_v10  ;;  %v9026_v10 = vld [vmem:[%s11747_s0 + $0x27c] ss:$72 sps:$4 sm:$0xff]  }
 0x284   : > { %v5714_v2 = vpop.f32.mrf.mxu0  ;;  %6391 = vmatmul.mubr.bf16.gmra.mxu0 %v9024_v5 }
 0x285   : > { %v5827_v6 = vpop.f32.mrf.mxu1  ;;  %6504 = vmatmul.mubr.bf16.gmra.mxu1 %v9025_v44  ;;  %v11217_v11 = vadd.f32 %v5823_v40, %v5711_v60  ;;  %v5715_v49 = vadd.f32 %v5714_v2, %v10942_v35  ;;  %6400 = vmatprep.mubr.bf16.mxu0 %v9026_v10 }
 0x286   : > { %6513 = vmatprep.mubr.bf16.mxu1 %v9027_v16  ;;  %v5716_v46 = vpop.f32.mrf.mxu0  ;;  %v9035_v16 = vld [vmem:[%s11747_s0 + $0x3a4] ss:$72 sps:$4 sm:$0xff]  }
 0x287   : > { %v5829_v45 = vpop.f32.mrf.mxu1  ;;  %v11226_v29 = vadd.f32 %v5827_v6, %v5715_v49  ;;  %v5717_v36 = vadd.f32 %v5716_v46, %v10956_v34  ;;  %v9029_v34 = vld [vmem:[%s11747_s0 + $0x280] ss:$72 sps:$4 sm:$0xff]  }
 0x288   : > { %v5718_v33 = vpop.f32.mrf.mxu0  ;;  %v9032_v49 = vld [vmem:[%s11747_s0 + $0x308] ss:$72 sps:$4 sm:$0xff]  }
 0x289   : > { %v5831_v12 = vpop.f32.mrf.mxu1  ;;  %v11229_v27 = vadd.f32 %v5829_v45, %v5717_v36  ;;  %v5719_v35 = vadd.f32 %v5718_v33, %v10971_v32 }
 0x28a   : > { %v5720_v47 = vpop.f32.mrf.mxu0 }
 0x28b   : > { %v5833_v52 = vpop.f32.mrf.mxu1  ;;  %v11232_v30 = vadd.f32 %v5831_v12, %v5719_v35  ;;  %v5721_v62 = vadd.f32 %v5720_v47, %v10977_v26  ;;  %v9030_v26 = vld [vmem:[%s11747_s0 + $0x30c] ss:$72 sps:$4 sm:$0xff]  }
 0x28c   : > { %v5724_v7 = vpop.f32.mrf.mxu0  ;;  %6401 = vmatmul.mubr.bf16.gmra.mxu0 %v9028_v31 }
 0x28d   : > { %v5837_v24 = vpop.f32.mrf.mxu1  ;;  %6514 = vmatmul.mubr.bf16.gmra.mxu1 %v9029_v34  ;;  %v11241_v50 = vadd.f32 %v5833_v52, %v5721_v62  ;;  %v5725_v32 = vadd.f32 %v5724_v7, %v10984_v42  ;;  %6410 = vmatprep.mubr.bf16.mxu0 %v9030_v26 }
 0x28e   : > { %6523 = vmatprep.mubr.bf16.mxu1 %v9031_v0  ;;  %v5726_v37 = vpop.f32.mrf.mxu0  ;;  %v9039_v0 = vld [vmem:[%s11747_s0 + $0x434] ss:$72 sps:$4 sm:$0xff]  }
 0x28f   : > { %v5839_v13 = vpop.f32.mrf.mxu1  ;;  %v11250_v4 = vadd.f32 %v5837_v24, %v5725_v32  ;;  %v5727_v20 = vadd.f32 %v5726_v37, %v10998_v25  ;;  %v9033_v25 = vld [vmem:[%s11747_s0 + $0x310] ss:$72 sps:$4 sm:$0xff]  }
 0x290   : > { %v5728_v15 = vpop.f32.mrf.mxu0  ;;  %v9036_v32 = vld [vmem:[%s11747_s0 + $0x398] ss:$72 sps:$4 sm:$0xff]  }
 0x291   : > { %v5841_v38 = vpop.f32.mrf.mxu1  ;;  %v11253_v8 = vadd.f32 %v5839_v13, %v5727_v20  ;;  %v5729_v42 = vadd.f32 %v5728_v15, %v11013_v1 }
 0x292   : > { %v5730_v40 = vpop.f32.mrf.mxu0 }
 0x293   : > { %v5843_v60 = vpop.f32.mrf.mxu1  ;;  %v11256_v2 = vadd.f32 %v5841_v38, %v5729_v42  ;;  %v5731_v6 = vadd.f32 %v5730_v40, %v11019_v63  ;;  %v9034_v63 = vld [vmem:[%s11747_s0 + $0x39c] ss:$72 sps:$4 sm:$0xff]  }
 0x294   : > { %v5734_v5 = vpop.f32.mrf.mxu0  ;;  %6411 = vmatmul.mubr.bf16.gmra.mxu0 %v9032_v49 }
 0x295   : > { %v5847_v44 = vpop.f32.mrf.mxu1  ;;  %6524 = vmatmul.mubr.bf16.gmra.mxu1 %v9033_v25  ;;  %v11265_v10 = vadd.f32 %v5843_v60, %v5731_v6  ;;  %v5735_v1 = vadd.f32 %v5734_v5, %v11026_v3  ;;  %6420 = vmatprep.mubr.bf16.mxu0 %v9034_v63 }
 0x296   : > { %6533 = vmatprep.mubr.bf16.mxu1 %v9035_v16  ;;  %v5736_v46 = vpop.f32.mrf.mxu0 }
 0x297   : > { %v5849_v45 = vpop.f32.mrf.mxu1  ;;  %v11274_v36 = vadd.f32 %v5847_v44, %v5735_v1  ;;  %v5737_v33 = vadd.f32 %v5736_v46, %v11040_v51  ;;  %v9037_v51 = vld [vmem:[%s11747_s0 + $0x3a0] ss:$72 sps:$4 sm:$0xff]  }
 0x298   : > { %v5738_v12 = vpop.f32.mrf.mxu0  ;;  %v9040_v1 = vld [vmem:[%s11747_s0 + $0x428] ss:$72 sps:$4 sm:$0xff]  }
 0x299   : > { %v5851_v35 = vpop.f32.mrf.mxu1  ;;  %v11277_v47 = vadd.f32 %v5849_v45, %v5737_v33  ;;  %v5739_v3 = vadd.f32 %v5738_v12, %v11055_v18 }
 0x29a   : > { %v5740_v52 = vpop.f32.mrf.mxu0 }
 0x29b   : > { %v5853_v62 = vpop.f32.mrf.mxu1  ;;  %v11280_v7 = vadd.f32 %v5851_v35, %v5739_v3  ;;  %v5741_v24 = vadd.f32 %v5740_v52, %v11061_v55  ;;  %v9038_v55 = vld [vmem:[%s11747_s0 + $0x42c] ss:$72 sps:$4 sm:$0xff]  }
 0x29c   : > { %v5744_v31 = vpop.f32.mrf.mxu0  ;;  %6421 = vmatmul.mubr.bf16.gmra.mxu0 %v9036_v32 }
 0x29d   : > { %v5857_v34 = vpop.f32.mrf.mxu1  ;;  %6534 = vmatmul.mubr.bf16.gmra.mxu1 %v9037_v51  ;;  %v11289_v26 = vadd.f32 %v5853_v62, %v5741_v24  ;;  %v5745_v18 = vadd.f32 %v5744_v31, %v11068_v48  ;;  %6430 = vmatprep.mubr.bf16.mxu0 %v9038_v55 }
 0x29e   : > { %6543 = vmatprep.mubr.bf16.mxu1 %v9039_v0  ;;  %v5746_v37 = vpop.f32.mrf.mxu0 }
 0x29f   : > { %v5859_v13 = vpop.f32.mrf.mxu1  ;;  %v11298_v20 = vadd.f32 %v5857_v34, %v5745_v18  ;;  %v5747_v15 = vadd.f32 %v5746_v37, %v11082_v17  ;;  %v9041_v17 = vld [vmem:[%s11747_s0 + $0x430] ss:$72 sps:$4 sm:$0xff]  }
 0x2a0   : > { %v5748_v38 = vpop.f32.mrf.mxu0 }
 0x2a1   : > { %v5861_v42 = vpop.f32.mrf.mxu1  ;;  %v11301_v40 = vadd.f32 %v5859_v13, %v5747_v15  ;;  %v5749_v48 = vadd.f32 %v5748_v38, %v11097_v61 }
 0x2a2   : > { %v5750_v60 = vpop.f32.mrf.mxu0 }
 0x2a3   : > { %v5863_v6 = vpop.f32.mrf.mxu1  ;;  %v11304_v5 = vadd.f32 %v5861_v42, %v5749_v48  ;;  %v5751_v44 = vadd.f32 %v5750_v60, %v11103_v58 }
 0x2a4   : > { %v5754_v49 = vpop.f32.mrf.mxu0  ;;  %6431 = vmatmul.mubr.bf16.gmra.mxu0 %v9040_v1 }
 0x2a5   : > { %v5867_v25 = vpop.f32.mrf.mxu1  ;;  %6544 = vmatmul.mubr.bf16.gmra.mxu1 %v9041_v17  ;;  %v11313_v63 = vadd.f32 %v5863_v6, %v5751_v44  ;;  %v5755_v61 = vadd.f32 %v5754_v49, %v11110_v28 }
 0x2a6   : > { %v5756_v16 = vpop.f32.mrf.mxu0 }
 0x2a7   : > { %v5869_v46 = vpop.f32.mrf.mxu1  ;;  %v11316_v45 = vadd.f32 %v5867_v25, %v5755_v61  ;;  %v5757_v58 = vadd.f32 %v5756_v16, %v11124_v54 }
 0x2a8   : > { %v5758_v33 = vpop.f32.mrf.mxu0 }
 0x2a9   : > { %v5871_v12 = vpop.f32.mrf.mxu1  ;;  %v11319_v35 = vadd.f32 %v5869_v46, %v5757_v58  ;;  %v5759_v3 = vadd.f32 %v5758_v33, %v11133_v43 }
 0x2aa   : > { %v5760_v52 = vpop.f32.mrf.mxu0 }
 0x2ab   : > { %v5873_v62 = vpop.f32.mrf.mxu1  ;;  %v11322_v24 = vadd.f32 %v5871_v12, %v5759_v3  ;;  %v5761_v31 = vadd.f32 %v5760_v52, %v11137_v56 }
 0x2ac   : > { %v5910_v34 = vpop.f32.mrf.mxu0 }
 0x2ad   : > { %v6023_v28 = vpop.f32.mrf.mxu1  ;;  %v11325_v32 = vadd.f32 %v5873_v62, %v5761_v31  ;;  %v5911_v51 = vadd.f32 %v5910_v34, %v11154_v22 }
 0x2ae   : > { %v5912_v18 = vpop.f32.mrf.mxu0 }
 0x2af   : > { %v6025_v54 = vpop.f32.mrf.mxu1  ;;  %v11328_v55 = vadd.f32 %v6023_v28, %v5911_v51  ;;  %v5913_v0 = vadd.f32 %v5912_v18, %v11157_v19 }
 0x2b0   : > { %v5914_v37 = vpop.f32.mrf.mxu0 }
 0x2b1   : > { %v6027_v43 = vpop.f32.mrf.mxu1  ;;  %v11331_v13 = vadd.f32 %v6025_v54, %v5913_v0  ;;  %v5915_v15 = vadd.f32 %v5914_v37, %v11160_v21 }
 0x2b2   : > { %v5916_v38 = vpop.f32.mrf.mxu0 }
 0x2b3   : > { %v6029_v56 = vpop.f32.mrf.mxu1  ;;  %v11334_v42 = vadd.f32 %v6027_v43, %v5915_v15  ;;  %v5917_v48 = vadd.f32 %v5916_v38, %v11169_v14 }
 0x2b4   : > { %v5920_v60 = vpop.f32.mrf.mxu0 }
 0x2b5   : > { %v6033_v22 = vpop.f32.mrf.mxu1  ;;  %v11337_v6 = vadd.f32 %v6029_v56, %v5917_v48  ;;  %v5921_v44 = vadd.f32 %v5920_v60, %v11178_v39 }
 0x2b6   : > { %v5922_v49 = vpop.f32.mrf.mxu0 }
 0x2b7   : > { %v6035_v19 = vpop.f32.mrf.mxu1  ;;  %v11340_v25 = vadd.f32 %v6033_v22, %v5921_v44  ;;  %v5923_v1 = vadd.f32 %v5922_v49, %v11181_v59 }
 0x2b8   : > { %v5924_v17 = vpop.f32.mrf.mxu0 }
 0x2b9   : > { %v6037_v21 = vpop.f32.mrf.mxu1  ;;  %v11343_v61 = vadd.f32 %v6035_v19, %v5923_v1  ;;  %v5925_v16 = vadd.f32 %v5924_v17, %v11184_v41 }
 0x2ba   : > { %v5926_v46 = vpop.f32.mrf.mxu0 }
 0x2bb   : > { %v6039_v14 = vpop.f32.mrf.mxu1  ;;  %v11346_v58 = vadd.f32 %v6037_v21, %v5925_v16  ;;  %v5927_v33 = vadd.f32 %v5926_v46, %v11193_v9 }
 0x2bc   : > { %v5930_v12 = vpop.f32.mrf.mxu0 }
 0x2bd   : > { %v6043_v39 = vpop.f32.mrf.mxu1  ;;  %v11349_v3 = vadd.f32 %v6039_v14, %v5927_v33  ;;  %v5931_v52 = vadd.f32 %v5930_v12, %v11202_v57 }
 0x2be   : > { %v5932_v62 = vpop.f32.mrf.mxu0 }
 0x2bf   : > { %v6045_v59 = vpop.f32.mrf.mxu1  ;;  %v11352_v31 = vadd.f32 %v6043_v39, %v5931_v52  ;;  %v5933_v34 = vadd.f32 %v5932_v62, %v11205_v53 }
 0x2c0   : > { %v5934_v28 = vpop.f32.mrf.mxu0 }
 0x2c1   : > { %v6047_v41 = vpop.f32.mrf.mxu1  ;;  %v11355_v51 = vadd.f32 %v6045_v59, %v5933_v34  ;;  %v5935_v18 = vadd.f32 %v5934_v28, %v11208_v23 }
 0x2c2   : > { %v5936_v54 = vpop.f32.mrf.mxu0 }
 0x2c3   : > { %v6049_v9 = vpop.f32.mrf.mxu1  ;;  %v11358_v0 = vadd.f32 %v6047_v41, %v5935_v18  ;;  %v5937_v37 = vadd.f32 %v5936_v54, %v11217_v11 }
 0x2c4   : > { %v5940_v43 = vpop.f32.mrf.mxu0 }
 0x2c5   : > { %v6053_v57 = vpop.f32.mrf.mxu1  ;;  %v11361_v15 = vadd.f32 %v6049_v9, %v5937_v37  ;;  %v5941_v38 = vadd.f32 %v5940_v43, %v11226_v29 }
 0x2c6   : > { %v5942_v56 = vpop.f32.mrf.mxu0 }
 0x2c7   : > { %v6055_v53 = vpop.f32.mrf.mxu1  ;;  %v11364_v48 = vadd.f32 %v6053_v57, %v5941_v38  ;;  %v5943_v60 = vadd.f32 %v5942_v56, %v11229_v27 }
 0x2c8   : > { %v5944_v22 = vpop.f32.mrf.mxu0 }
 0x2c9   : > { %v6057_v23 = vpop.f32.mrf.mxu1  ;;  %v11367_v44 = vadd.f32 %v6055_v53, %v5943_v60  ;;  %v5945_v49 = vadd.f32 %v5944_v22, %v11232_v30 }
 0x2ca   : > { %v5946_v19 = vpop.f32.mrf.mxu0 }
 0x2cb   : > { %v6059_v11 = vpop.f32.mrf.mxu1  ;;  %v11370_v1 = vadd.f32 %v6057_v23, %v5945_v49  ;;  %v5947_v17 = vadd.f32 %v5946_v19, %v11241_v50 }
 0x2cc   : > { %v5950_v21 = vpop.f32.mrf.mxu0 }
 0x2cd   : > { %v6063_v29 = vpop.f32.mrf.mxu1  ;;  %v11373_v16 = vadd.f32 %v6059_v11, %v5947_v17  ;;  %v5951_v46 = vadd.f32 %v5950_v21, %v11250_v4 }
 0x2ce   : > { %v5952_v14 = vpop.f32.mrf.mxu0 }
 0x2cf   : > { %v6065_v27 = vpop.f32.mrf.mxu1  ;;  %v11376_v33 = vadd.f32 %v6063_v29, %v5951_v46  ;;  %v5953_v12 = vadd.f32 %v5952_v14, %v11253_v8 }
 0x2d0   : > { %v5954_v39 = vpop.f32.mrf.mxu0 }
 0x2d1   : > { %v6067_v30 = vpop.f32.mrf.mxu1  ;;  %v11379_v52 = vadd.f32 %v6065_v27, %v5953_v12  ;;  %v5955_v62 = vadd.f32 %v5954_v39, %v11256_v2 }
 0x2d2   : > { %v5956_v59 = vpop.f32.mrf.mxu0 }
 0x2d3   : > { %v6069_v50 = vpop.f32.mrf.mxu1  ;;  %v11382_v34 = vadd.f32 %v6067_v30, %v5955_v62  ;;  %v5957_v28 = vadd.f32 %v5956_v59, %v11265_v10 }
 0x2d4   : > { %v5960_v41 = vpop.f32.mrf.mxu0 }
 0x2d5   : > { %11842 = vst [vmem:[#allocation20_spill] sm:$0xff] %v11382_v34  ;;  %v6073_v4 = vpop.f32.mrf.mxu1  ;;  %v11385_v18 = vadd.f32 %v6069_v50, %v5957_v28  ;;  %v5961_v54 = vadd.f32 %v5960_v41, %v11274_v36 }
 0x2d6   : > { %v5962_v9 = vpop.f32.mrf.mxu0 }
 0x2d7   : > { %11843 = vst [vmem:[#allocation21_spill] sm:$0xff] %v11385_v18  ;;  %v6075_v8 = vpop.f32.mrf.mxu1  ;;  %v11388_v37 = vadd.f32 %v6073_v4, %v5961_v54  ;;  %v5963_v43 = vadd.f32 %v5962_v9, %v11277_v47 }
 0x2d8   : > { %v5964_v57 = vpop.f32.mrf.mxu0 }
 0x2d9   : > { %11844 = vst [vmem:[#allocation22_spill] sm:$0xff] %v11388_v37  ;;  %v6077_v2 = vpop.f32.mrf.mxu1  ;;  %v11391_v38 = vadd.f32 %v6075_v8, %v5963_v43  ;;  %v5965_v56 = vadd.f32 %v5964_v57, %v11280_v7 }
 0x2da   : > { %v5966_v53 = vpop.f32.mrf.mxu0 }
 0x2db   : > { %11845 = vst [vmem:[#allocation6_spill] sm:$0xff] %v11391_v38  ;;  %v6079_v10 = vpop.f32.mrf.mxu1  ;;  %v11394_v60 = vadd.f32 %v6077_v2, %v5965_v56  ;;  %v5967_v22 = vadd.f32 %v5966_v53, %v11289_v26 }
 0x2dc   : > { %v5970_v23 = vpop.f32.mrf.mxu0 }
 0x2dd   : > { %11846 = vst [vmem:[#allocation23_spill] sm:$0xff] %v11394_v60  ;;  %v6083_v36 = vpop.f32.mrf.mxu1  ;;  %v11397_v49 = vadd.f32 %v6079_v10, %v5967_v22  ;;  %v5971_v19 = vadd.f32 %v5970_v23, %v11298_v20 }
 0x2de   : > { %v5972_v11 = vpop.f32.mrf.mxu0 }
 0x2df   : > { %11847 = vst [vmem:[#allocation7_spill] sm:$0xff] %v11397_v49  ;;  %v6085_v47 = vpop.f32.mrf.mxu1  ;;  %v11400_v17 = vadd.f32 %v6083_v36, %v5971_v19  ;;  %v5973_v21 = vadd.f32 %v5972_v11, %v11301_v40 }
 0x2e0   : > { %v5974_v29 = vpop.f32.mrf.mxu0 }
 0x2e1   : > { %11848 = vst [vmem:[#allocation25_spill] sm:$0xff] %v11400_v17  ;;  %v6087_v7 = vpop.f32.mrf.mxu1  ;;  %v11403_v46 = vadd.f32 %v6085_v47, %v5973_v21  ;;  %v5975_v14 = vadd.f32 %v5974_v29, %v11304_v5 }
 0x2e2   : > { %v5976_v27 = vpop.f32.mrf.mxu0 }
 0x2e3   : > { %11849 = vst [vmem:[#allocation8_spill] sm:$0xff] %v11403_v46  ;;  %v6089_v26 = vpop.f32.mrf.mxu1  ;;  %v11406_v12 = vadd.f32 %v6087_v7, %v5975_v14  ;;  %v5977_v39 = vadd.f32 %v5976_v27, %v11313_v63 }
 0x2e4   : > { %v5980_v30 = vpop.f32.mrf.mxu0 }
 0x2e5   : > { %11850 = vst [vmem:[#allocation27_spill] sm:$0xff] %v11406_v12  ;;  %v6093_v20 = vpop.f32.mrf.mxu1  ;;  %v11409_v62 = vadd.f32 %v6089_v26, %v5977_v39  ;;  %v5981_v59 = vadd.f32 %v5980_v30, %v11316_v45 }
 0x2e6   : > { %v5982_v50 = vpop.f32.mrf.mxu0 }
 0x2e7   : > { %11851 = vst [vmem:[#allocation9_spill] sm:$0xff] %v11409_v62  ;;  %v6095_v40 = vpop.f32.mrf.mxu1  ;;  %v11412_v28 = vadd.f32 %v6093_v20, %v5981_v59  ;;  %v5983_v41 = vadd.f32 %v5982_v50, %v11319_v35 }
 0x2e8   : > { %v5984_v4 = vpop.f32.mrf.mxu0 }
 0x2e9   : > { %11852 = vst [vmem:[#allocation29_spill] sm:$0xff] %v11412_v28  ;;  %v6097_v5 = vpop.f32.mrf.mxu1  ;;  %v11415_v54 = vadd.f32 %v6095_v40, %v5983_v41  ;;  %v5985_v9 = vadd.f32 %v5984_v4, %v11322_v24 }
 0x2ea   : > { %v5986_v8 = vpop.f32.mrf.mxu0 }
 0x2eb   : > { %11853 = vst [vmem:[#allocation24_spill] sm:$0xff] %v11415_v54  ;;  %v6099_v63 = vpop.f32.mrf.mxu1  ;;  %v11418_v43 = vadd.f32 %v6097_v5, %v5985_v9  ;;  %v5987_v57 = vadd.f32 %v5986_v8, %v11325_v32 }
 0x2ec   : > { %v6136_v2 = vpop.f32.mrf.mxu0 }
 0x2ed   : > { %11854 = vst [vmem:[#allocation26_spill] sm:$0xff] %v11418_v43  ;;  %v11421_v45 = vpop.f32.mrf.mxu1  ;;  %v11423_v56 = vadd.f32 %v6099_v63, %v5987_v57 }
 0x2ee   : > { %v6138_v53 = vpop.f32.mrf.mxu0 }
 0x2ef   : > { %11855 = vst [vmem:[#allocation28_spill] sm:$0xff] %v11423_v56  ;;  %v11425_v10 = vpop.f32.mrf.mxu1 }
 0x2f0   : > { %v11427_v35 = vpop.f32.mrf.mxu0 }
 0x2f1   : > { %v11429_v22 = vpop.f32.mrf.mxu1 }
 0x2f2   : > { %v11431_v23 = vpop.f32.mrf.mxu0 }
 0x2f3   : > { %v11433_v24 = vpop.f32.mrf.mxu1 }
 0x2f4   : > { %v11435_v36 = vpop.f32.mrf.mxu0 }
 0x2f5   : > { %v11437_v19 = vpop.f32.mrf.mxu1 }
 0x2f6   : > { %v11439_v32 = vpop.f32.mrf.mxu0 }
 0x2f7   : > { %v11441_v11 = vpop.f32.mrf.mxu1 }
 0x2f8   : > { %v11443_v47 = vpop.f32.mrf.mxu0 }
 0x2f9   : > { %v11445_v21 = vpop.f32.mrf.mxu1 }
 0x2fa   : > { %v11447_v29 = vpop.f32.mrf.mxu0 }
 0x2fb   : > { %v11449_v7 = vpop.f32.mrf.mxu1 }
 0x2fc   : > { %v11451_v14 = vpop.f32.mrf.mxu0 }
 0x2fd   : > { %v11453_v27 = vpop.f32.mrf.mxu1 }
 0x2fe   : > { %v11455_v26 = vpop.f32.mrf.mxu0 }
 0x2ff   : > { %v11457_v39 = vpop.f32.mrf.mxu1 }
 0x300   : > { %v11459_v30 = vpop.f32.mrf.mxu0 }
 0x301   : > { %v11461_v20 = vpop.f32.mrf.mxu1 }
 0x302   : > { %v11463_v59 = vpop.f32.mrf.mxu0 }
 0x303   : > { %v11465_v50 = vpop.f32.mrf.mxu1 }
 0x304   : > { %v11467_v40 = vpop.f32.mrf.mxu0 }
 0x305   : > { %v11469_v41 = vpop.f32.mrf.mxu1 }
 0x306   : > { %v11471_v4 = vpop.f32.mrf.mxu0 }
 0x307   : > { %v11473_v5 = vpop.f32.mrf.mxu1 }
 0x308   : > { %v11475_v9 = vpop.f32.mrf.mxu0 }
 0x309   : > { %v11477_v8 = vpop.f32.mrf.mxu1 }
 0x30a   : > { %v11479_v63 = vpop.f32.mrf.mxu0 }
 0x30b   : > { %v11481_v57 = vpop.f32.mrf.mxu1 }
 0x30c   : > { %v11483_v56 = vpop.f32.mrf.mxu0 }
 0x30d   : > { %v11485_v43 = vpop.f32.mrf.mxu1 }
 0x30e   : > { %v11487_v54 = vpop.f32.mrf.mxu0 }
 0x30f   : > { %v11489_v28 = vpop.f32.mrf.mxu1 }
 0x310   : > { %11856 = vst [vmem:[#allocation30_spill] sm:$0xff] %v11489_v28  ;;  %v11491_v62 = vpop.f32.mrf.mxu0 }
 0x311   : > { %11857 = vst [vmem:[#allocation10_spill] sm:$0xff] %v11491_v62  ;;  %v11493_v12 = vpop.f32.mrf.mxu1 }
 0x312   : > { %11858 = vst [vmem:[#allocation31_spill] sm:$0xff] %v11493_v12  ;;  %v11495_v46 = vpop.f32.mrf.mxu0 }
 0x313   : > { %11859 = vst [vmem:[#allocation11_spill] sm:$0xff] %v11495_v46  ;;  %v11497_v17 = vpop.f32.mrf.mxu1 }
 0x314   : > { %11860 = vst [vmem:[#allocation33_spill] sm:$0xff] %v11497_v17  ;;  %v11499_v49 = vpop.f32.mrf.mxu0 }
 0x315   : > { %11861 = vst [vmem:[#allocation12_spill] sm:$0xff] %v11499_v49  ;;  %v11501_v60 = vpop.f32.mrf.mxu1 }
 0x316   : > { %11862 = vst [vmem:[#allocation35_spill] sm:$0xff] %v11501_v60  ;;  %v11503_v38 = vpop.f32.mrf.mxu0 }
 0x317   : > { %11863 = vst [vmem:[#allocation13_spill] sm:$0xff] %v11503_v38  ;;  %v11505_v37 = vpop.f32.mrf.mxu1 }
 0x318   : > { %11864 = vst [vmem:[#allocation37_spill] sm:$0xff] %v11505_v37  ;;  %v11507_v18 = vpop.f32.mrf.mxu0 }
 0x319   : > { %11865 = vst [vmem:[#allocation32_spill] sm:$0xff] %v11507_v18  ;;  %v11509_v34 = vpop.f32.mrf.mxu1 }
 0x31a   : > { %11866 = vst [vmem:[#allocation34_spill] sm:$0xff] %v11509_v34  ;;  %v11511_v28 = vpop.f32.mrf.mxu0 }
 0x31b   : > { %11867 = vst [vmem:[#allocation36_spill] sm:$0xff] %v11511_v28  ;;  %v11513_v62 = vpop.f32.mrf.mxu1 }
 0x31c   : > { %11868 = vst [vmem:[#allocation38_spill] sm:$0xff] %v11513_v62  ;;  %v11515_v12 = vpop.f32.mrf.mxu0 }
 0x31d   : > { %11869 = vst [vmem:[#allocation14_spill] sm:$0xff] %v11515_v12  ;;  %v11517_v46 = vpop.f32.mrf.mxu1 }
 0x31e   : > { %11870 = vst [vmem:[#allocation39_spill] sm:$0xff] %v11517_v46  ;;  %v11519_v17 = vpop.f32.mrf.mxu0  ;;  %v6137_v46 = vadd.f32 %v6136_v2, %v11328_v55  ;;  %v6143_v55 = vadd.f32 %v11431_v23, %v11337_v6 }
 0x31f   : > { %11871 = vst [vmem:[#allocation15_spill] sm:$0xff] %v11519_v17  ;;  %v11521_v49 = vpop.f32.mrf.mxu1 }
 0x320   : > { %11872 = vst [vmem:[#allocation41_spill] sm:$0xff] %v11521_v49  ;;  %v11523_v60 = vpop.f32.mrf.mxu0 }
 0x321   : > { %11873 = vst [vmem:[#allocation16_spill] sm:$0xff] %v11523_v60  ;;  %v11525_v38 = vpop.f32.mrf.mxu1 }
 0x322   : > { %11874 = vst [vmem:[#allocation43_spill] sm:$0xff] %v11525_v38  ;;  %v11527_v37 = vpop.f32.mrf.mxu0  ;;  %v6139_v38 = vadd.f32 %v6138_v53, %v11331_v13  ;;  %v6147_v53 = vadd.f32 %v11435_v36, %v11340_v25 }
 0x323   : > { %11875 = vst [vmem:[#allocation17_spill] sm:$0xff] %v11527_v37  ;;  %v11529_v18 = vpop.f32.mrf.mxu1 }
 0x324   : > { %11876 = vst [vmem:[#allocation45_spill] sm:$0xff] %v11529_v18  ;;  %v11531_v34 = vpop.f32.mrf.mxu0  ;;  %v6250_v18 = vadd.f32 %v11421_v45, %v6137_v46  ;;  %v6149_v46 = vadd.f32 %v11439_v32, %v11343_v61  ;;  %v6260_v23 = vadd.f32 %v11437_v19, %v6147_v53 }
 0x325   : > { %11877 = vst [vmem:[#allocation40_spill] sm:$0xff] %v11531_v34  ;;  %v11533_v28 = vpop.f32.mrf.mxu1 }
 0x326   : > { %11878 = vst [vmem:[#allocation42_spill] sm:$0xff] %v11533_v28  ;;  %v11535_v62 = vpop.f32.mrf.mxu0  ;;  %v6141_v28 = vadd.f32 %v11427_v35, %v11334_v42 }
 0x327   : > { %11879 = vst [vmem:[#allocation44_spill] sm:$0xff] %v11535_v62  ;;  %v11537_v12 = vpop.f32.mrf.mxu1 }
 0x328   : > { %11880 = vst [vmem:[#allocation46_spill] sm:$0xff] %v11537_v12  ;;  %v11540_v17 = vpop.f32.mrf.mxu0  ;;  %v6252_v12 = vadd.f32 %v11425_v10, %v6139_v38  ;;  %v6254_v13 = vadd.f32 %v11429_v22, %v6141_v28  ;;  %v6256_v38 = vadd.f32 %v11433_v24, %v6143_v55  ;;  %v6151_v28 = vadd.f32 %v11443_v47, %v11346_v58 }
 0x329   : > { %11881 = vst [vmem:[#allocation18_spill] sm:$0xff] %v11540_v17  ;;  %v11542_v49 = vpop.f32.mrf.mxu1  ;;  %v6153_v24 = vadd.f32 %v11447_v29, %v11349_v3  ;;  %v6157_v58 = vadd.f32 %v11451_v14, %v11352_v31  ;;  %v6161_v31 = vadd.f32 %v11459_v30, %v11358_v0  ;;  %v6167_v0 = vadd.f32 %v11467_v40, %v11364_v48 }
 0x32a   : > { %11882 = vst [vmem:[#allocation47_spill] sm:$0xff] %v11542_v49  ;;  %v11545_v60 = vpop.f32.mrf.mxu0  ;;  %v6264_v19 = vadd.f32 %v11445_v21, %v6151_v28  ;;  %v6171_v48 = vadd.f32 %v11475_v9, %v11370_v1  ;;  %v6177_v1 = vadd.f32 %v11483_v56, %v11376_v33  ;;  %v11885_v33 = vld [vmem:[#allocation10_spill] sm:$0xff] }
 0x32b   : > { %v11547_v37 = vpop.f32.mrf.mxu1  ;;  %v6266_v3 = vadd.f32 %v11449_v7, %v6153_v24  ;;  %v6270_v21 = vadd.f32 %v11453_v27, %v6157_v58  ;;  %v6163_v7 = vadd.f32 %v11463_v59, %v11361_v15  ;;  %v6274_v27 = vadd.f32 %v11461_v20, %v6161_v31  ;;  %v11887_v31 = vld [vmem:[#allocation21_spill] sm:$0xff] }
 0x32c   : > { %11883 = vst [vmem:[#allocation19_spill] sm:$0xff] %v11547_v37  ;;  %v6362_v62 = vpop.f32.mrf.mxu0  ;;  %v6280_v20 = vadd.f32 %v11469_v41, %v6167_v0  ;;  %v6284_v41 = vadd.f32 %v11477_v8, %v6171_v48  ;;  %v6290_v8 = vadd.f32 %v11485_v43, %v6177_v1  ;;  %v11889_v43 = vld [vmem:[#allocation31_spill] sm:$0xff]  ;;  %v11892_v0 = vld [vmem:[#allocation6_spill] sm:$0xff] }
 0x32d   : > { %v6475_v34 = vpop.f32.mrf.mxu1  ;;  %v6363_v2 = vadd.f32 %v6362_v62, %v6250_v18  ;;  %v6276_v15 = vadd.f32 %v11465_v50, %v6163_v7  ;;  %v6173_v50 = vadd.f32 %v11479_v63, %v11373_v16 }
 0x32e   : > { %v6364_v49 = vpop.f32.mrf.mxu0 }
 0x32f   : > { %v6477_v17 = vpop.f32.mrf.mxu1  ;;  %v6365_v37 = vadd.f32 %v6364_v49, %v6252_v12  ;;  %v6476_v10 = vadd.f32 %v6475_v34, %v6363_v2  ;;  %v6262_v12 = vadd.f32 %v11441_v11, %v6149_v46  ;;  %v6159_v11 = vadd.f32 %v11455_v26, %v11355_v51 }
 0x330   : > { %v6366_v42 = vpop.f32.mrf.mxu0  ;;  %v6286_v16 = vadd.f32 %v11481_v57, %v6173_v50  ;;  %v11898_v50 = vld [vmem:[#allocation37_spill] sm:$0xff] }
 0x331   : > { %v6479_v45 = vpop.f32.mrf.mxu1  ;;  %v6478_v35 = vadd.f32 %v6477_v17, %v6365_v37  ;;  %v6367_v6 = vadd.f32 %v6366_v42, %v6254_v13  ;;  %v6272_v51 = vadd.f32 %v11457_v39, %v6159_v11  ;;  %v6169_v39 = vadd.f32 %v11471_v4, %v11367_v44 }
 0x332   : > { %v6368_v18 = vpop.f32.mrf.mxu0 }
 0x333   : > { %v6481_v62 = vpop.f32.mrf.mxu1  ;;  %v7726_v25 = vpack.c.bf16 %v6478_v35, %v6476_v10  ;;  %v6369_v49 = vadd.f32 %v6368_v18, %v6256_v38  ;;  %v6480_v34 = vadd.f32 %v6479_v45, %v6367_v6  ;;  %v6282_v44 = vadd.f32 %v11473_v5, %v6169_v39 }
 0x334   : > { %v6372_v61 = vpop.f32.mrf.mxu0  ;;  %v6179_v5 = vadd.f32 %v11487_v54, %v11379_v52 }
 0x335   : > { %v6485_v22 = vpop.f32.mrf.mxu1  ;;  %6747 = vst [vmem:[%s10853_s7 + $0x8] sm:$0xff] %v7726_v25  ;;  %v6482_v37 = vadd.f32 %v6481_v62, %v6369_v49  ;;  %v6373_v17 = vadd.f32 %v6372_v61, %v6260_v23 }
 0x336   : > { %v6374_v36 = vpop.f32.mrf.mxu0 }
 0x337   : > { %v6487_v32 = vpop.f32.mrf.mxu1  ;;  %v7728_v47 = vpack.c.bf16 %v6482_v37, %v6480_v34  ;;  %v6375_v55 = vadd.f32 %v6374_v36, %v6262_v12  ;;  %v6486_v29 = vadd.f32 %v6485_v22, %v6373_v17 }
 0x338   : > { %v6376_v2 = vpop.f32.mrf.mxu0 }
 0x339   : > { %v6489_v13 = vpop.f32.mrf.mxu1  ;;  %6749 = vst [vmem:[%s10853_s7 + $0x18] sm:$0xff] %v7728_v47  ;;  %v6488_v53 = vadd.f32 %v6487_v32, %v6375_v55  ;;  %v6377_v46 = vadd.f32 %v6376_v2, %v6264_v19 }
 0x33a   : > { %v6378_v42 = vpop.f32.mrf.mxu0 }
 0x33b   : > { %v6491_v45 = vpop.f32.mrf.mxu1  ;;  %v7730_v14 = vpack.c.bf16 %v6488_v53, %v6486_v29  ;;  %v6379_v38 = vadd.f32 %v6378_v42, %v6266_v3  ;;  %v6490_v35 = vadd.f32 %v6489_v13, %v6377_v46  ;;  %v11884_v53 = vld [vmem:[#allocation20_spill] sm:$0xff] }
 0x33c   : > { %v6382_v26 = vpop.f32.mrf.mxu0  ;;  %v6181_v56 = vadd.f32 %v11885_v33, %v11884_v53  ;;  %v11905_v53 = vld [vmem:[#allocation15_spill] sm:$0xff] }
 0x33d   : > { %v6495_v10 = vpop.f32.mrf.mxu1  ;;  %6751 = vst [vmem:[%s10853_s7 + $0x28] sm:$0xff] %v7730_v14  ;;  %v6492_v6 = vadd.f32 %v6491_v45, %v6379_v38  ;;  %v6383_v18 = vadd.f32 %v6382_v26, %v6270_v21  ;;  %v11886_v45 = vld [vmem:[#allocation30_spill] sm:$0xff]  ;;  %v11888_v14 = vld [vmem:[#allocation11_spill] sm:$0xff] }
 0x33e   : > { %v6384_v62 = vpop.f32.mrf.mxu0  ;;  %v6292_v52 = vadd.f32 %v11886_v45, %v6179_v5  ;;  %v6183_v57 = vadd.f32 %v11888_v14, %v11887_v31 }
 0x33f   : > { %v6497_v23 = vpop.f32.mrf.mxu1  ;;  %v7732_v30 = vpack.c.bf16 %v6492_v6, %v6490_v35  ;;  %v6385_v28 = vadd.f32 %v6384_v62, %v6272_v51  ;;  %v6496_v59 = vadd.f32 %v6495_v10, %v6383_v18  ;;  %v6294_v35 = vadd.f32 %v11889_v43, %v6181_v56  ;;  %v11890_v6 = vld [vmem:[#allocation22_spill] sm:$0xff]  ;;  %v11891_v18 = vld [vmem:[#allocation12_spill] sm:$0xff] }
 0x340   : > { %v6386_v25 = vpop.f32.mrf.mxu0  ;;  %v6187_v62 = vadd.f32 %v11891_v18, %v11890_v6 }
 0x341   : > { %v6499_v49 = vpop.f32.mrf.mxu1  ;;  %6753 = vst [vmem:[%s10853_s7 + $0x38] sm:$0xff] %v7732_v30  ;;  %v6498_v12 = vadd.f32 %v6497_v23, %v6385_v28  ;;  %v6387_v61 = vadd.f32 %v6386_v25, %v6274_v27  ;;  %v11893_v30 = vld [vmem:[#allocation13_spill] sm:$0xff] }
 0x342   : > { %v6388_v22 = vpop.f32.mrf.mxu0  ;;  %v6189_v28 = vadd.f32 %v11893_v30, %v11892_v0 }
 0x343   : > { %v6501_v24 = vpop.f32.mrf.mxu1  ;;  %v7734_v40 = vpack.c.bf16 %v6498_v12, %v6496_v59  ;;  %v6389_v34 = vadd.f32 %v6388_v22, %v6276_v15  ;;  %v6500_v17 = vadd.f32 %v6499_v49, %v6387_v61  ;;  %v11894_v49 = vld [vmem:[#allocation33_spill] sm:$0xff] }
 0x344   : > { %v6392_v4 = vpop.f32.mrf.mxu0  ;;  %v6296_v15 = vadd.f32 %v11894_v49, %v6183_v57  ;;  %v11907_v57 = vld [vmem:[#allocation39_spill] sm:$0xff] }
 0x345   : > { %v6505_v37 = vpop.f32.mrf.mxu1  ;;  %6755 = vst [vmem:[%s10853_s7 + $0x48] sm:$0xff] %v7734_v40  ;;  %v6502_v36 = vadd.f32 %v6501_v24, %v6389_v34  ;;  %v6393_v32 = vadd.f32 %v6392_v4, %v6280_v20  ;;  %v11895_v20 = vld [vmem:[#allocation35_spill] sm:$0xff]  ;;  %v11897_v34 = vld [vmem:[#allocation32_spill] sm:$0xff] }
 0x346   : > { %v6394_v19 = vpop.f32.mrf.mxu0  ;;  %v6300_v48 = vadd.f32 %v11895_v20, %v6187_v62  ;;  %v11896_v40 = vld [vmem:[#allocation23_spill] sm:$0xff] }
 0x347   : > { %v6507_v58 = vpop.f32.mrf.mxu1  ;;  %v7736_v9 = vpack.c.bf16 %v6502_v36, %v6500_v17  ;;  %v6395_v47 = vadd.f32 %v6394_v19, %v6282_v44  ;;  %v6506_v63 = vadd.f32 %v6505_v37, %v6393_v32  ;;  %v6191_v44 = vadd.f32 %v11897_v34, %v11896_v40  ;;  %v11899_v19 = vld [vmem:[#allocation7_spill] sm:$0xff]  ;;  %v11917_v40 = vld [vmem:[#allocation44_spill] sm:$0xff] }
 0x348   : > { %v6396_v55 = vpop.f32.mrf.mxu0  ;;  %v6302_v17 = vadd.f32 %v11898_v50, %v6189_v28 }
 0x349   : > { %v6509_v11 = vpop.f32.mrf.mxu1  ;;  %6757 = vst [vmem:[%s10853_s7 + $0x58] sm:$0xff] %v7736_v9  ;;  %v6508_v2 = vadd.f32 %v6507_v58, %v6395_v47  ;;  %v6397_v13 = vadd.f32 %v6396_v55, %v6284_v41  ;;  %v11900_v58 = vld [vmem:[#allocation36_spill] sm:$0xff] }
 0x34a   : > { %v6398_v3 = vpop.f32.mrf.mxu0  ;;  %v6193_v41 = vadd.f32 %v11900_v58, %v11899_v19 }
 0x34b   : > { %v6511_v29 = vpop.f32.mrf.mxu1  ;;  %v7738_v46 = vpack.c.bf16 %v6508_v2, %v6506_v63  ;;  %v6399_v42 = vadd.f32 %v6398_v3, %v6286_v16  ;;  %v6510_v38 = vadd.f32 %v6509_v11, %v6397_v13  ;;  %v11901_v11 = vld [vmem:[#allocation34_spill] sm:$0xff]  ;;  %v11902_v63 = vld [vmem:[#allocation25_spill] sm:$0xff] }
 0x34c   : > { %v6402_v54 = vpop.f32.mrf.mxu0  ;;  %v6304_v16 = vadd.f32 %v11901_v11, %v6191_v44  ;;  %v11903_v2 = vld [vmem:[#allocation14_spill] sm:$0xff] }
 0x34d   : > { %v6515_v21 = vpop.f32.mrf.mxu1  ;;  %6759 = vst [vmem:[%s10853_s7 + $0x68] sm:$0xff] %v7738_v46  ;;  %v6512_v51 = vadd.f32 %v6511_v29, %v6399_v42  ;;  %v6403_v26 = vadd.f32 %v6402_v54, %v6290_v8  ;;  %v6197_v13 = vadd.f32 %v11903_v2, %v11902_v63  ;;  %v11904_v8 = vld [vmem:[#allocation8_spill] sm:$0xff]  ;;  %v11906_v42 = vld [vmem:[#allocation38_spill] sm:$0xff] }
 0x34e   : > { %v6404_v10 = vpop.f32.mrf.mxu0  ;;  %v6199_v33 = vadd.f32 %v11905_v53, %v11904_v8  ;;  %v6306_v45 = vadd.f32 %v11906_v42, %v6193_v41  ;;  %v11919_v41 = vld [vmem:[#allocation42_spill] sm:$0xff]  ;;  %v11924_v42 = vld [vmem:[#allocation47_spill] sm:$0xff] }
 0x34f   : > { %v6517_v7 = vpop.f32.mrf.mxu1  ;;  %v7740_v23 = vpack.c.bf16 %v6512_v51, %v6510_v38  ;;  %v6405_v27 = vadd.f32 %v6404_v10, %v6292_v52  ;;  %v6516_v59 = vadd.f32 %v6515_v21, %v6403_v26  ;;  %v6310_v38 = vadd.f32 %v11907_v57, %v6197_v13  ;;  %v11908_v51 = vld [vmem:[#allocation27_spill] sm:$0xff]  ;;  %v11909_v26 = vld [vmem:[#allocation16_spill] sm:$0xff] }
 0x350   : > { %v6406_v39 = vpop.f32.mrf.mxu0  ;;  %v6201_v10 = vadd.f32 %v11909_v26, %v11908_v51 }
 0x351   : > { %v6519_v25 = vpop.f32.mrf.mxu1  ;;  %6761 = vst [vmem:[%s10853_s7 + $0x78] sm:$0xff] %v7740_v23  ;;  %v6518_v12 = vadd.f32 %v6517_v7, %v6405_v27  ;;  %v6407_v61 = vadd.f32 %v6406_v39, %v6294_v35  ;;  %v11910_v35 = vld [vmem:[#allocation41_spill] sm:$0xff] }
 0x352   : > { %v6408_v22 = vpop.f32.mrf.mxu0  ;;  %v6312_v6 = vadd.f32 %v11910_v35, %v6199_v33  ;;  %v11911_v23 = vld [vmem:[#allocation9_spill] sm:$0xff] }
 0x353   : > { %v6521_v24 = vpop.f32.mrf.mxu1  ;;  %v7742_v4 = vpack.c.bf16 %v6518_v12, %v6516_v59  ;;  %v6409_v37 = vadd.f32 %v6408_v22, %v6296_v15  ;;  %v6520_v1 = vadd.f32 %v6519_v25, %v6407_v61  ;;  %v11912_v27 = vld [vmem:[#allocation17_spill] sm:$0xff]  ;;  %v11913_v15 = vld [vmem:[#allocation43_spill] sm:$0xff]  ;;  %v11915_v61 = vld [vmem:[#allocation40_spill] sm:$0xff] }
 0x354   : > { %v6412_v36 = vpop.f32.mrf.mxu0  ;;  %v6203_v0 = vadd.f32 %v11912_v27, %v11911_v23  ;;  %v6314_v59 = vadd.f32 %v11913_v15, %v6201_v10  ;;  %v11914_v12 = vld [vmem:[#allocation29_spill] sm:$0xff]  ;;  %v6805_v23 = vld [vmem:[%s10853_s7 + $0x8] sm:$0xff] (%p9191_p9)  ;;  %v6807_v27 = vld [vmem:[%s10853_s7 + $0x10] sm:$0xff] (%p9191_p9) }
 0x355   : > { %v6525_v32 = vpop.f32.mrf.mxu1  ;;  %6763 = vst [vmem:[%s10853_s7 + $0x88] sm:$0xff] %v7742_v4  ;;  %v6522_v9 = vadd.f32 %v6521_v24, %v6409_v37  ;;  %v6413_v47 = vadd.f32 %v6412_v36, %v6300_v48  ;;  %v6207_v22 = vadd.f32 %v11915_v61, %v11914_v12  ;;  %v11916_v48 = vld [vmem:[#allocation24_spill] sm:$0xff]  ;;  %v11918_v37 = vld [vmem:[#allocation45_spill] sm:$0xff]  ;;  %6806 = vst [vmem:[%s11666_s20 + $0x8] sm:$0xff] (%p9191_p9), %v6805_v23 }
 0x356   : > { %v6414_v5 = vpop.f32.mrf.mxu0  ;;  %v6209_v34 = vadd.f32 %v11917_v40, %v11916_v48  ;;  %v6316_v50 = vadd.f32 %v11918_v37, %v6203_v0  ;;  %v6809_v0 = vld [vmem:[%s10853_s7 + $0x18] sm:$0xff] (%p9191_p9)  ;;  %6808 = vst [vmem:[%s11666_s20 + $0x20] sm:$0xff] (%p9191_p9), %v6807_v27  ;;  %v6821_v15 = vld [vmem:[%s10853_s7 + $0x48] sm:$0xff] (%p9191_p9)  ;;  %v6827_v61 = vld [vmem:[%s10853_s7 + $0x60] sm:$0xff] (%p9191_p9) }
 0x357   : > { %v6527_v55 = vpop.f32.mrf.mxu1  ;;  %v7744_v3 = vpack.c.bf16 %v6522_v9, %v6520_v1  ;;  %v6415_v29 = vadd.f32 %v6414_v5, %v6302_v17  ;;  %v6526_v52 = vadd.f32 %v6525_v32, %v6413_v47  ;;  %v6320_v1 = vadd.f32 %v11919_v41, %v6207_v22  ;;  %v11920_v9 = vld [vmem:[#allocation26_spill] sm:$0xff]  ;;  %6810 = vst [vmem:[%s11666_s20 + $0x28] sm:$0xff] (%p9191_p9), %v6809_v0  ;;  %v6825_v12 = vld [vmem:[%s10853_s7 + $0x58] sm:$0xff] (%p9191_p9)  ;;  %v6829_v22 = vld [vmem:[%s10853_s7 + $0x68] sm:$0xff] (%p9191_p9) }
 0x358   : > { %v6416_v56 = vpop.f32.mrf.mxu0  ;;  %v11921_v47 = vld [vmem:[#allocation18_spill] sm:$0xff]  ;;  %6822 = vst [vmem:[%s11666_s20 + $0x88] sm:$0xff] (%p9191_p9), %v6821_v15  ;;  %6826 = vst [vmem:[%s11666_s20 + $0xa8] sm:$0xff] (%p9191_p9), %v6825_v12 }
 0x359   : > { %v6529_v46 = vpop.f32.mrf.mxu1  ;;  %6765 = vst [vmem:[%s10853_s7 + $0x98] sm:$0xff] %v7744_v3  ;;  %v6528_v54 = vadd.f32 %v6527_v55, %v6415_v29  ;;  %v6417_v21 = vadd.f32 %v6416_v56, %v6304_v16  ;;  %v6211_v5 = vadd.f32 %v11921_v47, %v11920_v9  ;;  %v11922_v16 = vld [vmem:[#allocation46_spill] sm:$0xff]  ;;  %v11923_v3 = vld [vmem:[#allocation28_spill] sm:$0xff]  ;;  %6828 = vst [vmem:[%s11666_s20 + $0xc0] sm:$0xff] (%p9191_p9), %v6827_v61 }
 0x35a   : > { %v6418_v31 = vpop.f32.mrf.mxu0  ;;  %v6322_v63 = vadd.f32 %v11922_v16, %v6209_v34  ;;  %v6213_v29 = vadd.f32 %v11545_v60, %v11923_v3  ;;  %6830 = vst [vmem:[%s11666_s20 + $0xc8] sm:$0xff] (%p9191_p9), %v6829_v22  ;;  %v6835_v48 = vld [vmem:[%s10853_s7 + $0x80] sm:$0xff] (%p9191_p9)  ;;  %v6839_v34 = vld [vmem:[%s10853_s7 + $0x90] sm:$0xff] (%p9191_p9) }
 0x35b   : > { %v6531_v14 = vpop.f32.mrf.mxu1  ;;  %v7746_v7 = vpack.c.bf16 %v6528_v54, %v6526_v52  ;;  %v6419_v43 = vadd.f32 %v6418_v31, %v6306_v45  ;;  %v6530_v30 = vadd.f32 %v6529_v46, %v6417_v21  ;;  %v6324_v45 = vadd.f32 %v11924_v42, %v6211_v5  ;;  %6836 = vst [vmem:[%s11666_s20 + $0x100] sm:$0xff] (%p9191_p9), %v6835_v48  ;;  %v6859_v41 = vld [vmem:[%s10853_s7 + $0xe0] sm:$0xff] (%p9191_p9)  ;;  %v6863_v9 = vld [vmem:[%s10853_s7 + $0xf0] sm:$0xff] (%p9191_p9) }
 0x35c   : > { %v6422_v18 = vpop.f32.mrf.mxu0  ;;  %v6837_v40 = vld [vmem:[%s10853_s7 + $0x88] sm:$0xff] (%p9191_p9)  ;;  %6840 = vst [vmem:[%s11666_s20 + $0x120] sm:$0xff] (%p9191_p9), %v6839_v34  ;;  %6860 = vst [vmem:[%s11666_s20 + $0x1c0] sm:$0xff] (%p9191_p9), %v6859_v41 }
 0x35d   : > { %v6535_v62 = vpop.f32.mrf.mxu1  ;;  %6767 = vst [vmem:[%s10853_s7 + $0xa8] sm:$0xff] %v7746_v7  ;;  %v6532_v28 = vadd.f32 %v6531_v14, %v6419_v43  ;;  %v6423_v39 = vadd.f32 %v6422_v18, %v6310_v38  ;;  %v11925_v14 = vld [vmem:[#allocation19_spill] sm:$0xff]  ;;  %6838 = vst [vmem:[%s11666_s20 + $0x108] sm:$0xff] (%p9191_p9), %v6837_v40 }
 0x35e   : > { %v6424_v25 = vpop.f32.mrf.mxu0  ;;  %v6326_v57 = vadd.f32 %v11925_v14, %v6213_v29  ;;  %6864 = vst [vmem:[%s11666_s20 + $0x1e0] sm:$0xff] (%p9191_p9), %v6863_v9 }
 0x35f   : > { %v6537_v49 = vpop.f32.mrf.mxu1  ;;  %v7748_v24 = vpack.c.bf16 %v6532_v28, %v6530_v30  ;;  %v6425_v20 = vadd.f32 %v6424_v25, %v6312_v6  ;;  %v6536_v17 = vadd.f32 %v6535_v62, %v6423_v39  ;;  %v6803_v62 = vld [vmem:[%s10853_s7] sm:$0xff] (%p9191_p9)  ;;  %v6813_v28 = vld [vmem:[%s10853_s7 + $0x28] sm:$0xff] (%p9191_p9)  ;;  %v6815_v39 = vld [vmem:[%s10853_s7 + $0x30] sm:$0xff] (%p9191_p9) }
 0x360   : > { %v6426_v44 = vpop.f32.mrf.mxu0  ;;  %v6811_v30 = vld [vmem:[%s10853_s7 + $0x20] sm:$0xff] (%p9191_p9)  ;;  %6804 = vst [vmem:[%s11666_s20] sm:$0xff] (%p9191_p9), %v6803_v62  ;;  %6814 = vst [vmem:[%s11666_s20 + $0x48] sm:$0xff] (%p9191_p9), %v6813_v28  ;;  %v6817_v25 = vld [vmem:[%s10853_s7 + $0x38] sm:$0xff] (%p9191_p9) }
 0x361   : > { %v6539_v4 = vpop.f32.mrf.mxu1  ;;  %6769 = vst [vmem:[%s10853_s7 + $0xb8] sm:$0xff] %v7748_v24  ;;  %v6538_v36 = vadd.f32 %v6537_v49, %v6425_v20  ;;  %v6427_v32 = vadd.f32 %v6426_v44, %v6314_v59  ;;  %6812 = vst [vmem:[%s11666_s20 + $0x40] sm:$0xff] (%p9191_p9), %v6811_v30  ;;  %v6819_v49 = vld [vmem:[%s10853_s7 + $0x40] sm:$0xff] (%p9191_p9)  ;;  %v6823_v59 = vld [vmem:[%s10853_s7 + $0x50] sm:$0xff] (%p9191_p9) }
 0x362   : > { %v6428_v19 = vpop.f32.mrf.mxu0  ;;  %6816 = vst [vmem:[%s11666_s20 + $0x60] sm:$0xff] (%p9191_p9), %v6815_v39  ;;  %6818 = vst [vmem:[%s11666_s20 + $0x68] sm:$0xff] (%p9191_p9), %v6817_v25  ;;  %v6831_v24 = vld [vmem:[%s10853_s7 + $0x70] sm:$0xff] (%p9191_p9)  ;;  %v6833_v20 = vld [vmem:[%s10853_s7 + $0x78] sm:$0xff] (%p9191_p9) }
 0x363   : > { %v6541_v58 = vpop.f32.mrf.mxu1  ;;  %v7750_v55 = vpack.c.bf16 %v6538_v36, %v6536_v17  ;;  %v6429_v11 = vadd.f32 %v6428_v19, %v6316_v50  ;;  %v6540_v8 = vadd.f32 %v6539_v4, %v6427_v32  ;;  %6820 = vst [vmem:[%s11666_s20 + $0x80] sm:$0xff] (%p9191_p9), %v6819_v49  ;;  %6824 = vst [vmem:[%s11666_s20 + $0xa0] sm:$0xff] (%p9191_p9), %v6823_v59  ;;  %v6841_v44 = vld [vmem:[%s10853_s7 + $0x98] sm:$0xff] (%p9191_p9)  ;;  %v6843_v4 = vld [vmem:[%s10853_s7 + $0xa0] sm:$0xff] (%p9191_p9) }
 0x364   : > { %v6432_v2 = vpop.f32.mrf.mxu0  ;;  %6832 = vst [vmem:[%s11666_s20 + $0xe0] sm:$0xff] (%p9191_p9), %v6831_v24  ;;  %6834 = vst [vmem:[%s11666_s20 + $0xe8] sm:$0xff] (%p9191_p9), %v6833_v20  ;;  %v6845_v37 = vld [vmem:[%s10853_s7 + $0xa8] sm:$0xff] (%p9191_p9)  ;;  %v6847_v50 = vld [vmem:[%s10853_s7 + $0xb0] sm:$0xff] (%p9191_p9) }
 0x365   : > { %v6545_v13 = vpop.f32.mrf.mxu1  ;;  %6771 = vst [vmem:[%s10853_s7 + $0xc8] sm:$0xff] %v7750_v55  ;;  %v6542_v53 = vadd.f32 %v6541_v58, %v6429_v11  ;;  %v6433_v33 = vadd.f32 %v6432_v2, %v6320_v1  ;;  %6842 = vst [vmem:[%s11666_s20 + $0x128] sm:$0xff] (%p9191_p9), %v6841_v44  ;;  %v6851_v36 = vld [vmem:[%s10853_s7 + $0xc0] sm:$0xff] (%p9191_p9)  ;;  %v6855_v19 = vld [vmem:[%s10853_s7 + $0xd0] sm:$0xff] (%p9191_p9) }
 0x366   : > { %v6434_v56 = vpop.f32.mrf.mxu0  ;;  %6844 = vst [vmem:[%s11666_s20 + $0x140] sm:$0xff] (%p9191_p9), %v6843_v4  ;;  %6846 = vst [vmem:[%s11666_s20 + $0x148] sm:$0xff] (%p9191_p9), %v6845_v37 }
 0x367   : > { %v6547_v46 = vpop.f32.mrf.mxu1  ;;  %v7752_v52 = vpack.c.bf16 %v6542_v53, %v6540_v8  ;;  %v6435_v54 = vadd.f32 %v6434_v56, %v6322_v63  ;;  %v6546_v38 = vadd.f32 %v6545_v13, %v6433_v33  ;;  %6848 = vst [vmem:[%s11666_s20 + $0x160] sm:$0xff] (%p9191_p9), %v6847_v50  ;;  %6852 = vst [vmem:[%s11666_s20 + $0x180] sm:$0xff] (%p9191_p9), %v6851_v36 }
 0x368   : > { %v6436_v21 = vpop.f32.mrf.mxu0  ;;  %v6849_v17 = vld [vmem:[%s10853_s7 + $0xb8] sm:$0xff] (%p9191_p9)  ;;  %6856 = vst [vmem:[%s11666_s20 + $0x1a0] sm:$0xff] (%p9191_p9), %v6855_v19 }
 0x369   : > { %v6549_v31 = vpop.f32.mrf.mxu1  ;;  %6773 = vst [vmem:[%s10853_s7 + $0xd8] sm:$0xff] %v7752_v52  ;;  %v6548_v51 = vadd.f32 %v6547_v46, %v6435_v54  ;;  %v6437_v60 = vadd.f32 %v6436_v21, %v6324_v45  ;;  %6850 = vst [vmem:[%s11666_s20 + $0x168] sm:$0xff] (%p9191_p9), %v6849_v17 }
 0x36a   : > { %v6438_v26 = vpop.f32.mrf.mxu0 }
 0x36b   : > { %v7754_v10 = vpack.c.bf16 %v6548_v51, %v6546_v38  ;;  %v6439_v7 = vadd.f32 %v6438_v26, %v6326_v57  ;;  %v6551_v43 = vpop.f32.mrf.mxu1  ;;  %v6550_v35 = vadd.f32 %v6549_v31, %v6437_v60 }
 0x36c   : > { %v6853_v32 = vld [vmem:[%s10853_s7 + $0xc8] sm:$0xff] (%p9191_p9) }
 0x36d   : > { %6775 = vst [vmem:[%s10853_s7 + $0xe8] sm:$0xff] %v7754_v10  ;;  %v6552_v6 = vadd.f32 %v6551_v43, %v6439_v7  ;;  %6784 = sbr.rel (!%p9191_p9) target bundleno = 890 (0x37a), region = 36  ;;  %6854 = vst [vmem:[%s11666_s20 + $0x188] sm:$0xff] (%p9191_p9), %v6853_v32 }
 0x36f   : > { %v7756_v18 = vpack.c.bf16 %v6552_v6, %v6550_v35 }
 0x370   : > { %v6857_v58 = vld [vmem:[%s10853_s7 + $0xd8] sm:$0xff] (%p9191_p9) }
 0x371   : > { %6777 = vst [vmem:[%s10853_s7 + $0xf8] sm:$0xff] %v7756_v18  ;;  %6858 = vst [vmem:[%s11666_s20 + $0x1a8] sm:$0xff] (%p9191_p9), %v6857_v58 }
 0x374   : > { %v6861_v1 = vld [vmem:[%s10853_s7 + $0xe8] sm:$0xff] }
 0x375   : > { %6862 = vst [vmem:[%s11666_s20 + $0x1c8] sm:$0xff] %v6861_v1 }
 0x378   : > { %v6865_v47 = vld [vmem:[%s10853_s7 + $0xf8] sm:$0xff] }
 0x379   : > { %6866 = vst [vmem:[%s11666_s20 + $0x1e8] sm:$0xff] %v6865_v47 }
 0x37a PF: > { %s15_s14 = sadd.s32 1, %s9120_s14   ;;  %s11926_s9 = smov %s9104_s10 }
 0x37b   : > { %p12_p8 = scmp.ge.s32.totalorder %s15_s14, 4   ;;  %s11927_s10 = smov %s9108_s11 }
 0x37c   : > { %s11928_s11 = smov %s9189_s21  ;;  %s11929_s12 = smov %s9116_s13 }
 0x37d   : > { %s11930_s13 = smov %s11932_s16  ;;  %14 = sbr.rel (!%p12_p8) target bundleno = 4 (0x4), region = 94 }
 0x382   :  { %6882 = vsyncpa [#allocation3], 1 }
 0x383   :  { %6884 = vsyncpa [#allocation3 + $0x1], 1 }

// kernel: _lambda_.15
= control target key start
LH: loop header
LB: loop body
LE: loop exit
PB: predicated region body
PF: predicated region fallthrough
CT: control target
= control target key end

     0   :  { %s3982_s9 = smov 0   ;;  %s3984_s10 = smov 0   ;;  %s4804_s0 = inlined_call_operand.vmem [shape: bf16[512,1152], index: 0, kind: input, shape index: {}]   ;;  %s4805_s1 = inlined_call_operand.vmem [shape: bf16[1152,128], index: 1, kind: input, shape index: {}]   ;;  %s4806_s2 = inlined_call_operand.vmem [shape: bf16[512,128], index: 2, kind: output, shape index: {}]  }
   0x1   :  { %s3986_s11 = smov 0  }
   0x2 LB: > { %s24_s12 = sadd.s32 1, %s3961_s10  ;;  %p2720_p0 = scmp.ge.s32.totalorder %s3965_s11, 1  ;;  %s3965_s11 = sphi %s3986_s11, %s12_s11   ;;  %s3961_s10 = sphi %s3984_s10, %s4828_s10   ;;  %s3957_s9 = sphi %s3982_s9, %s4827_s9  }
   0x3   : > { %p26_p1 = scmp.ge.s32.totalorder %s24_s12, 2  ;;  %p137_p2 = scmp.lt.s32.totalorder %s3965_s11, 3 }
   0x5   : > { %s4830_s12 = smov (%p26_p1, %s24_s12), 0  ;;  %p138_p3 = pnand %p2720_p0, %p137_p2 }
   0x7   : > { %141 = sbr.rel (%p138_p3) target bundleno = 533 (0x215), region = 28 }
   0xc   : > { %v3663_v0 = vld [vmem:[%s4805_s1 + $0x78] sm:$0xff]   ;;  %s2721_s15 = sshll.u32 %s3957_s9, 5  ;;  %v3665_v2 = vld [vmem:[%s4805_s1 + $0x70] sm:$0xff]   ;;  %v3667_v4 = vld [vmem:[%s4805_s1 + $0x68] sm:$0xff]  }
   0xd   : > { %v3664_v1 = vld [vmem:[%s4805_s1 + $0x38] sm:$0xff]   ;;  %3102 = vmatprep.subr.bf16.mxu0 %v3663_v0  ;;  %3622 = vmatprep.subr.bf16.mxu1 %v3663_v0  ;;  %p168_p4 = scmp.lt.s32.totalorder %s2721_s15, 63  ;;  %v3666_v3 = vld [vmem:[%s4805_s1 + $0x30] sm:$0xff]   ;;  %v3668_v5 = vld [vmem:[%s4805_s1 + $0x28] sm:$0xff]  }
   0xe   : > { %3103 = vmatpush3.bf16.msra.mxu0 %v3664_v1  ;;  %3630 = vmatpush3.bf16.msra.mxu1 %v3664_v1  ;;  %v3669_v6 = vld [vmem:[%s4805_s1 + $0x60] sm:$0xff]   ;;  %v3671_v8 = vld [vmem:[%s4805_s1 + $0x58] sm:$0xff]   ;;  %v3673_v10 = vld [vmem:[%s4805_s1 + $0x50] sm:$0xff]  }
   0xf   : > { %3104 = vmatprep.subr.bf16.mxu0 %v3665_v2  ;;  %3623 = vmatprep.subr.bf16.mxu1 %v3665_v2  ;;  %s4832_s15 = smov (!%p168_p4, %s2721_s15), 63  ;;  %v3670_v7 = vld [vmem:[%s4805_s1 + $0x20] sm:$0xff]   ;;  %v3672_v9 = vld [vmem:[%s4805_s1 + $0x18] sm:$0xff]   ;;  %v3674_v13 = vld [vmem:[%s4805_s1 + $0x10] sm:$0xff]  }
  0x10   : > { %s3638_s28 = smul.u32 36, %s4832_s15  ;;  %v3675_v14 = vld [vmem:[%s4805_s1 + $0x48] sm:$0xff]   ;;  %v3677_v16 = vld [vmem:[%s4805_s1 + $0x40] sm:$0xff]   ;;  %v3685_v18 = vld [vmem:[%s4805_s1 + $0xf8] sm:$0xff]  }
  0x11   : > { %v3676_v15 = vld [vmem:[%s4805_s1 + $0x8] sm:$0xff]   ;;  %v3678_v17 = vld [vmem:[%s4805_s1] sm:$0xff]   ;;  %v3688_v21 = vld [vmem:[%s4805_s1 + $0x178] sm:$0xff]  }
  0x12   : > { %3105 = vmatpush3.bf16.msra.mxu0 %v3666_v3  ;;  %3631 = vmatpush3.bf16.msra.mxu1 %v3666_v3  ;;  %s4033_s7 = scalar_lea.vmem %s4804_s0, %s3638_s28  ;;  %v3686_v22 = vld [vmem:[%s4805_s1 + $0xb8] sm:$0xff]   ;;  %v3687_v23 = vld [vmem:[%s4805_s1 + $0xf0] sm:$0xff]   ;;  %v3697_v31 = vld [vmem:[%s4805_s1 + $0xe8] sm:$0xff]  }
  0x13   : > { %3106 = vmatprep.subr.bf16.mxu0 %v3667_v4  ;;  %3624 = vmatprep.subr.bf16.mxu1 %v3667_v4  ;;  %v3681_v11 = vld [vmem:[%s4033_s7 + $0x4] ss:$36 sps:$4 sm:$0xff]   ;;  %v3690_v24 = vld [vmem:[%s4805_s1 + $0x138] sm:$0xff]   ;;  %v3691_v25 = vld [vmem:[%s4033_s7 + $0x4c] ss:$36 sps:$4 sm:$0xff]  }
  0x14   : > { %v3684_v12 = vld [vmem:[%s4033_s7 + $0x364] ss:$36 sps:$4 sm:$0xff]   ;;  %1692 = vmatprep.mubr.bf16.mxu0 %v3681_v11  ;;  %v3693_v26 = vld [vmem:[%s4033_s7 + $0x3ac] ss:$36 sps:$4 sm:$0xff]   ;;  %v3701_v35 = vld [vmem:[%s4033_s7 + $0x94] ss:$36 sps:$4 sm:$0xff]  }
  0x15   : > { %1788 = vmatprep.mubr.bf16.mxu1 %v3684_v12  ;;  %v3679_v19 = vld [vmem:[%s4033_s7] ss:$36 sps:$4 sm:$0xff]   ;;  %v3689_v27 = vld [vmem:[%s4805_s1 + $0xb0] sm:$0xff]   ;;  %v3695_v29 = vld [vmem:[%s4033_s7 + $0x48] ss:$36 sps:$4 sm:$0xff]  }
  0x16   : > { %3107 = vmatpush3.bf16.msra.mxu0 %v3668_v5  ;;  %3632 = vmatpush3.bf16.msra.mxu1 %v3668_v5  ;;  %v3682_v20 = vld [vmem:[%s4033_s7 + $0x360] ss:$36 sps:$4 sm:$0xff]   ;;  %v3708_v28 = vld [vmem:[%s4805_s1 + $0x170] sm:$0xff]   ;;  %v3696_v30 = vld [vmem:[%s4033_s7 + $0x3a8] ss:$36 sps:$4 sm:$0xff]  }
  0x17   : > { %3108 = vmatprep.subr.bf16.mxu0 %v3669_v6  ;;  %3625 = vmatprep.subr.bf16.mxu1 %v3669_v6  ;;  %v3698_v32 = vld [vmem:[%s4805_s1 + $0xa8] sm:$0xff]   ;;  %v3710_v33 = vld [vmem:[%s4805_s1 + $0x130] sm:$0xff]   ;;  %v3699_v34 = vld [vmem:[%s4805_s1 + $0xe0] sm:$0xff]  }
  0x18   : > { %v3703_v36 = vld [vmem:[%s4033_s7 + $0x3f4] ss:$36 sps:$4 sm:$0xff]   ;;  %v3700_v37 = vld [vmem:[%s4805_s1 + $0xa0] sm:$0xff]   ;;  %v3722_v43 = vld [vmem:[%s4805_s1 + $0x168] sm:$0xff]  }
  0x19   : > { %v3705_v38 = vld [vmem:[%s4033_s7 + $0x90] ss:$36 sps:$4 sm:$0xff]   ;;  %v3707_v40 = vld [vmem:[%s4805_s1 + $0xd8] sm:$0xff]   ;;  %v3724_v46 = vld [vmem:[%s4805_s1 + $0x128] sm:$0xff]  }
  0x1a   : > { %3109 = vmatpush3.bf16.msra.mxu0 %v3670_v7  ;;  %3633 = vmatpush3.bf16.msra.mxu1 %v3670_v7  ;;  %v3706_v39 = vld [vmem:[%s4033_s7 + $0x3f0] ss:$36 sps:$4 sm:$0xff]   ;;  %v3709_v41 = vld [vmem:[%s4805_s1 + $0x98] sm:$0xff]   ;;  %v3719_v48 = vld [vmem:[%s4805_s1 + $0xc8] sm:$0xff]  }
  0x1b   : > { %3110 = vmatprep.subr.bf16.mxu0 %v3671_v8  ;;  %3626 = vmatprep.subr.bf16.mxu1 %v3671_v8  ;;  %v3711_v42 = vld [vmem:[%s4805_s1 + $0xd0] sm:$0xff]   ;;  %v3713_v44 = vld [vmem:[%s4033_s7 + $0xdc] ss:$36 sps:$4 sm:$0xff]   ;;  %v3720_v51 = vld [vmem:[%s4805_s1 + $0x88] sm:$0xff]  }
  0x1c   : > { %v3715_v45 = vld [vmem:[%s4033_s7 + $0x43c] ss:$36 sps:$4 sm:$0xff]   ;;  %v3712_v47 = vld [vmem:[%s4805_s1 + $0x90] sm:$0xff]   ;;  %v3725_v53 = vld [vmem:[%s4033_s7 + $0x124] ss:$36 sps:$4 sm:$0xff]  }
  0x1d   : > { %v3717_v49 = vld [vmem:[%s4033_s7 + $0xd8] ss:$36 sps:$4 sm:$0xff]   ;;  %v3721_v52 = vld [vmem:[%s4805_s1 + $0xc0] sm:$0xff]   ;;  %v3729_v54 = vld [vmem:[%s4033_s7 + $0xc] ss:$36 sps:$4 sm:$0xff]  }
  0x1e   : > { %3111 = vmatpush3.bf16.msra.mxu0 %v3672_v9  ;;  %3634 = vmatpush3.bf16.msra.mxu1 %v3672_v9  ;;  %v3718_v50 = vld [vmem:[%s4033_s7 + $0x438] ss:$36 sps:$4 sm:$0xff]   ;;  %v3739_v55 = vld [vmem:[%s4805_s1 + $0x160] sm:$0xff]   ;;  %v3727_v58 = vld [vmem:[%s4033_s7 + $0x8] ss:$36 sps:$4 sm:$0xff]  }
  0x1f   : > { %3112 = vmatprep.subr.bf16.mxu0 %v3673_v10  ;;  %3627 = vmatprep.subr.bf16.mxu1 %v3673_v10  ;;  %v3740_v56 = vld [vmem:[%s4805_s1 + $0x120] sm:$0xff]   ;;  %v3731_v60 = vld [vmem:[%s4805_s1 + $0x1f8] sm:$0xff]   ;;  %v3733_v62 = vld [vmem:[%s4033_s7 + $0x16c] ss:$36 sps:$4 sm:$0xff]  }
  0x20   : > { %v3723_v57 = vld [vmem:[%s4805_s1 + $0x80] sm:$0xff]   ;;  %v3732_v61 = vld [vmem:[%s4805_s1 + $0x1b8] sm:$0xff]   ;;  %v3747_v1 = vld [vmem:[%s4805_s1 + $0x1f0] sm:$0xff]  }
  0x21   : > { %v3730_v59 = vld [vmem:[%s4033_s7 + $0x120] ss:$36 sps:$4 sm:$0xff]   ;;  %v3735_v63 = vld [vmem:[%s4033_s7 + $0x54] ss:$36 sps:$4 sm:$0xff]   ;;  %v3737_v4 = vld [vmem:[%s4033_s7 + $0x168] ss:$36 sps:$4 sm:$0xff]  }
  0x22   : > { %3113 = vmatpush3.bf16.msra.mxu0 %v3674_v13  ;;  %3635 = vmatpush3.bf16.msra.mxu1 %v3674_v13  ;;  %v3749_v0 = vld [vmem:[%s4805_s1 + $0x158] sm:$0xff]   ;;  %v3748_v3 = vld [vmem:[%s4805_s1 + $0x1b0] sm:$0xff]   ;;  %v3764_v9 = vld [vmem:[%s4805_s1 + $0x1e8] sm:$0xff]  }
  0x23   : > { %3114 = vmatprep.subr.bf16.mxu0 %v3675_v14  ;;  %3628 = vmatprep.subr.bf16.mxu1 %v3675_v14  ;;  %v3750_v2 = vld [vmem:[%s4805_s1 + $0x118] sm:$0xff]   ;;  %v3738_v5 = vld [vmem:[%s4033_s7 + $0x50] ss:$36 sps:$4 sm:$0xff]   ;;  %v3766_v11 = vld [vmem:[%s4805_s1 + $0x1a8] sm:$0xff]  }
  0x24   : > { %v3741_v6 = vld [vmem:[%s4033_s7 + $0x1b4] ss:$36 sps:$4 sm:$0xff]   ;;  %v3743_v7 = vld [vmem:[%s4033_s7 + $0x9c] ss:$36 sps:$4 sm:$0xff]  }
  0x25   : > { %v3763_v8 = vld [vmem:[%s4805_s1 + $0x150] sm:$0xff]   ;;  %v3746_v13 = vld [vmem:[%s4033_s7 + $0x98] ss:$36 sps:$4 sm:$0xff]  }
  0x26   : > { %3115 = vmatpush3.bf16.msra.mxu0 %v3676_v15  ;;  %3636 = vmatpush3.bf16.msra.mxu1 %v3676_v15  ;;  %v3765_v10 = vld [vmem:[%s4805_s1 + $0x110] sm:$0xff]   ;;  %v3751_v14 = vld [vmem:[%s4033_s7 + $0x1fc] ss:$36 sps:$4 sm:$0xff]   ;;  %v3773_v15 = vld [vmem:[%s4805_s1 + $0x148] sm:$0xff]  }
  0x27   : > { %3116 = vmatprep.subr.bf16.mxu0 %v3677_v16  ;;  %3629 = vmatprep.subr.bf16.mxu1 %v3677_v16  ;;  %v3745_v12 = vld [vmem:[%s4033_s7 + $0x1b0] ss:$36 sps:$4 sm:$0xff]   ;;  %v3774_v16 = vld [vmem:[%s4805_s1 + $0x108] sm:$0xff]  }
  0x2a   : > { %3117 = vmatpush3.bf16.msra.mxu0 %v3678_v17  ;;  %3637 = vmatpush3.bf16.msra.mxu1 %v3678_v17  ;;  %v3753_v17 = vld [vmem:[%s4033_s7 + $0xe4] ss:$36 sps:$4 sm:$0xff]  }
  0x2b   : > { %3214 = vmatprep.subr.bf16.mxu1 %v3685_v18  ;;  %3326 = vmatprep.subr.bf16.mxu0 %v3688_v21  ;;  %v3781_v18 = vld [vmem:[%s4805_s1 + $0x1e0] sm:$0xff]  }
  0x2c   : > { %v3756_v21 = vld [vmem:[%s4033_s7 + $0xe0] ss:$36 sps:$4 sm:$0xff]  }
  0x2d   : > { %1693 = vmatmul.mubr.bf16.vlgmr.msra.gmra.mxu0 %v3679_v19  ;;  %1789 = vmatmul.mubr.bf16.vlgmr.msra.gmra.mxu1 %v3682_v20  ;;  %v3782_v19 = vld [vmem:[%s4805_s1 + $0x1a0] sm:$0xff]   ;;  %v3755_v20 = vld [vmem:[%s4033_s7 + $0x1f8] ss:$36 sps:$4 sm:$0xff]  }
  0x2e   : > { %3215 = vmatpush3.bf16.msra.mxu1 %v3686_v22  ;;  %3327 = vmatpush3.bf16.msra.mxu0 %v3690_v24  ;;  %v3757_v22 = vld [vmem:[%s4033_s7 + $0x244] ss:$36 sps:$4 sm:$0xff]  }
  0x2f   : > { %3216 = vmatprep.subr.bf16.mxu1 %v3687_v23  ;;  %1700 = vmatprep.mubr.bf16.mxu0 %v3691_v25  ;;  %v3759_v23 = vld [vmem:[%s4033_s7 + $0x12c] ss:$36 sps:$4 sm:$0xff]   ;;  %v3789_v24 = vld [vmem:[%s4805_s1 + $0x140] sm:$0xff]  }
  0x30   : > { %1796 = vmatprep.mubr.bf16.mxu1 %v3693_v26  ;;  %3328 = vmatprep.subr.bf16.mxu0 %v3708_v28  ;;  %v3790_v25 = vld [vmem:[%s4805_s1 + $0x100] sm:$0xff]   ;;  %v3797_v26 = vld [vmem:[%s4805_s1 + $0x1d8] sm:$0xff]  }
  0x31   : > { %v3798_v28 = vld [vmem:[%s4805_s1 + $0x198] sm:$0xff]  }
  0x32   : > { %3217 = vmatpush3.bf16.msra.mxu1 %v3689_v27  ;;  %3329 = vmatpush3.bf16.msra.mxu0 %v3710_v33  ;;  %v3761_v27 = vld [vmem:[%s4033_s7 + $0x240] ss:$36 sps:$4 sm:$0xff]   ;;  %v3812_v33 = vld [vmem:[%s4805_s1 + $0x1d0] sm:$0xff]  }
  0x33   : > { %3218 = vmatprep.subr.bf16.mxu1 %v3697_v31  ;;  %3330 = vmatprep.subr.bf16.mxu0 %v3722_v43  ;;  %v3767_v31 = vld [vmem:[%s4033_s7 + $0x28c] ss:$36 sps:$4 sm:$0xff]   ;;  %v3783_v43 = vld [vmem:[%s4033_s7 + $0x31c] ss:$36 sps:$4 sm:$0xff]  }
  0x35   : > { %1701 = vmatmul.mubr.bf16.gmra.mxu0 %v3695_v29  ;;  %1797 = vmatmul.mubr.bf16.gmra.mxu1 %v3696_v30  ;;  %v3799_v29 = vld [vmem:[%s4805_s1 + $0x238] sm:$0xff]   ;;  %v3762_v30 = vld [vmem:[%s4033_s7 + $0x128] ss:$36 sps:$4 sm:$0xff]  }
  0x36   : > { %3219 = vmatpush3.bf16.msra.mxu1 %v3698_v32  ;;  %1708 = vmatprep.mubr.bf16.mxu0 %v3701_v35  ;;  %v3769_v32 = vld [vmem:[%s4033_s7 + $0x174] ss:$36 sps:$4 sm:$0xff]  }
  0x37   : > { %3220 = vmatprep.subr.bf16.mxu1 %v3699_v34  ;;  %1804 = vmatprep.mubr.bf16.mxu1 %v3703_v36  ;;  %v3771_v34 = vld [vmem:[%s4033_s7 + $0x288] ss:$36 sps:$4 sm:$0xff]   ;;  %v3813_v35 = vld [vmem:[%s4805_s1 + $0x190] sm:$0xff]  }
  0x38   : > { %3331 = vmatpush3.bf16.msra.mxu0 %v3724_v46  ;;  %v3772_v36 = vld [vmem:[%s4033_s7 + $0x170] ss:$36 sps:$4 sm:$0xff]   ;;  %v3788_v46 = vld [vmem:[%s4033_s7 + $0x200] ss:$36 sps:$4 sm:$0xff]  }
  0x39   : > { %3332 = vmatprep.subr.bf16.mxu0 %v3739_v55  ;;  %v3814_v55 = vld [vmem:[%s4805_s1 + $0x230] sm:$0xff]  }
  0x3a   : > { %3221 = vmatpush3.bf16.msra.mxu1 %v3700_v37  ;;  %v3775_v37 = vld [vmem:[%s4033_s7 + $0x2d4] ss:$36 sps:$4 sm:$0xff]  }
  0x3b   : > { %3222 = vmatprep.subr.bf16.mxu1 %v3707_v40  ;;  %v3780_v40 = vld [vmem:[%s4033_s7 + $0x1b8] ss:$36 sps:$4 sm:$0xff]  }
  0x3c   : > { %3333 = vmatpush3.bf16.msra.mxu0 %v3740_v56  ;;  %v3829_v56 = vld [vmem:[%s4805_s1 + $0x228] sm:$0xff]  }
  0x3d   : > { %1709 = vmatmul.mubr.bf16.gmra.mxu0 %v3705_v38  ;;  %1805 = vmatmul.mubr.bf16.gmra.mxu1 %v3706_v39  ;;  %v3777_v38 = vld [vmem:[%s4033_s7 + $0x1bc] ss:$36 sps:$4 sm:$0xff]   ;;  %v3779_v39 = vld [vmem:[%s4033_s7 + $0x2d0] ss:$36 sps:$4 sm:$0xff]  }
  0x3e   : > { %3223 = vmatpush3.bf16.msra.mxu1 %v3709_v41  ;;  %1716 = vmatprep.mubr.bf16.mxu0 %v3713_v44  ;;  %v3827_v41 = vld [vmem:[%s4805_s1 + $0x1c8] sm:$0xff]  }
  0x3f   : > { %3224 = vmatprep.subr.bf16.mxu1 %v3711_v42  ;;  %1812 = vmatprep.mubr.bf16.mxu1 %v3715_v45  ;;  %v3828_v42 = vld [vmem:[%s4805_s1 + $0x188] sm:$0xff]   ;;  %v3787_v45 = vld [vmem:[%s4033_s7 + $0x318] ss:$36 sps:$4 sm:$0xff]  }
  0x40   : > { %3334 = vmatprep.subr.bf16.mxu0 %v3749_v0  ;;  %v3785_v44 = vld [vmem:[%s4033_s7 + $0x204] ss:$36 sps:$4 sm:$0xff]  }
  0x41   : > { %3335 = vmatpush3.bf16.msra.mxu0 %v3750_v2  ;;  %v3811_v0 = vld [vmem:[%s4033_s7 + $0xa0] ss:$36 sps:$4 sm:$0xff]   ;;  %v3817_v2 = vld [vmem:[%s4033_s7 + $0xec] ss:$36 sps:$4 sm:$0xff]  }
  0x42   : > { %3225 = vmatpush3.bf16.msra.mxu1 %v3712_v47  ;;  %3336 = vmatprep.subr.bf16.mxu0 %v3763_v8  ;;  %v3842_v47 = vld [vmem:[%s4805_s1 + $0x1c0] sm:$0xff]   ;;  %v3823_v8 = vld [vmem:[%s4033_s7 + $0x134] ss:$36 sps:$4 sm:$0xff]  }
  0x43   : > { %3226 = vmatprep.subr.bf16.mxu1 %v3719_v48  ;;  %v3843_v48 = vld [vmem:[%s4805_s1 + $0x180] sm:$0xff]  }
  0x45   : > { %1717 = vmatmul.mubr.bf16.gmra.mxu0 %v3717_v49  ;;  %1813 = vmatmul.mubr.bf16.gmra.mxu1 %v3718_v50  ;;  %v3791_v49 = vld [vmem:[%s4033_s7 + $0x24c] ss:$36 sps:$4 sm:$0xff]   ;;  %v3795_v50 = vld [vmem:[%s4033_s7 + $0x14] ss:$36 sps:$4 sm:$0xff]  }
  0x46   : > { %3227 = vmatpush3.bf16.msra.mxu1 %v3720_v51  ;;  %1724 = vmatprep.mubr.bf16.mxu0 %v3725_v53  ;;  %v3793_v51 = vld [vmem:[%s4033_s7 + $0x10] ss:$36 sps:$4 sm:$0xff]  }
  0x47   : > { %3228 = vmatprep.subr.bf16.mxu1 %v3721_v52  ;;  %1853 = vmatprep.mubr.bf16.mxu1 %v3729_v54  ;;  %v3796_v52 = vld [vmem:[%s4033_s7 + $0x248] ss:$36 sps:$4 sm:$0xff]   ;;  %v3800_v53 = vld [vmem:[%s4033_s7 + $0x294] ss:$36 sps:$4 sm:$0xff]   ;;  %v3802_v54 = vld [vmem:[%s4033_s7 + $0x5c] ss:$36 sps:$4 sm:$0xff]  }
  0x48   : > { %3337 = vmatpush3.bf16.msra.mxu0 %v3765_v10  ;;  %v3825_v10 = vld [vmem:[%s4033_s7 + $0x368] ss:$36 sps:$4 sm:$0xff]  }
  0x49   : > { %3338 = vmatprep.subr.bf16.mxu0 %v3773_v15  ;;  %v3835_v15 = vld [vmem:[%s4033_s7 + $0x178] ss:$36 sps:$4 sm:$0xff]  }
  0x4a   : > { %3229 = vmatpush3.bf16.msra.mxu1 %v3723_v57  ;;  %v3804_v57 = vld [vmem:[%s4033_s7 + $0x290] ss:$36 sps:$4 sm:$0xff]  }
  0x4b   : > { %3438 = vmatprep.subr.bf16.mxu1 %v3731_v60  ;;  %v3808_v60 = vld [vmem:[%s4033_s7 + $0xa4] ss:$36 sps:$4 sm:$0xff]  }
  0x4c   : > { %3339 = vmatpush3.bf16.msra.mxu0 %v3774_v16  ;;  %v3836_v16 = vld [vmem:[%s4033_s7 + $0x3fc] ss:$36 sps:$4 sm:$0xff]  }
  0x4d   : > { %1725 = vmatmul.mubr.bf16.gmra.mxu0 %v3730_v59  ;;  %1854 = vmatmul.mubr.bf16.vlgmr.msra.gmra.mxu1 %v3727_v58  ;;  %v3805_v58 = vld [vmem:[%s4033_s7 + $0x58] ss:$36 sps:$4 sm:$0xff]  }
  0x4e   : > { %3439 = vmatpush3.bf16.msra.mxu1 %v3732_v61  ;;  %1732 = vmatprep.mubr.bf16.mxu0 %v3733_v62  ;;  %v3806_v59 = vld [vmem:[%s4033_s7 + $0x2dc] ss:$36 sps:$4 sm:$0xff]  }
  0x4f   : > { %1861 = vmatprep.mubr.bf16.mxu1 %v3735_v63  ;;  %3440 = vmatprep.subr.bf16.mxu1 %v3747_v1  ;;  %v3844_v61 = vld [vmem:[%s4805_s1 + $0x220] sm:$0xff]   ;;  %v3857_v62 = vld [vmem:[%s4805_s1 + $0x218] sm:$0xff]  }
  0x50   : > { %3340 = vmatprep.subr.bf16.mxu0 %v3789_v24  ;;  %v3810_v63 = vld [vmem:[%s4033_s7 + $0x2d8] ss:$36 sps:$4 sm:$0xff]   ;;  %v3815_v1 = vld [vmem:[%s4033_s7 + $0x324] ss:$36 sps:$4 sm:$0xff]  }
  0x51   : > { %3341 = vmatpush3.bf16.msra.mxu0 %v3790_v25  ;;  %v3851_v24 = vld [vmem:[%s4033_s7 + $0x254] ss:$36 sps:$4 sm:$0xff]   ;;  %v3855_v25 = vld [vmem:[%s4033_s7 + $0x1c] ss:$36 sps:$4 sm:$0xff]  }
  0x52   : > { %3441 = vmatpush3.bf16.msra.mxu1 %v3748_v3  ;;  %3574 = vmatprep.subr.bf16.mxu0 %v3799_v29  ;;  %v3870_v3 = vld [vmem:[%s4805_s1 + $0x210] sm:$0xff]  }
  0x53   : > { %3442 = vmatprep.subr.bf16.mxu1 %v3764_v9  ;;  %v3896_v9 = vld [vmem:[%s4805_s1 + $0x200] sm:$0xff]  }
  0x55   : > { %1733 = vmatmul.mubr.bf16.gmra.mxu0 %v3737_v4  ;;  %1862 = vmatmul.mubr.bf16.gmra.mxu1 %v3738_v5  ;;  %v3819_v4 = vld [vmem:[%s4033_s7 + $0x320] ss:$36 sps:$4 sm:$0xff]   ;;  %v3820_v5 = vld [vmem:[%s4033_s7 + $0xe8] ss:$36 sps:$4 sm:$0xff]  }
  0x56   : > { %1740 = vmatprep.mubr.bf16.mxu0 %v3741_v6  ;;  %1869 = vmatprep.mubr.bf16.mxu1 %v3743_v7  ;;  %v3883_v6 = vld [vmem:[%s4805_s1 + $0x208] sm:$0xff]  }
  0x57   : > { %3443 = vmatpush3.bf16.msra.mxu1 %v3766_v11  ;;  %v3821_v7 = vld [vmem:[%s4033_s7 + $0x36c] ss:$36 sps:$4 sm:$0xff]  }
  0x58   : > { %3444 = vmatprep.subr.bf16.mxu1 %v3781_v18  ;;  %v3826_v11 = vld [vmem:[%s4033_s7 + $0x130] ss:$36 sps:$4 sm:$0xff]   ;;  %v3840_v18 = vld [vmem:[%s4033_s7 + $0x3f8] ss:$36 sps:$4 sm:$0xff]  }
  0x5b   : > { %3445 = vmatpush3.bf16.msra.mxu1 %v3782_v19  ;;  %v3841_v19 = vld [vmem:[%s4033_s7 + $0x1c0] ss:$36 sps:$4 sm:$0xff]  }
  0x5c   : > { %3446 = vmatprep.subr.bf16.mxu1 %v3797_v26  ;;  %v3853_v26 = vld [vmem:[%s4033_s7 + $0x18] ss:$36 sps:$4 sm:$0xff]  }
  0x5d   : > { %1741 = vmatmul.mubr.bf16.gmra.mxu0 %v3745_v12  ;;  %1870 = vmatmul.mubr.bf16.gmra.mxu1 %v3746_v13  ;;  %v3830_v12 = vld [vmem:[%s4033_s7 + $0x3b4] ss:$36 sps:$4 sm:$0xff]   ;;  %v3832_v13 = vld [vmem:[%s4033_s7 + $0x17c] ss:$36 sps:$4 sm:$0xff]  }
  0x5e   : > { %1748 = vmatprep.mubr.bf16.mxu0 %v3751_v14  ;;  %1877 = vmatprep.mubr.bf16.mxu1 %v3753_v17  ;;  %v3834_v14 = vld [vmem:[%s4033_s7 + $0x3b0] ss:$36 sps:$4 sm:$0xff]   ;;  %v3838_v17 = vld [vmem:[%s4033_s7 + $0x1c4] ss:$36 sps:$4 sm:$0xff]  }
  0x5f   : > { %3447 = vmatpush3.bf16.msra.mxu1 %v3798_v28  ;;  %v3858_v28 = vld [vmem:[%s4033_s7 + $0x29c] ss:$36 sps:$4 sm:$0xff]  }
  0x60   : > { %3448 = vmatprep.subr.bf16.mxu1 %v3812_v33  ;;  %v3866_v33 = vld [vmem:[%s4033_s7 + $0xac] ss:$36 sps:$4 sm:$0xff]  }
  0x63   : > { %3449 = vmatpush3.bf16.msra.mxu1 %v3813_v35  ;;  %v3869_v35 = vld [vmem:[%s4033_s7 + $0xa8] ss:$36 sps:$4 sm:$0xff]  }
  0x64   : > { %3450 = vmatprep.subr.bf16.mxu1 %v3827_v41  ;;  %v3879_v41 = vld [vmem:[%s4033_s7 + $0x13c] ss:$36 sps:$4 sm:$0xff]  }
  0x65   : > { %1749 = vmatmul.mubr.bf16.gmra.mxu0 %v3755_v20  ;;  %1878 = vmatmul.mubr.bf16.gmra.mxu1 %v3756_v21  ;;  %v3845_v20 = vld [vmem:[%s4033_s7 + $0x444] ss:$36 sps:$4 sm:$0xff]   ;;  %v3847_v21 = vld [vmem:[%s4033_s7 + $0x20c] ss:$36 sps:$4 sm:$0xff]  }
  0x66   : > { %1756 = vmatprep.mubr.bf16.mxu0 %v3757_v22  ;;  %1885 = vmatprep.mubr.bf16.mxu1 %v3759_v23  ;;  %v3849_v22 = vld [vmem:[%s4033_s7 + $0x440] ss:$36 sps:$4 sm:$0xff]   ;;  %v3850_v23 = vld [vmem:[%s4033_s7 + $0x208] ss:$36 sps:$4 sm:$0xff]  }
  0x67   : > { %3451 = vmatpush3.bf16.msra.mxu1 %v3828_v42  ;;  %v3881_v42 = vld [vmem:[%s4033_s7 + $0x370] ss:$36 sps:$4 sm:$0xff]  }
  0x68   : > { %3452 = vmatprep.subr.bf16.mxu1 %v3842_v47 }
  0x6b   : > { %3453 = vmatpush3.bf16.msra.mxu1 %v3843_v48 }
  0x6d   : > { %1757 = vmatmul.mubr.bf16.gmra.mxu0 %v3761_v27  ;;  %1886 = vmatmul.mubr.bf16.gmra.mxu1 %v3762_v30  ;;  %v3856_v27 = vld [vmem:[%s4033_s7 + $0x250] ss:$36 sps:$4 sm:$0xff]   ;;  %v3862_v30 = vld [vmem:[%s4033_s7 + $0x298] ss:$36 sps:$4 sm:$0xff]  }
  0x6e   : > { %1764 = vmatprep.mubr.bf16.mxu0 %v3767_v31  ;;  %1893 = vmatprep.mubr.bf16.mxu1 %v3769_v32  ;;  %v3863_v31 = vld [vmem:[%s4033_s7 + $0x60] ss:$36 sps:$4 sm:$0xff]  }
  0x6f   : > { %v3864_v32 = vld [vmem:[%s4033_s7 + $0x2e4] ss:$36 sps:$4 sm:$0xff]  }
  0x75   : > { %1765 = vmatmul.mubr.bf16.gmra.mxu0 %v3771_v34  ;;  %1894 = vmatmul.mubr.bf16.gmra.mxu1 %v3772_v36  ;;  %v3868_v34 = vld [vmem:[%s4033_s7 + $0x2e0] ss:$36 sps:$4 sm:$0xff]   ;;  %v3871_v36 = vld [vmem:[%s4033_s7 + $0x32c] ss:$36 sps:$4 sm:$0xff]  }
  0x76   : > { %1772 = vmatprep.mubr.bf16.mxu0 %v3775_v37  ;;  %1901 = vmatprep.mubr.bf16.mxu1 %v3777_v38  ;;  %v3873_v37 = vld [vmem:[%s4033_s7 + $0xf4] ss:$36 sps:$4 sm:$0xff]   ;;  %v3875_v38 = vld [vmem:[%s4033_s7 + $0x328] ss:$36 sps:$4 sm:$0xff]  }
  0x7d   : > { %1773 = vmatmul.mubr.bf16.gmra.mxu0 %v3779_v39  ;;  %1902 = vmatmul.mubr.bf16.gmra.mxu1 %v3780_v40  ;;  %v3876_v39 = vld [vmem:[%s4033_s7 + $0xf0] ss:$36 sps:$4 sm:$0xff]  }
  0x7e   : > { %1780 = vmatprep.mubr.bf16.mxu0 %v3783_v43  ;;  %1909 = vmatprep.mubr.bf16.mxu1 %v3785_v44  ;;  %v3877_v40 = vld [vmem:[%s4033_s7 + $0x374] ss:$36 sps:$4 sm:$0xff]   ;;  %v3884_v44 = vld [vmem:[%s4033_s7 + $0x3bc] ss:$36 sps:$4 sm:$0xff]  }
  0x7f   : > { %v3882_v43 = vld [vmem:[%s4033_s7 + $0x138] ss:$36 sps:$4 sm:$0xff]  }
  0x85   : > { %1781 = vmatmul.mubr.bf16.gmra.mxu0 %v3787_v45  ;;  %1910 = vmatmul.mubr.bf16.gmra.mxu1 %v3788_v46  ;;  %v3886_v45 = vld [vmem:[%s4033_s7 + $0x184] ss:$36 sps:$4 sm:$0xff]  }
  0x86   : > { %1917 = vmatprep.mubr.bf16.mxu1 %v3791_v49  ;;  %2014 = vmatprep.mubr.bf16.mxu0 %v3795_v50 }
  0x8d   : > { %1918 = vmatmul.mubr.bf16.gmra.mxu1 %v3796_v52  ;;  %2015 = vmatmul.mubr.bf16.vlgmr.msra.gmra.mxu0 %v3793_v51 }
  0x8e   : > { %3575 = vmatpush3.bf16.msra.mxu0 %v3799_v29  ;;  %1925 = vmatprep.mubr.bf16.mxu1 %v3800_v53  ;;  %v3860_v29 = vld [vmem:[%s4033_s7 + $0x64] ss:$36 sps:$4 sm:$0xff]  }
  0x8f   : > { %2022 = vmatprep.mubr.bf16.mxu0 %v3802_v54  ;;  %3576 = vmatprep.subr.bf16.mxu0 %v3814_v55  ;;  %v3888_v54 = vld [vmem:[%s4033_s7 + $0x3b8] ss:$36 sps:$4 sm:$0xff]  }
  0x92   : > { %3577 = vmatpush3.bf16.msra.mxu0 %v3814_v55  ;;  %v3889_v55 = vld [vmem:[%s4033_s7 + $0x180] ss:$36 sps:$4 sm:$0xff]  }
  0x93   : > { %3578 = vmatprep.subr.bf16.mxu0 %v3829_v56 }
  0x95   : > { %1926 = vmatmul.mubr.bf16.gmra.mxu1 %v3804_v57  ;;  %2023 = vmatmul.mubr.bf16.gmra.mxu0 %v3805_v58  ;;  %v3892_v57 = vld [vmem:[%s4033_s7 + $0x1cc] ss:$36 sps:$4 sm:$0xff]  }
  0x96   : > { %1933 = vmatprep.mubr.bf16.mxu1 %v3806_v59  ;;  %2030 = vmatprep.mubr.bf16.mxu0 %v3808_v60 }
  0x97   : > { %3579 = vmatpush3.bf16.msra.mxu0 %v3829_v56  ;;  %v3890_v56 = vld [vmem:[%s4033_s7 + $0x404] ss:$36 sps:$4 sm:$0xff]  }
  0x98   : > { %3580 = vmatprep.subr.bf16.mxu0 %v3844_v61 }
  0x9b   : > { %3581 = vmatpush3.bf16.msra.mxu0 %v3844_v61 }
  0x9c   : > { %3582 = vmatprep.subr.bf16.mxu0 %v3857_v62 }
  0x9d   : > { %1934 = vmatmul.mubr.bf16.gmra.mxu1 %v3810_v63  ;;  %2031 = vmatmul.mubr.bf16.gmra.mxu0 %v3811_v0 }
  0x9e   : > { %1941 = vmatprep.mubr.bf16.mxu1 %v3815_v1  ;;  %2038 = vmatprep.mubr.bf16.mxu0 %v3817_v2 }
  0x9f   : > { %3583 = vmatpush3.bf16.msra.mxu0 %v3857_v62 }
  0xa0   : > { %3584 = vmatprep.subr.bf16.mxu0 %v3870_v3 }
  0xa3   : > { %3585 = vmatpush3.bf16.msra.mxu0 %v3870_v3 }
  0xa4   : > { %3586 = vmatprep.subr.bf16.mxu0 %v3883_v6 }
  0xa5   : > { %1942 = vmatmul.mubr.bf16.gmra.mxu1 %v3819_v4  ;;  %2039 = vmatmul.mubr.bf16.gmra.mxu0 %v3820_v5 }
  0xa6   : > { %1949 = vmatprep.mubr.bf16.mxu1 %v3821_v7  ;;  %2046 = vmatprep.mubr.bf16.mxu0 %v3823_v8  ;;  %v3895_v7 = vld [vmem:[%s4033_s7 + $0x1c8] ss:$36 sps:$4 sm:$0xff]  }
  0xa7   : > { %3587 = vmatpush3.bf16.msra.mxu0 %v3883_v6  ;;  %v3894_v6 = vld [vmem:[%s4033_s7 + $0x400] ss:$36 sps:$4 sm:$0xff]   ;;  %v3897_v8 = vld [vmem:[%s4033_s7 + $0x44c] ss:$36 sps:$4 sm:$0xff]  }
  0xa8   : > { %3588 = vmatprep.subr.bf16.mxu0 %v3896_v9 }
  0xab   : > { %3589 = vmatpush3.bf16.msra.mxu0 %v3896_v9  ;;  %v3899_v9 = vld [vmem:[%s4033_s7 + $0x214] ss:$36 sps:$4 sm:$0xff]  }
  0xad   : > { %1950 = vmatmul.mubr.bf16.gmra.mxu1 %v3825_v10  ;;  %2047 = vmatmul.mubr.bf16.gmra.mxu0 %v3826_v11 }
  0xae   : > { %1957 = vmatprep.mubr.bf16.mxu1 %v3830_v12  ;;  %2054 = vmatprep.mubr.bf16.mxu0 %v3832_v13 }
  0xb5   : > { %1958 = vmatmul.mubr.bf16.gmra.mxu1 %v3834_v14  ;;  %2055 = vmatmul.mubr.bf16.gmra.mxu0 %v3835_v15 }
  0xb6   : > { %1965 = vmatprep.mubr.bf16.mxu1 %v3836_v16  ;;  %2062 = vmatprep.mubr.bf16.mxu0 %v3838_v17 }
  0xbd   : > { %1966 = vmatmul.mubr.bf16.gmra.mxu1 %v3840_v18  ;;  %2063 = vmatmul.mubr.bf16.gmra.mxu0 %v3841_v19 }
  0xbe   : > { %1973 = vmatprep.mubr.bf16.mxu1 %v3845_v20  ;;  %2070 = vmatprep.mubr.bf16.mxu0 %v3847_v21 }
  0xc5   : > { %1974 = vmatmul.mubr.bf16.gmra.mxu1 %v3849_v22  ;;  %2071 = vmatmul.mubr.bf16.gmra.mxu0 %v3850_v23  ;;  %v3901_v22 = vld [vmem:[%s4033_s7 + $0x448] ss:$36 sps:$4 sm:$0xff]   ;;  %v3902_v23 = vld [vmem:[%s4033_s7 + $0x210] ss:$36 sps:$4 sm:$0xff]  }
  0xc6   : > { %2078 = vmatprep.mubr.bf16.mxu0 %v3851_v24  ;;  %2175 = vmatprep.mubr.bf16.mxu1 %v3855_v25  ;;  %v3905_v24 = vld [vmem:[%s4033_s7 + $0x25c] ss:$36 sps:$4 sm:$0xff]  }
  0xc7   : > { %v3906_v25 = vld [vmem:[%s4033_s7 + $0x20] ss:$36 sps:$4 sm:$0xff]  }
  0xcd   : > { %2079 = vmatmul.mubr.bf16.gmra.mxu0 %v3856_v27  ;;  %2176 = vmatmul.mubr.bf16.vlgmr.msra.gmra.mxu1 %v3853_v26 }
  0xce   : > { %2086 = vmatprep.mubr.bf16.mxu0 %v3858_v28  ;;  %2183 = vmatprep.mubr.bf16.mxu1 %v3860_v29 }
  0xd5   : > { %2087 = vmatmul.mubr.bf16.gmra.mxu0 %v3862_v30  ;;  %2184 = vmatmul.mubr.bf16.gmra.mxu1 %v3863_v31 }
  0xd6   : > { %2094 = vmatprep.mubr.bf16.mxu0 %v3864_v32  ;;  %2191 = vmatprep.mubr.bf16.mxu1 %v3866_v33 }
  0xdd   : > { %2095 = vmatmul.mubr.bf16.gmra.mxu0 %v3868_v34  ;;  %2192 = vmatmul.mubr.bf16.gmra.mxu1 %v3869_v35 }
  0xde   : > { %2102 = vmatprep.mubr.bf16.mxu0 %v3871_v36  ;;  %2199 = vmatprep.mubr.bf16.mxu1 %v3873_v37 }
  0xe5   : > { %2103 = vmatmul.mubr.bf16.gmra.mxu0 %v3875_v38  ;;  %2200 = vmatmul.mubr.bf16.gmra.mxu1 %v3876_v39  ;;  %v3903_v38 = vld [vmem:[%s4033_s7 + $0x258] ss:$36 sps:$4 sm:$0xff]   ;;  %v3907_v39 = vld [vmem:[%s4033_s7 + $0x68] ss:$36 sps:$4 sm:$0xff]  }
  0xe6   : > { %2110 = vmatprep.mubr.bf16.mxu0 %v3877_v40  ;;  %2207 = vmatprep.mubr.bf16.mxu1 %v3879_v41  ;;  %v3910_v40 = vld [vmem:[%s4033_s7 + $0x2a4] ss:$36 sps:$4 sm:$0xff]   ;;  %v3911_v41 = vld [vmem:[%s4033_s7 + $0xb0] ss:$36 sps:$4 sm:$0xff]  }
  0xed   : > { %v3118_v46 = vpop.f32.mrf.mxu0  ;;  %v3190_v47 = vpop.f32.mrf.mxu1  ;;  %2111 = vmatmul.mubr.bf16.gmra.mxu0 %v3881_v42  ;;  %2208 = vmatmul.mubr.bf16.gmra.mxu1 %v3882_v43 }
  0xee   : > { %2118 = vmatprep.mubr.bf16.mxu0 %v3884_v44  ;;  %2215 = vmatprep.mubr.bf16.mxu1 %v3886_v45 }
  0xef   : > { %v3119_v48 = vpop.f32.mrf.mxu0  ;;  %v3191_v49 = vpop.f32.mrf.mxu1 }
  0xf0   : > { %v4326_v50 = vadd.f32 %v3119_v48, %v3118_v46  ;;  %v4328_v51 = vadd.f32 %v3191_v49, %v3190_v47 }
  0xf1   : > { %v3121_v52 = vpop.f32.mrf.mxu0  ;;  %v3193_v53 = vpop.f32.mrf.mxu1 }
  0xf3   : > { %v3122_v58 = vpop.f32.mrf.mxu0  ;;  %v3194_v59 = vpop.f32.mrf.mxu1 }
  0xf4   : > { %v4334_v60 = vadd.f32 %v3122_v58, %v3121_v52  ;;  %v4336_v61 = vadd.f32 %v3194_v59, %v3193_v53  ;;  %v3915_v59 = vld [vmem:[%s4033_s7 + $0x2ec] ss:$36 sps:$4 sm:$0xff]  }
  0xf5   : > { %v3124_v62 = vpop.f32.mrf.mxu0  ;;  %v3196_v63 = vpop.f32.mrf.mxu1  ;;  %2119 = vmatmul.mubr.bf16.gmra.mxu0 %v3888_v54  ;;  %2216 = vmatmul.mubr.bf16.gmra.mxu1 %v3889_v55 }
  0xf6   : > { %2126 = vmatprep.mubr.bf16.mxu0 %v3890_v56  ;;  %2223 = vmatprep.mubr.bf16.mxu1 %v3892_v57  ;;  %v3908_v56 = vld [vmem:[%s4033_s7 + $0x2a0] ss:$36 sps:$4 sm:$0xff]   ;;  %v3912_v57 = vld [vmem:[%s4033_s7 + $0xf8] ss:$36 sps:$4 sm:$0xff]  }
  0xf7   : > { %v3125_v0 = vpop.f32.mrf.mxu0  ;;  %v3197_v1 = vpop.f32.mrf.mxu1 }
  0xf8   : > { %v4338_v2 = vadd.f32 %v3125_v0, %v3124_v62  ;;  %v4340_v3 = vadd.f32 %v3197_v1, %v3196_v63  ;;  %v3916_v62 = vld [vmem:[%s4033_s7 + $0x140] ss:$36 sps:$4 sm:$0xff]  }
  0xf9   : > { %v3127_v4 = vpop.f32.mrf.mxu0  ;;  %v3199_v5 = vpop.f32.mrf.mxu1 }
  0xfb   : > { %v3128_v10 = vpop.f32.mrf.mxu0  ;;  %v3200_v11 = vpop.f32.mrf.mxu1 }
  0xfc   : > { %v4346_v12 = vadd.f32 %v3128_v10, %v3127_v4  ;;  %v4348_v13 = vadd.f32 %v3200_v11, %v3199_v5 }
  0xfd   : > { %v3130_v14 = vpop.f32.mrf.mxu0  ;;  %v3202_v15 = vpop.f32.mrf.mxu1  ;;  %2127 = vmatmul.mubr.bf16.gmra.mxu0 %v3894_v6  ;;  %2224 = vmatmul.mubr.bf16.gmra.mxu1 %v3895_v7 }
  0xfe   : > { %2134 = vmatprep.mubr.bf16.mxu0 %v3897_v8  ;;  %2231 = vmatprep.mubr.bf16.mxu1 %v3899_v9 }
  0xff   : > { %v3131_v16 = vpop.f32.mrf.mxu0  ;;  %v3203_v17 = vpop.f32.mrf.mxu1 }
 0x100   : > { %v4350_v18 = vadd.f32 %v3131_v16, %v3130_v14  ;;  %v4352_v19 = vadd.f32 %v3203_v17, %v3202_v15  ;;  %v3913_v15 = vld [vmem:[%s4033_s7 + $0x2e8] ss:$36 sps:$4 sm:$0xff]  }
 0x101   : > { %v3133_v20 = vpop.f32.mrf.mxu0  ;;  %v3205_v21 = vpop.f32.mrf.mxu1  ;;  %v3917_v16 = vld [vmem:[%s4033_s7 + $0x188] ss:$36 sps:$4 sm:$0xff]  }
 0x103   : > { %v3134_v26 = vpop.f32.mrf.mxu0  ;;  %v3206_v27 = vpop.f32.mrf.mxu1 }
 0x104   : > { %v4358_v28 = vadd.f32 %v3134_v26, %v3133_v20  ;;  %v4360_v29 = vadd.f32 %v3206_v27, %v3205_v21  ;;  %v3920_v20 = vld [vmem:[%s4033_s7 + $0x334] ss:$36 sps:$4 sm:$0xff]  }
 0x105   : > { %v3136_v30 = vpop.f32.mrf.mxu0  ;;  %v3208_v31 = vpop.f32.mrf.mxu1  ;;  %2135 = vmatmul.mubr.bf16.gmra.mxu0 %v3901_v22  ;;  %2232 = vmatmul.mubr.bf16.gmra.mxu1 %v3902_v23  ;;  %v3921_v21 = vld [vmem:[%s4033_s7 + $0x1d0] ss:$36 sps:$4 sm:$0xff]  }
 0x106   : > { %2239 = vmatprep.mubr.bf16.mxu1 %v3905_v24  ;;  %3590 = vmatprep.mubr.bf16.mxu0 %v3906_v25 }
 0x107   : > { %v3137_v32 = vpop.f32.mrf.mxu0  ;;  %v3209_v33 = vpop.f32.mrf.mxu1 }
 0x108   : > { %v4362_v34 = vadd.f32 %v3137_v32, %v3136_v30  ;;  %v4364_v35 = vadd.f32 %v3209_v33, %v3208_v31 }
 0x109   : > { %v3139_v36 = vpop.f32.mrf.mxu0  ;;  %v3211_v37 = vpop.f32.mrf.mxu1 }
 0x10b   : > { %v3140_v42 = vpop.f32.mrf.mxu0  ;;  %v3212_v43 = vpop.f32.mrf.mxu1 }
 0x10c   : > { %v4370_v44 = vadd.f32 %v3140_v42, %v3139_v36  ;;  %v4372_v45 = vadd.f32 %v3212_v43, %v3211_v37  ;;  %v3918_v37 = vld [vmem:[%s4033_s7 + $0x330] ss:$36 sps:$4 sm:$0xff]  }
 0x10d   : > { %v3142_v46 = vpop.f32.mrf.mxu0  ;;  %v3230_v47 = vpop.f32.mrf.mxu1  ;;  %2240 = vmatmul.mubr.bf16.gmra.mxu1 %v3903_v38  ;;  %3591 = vmatmul.mubr.bf16.vlgmr.msra.gmra.mxu0 %v3907_v39  ;;  %v3922_v38 = vld [vmem:[%s4033_s7 + $0x218] ss:$36 sps:$4 sm:$0xff]  }
 0x10e   : > { %2247 = vmatprep.mubr.bf16.mxu1 %v3910_v40  ;;  %3594 = vmatprep.mubr.bf16.mxu0 %v3911_v41  ;;  %v3925_v40 = vld [vmem:[%s4033_s7 + $0x37c] ss:$36 sps:$4 sm:$0xff]  }
 0x10f   : > { %v3143_v48 = vpop.f32.mrf.mxu0  ;;  %v3231_v49 = vpop.f32.mrf.mxu1  ;;  %v3926_v41 = vld [vmem:[%s4033_s7 + $0x260] ss:$36 sps:$4 sm:$0xff]  }
 0x110   : > { %v4374_v52 = vadd.f32 %v3143_v48, %v3142_v46  ;;  %v3232_v53 = vadd.f32 %v3231_v49, %v3230_v47 }
 0x111   : > { %v3145_v54 = vpop.f32.mrf.mxu0  ;;  %v3233_v55 = vpop.f32.mrf.mxu1 }
 0x112   : > { %v4379_v58 = vadd.f32 %v3232_v53, %v4326_v50 }
 0x113   : > { %v3146_v63 = vpop.f32.mrf.mxu0  ;;  %v3234_v0 = vpop.f32.mrf.mxu1 }
 0x114   : > { %v4383_v1 = vadd.f32 %v3146_v63, %v3145_v54  ;;  %v3235_v4 = vadd.f32 %v3234_v0, %v3233_v55  ;;  %v3930_v0 = vld [vmem:[%s4033_s7 + $0x3c4] ss:$36 sps:$4 sm:$0xff]  }
 0x115   : > { %v3148_v5 = vpop.f32.mrf.mxu0  ;;  %v3236_v6 = vpop.f32.mrf.mxu1  ;;  %2248 = vmatmul.mubr.bf16.gmra.mxu1 %v3908_v56  ;;  %3595 = vmatmul.mubr.bf16.gmra.mxu0 %v3912_v57 }
 0x116   : > { %v4386_v7 = vadd.f32 %v3235_v4, %v4334_v60  ;;  %2255 = vmatprep.mubr.bf16.mxu1 %v3915_v59  ;;  %3598 = vmatprep.mubr.bf16.mxu0 %v3916_v62  ;;  %v3923_v59 = vld [vmem:[%s4033_s7 + $0x378] ss:$36 sps:$4 sm:$0xff]   ;;  %v3927_v62 = vld [vmem:[%s4033_s7 + $0x2a8] ss:$36 sps:$4 sm:$0xff]   ;;  %v3931_v4 = vld [vmem:[%s4033_s7 + $0x2f0] ss:$36 sps:$4 sm:$0xff]  }
 0x117   : > { %v3149_v50 = vpop.f32.mrf.mxu0  ;;  %v3237_v8 = vpop.f32.mrf.mxu1 }
 0x118   : > { %v4388_v9 = vadd.f32 %v3149_v50, %v3148_v5  ;;  %v3238_v10 = vadd.f32 %v3237_v8, %v3236_v6 }
 0x119   : > { %v3151_v11 = vpop.f32.mrf.mxu0  ;;  %v3239_v14 = vpop.f32.mrf.mxu1 }
 0x11a   : > { %v4393_v17 = vadd.f32 %v3238_v10, %v4338_v2 }
 0x11b   : > { %v3152_v22 = vpop.f32.mrf.mxu0  ;;  %v3240_v23 = vpop.f32.mrf.mxu1 }
 0x11c   : > { %v4397_v60 = vadd.f32 %v3152_v22, %v3151_v11  ;;  %v3241_v24 = vadd.f32 %v3240_v23, %v3239_v14  ;;  %v3928_v22 = vld [vmem:[%s4033_s7 + $0x3c0] ss:$36 sps:$4 sm:$0xff]   ;;  %v3932_v23 = vld [vmem:[%s4033_s7 + $0x338] ss:$36 sps:$4 sm:$0xff]  }
 0x11d   : > { %v3154_v25 = vpop.f32.mrf.mxu0  ;;  %v3242_v26 = vpop.f32.mrf.mxu1  ;;  %2256 = vmatmul.mubr.bf16.gmra.mxu1 %v3913_v15  ;;  %3599 = vmatmul.mubr.bf16.gmra.mxu0 %v3917_v16 }
 0x11e   : > { %v4400_v27 = vadd.f32 %v3241_v24, %v4346_v12  ;;  %2263 = vmatprep.mubr.bf16.mxu1 %v3920_v20  ;;  %3602 = vmatprep.mubr.bf16.mxu0 %v3921_v21 }
 0x11f   : > { %v3155_v2 = vpop.f32.mrf.mxu0  ;;  %v3243_v30 = vpop.f32.mrf.mxu1 }
 0x120   : > { %v4402_v31 = vadd.f32 %v3155_v2, %v3154_v25  ;;  %v3244_v32 = vadd.f32 %v3243_v30, %v3242_v26  ;;  %v3935_v25 = vld [vmem:[%s4033_s7 + $0x40c] ss:$36 sps:$4 sm:$0xff]   ;;  %v3936_v26 = vld [vmem:[%s4033_s7 + $0x380] ss:$36 sps:$4 sm:$0xff]  }
 0x121   : > { %v3157_v33 = vpop.f32.mrf.mxu0  ;;  %v3245_v36 = vpop.f32.mrf.mxu1 }
 0x122   : > { %v4407_v39 = vadd.f32 %v3244_v32, %v4350_v18 }
 0x123   : > { %v3158_v42 = vpop.f32.mrf.mxu0  ;;  %v3246_v43 = vpop.f32.mrf.mxu1 }
 0x124   : > { %v4411_v12 = vadd.f32 %v3158_v42, %v3157_v33  ;;  %v3247_v46 = vadd.f32 %v3246_v43, %v3245_v36 }
 0x125   : > { %v3160_v47 = vpop.f32.mrf.mxu0  ;;  %v3248_v48 = vpop.f32.mrf.mxu1  ;;  %2264 = vmatmul.mubr.bf16.gmra.mxu1 %v3918_v37  ;;  %3603 = vmatmul.mubr.bf16.gmra.mxu0 %v3922_v38 }
 0x126   : > { %v4414_v49 = vadd.f32 %v3247_v46, %v4358_v28  ;;  %2271 = vmatprep.mubr.bf16.mxu1 %v3925_v40  ;;  %3606 = vmatprep.mubr.bf16.mxu0 %v3926_v41  ;;  %v3933_v46 = vld [vmem:[%s4033_s7 + $0x408] ss:$36 sps:$4 sm:$0xff]  }
 0x127   : > { %v3161_v18 = vpop.f32.mrf.mxu0  ;;  %v3249_v53 = vpop.f32.mrf.mxu1 }
 0x128   : > { %v4416_v54 = vadd.f32 %v3161_v18, %v3160_v47  ;;  %v3250_v55 = vadd.f32 %v3249_v53, %v3248_v48  ;;  %v3937_v47 = vld [vmem:[%s4033_s7 + $0x3c8] ss:$36 sps:$4 sm:$0xff]   ;;  %v3940_v18 = vld [vmem:[%s4033_s7 + $0x454] ss:$36 sps:$4 sm:$0xff]  }
 0x129   : > { %v3163_v56 = vpop.f32.mrf.mxu0  ;;  %v3251_v57 = vpop.f32.mrf.mxu1  ;;  %v3941_v53 = vld [vmem:[%s4033_s7 + $0x410] ss:$36 sps:$4 sm:$0xff]  }
 0x12a   : > { %v4421_v63 = vadd.f32 %v3250_v55, %v4362_v34 }
 0x12b   : > { %v3164_v5 = vpop.f32.mrf.mxu0  ;;  %v3252_v6 = vpop.f32.mrf.mxu1 }
 0x12c   : > { %v4425_v28 = vadd.f32 %v3164_v5, %v3163_v56  ;;  %v3253_v50 = vadd.f32 %v3252_v6, %v3251_v57 }
 0x12d   : > { %v3166_v8 = vpop.f32.mrf.mxu0  ;;  %v3254_v10 = vpop.f32.mrf.mxu1  ;;  %2272 = vmatmul.mubr.bf16.gmra.mxu1 %v3923_v59  ;;  %3607 = vmatmul.mubr.bf16.gmra.mxu0 %v3927_v62 }
 0x12e   : > { %v4428_v11 = vadd.f32 %v3253_v50, %v4370_v44  ;;  %2279 = vmatprep.mubr.bf16.mxu1 %v3930_v0  ;;  %3610 = vmatprep.mubr.bf16.mxu0 %v3931_v4 }
 0x12f   : > { %v3167_v34 = vpop.f32.mrf.mxu0  ;;  %v3255_v14 = vpop.f32.mrf.mxu1 }
 0x130   : > { %v4430_v15 = vadd.f32 %v3167_v34, %v3166_v8  ;;  %v3256_v16 = vadd.f32 %v3255_v14, %v3254_v10  ;;  %v3938_v10 = vld [vmem:[%s4033_s7 + $0x450] ss:$36 sps:$4 sm:$0xff]   ;;  %v3942_v34 = vld [vmem:[%s4033_s7 + $0x458] ss:$36 sps:$4 sm:$0xff]   ;;  %s2724_s7 = sshll.u32 %s4832_s15, 2 }
 0x131   : > { %v3169_v20 = vpop.f32.mrf.mxu0  ;;  %v3257_v21 = vpop.f32.mrf.mxu1  ;;  %s4708_s25 = scalar_lea.vmem %s4806_s2, %s2724_s7 }
 0x132   : > { %v4435_v24 = vadd.f32 %v3256_v16, %v4374_v52 }
 0x133   : > { %v3170_v2 = vpop.f32.mrf.mxu0  ;;  %v3258_v30 = vpop.f32.mrf.mxu1 }
 0x134   : > { %v4439_v44 = vadd.f32 %v3170_v2, %v3169_v20  ;;  %v3259_v32 = vadd.f32 %v3258_v30, %v3257_v21 }
 0x135   : > { %v3172_v33 = vpop.f32.mrf.mxu0  ;;  %v3260_v36 = vpop.f32.mrf.mxu1  ;;  %2280 = vmatmul.mubr.bf16.gmra.mxu1 %v3928_v22  ;;  %3611 = vmatmul.mubr.bf16.gmra.mxu0 %v3932_v23 }
 0x136   : > { %v4442_v37 = vadd.f32 %v3259_v32, %v4383_v1  ;;  %2287 = vmatprep.mubr.bf16.mxu1 %v3935_v25  ;;  %3614 = vmatprep.mubr.bf16.mxu0 %v3936_v26 }
 0x137   : > { %v3173_v52 = vpop.f32.mrf.mxu0  ;;  %v3261_v38 = vpop.f32.mrf.mxu1 }
 0x138   : > { %v4444_v40 = vadd.f32 %v3173_v52, %v3172_v33  ;;  %v3262_v41 = vadd.f32 %v3261_v38, %v3260_v36 }
 0x139   : > { %v3175_v42 = vpop.f32.mrf.mxu0  ;;  %v3263_v43 = vpop.f32.mrf.mxu1 }
 0x13a   : > { %v4449_v48 = vadd.f32 %v3262_v41, %v4388_v9 }
 0x13b   : > { %v3176_v55 = vpop.f32.mrf.mxu0  ;;  %v3264_v56 = vpop.f32.mrf.mxu1 }
 0x13c   : > { %v4453_v1 = vadd.f32 %v3176_v55, %v3175_v42  ;;  %v3265_v57 = vadd.f32 %v3264_v56, %v3263_v43 }
 0x13d   : > { %v3178_v59 = vpop.f32.mrf.mxu0  ;;  %v3266_v62 = vpop.f32.mrf.mxu1  ;;  %2288 = vmatmul.mubr.bf16.gmra.mxu1 %v3933_v46  ;;  %3615 = vmatmul.mubr.bf16.gmra.mxu0 %v3937_v47 }
 0x13e   : > { %v4456_v0 = vadd.f32 %v3265_v57, %v4397_v60  ;;  %2295 = vmatprep.mubr.bf16.mxu1 %v3940_v18  ;;  %3618 = vmatprep.mubr.bf16.mxu0 %v3941_v53 }
 0x13f   : > { %v3179_v9 = vpop.f32.mrf.mxu0  ;;  %v3267_v4 = vpop.f32.mrf.mxu1 }
 0x140   : > { %v4458_v5 = vadd.f32 %v3179_v9, %v3178_v59  ;;  %v3268_v6 = vadd.f32 %v3267_v4, %v3266_v62 }
 0x141   : > { %v3181_v50 = vpop.f32.mrf.mxu0  ;;  %v3269_v8 = vpop.f32.mrf.mxu1 }
 0x142   : > { %v4463_v14 = vadd.f32 %v3268_v6, %v4402_v31 }
 0x143   : > { %v3182_v16 = vpop.f32.mrf.mxu0  ;;  %v3270_v20 = vpop.f32.mrf.mxu1 }
 0x144   : > { %v4465_v21 = vadd.f32 %v3182_v16, %v3181_v50  ;;  %v3271_v60 = vadd.f32 %v3270_v20, %v3269_v8 }
 0x145   : > { %v3184_v22 = vpop.f32.mrf.mxu0  ;;  %v3272_v23 = vpop.f32.mrf.mxu1  ;;  %2296 = vmatmul.mubr.bf16.gmra.mxu1 %v3938_v10  ;;  %3619 = vmatmul.mubr.bf16.gmra.mxu0 %v3942_v34 }
 0x146   : > { %v4468_v25 = vadd.f32 %v3271_v60, %v4411_v12 }
 0x147   : > { %v3185_v26 = vpop.f32.mrf.mxu0  ;;  %v3273_v2 = vpop.f32.mrf.mxu1 }
 0x148   : > { %v4470_v30 = vadd.f32 %v3185_v26, %v3184_v22  ;;  %v3274_v32 = vadd.f32 %v3273_v2, %v3272_v23 }
 0x149   : > { %v3187_v33 = vpop.f32.mrf.mxu0  ;;  %v3275_v31 = vpop.f32.mrf.mxu1 }
 0x14a   : > { %v4473_v36 = vadd.f32 %v3274_v32, %v4416_v54 }
 0x14b   : > { %v3188_v52 = vpop.f32.mrf.mxu0  ;;  %v3276_v38 = vpop.f32.mrf.mxu1 }
 0x14c   : > { %v4475_v41 = vadd.f32 %v3188_v52, %v3187_v33  ;;  %v3277_v42 = vadd.f32 %v3276_v38, %v3275_v31 }
 0x14d   : > { %v3278_v43 = vpop.f32.mrf.mxu1  ;;  %v3342_v46 = vpop.f32.mrf.mxu0 }
 0x14e   : > { %v4478_v12 = vadd.f32 %v3277_v42, %v4425_v28 }
 0x14f   : > { %v3279_v47 = vpop.f32.mrf.mxu1  ;;  %v3343_v18 = vpop.f32.mrf.mxu0 }
 0x150   : > { %v3280_v53 = vadd.f32 %v3279_v47, %v3278_v43  ;;  %v3344_v55 = vadd.f32 %v3343_v18, %v3342_v46 }
 0x151   : > { %v3281_v56 = vpop.f32.mrf.mxu1  ;;  %v3345_v57 = vpop.f32.mrf.mxu0 }
 0x152   : > { %v4481_v59 = vadd.f32 %v3280_v53, %v4430_v15  ;;  %v4484_v54 = vadd.f32 %v3344_v55, %v4379_v58 }
 0x153   : > { %v3282_v62 = vpop.f32.mrf.mxu1  ;;  %v3346_v9 = vpop.f32.mrf.mxu0 }
 0x154   : > { %v3283_v4 = vadd.f32 %v3282_v62, %v3281_v56  ;;  %v3347_v6 = vadd.f32 %v3346_v9, %v3345_v57 }
 0x155   : > { %v3284_v50 = vpop.f32.mrf.mxu1  ;;  %v3348_v8 = vpop.f32.mrf.mxu0 }
 0x156   : > { %v4487_v28 = vadd.f32 %v3283_v4, %v4439_v44  ;;  %v4490_v10 = vadd.f32 %v3347_v6, %v4386_v7 }
 0x157   : > { %v3285_v34 = vpop.f32.mrf.mxu1  ;;  %v3349_v16 = vpop.f32.mrf.mxu0 }
 0x158   : > { %v3286_v20 = vadd.f32 %v3285_v34, %v3284_v50  ;;  %v3350_v15 = vadd.f32 %v3349_v16, %v3348_v8 }
 0x159   : > { %v3287_v60 = vpop.f32.mrf.mxu1  ;;  %v3351_v22 = vpop.f32.mrf.mxu0 }
 0x15a   : > { %v4493_v58 = vadd.f32 %v3286_v20, %v4444_v40  ;;  %v4496_v23 = vadd.f32 %v3350_v15, %v4393_v17 }
 0x15b   : > { %v3288_v26 = vpop.f32.mrf.mxu1  ;;  %v3352_v2 = vpop.f32.mrf.mxu0 }
 0x15c   : > { %v3289_v32 = vadd.f32 %v3288_v26, %v3287_v60  ;;  %v3353_v44 = vadd.f32 %v3352_v2, %v3351_v22 }
 0x15d   : > { %v3290_v33 = vpop.f32.mrf.mxu1  ;;  %v3354_v31 = vpop.f32.mrf.mxu0 }
 0x15e   : > { %v4499_v7 = vadd.f32 %v3289_v32, %v4453_v1  ;;  %v4502_v52 = vadd.f32 %v3353_v44, %v4400_v27 }
 0x15f   : > { %v3291_v38 = vpop.f32.mrf.mxu1  ;;  %v3355_v42 = vpop.f32.mrf.mxu0 }
 0x160   : > { %v3292_v43 = vadd.f32 %v3291_v38, %v3290_v33  ;;  %v3356_v40 = vadd.f32 %v3355_v42, %v3354_v31 }
 0x161   : > { %v3293_v46 = vpop.f32.mrf.mxu1  ;;  %v3357_v47 = vpop.f32.mrf.mxu0 }
 0x162   : > { %v4505_v17 = vadd.f32 %v3292_v43, %v4458_v5  ;;  %v4508_v18 = vadd.f32 %v3356_v40, %v4407_v39 }
 0x163   : > { %v3294_v53 = vpop.f32.mrf.mxu1  ;;  %v3358_v55 = vpop.f32.mrf.mxu0 }
 0x164   : > { %v3295_v56 = vadd.f32 %v3294_v53, %v3293_v46  ;;  %v3359_v1 = vadd.f32 %v3358_v55, %v3357_v47 }
 0x165   : > { %v3296_v57 = vpop.f32.mrf.mxu1  ;;  %v3360_v62 = vpop.f32.mrf.mxu0 }
 0x166   : > { %v4511_v27 = vadd.f32 %v3295_v56, %v4465_v21  ;;  %v4514_v9 = vadd.f32 %v3359_v1, %v4414_v49 }
 0x167   : > { %v3297_v4 = vpop.f32.mrf.mxu1  ;;  %v3361_v6 = vpop.f32.mrf.mxu0 }
 0x168   : > { %v3298_v50 = vadd.f32 %v3297_v4, %v3296_v57  ;;  %v3362_v5 = vadd.f32 %v3361_v6, %v3360_v62 }
 0x169   : > { %v3299_v8 = vpop.f32.mrf.mxu1  ;;  %v3363_v34 = vpop.f32.mrf.mxu0 }
 0x16a   : > { %v4517_v39 = vadd.f32 %v3298_v50, %v4470_v30  ;;  %v4520_v16 = vadd.f32 %v3362_v5, %v4421_v63 }
 0x16b   : > { %v3300_v20 = vpop.f32.mrf.mxu1  ;;  %v3364_v15 = vpop.f32.mrf.mxu0 }
 0x16c   : > { %v3301_v60 = vadd.f32 %v3300_v20, %v3299_v8  ;;  %v3365_v21 = vadd.f32 %v3364_v15, %v3363_v34 }
 0x16d   : > { %v3302_v22 = vpop.f32.mrf.mxu1  ;;  %v3366_v26 = vpop.f32.mrf.mxu0 }
 0x16e   : > { %v4523_v49 = vadd.f32 %v3301_v60, %v4475_v41  ;;  %v4526_v2 = vadd.f32 %v3365_v21, %v4428_v11 }
 0x16f   : > { %v3303_v32 = vpop.f32.mrf.mxu1  ;;  %v3367_v44 = vpop.f32.mrf.mxu0 }
 0x170   : > { %v3304_v33 = vadd.f32 %v3303_v32, %v3302_v22  ;;  %v3368_v30 = vadd.f32 %v3367_v44, %v3366_v26 }
 0x171   : > { %v3305_v31 = vpop.f32.mrf.mxu1  ;;  %v3369_v38 = vpop.f32.mrf.mxu0 }
 0x172   : > { %v4529_v63 = vadd.f32 %v3304_v33, %v4328_v51  ;;  %v4532_v42 = vadd.f32 %v3368_v30, %v4435_v24 }
 0x173   : > { %v3306_v43 = vpop.f32.mrf.mxu1  ;;  %v3370_v40 = vpop.f32.mrf.mxu0 }
 0x174   : > { %v3307_v46 = vadd.f32 %v3306_v43, %v3305_v31  ;;  %v3371_v41 = vadd.f32 %v3370_v40, %v3369_v38 }
 0x175   : > { %v3308_v47 = vpop.f32.mrf.mxu1  ;;  %v3372_v53 = vpop.f32.mrf.mxu0 }
 0x176   : > { %v4535_v11 = vadd.f32 %v3307_v46, %v4336_v61  ;;  %v4538_v55 = vadd.f32 %v3371_v41, %v4442_v37 }
 0x177   : > { %v3309_v56 = vpop.f32.mrf.mxu1  ;;  %v3373_v1 = vpop.f32.mrf.mxu0 }
 0x178   : > { %v3310_v57 = vadd.f32 %v3309_v56, %v3308_v47  ;;  %v3374_v51 = vadd.f32 %v3373_v1, %v3372_v53 }
 0x179   : > { %v3311_v62 = vpop.f32.mrf.mxu1  ;;  %v3375_v4 = vpop.f32.mrf.mxu0 }
 0x17a   : > { %v4541_v24 = vadd.f32 %v3310_v57, %v4340_v3  ;;  %v4544_v6 = vadd.f32 %v3374_v51, %v4449_v48 }
 0x17b   : > { %v3312_v50 = vpop.f32.mrf.mxu1  ;;  %v3376_v5 = vpop.f32.mrf.mxu0 }
 0x17c   : > { %v3313_v8 = vadd.f32 %v3312_v50, %v3311_v62  ;;  %v3377_v61 = vadd.f32 %v3376_v5, %v3375_v4 }
 0x17d   : > { %v3314_v34 = vpop.f32.mrf.mxu1  ;;  %v3378_v20 = vpop.f32.mrf.mxu0 }
 0x17e   : > { %v4547_v37 = vadd.f32 %v3313_v8, %v4348_v13  ;;  %v4550_v15 = vadd.f32 %v3377_v61, %v4456_v0 }
 0x17f   : > { %v3315_v60 = vpop.f32.mrf.mxu1  ;;  %v3379_v21 = vpop.f32.mrf.mxu0 }
 0x180   : > { %v3316_v22 = vadd.f32 %v3315_v60, %v3314_v34  ;;  %v3380_v3 = vadd.f32 %v3379_v21, %v3378_v20 }
 0x181   : > { %v3317_v26 = vpop.f32.mrf.mxu1  ;;  %v3381_v32 = vpop.f32.mrf.mxu0 }
 0x182   : > { %v4553_v48 = vadd.f32 %v3316_v22, %v4352_v19  ;;  %v4556_v44 = vadd.f32 %v3380_v3, %v4463_v14 }
 0x183   : > { %v3318_v33 = vpop.f32.mrf.mxu1  ;;  %v3382_v30 = vpop.f32.mrf.mxu0 }
 0x184   : > { %v3319_v31 = vadd.f32 %v3318_v33, %v3317_v26  ;;  %v3383_v13 = vadd.f32 %v3382_v30, %v3381_v32 }
 0x185   : > { %v3320_v38 = vpop.f32.mrf.mxu1  ;;  %v3384_v43 = vpop.f32.mrf.mxu0 }
 0x186   : > { %v4559_v0 = vadd.f32 %v3319_v31, %v4360_v29  ;;  %v4562_v40 = vadd.f32 %v3383_v13, %v4468_v25 }
 0x187   : > { %v3321_v46 = vpop.f32.mrf.mxu1  ;;  %v3385_v41 = vpop.f32.mrf.mxu0 }
 0x188   : > { %v3322_v47 = vadd.f32 %v3321_v46, %v3320_v38  ;;  %v3386_v19 = vadd.f32 %v3385_v41, %v3384_v43 }
 0x189   : > { %v3323_v53 = vpop.f32.mrf.mxu1  ;;  %v3387_v56 = vpop.f32.mrf.mxu0 }
 0x18a   : > { %v4565_v14 = vadd.f32 %v3322_v47, %v4364_v35  ;;  %v4568_v1 = vadd.f32 %v3386_v19, %v4473_v36 }
 0x18b   : > { %v3324_v57 = vpop.f32.mrf.mxu1  ;;  %v3388_v51 = vpop.f32.mrf.mxu0 }
 0x18c   : > { %v3325_v62 = vadd.f32 %v3324_v57, %v3323_v53  ;;  %v3389_v29 = vadd.f32 %v3388_v51, %v3387_v56 }
 0x18d   : > { %v3390_v4 = vpop.f32.mrf.mxu0  ;;  %v3454_v50 = vpop.f32.mrf.mxu1 }
 0x18e   : > { %v4571_v25 = vadd.f32 %v3325_v62, %v4372_v45  ;;  %v4574_v5 = vadd.f32 %v3389_v29, %v4478_v12 }
 0x18f   : > { %v3391_v8 = vpop.f32.mrf.mxu0  ;;  %v3455_v61 = vpop.f32.mrf.mxu1 }
 0x190   : > { %v3392_v34 = vadd.f32 %v3391_v8, %v3390_v4  ;;  %v3456_v35 = vadd.f32 %v3455_v61, %v3454_v50 }
 0x191   : > { %v3393_v20 = vpop.f32.mrf.mxu0  ;;  %v4576_v60 = vpop.f32.mrf.mxu1 }
 0x192   : > { %v4579_v36 = vadd.f32 %v3392_v34, %v4481_v59  ;;  %v4582_v21 = vadd.f32 %v3456_v35, %v4484_v54 }
 0x193   : > { %v3394_v22 = vpop.f32.mrf.mxu0  ;;  %v4584_v3 = vpop.f32.mrf.mxu1 }
 0x194   : > { %v3395_v45 = vadd.f32 %v3394_v22, %v3393_v20 }
 0x195   : > { %v3396_v26 = vpop.f32.mrf.mxu0  ;;  %v4586_v12 = vpop.f32.mrf.mxu1 }
 0x196   : > { %v4589_v32 = vadd.f32 %v3395_v45, %v4487_v28 }
 0x197   : > { %v3397_v33 = vpop.f32.mrf.mxu0  ;;  %v4591_v30 = vpop.f32.mrf.mxu1 }
 0x198   : > { %v3398_v31 = vadd.f32 %v3397_v33, %v3396_v26 }
 0x199   : > { %v3399_v13 = vpop.f32.mrf.mxu0  ;;  %v4593_v59 = vpop.f32.mrf.mxu1 }
 0x19a   : > { %v4596_v54 = vadd.f32 %v3398_v31, %v4493_v58 }
 0x19b   : > { %v3400_v38 = vpop.f32.mrf.mxu0  ;;  %v4598_v43 = vpop.f32.mrf.mxu1 }
 0x19c   : > { %v3401_v46 = vadd.f32 %v3400_v38, %v3399_v13 }
 0x19d   : > { %v3402_v41 = vpop.f32.mrf.mxu0  ;;  %v4600_v47 = vpop.f32.mrf.mxu1 }
 0x19e   : > { %v4603_v28 = vadd.f32 %v3401_v46, %v4499_v7 }
 0x19f   : > { %v3403_v19 = vpop.f32.mrf.mxu0  ;;  %v4605_v53 = vpop.f32.mrf.mxu1 }
 0x1a0   : > { %v3404_v56 = vadd.f32 %v3403_v19, %v3402_v41 }
 0x1a1   : > { %v3405_v57 = vpop.f32.mrf.mxu0  ;;  %v4607_v51 = vpop.f32.mrf.mxu1 }
 0x1a2   : > { %v4610_v58 = vadd.f32 %v3404_v56, %v4505_v17 }
 0x1a3   : > { %v3406_v62 = vpop.f32.mrf.mxu0  ;;  %v4612_v29 = vpop.f32.mrf.mxu1 }
 0x1a4   : > { %4807 = vst [vmem:[#allocation2_spill] sm:$0xff] %v4610_v58  ;;  %v3407_v4 = vadd.f32 %v3406_v62, %v3405_v57 }
 0x1a5   : > { %v3408_v50 = vpop.f32.mrf.mxu0  ;;  %v4614_v8 = vpop.f32.mrf.mxu1 }
 0x1a6   : > { %v4617_v7 = vadd.f32 %v3407_v4, %v4511_v27 }
 0x1a7   : > { %v3409_v61 = vpop.f32.mrf.mxu0  ;;  %v4619_v34 = vpop.f32.mrf.mxu1 }
 0x1a8   : > { %4808 = vst [vmem:[#allocation3_spill] sm:$0xff] %v4617_v7  ;;  %v3410_v35 = vadd.f32 %v3409_v61, %v3408_v50 }
 0x1a9   : > { %v3411_v20 = vpop.f32.mrf.mxu0  ;;  %v4621_v22 = vpop.f32.mrf.mxu1 }
 0x1aa   : > { %v4624_v17 = vadd.f32 %v3410_v35, %v4517_v39 }
 0x1ab   : > { %v3412_v45 = vpop.f32.mrf.mxu0  ;;  %v4626_v26 = vpop.f32.mrf.mxu1 }
 0x1ac   : > { %v3413_v33 = vadd.f32 %v3412_v45, %v3411_v20 }
 0x1ad   : > { %v3414_v31 = vpop.f32.mrf.mxu0  ;;  %v4628_v13 = vpop.f32.mrf.mxu1 }
 0x1ae   : > { %v4631_v27 = vadd.f32 %v3413_v33, %v4523_v49 }
 0x1af   : > { %v3415_v38 = vpop.f32.mrf.mxu0  ;;  %v4633_v46 = vpop.f32.mrf.mxu1 }
 0x1b0   : > { %4809 = vst [vmem:[#allocation4_spill] sm:$0xff] %v4631_v27  ;;  %v3416_v41 = vadd.f32 %v3415_v38, %v3414_v31 }
 0x1b1   : > { %v3417_v19 = vpop.f32.mrf.mxu0  ;;  %v4635_v56 = vpop.f32.mrf.mxu1 }
 0x1b2   : > { %v4638_v39 = vadd.f32 %v3416_v41, %v4529_v63 }
 0x1b3   : > { %v3418_v57 = vpop.f32.mrf.mxu0  ;;  %v4640_v62 = vpop.f32.mrf.mxu1 }
 0x1b4   : > { %4810 = vst [vmem:[#allocation5_spill] sm:$0xff] %v4638_v39  ;;  %v3419_v4 = vadd.f32 %v3418_v57, %v3417_v19 }
 0x1b5   : > { %v3420_v50 = vpop.f32.mrf.mxu0  ;;  %v4642_v61 = vpop.f32.mrf.mxu1 }
 0x1b6   : > { %v4645_v49 = vadd.f32 %v3419_v4, %v4535_v11 }
 0x1b7   : > { %v3421_v35 = vpop.f32.mrf.mxu0  ;;  %v4647_v20 = vpop.f32.mrf.mxu1 }
 0x1b8   : > { %4811 = vst [vmem:[#allocation6_spill] sm:$0xff] %v4645_v49  ;;  %v3422_v45 = vadd.f32 %v3421_v35, %v3420_v50 }
 0x1b9   : > { %v3423_v33 = vpop.f32.mrf.mxu0  ;;  %v4649_v31 = vpop.f32.mrf.mxu1 }
 0x1ba   : > { %v4652_v63 = vadd.f32 %v3422_v45, %v4541_v24 }
 0x1bb   : > { %v3424_v38 = vpop.f32.mrf.mxu0  ;;  %v4654_v41 = vpop.f32.mrf.mxu1 }
 0x1bc   : > { %4812 = vst [vmem:[#allocation7_spill] sm:$0xff] %v4652_v63  ;;  %v3425_v19 = vadd.f32 %v3424_v38, %v3423_v33 }
 0x1bd   : > { %v3426_v57 = vpop.f32.mrf.mxu0  ;;  %v4656_v39 = vpop.f32.mrf.mxu1 }
 0x1be   : > { %v4659_v11 = vadd.f32 %v3425_v19, %v4547_v37 }
 0x1bf   : > { %v3427_v4 = vpop.f32.mrf.mxu0  ;;  %v4661_v49 = vpop.f32.mrf.mxu1 }
 0x1c0   : > { %4813 = vst [vmem:[#allocation8_spill] sm:$0xff] %v4659_v11  ;;  %v3428_v50 = vadd.f32 %v3427_v4, %v3426_v57 }
 0x1c1   : > { %v3429_v35 = vpop.f32.mrf.mxu0  ;;  %v4663_v7 = vpop.f32.mrf.mxu1 }
 0x1c2   : > { %v4666_v24 = vadd.f32 %v3428_v50, %v4553_v48 }
 0x1c3   : > { %v3430_v45 = vpop.f32.mrf.mxu0  ;;  %v4668_v63 = vpop.f32.mrf.mxu1 }
 0x1c4   : > { %4814 = vst [vmem:[#allocation9_spill] sm:$0xff] %v4666_v24  ;;  %v3431_v33 = vadd.f32 %v3430_v45, %v3429_v35  ;;  %v3462_v35 = vadd.f32 %v4591_v30, %v4586_v12 }
 0x1c5   : > { %v3432_v38 = vpop.f32.mrf.mxu0  ;;  %v4670_v58 = vpop.f32.mrf.mxu1 }
 0x1c6   : > { %v4673_v37 = vadd.f32 %v3431_v33, %v4559_v0  ;;  %v3465_v0 = vadd.f32 %v4598_v43, %v4593_v59 }
 0x1c7   : > { %v3433_v19 = vpop.f32.mrf.mxu0  ;;  %v4675_v11 = vpop.f32.mrf.mxu1 }
 0x1c8   : > { %4815 = vst [vmem:[#allocation10_spill] sm:$0xff] %v4673_v37  ;;  %v3434_v57 = vadd.f32 %v3433_v19, %v3432_v38  ;;  %v3459_v19 = vadd.f32 %v4584_v3, %v4576_v60  ;;  %v2189_v12 = vadd.f32 %v3465_v0, %v4502_v52  ;;  %v3474_v60 = vadd.f32 %v4619_v34, %v4614_v8 }
 0x1c9   : > { %v3435_v4 = vpop.f32.mrf.mxu0  ;;  %v4677_v27 = vpop.f32.mrf.mxu1  ;;  %v3468_v34 = vadd.f32 %v4605_v53, %v4600_v47  ;;  %v3471_v0 = vadd.f32 %v4612_v29, %v4607_v51  ;;  %v3486_v53 = vadd.f32 %v4647_v20, %v4642_v61 }
 0x1ca   : > { %v4680_v48 = vadd.f32 %v3434_v57, %v4565_v14 }
 0x1cb   : > { %v3436_v50 = vpop.f32.mrf.mxu0  ;;  %v4682_v24 = vpop.f32.mrf.mxu1  ;;  %v2197_v47 = vadd.f32 %v3471_v0, %v4514_v9  ;;  %v3483_v9 = vadd.f32 %v4640_v62, %v4635_v56  ;;  %v3498_v62 = vadd.f32 %v4675_v11, %v4670_v58 }
 0x1cc   : > { %4816 = vst [vmem:[#allocation11_spill] sm:$0xff] %v4680_v48  ;;  %v3437_v45 = vadd.f32 %v3436_v50, %v3435_v4  ;;  %v2186_v48 = vadd.f32 %v3462_v35, %v4496_v23  ;;  %v2181_v50 = vadd.f32 %v3459_v19, %v4490_v10 }
 0x1cd   : > { %v4688_v33 = vpop.f32.mrf.mxu1  ;;  %v3592_v38 = vpop.f32.mrf.mxu0  ;;  %v2213_v56 = vadd.f32 %v3483_v9, %v4538_v55  ;;  %v3495_v55 = vadd.f32 %v4668_v63, %v4663_v7  ;;  %v2234_v11 = vadd.f32 %v3498_v62, %v4568_v1  ;;  %v4817_v62 = vld [vmem:[#allocation4_spill] sm:$0xff] }
 0x1ce   : > { %v4693_v37 = vadd.f32 %v3437_v45, %v4571_v25  ;;  %v2347_v43 = vadd.f32 %v3592_v38, %v2186_v48  ;;  %v3477_v25 = vadd.f32 %v4626_v26, %v4621_v22  ;;  %v2202_v22 = vadd.f32 %v3474_v60, %v4520_v16 }
 0x1cf   : > { %v4695_v14 = vpop.f32.mrf.mxu1  ;;  %v2338_v57 = vpop.f32.mrf.mxu0  ;;  %v3489_v16 = vadd.f32 %v4654_v41, %v4649_v31  ;;  %v2218_v31 = vadd.f32 %v3486_v53, %v4544_v6  ;;  %v3501_v6 = vadd.f32 %v4682_v24, %v4677_v27 }
 0x1d0   : > { %v2339_v3 = vadd.f32 %v2338_v57, %v4582_v21  ;;  %v2205_v21 = vadd.f32 %v3477_v25, %v4526_v2 }
 0x1d1   : > { %v4700_v30 = vpop.f32.mrf.mxu1  ;;  %v3593_v59 = vpop.f32.mrf.mxu0  ;;  %v2221_v41 = vadd.f32 %v3489_v16, %v4550_v15  ;;  %v2237_v27 = vadd.f32 %v3501_v6, %v4574_v5 }
 0x1d2   : > { %v2350_v4 = vadd.f32 %v3593_v59, %v2189_v12  ;;  %v2194_v59 = vadd.f32 %v3468_v34, %v4508_v18  ;;  %v3480_v18 = vadd.f32 %v4633_v46, %v4628_v13 }
 0x1d3   : > { %v4710_v23 = vpop.f32.mrf.mxu1  ;;  %v2341_v52 = vpop.f32.mrf.mxu0 }
 0x1d4   : > { %v3015_v48 = vpack.c.bf16 %v2350_v4, %v2347_v43  ;;  %v2342_v10 = vadd.f32 %v2341_v52, %v2181_v50  ;;  %v2210_v13 = vadd.f32 %v3480_v18, %v4532_v42  ;;  %v3492_v42 = vadd.f32 %v4661_v49, %v4656_v39 }
 0x1d5   : > { %v4715_v35 = vpop.f32.mrf.mxu1  ;;  %v3596_v8 = vpop.f32.mrf.mxu0  ;;  %v2229_v39 = vadd.f32 %v3495_v55, %v4562_v40 }
 0x1d6   : > { %3087 = vst [vmem:[%s4708_s25 + $0x8] sm:$0xff] %v3015_v48   ;;  %v3010_v45 = vpack.c.bf16 %v2342_v10, %v2339_v3  ;;  %v2363_v12 = vadd.f32 %v3596_v8, %v2202_v22 }
 0x1d7   : > { %v3509_v38 = vpop.f32.mrf.mxu1  ;;  %v2354_v19 = vpop.f32.mrf.mxu0 }
 0x1d8   : > { %3011 = vst [vmem:[%s4708_s25] sm:$0xff] %v3010_v45   ;;  %v2355_v4 = vadd.f32 %v2354_v19, %v2194_v59  ;;  %v3510_v7 = vadd.f32 %v3509_v38, %v4715_v35 }
 0x1d9   : > { %v3511_v26 = vpop.f32.mrf.mxu1  ;;  %v3597_v57 = vpop.f32.mrf.mxu0 }
 0x1da   : > { %v2366_v43 = vadd.f32 %v3597_v57, %v2205_v21  ;;  %v2250_v35 = vadd.f32 %v3510_v7, %v4596_v54  ;;  %v4821_v7 = vld [vmem:[#allocation8_spill] sm:$0xff] }
 0x1db   : > { %v3512_v51 = vpop.f32.mrf.mxu1  ;;  %v2357_v29 = vpop.f32.mrf.mxu0 }
 0x1dc   : > { %v3025_v2 = vpack.c.bf16 %v2366_v43, %v2363_v12  ;;  %v2358_v50 = vadd.f32 %v2357_v29, %v2197_v47  ;;  %v2226_v43 = vadd.f32 %v3492_v42, %v4556_v44  ;;  %v3513_v53 = vadd.f32 %v3512_v51, %v3511_v26  ;;  %v4819_v42 = vld [vmem:[#allocation3_spill] sm:$0xff] }
 0x1dd   : > { %v4731_v60 = vpop.f32.mrf.mxu1  ;;  %v3600_v52 = vpop.f32.mrf.mxu0  ;;  %v3507_v44 = vadd.f32 %v4710_v23, %v4700_v30 }
 0x1de   : > { %3089 = vst [vmem:[%s4708_s25 + $0x18] sm:$0xff] %v3025_v2   ;;  %v3020_v25 = vpack.c.bf16 %v2358_v50, %v2355_v4  ;;  %v2379_v10 = vadd.f32 %v3600_v52, %v2218_v31  ;;  %v3504_v2 = vadd.f32 %v4695_v14, %v4688_v33  ;;  %v2253_v38 = vadd.f32 %v3513_v53, %v4603_v28 }
 0x1df   : > { %v4738_v61 = vpop.f32.mrf.mxu1  ;;  %v2370_v20 = vpop.f32.mrf.mxu0  ;;  %v2245_v33 = vadd.f32 %v3507_v44, %v4589_v32 }
 0x1e0   : > { %3088 = vst [vmem:[%s4708_s25 + $0x10] sm:$0xff] %v3020_v25   ;;  %v2371_v15 = vadd.f32 %v2370_v20, %v2210_v13  ;;  %v2242_v9 = vadd.f32 %v3504_v2, %v4579_v36  ;;  %v3516_v28 = vadd.f32 %v4738_v61, %v4731_v60  ;;  %v4823_v2 = vld [vmem:[#allocation6_spill] sm:$0xff] }
 0x1e1   : > { %v4743_v3 = vpop.f32.mrf.mxu1  ;;  %v3601_v48 = vpop.f32.mrf.mxu0 }
 0x1e2   : > { %v2382_v46 = vadd.f32 %v3601_v48, %v2221_v41 }
 0x1e3   : > { %v3518_v8 = vpop.f32.mrf.mxu1  ;;  %v2373_v34 = vpop.f32.mrf.mxu0 }
 0x1e4   : > { %v3035_v0 = vpack.c.bf16 %v2382_v46, %v2379_v10  ;;  %v2374_v45 = vadd.f32 %v2373_v34, %v2213_v56  ;;  %v3519_v13 = vadd.f32 %v3518_v8, %v4743_v3 }
 0x1e5   : > { %v3520_v19 = vpop.f32.mrf.mxu1  ;;  %v3604_v22 = vpop.f32.mrf.mxu0 }
 0x1e6   : > { %3091 = vst [vmem:[%s4708_s25 + $0x28] sm:$0xff] %v3035_v0   ;;  %v3030_v21 = vpack.c.bf16 %v2374_v45, %v2371_v15  ;;  %v2395_v59 = vadd.f32 %v3604_v22, %v2234_v11  ;;  %v4818_v45 = vld [vmem:[#allocation2_spill] sm:$0xff]  ;;  %v2261_v60 = vadd.f32 %v3519_v13, %v4819_v42 }
 0x1e7   : > { %v3521_v57 = vpop.f32.mrf.mxu1  ;;  %v2386_v58 = vpop.f32.mrf.mxu0 }
 0x1e8   : > { %3090 = vst [vmem:[%s4708_s25 + $0x20] sm:$0xff] %v3030_v21   ;;  %v2387_v29 = vadd.f32 %v2386_v58, %v2226_v43  ;;  %v3522_v14 = vadd.f32 %v3521_v57, %v3520_v19  ;;  %v2258_v19 = vadd.f32 %v3516_v28, %v4818_v45  ;;  %v4826_v28 = vld [vmem:[#allocation11_spill] sm:$0xff] }
 0x1e9   : > { %v3523_v24 = vpop.f32.mrf.mxu1  ;;  %v3605_v12 = vpop.f32.mrf.mxu0 }
 0x1ea   : > { %v2398_v47 = vadd.f32 %v3605_v12, %v2237_v27  ;;  %v2266_v32 = vadd.f32 %v3522_v14, %v4624_v17 }
 0x1eb   : > { %v3524_v49 = vpop.f32.mrf.mxu1  ;;  %v2389_v63 = vpop.f32.mrf.mxu0 }
 0x1ec   : > { %v3045_v16 = vpack.c.bf16 %v2398_v47, %v2395_v59  ;;  %v2390_v1 = vadd.f32 %v2389_v63, %v2229_v39  ;;  %v3525_v20 = vadd.f32 %v3524_v49, %v3523_v24  ;;  %v4820_v47 = vld [vmem:[#allocation7_spill] sm:$0xff] }
 0x1ed   : > { %v3526_v4 = vpop.f32.mrf.mxu1  ;;  %v3608_v5 = vpop.f32.mrf.mxu0 }
 0x1ee   : > { %3093 = vst [vmem:[%s4708_s25 + $0x38] sm:$0xff] %v3045_v16   ;;  %v3040_v50 = vpack.c.bf16 %v2390_v1, %v2387_v29  ;;  %v2411_v18 = vadd.f32 %v3608_v5, %v2250_v35  ;;  %v2269_v34 = vadd.f32 %v3525_v20, %v4817_v62  ;;  %v4822_v16 = vld [vmem:[#allocation5_spill] sm:$0xff] }
 0x1ef   : > { %v3527_v40 = vpop.f32.mrf.mxu1  ;;  %v2402_v52 = vpop.f32.mrf.mxu0  ;;  %v4824_v20 = vld [vmem:[#allocation9_spill] sm:$0xff] }
 0x1f0   : > { %3092 = vst [vmem:[%s4708_s25 + $0x30] sm:$0xff] %v3040_v50   ;;  %v2403_v31 = vadd.f32 %v2402_v52, %v2242_v9  ;;  %v3528_v27 = vadd.f32 %v3527_v40, %v3526_v4 }
 0x1f1   : > { %v3529_v26 = vpop.f32.mrf.mxu1  ;;  %v3609_v51 = vpop.f32.mrf.mxu0 }
 0x1f2   : > { %v2414_v25 = vadd.f32 %v3609_v51, %v2253_v38  ;;  %v2274_v1 = vadd.f32 %v3528_v27, %v4822_v16 }
 0x1f3   : > { %v3530_v30 = vpop.f32.mrf.mxu1  ;;  %v2405_v23 = vpop.f32.mrf.mxu0 }
 0x1f4   : > { %v3055_v41 = vpack.c.bf16 %v2414_v25, %v2411_v18  ;;  %v2406_v48 = vadd.f32 %v2405_v23, %v2245_v33  ;;  %v3531_v24 = vadd.f32 %v3530_v30, %v3529_v26 }
 0x1f5   : > { %v3532_v54 = vpop.f32.mrf.mxu1  ;;  %v3612_v10 = vpop.f32.mrf.mxu0 }
 0x1f6   : > { %3095 = vst [vmem:[%s4708_s25 + $0x48] sm:$0xff] %v3055_v41   ;;  %v3050_v36 = vpack.c.bf16 %v2406_v48, %v2403_v31  ;;  %v2427_v0 = vadd.f32 %v3612_v10, %v2266_v32  ;;  %v2277_v4 = vadd.f32 %v3531_v24, %v4823_v2  ;;  %v4825_v41 = vld [vmem:[#allocation10_spill] sm:$0xff] }
 0x1f7   : > { %v3533_v46 = vpop.f32.mrf.mxu1  ;;  %v2418_v56 = vpop.f32.mrf.mxu0 }
 0x1f8   : > { %3094 = vst [vmem:[%s4708_s25 + $0x40] sm:$0xff] %v3050_v36   ;;  %v3534_v61 = vadd.f32 %v3533_v46, %v3532_v54  ;;  %v2419_v55 = vadd.f32 %v2418_v56, %v2258_v19 }
 0x1f9   : > { %v3535_v6 = vpop.f32.mrf.mxu1  ;;  %v3613_v15 = vpop.f32.mrf.mxu0 }
 0x1fa   : > { %v2430_v22 = vadd.f32 %v3613_v15, %v2269_v34  ;;  %v2282_v39 = vadd.f32 %v3534_v61, %v4820_v47 }
 0x1fb   : > { %v3536_v3 = vpop.f32.mrf.mxu1  ;;  %v2421_v8 = vpop.f32.mrf.mxu0 }
 0x1fc   : > { %v3065_v21 = vpack.c.bf16 %v2430_v22, %v2427_v0  ;;  %v3537_v57 = vadd.f32 %v3536_v3, %v3535_v6  ;;  %v2422_v58 = vadd.f32 %v2421_v8, %v2261_v60 }
 0x1fd   : > { %v3538_v17 = vpop.f32.mrf.mxu1  ;;  %v3616_v11 = vpop.f32.mrf.mxu0 }
 0x1fe   : > { %3097 = vst [vmem:[%s4708_s25 + $0x58] sm:$0xff] %v3065_v21   ;;  %v3060_v12 = vpack.c.bf16 %v2422_v58, %v2419_v55  ;;  %v2285_v49 = vadd.f32 %v3537_v57, %v4821_v7  ;;  %v2443_v29 = vadd.f32 %v3616_v11, %v2282_v39 }
 0x1ff   : > { %v3539_v59 = vpop.f32.mrf.mxu1  ;;  %v2434_v43 = vpop.f32.mrf.mxu0 }
 0x200   : > { %3096 = vst [vmem:[%s4708_s25 + $0x50] sm:$0xff] %v3060_v12   ;;  %v2435_v40 = vadd.f32 %v2434_v43, %v2274_v1  ;;  %v3540_v51 = vadd.f32 %v3539_v59, %v3538_v17 }
 0x201   : > { %v3541_v63 = vpop.f32.mrf.mxu1  ;;  %v3617_v53 = vpop.f32.mrf.mxu0 }
 0x202   : > { %v2446_v5 = vadd.f32 %v3617_v53, %v2285_v49  ;;  %v2290_v31 = vadd.f32 %v3540_v51, %v4824_v20 }
 0x203   : > { %v3542_v44 = vpop.f32.mrf.mxu1  ;;  %v2437_v50 = vpop.f32.mrf.mxu0 }
 0x204   : > { %v3075_v52 = vpack.c.bf16 %v2446_v5, %v2443_v29  ;;  %v2438_v35 = vadd.f32 %v2437_v50, %v2277_v4  ;;  %v3543_v18 = vadd.f32 %v3542_v44, %v3541_v63 }
 0x205   : > { %v3544_v38 = vpop.f32.mrf.mxu1  ;;  %v3620_v26 = vpop.f32.mrf.mxu0 }
 0x206   : > { %3099 = vst [vmem:[%s4708_s25 + $0x68] sm:$0xff] %v3075_v52   ;;  %v3070_v9 = vpack.c.bf16 %v2438_v35, %v2435_v40  ;;  %v2293_v48 = vadd.f32 %v3543_v18, %v4825_v41 }
 0x207   : > { %v3545_v25 = vpop.f32.mrf.mxu1  ;;  %v2450_v33 = vpop.f32.mrf.mxu0 }
 0x208   : > { %3098 = vst [vmem:[%s4708_s25 + $0x60] sm:$0xff] %v3070_v9   ;;  %v3546_v14 = vadd.f32 %v3545_v25, %v3544_v38  ;;  %v2451_v36 = vadd.f32 %v2450_v33, %v2290_v31 }
 0x209   : > { %v3547_v30 = vpop.f32.mrf.mxu1  ;;  %v3621_v23 = vpop.f32.mrf.mxu0 }
 0x20a   : > { %v2298_v13 = vadd.f32 %v3546_v14, %v4826_v28 }
 0x20b   : > { %v3548_v54 = vpop.f32.mrf.mxu1  ;;  %v2453_v10 = vpop.f32.mrf.mxu0 }
 0x20c   : > { %v3549_v46 = vadd.f32 %v3548_v54, %v3547_v30  ;;  %v2454_v56 = vadd.f32 %v2453_v10, %v2293_v48  ;;  %v2459_v34 = vadd.f32 %v3620_v26, %v2298_v13 }
 0x20e   : > { %v2301_v32 = vadd.f32 %v3549_v46, %v4693_v37  ;;  %v3080_v62 = vpack.c.bf16 %v2454_v56, %v2451_v36 }
 0x210   : > { %v2462_v6 = vadd.f32 %v3621_v23, %v2301_v32  ;;  %3100 = vst [vmem:[%s4708_s25 + $0x70] sm:$0xff] %v3080_v62  }
 0x212   : > { %v3085_v15 = vpack.c.bf16 %v2462_v6, %v2459_v34 }
 0x214   : > { %3101 = vst [vmem:[%s4708_s25 + $0x78] sm:$0xff] %v3085_v15  }
 0x215 PF: > { %s12_s11 = sadd.s32 1, %s3965_s11   ;;  %s4827_s9 = smov %s3961_s10 }
 0x216   : > { %p9_p5 = scmp.ge.s32.totalorder %s12_s11, 4   ;;  %s4828_s10 = smov %s4830_s12 }
 0x218   :  { %11 = sbr.rel (!%p9_p5) target bundleno = 2 (0x2), region = 61 }

// kernel: _lambda_.17
= control target key start
LH: loop header
LB: loop body
LE: loop exit
PB: predicated region body
PF: predicated region fallthrough
CT: control target
= control target key end

     0   :  { %s1105_s15 = smov 0   ;;  %s1107_s16 = smov 0   ;;  %s1300_s0 = inlined_call_operand.vmem [shape: bf16[2,256,128], index: 0, kind: input, shape index: {}]   ;;  %s1301_s1 = inlined_call_operand.vmem [shape: f32[2,1,128], index: 1, kind: input, shape index: {}]   ;;  %s1302_s2 = inlined_call_operand.vmem [shape: f32[2,1,128], index: 2, kind: input, shape index: {}]   ;;  %s1303_s3 = inlined_call_operand.vmem [shape: bf16[2,256,128], index: 3, kind: input, shape index: {}]   ;;  %s1304_s4 = inlined_call_operand.vmem [shape: bf16[2,256,128], index: 4, kind: output, shape index: {}]  }
   0x1   :  { %s1109_s17 = smov 0   ;;  %s1111_s18 = smov 0  }
   0x2   :  { %s1113_s19 = smov 0  }
   0x3 LB: > { %s23_s20 = sadd.s32 1, %s1070_s17  ;;  %s26_s21 = sadd.s32 1, %s1074_s18  ;;  %s1078_s19 = sphi %s1113_s19, %s14_s19   ;;  %s1074_s18 = sphi %s1111_s18, %s1308_s18   ;;  %s1070_s17 = sphi %s1109_s17, %s1307_s17   ;;  %s1066_s16 = sphi %s1107_s16, %s1306_s16   ;;  %s1062_s15 = sphi %s1105_s15, %s1305_s15  }
   0x4   : > { %p24_p0 = scmp.ge.s32.totalorder %s23_s20, 2  ;;  %p749_p1 = scmp.ge.s32.totalorder %s1078_s19, 1 }
   0x5   : > { %p216_p2 = scmp.lt.s32.totalorder %s1078_s19, 5 }
   0x6   : > { %s1310_s20 = smov (%p24_p0, %s23_s20), 0  ;;  %s1312_s21 = smov (!%p24_p0, %s26_s21), %s1074_s18 }
   0x7   : > { %p217_p3 = pnand %p749_p1, %p216_p2  ;;  %p28_p4 = scmp.ge.s32.totalorder %s1312_s21, 2 }
   0x8   : > { %s750_s22 = sshll.u32 (!%p217_p3), %s1062_s15, 4  ;;  %p266_p5 = scmp.lt.s32.totalorder (!%p217_p3), %s1066_s16, 1 }
   0x9   : > { %s1314_s21 = smov (%p28_p4, %s1312_s21), 0  ;;  %220 = sbr.rel (%p217_p3) target bundleno = 94 (0x5e), region = 36 }
   0xa   : > { %p268_p6 = scmp.lt.s32.totalorder (!%p217_p3), %s750_s22, 31 }
   0xe   : > { %s1316_s16 = smov (!%p266_p5, %s1066_s16), 1  ;;  %s1318_s22 = smov (!%p268_p6, %s750_s22), 31 }
   0xf   : > { %s751_s23 = sshll.u32 %s1316_s16, 5  ;;  %s277_s26 = scalar_lea.vmem %s1301_s1, %s1316_s16 }
  0x10   : > { %s271_s27 = sadd.s32 %s751_s23, %s1318_s22  ;;  %s280_s5 = scalar_lea.vmem %s1302_s2, %s1316_s16  ;;  %v1155_v0 = vld [vmem:[%s277_s26] ss:$0 sm:$0xff] }
  0x11   : > { %s1138_s28 = sshll.u32 %s271_s27, 2  ;;  %v1163_v11 = vld [vmem:[%s280_s5] ss:$0 sm:$0xff] }
  0x12   : > { %s1147_s8 = scalar_lea.vmem %s1300_s0, %s1138_s28  ;;  %s1153_s11 = scalar_lea.vmem %s1303_s3, %s1138_s28 }
  0x13   : > { %v812_v1 = vld [vmem:[%s1147_s8] sm:$0xff]   ;;  %v915_v3 = vld [vmem:[%s1147_s8 + $0x8] sm:$0xff]   ;;  %v916_v9 = vld [vmem:[%s1147_s8 + $0x10] sm:$0xff]   ;;  %s1261_s14 = scalar_lea.vmem %s1304_s4, %s1138_s28 }
  0x14   : > { %v844_v2 = vld [vmem:[%s1153_s11] sm:$0xff]   ;;  %v813_v4 = vunpack.c.l.bf16 %v812_v1  ;;  %v814_v5 = vunpack.c.h.bf16 %v812_v1  ;;  %v922_v8 = vld [vmem:[%s1153_s11 + $0x8] sm:$0xff]   ;;  %v923_v10 = vld [vmem:[%s1153_s11 + $0x10] sm:$0xff]   ;;  %v817_v12 = vunpack.c.l.bf16 %v915_v3  ;;  %v818_v13 = vunpack.c.h.bf16 %v915_v3 }
  0x15   : > { %v845_v6 = vunpack.c.l.bf16 %v844_v2  ;;  %v846_v7 = vunpack.c.h.bf16 %v844_v2  ;;  %v849_v14 = vunpack.c.l.bf16 %v922_v8  ;;  %v850_v15 = vunpack.c.h.bf16 %v922_v8  ;;  %v917_v20 = vld [vmem:[%s1147_s8 + $0x18] sm:$0xff]   ;;  %v918_v46 = vld [vmem:[%s1147_s8 + $0x20] sm:$0xff]   ;;  %v919_v58 = vld [vmem:[%s1147_s8 + $0x28] sm:$0xff]  }
  0x16   : > { %v340_v16 = vmul.f32 %v813_v4, %v1155_v0  ;;  %v341_v17 = vmul.f32 %v814_v5, %v1155_v0  ;;  %v821_v18 = vunpack.c.l.bf16 %v916_v9  ;;  %v822_v19 = vunpack.c.h.bf16 %v916_v9  ;;  %v924_v41 = vld [vmem:[%s1153_s11 + $0x18] sm:$0xff]   ;;  %v925_v51 = vld [vmem:[%s1153_s11 + $0x20] sm:$0xff]   ;;  %v926_v2 = vld [vmem:[%s1153_s11 + $0x28] sm:$0xff]  }
  0x17   : > { %v342_v21 = vmul.f32 %v817_v12, %v1155_v0  ;;  %v343_v22 = vmul.f32 %v818_v13, %v1155_v0  ;;  %v853_v23 = vunpack.c.l.bf16 %v923_v10  ;;  %v854_v24 = vunpack.c.h.bf16 %v923_v10  ;;  %v920_v9 = vld [vmem:[%s1147_s8 + $0x30] sm:$0xff]  }
  0x18   : > { %v363_v25 = vadd.f32 %v1163_v11, %v340_v16  ;;  %v364_v26 = vadd.f32 %v1163_v11, %v341_v17  ;;  %v344_v27 = vmul.f32 %v821_v18, %v1155_v0  ;;  %v345_v28 = vmul.f32 %v822_v19, %v1155_v0 }
  0x19   : > { %v365_v29 = vadd.f32 %v1163_v11, %v342_v21  ;;  %v366_v30 = vadd.f32 %v1163_v11, %v343_v22  ;;  %v825_v31 = vunpack.c.l.bf16 %v917_v20  ;;  %v826_v32 = vunpack.c.h.bf16 %v917_v20  ;;  %v927_v21 = vld [vmem:[%s1153_s11 + $0x30] sm:$0xff]   ;;  %v921_v22 = vld [vmem:[%s1147_s8 + $0x38] sm:$0xff]  }
  0x1a   : > { %v1176_v33 = vadd.f32 %v845_v6, %v363_v25  ;;  %v1178_v34 = vadd.f32 %v846_v7, %v364_v26  ;;  %v367_v35 = vadd.f32 %v1163_v11, %v344_v27  ;;  %v368_v36 = vadd.f32 %v1163_v11, %v345_v28 }
  0x1b   : > { %v1182_v37 = vadd.f32 %v849_v14, %v365_v29  ;;  %v1184_v38 = vadd.f32 %v850_v15, %v366_v30  ;;  %v346_v39 = vmul.f32 %v825_v31, %v1155_v0  ;;  %v347_v40 = vmul.f32 %v826_v32, %v1155_v0  ;;  %v928_v32 = vld [vmem:[%s1153_s11 + $0x38] sm:$0xff]  }
  0x1c   : > { %v761_v42 = vmul.f32 -1.442695, %v1176_v33  ;;  %v762_v43 = vmul.f32 -1.442695, %v1178_v34  ;;  %v1191_v44 = vadd.f32 %v853_v23, %v367_v35  ;;  %v1193_v45 = vadd.f32 %v854_v24, %v368_v36 }
  0x1d   : > { %v763_v47 = vmul.f32 -1.442695, %v1182_v37  ;;  %v764_v48 = vmul.f32 -1.442695, %v1184_v38  ;;  %v369_v49 = vadd.f32 %v1163_v11, %v346_v39  ;;  %v370_v50 = vadd.f32 %v1163_v11, %v347_v40 }
  0x1e   : > { %976 = vpow2.f32 %v761_v42  ;;  %v765_v52 = vmul.f32 -1.442695, %v1191_v44  ;;  %v766_v53 = vmul.f32 -1.442695, %v1193_v45  ;;  %v857_v54 = vunpack.c.l.bf16 %v924_v41 }
  0x1f   : > { %978 = vpow2.f32 %v762_v43  ;;  %v858_v55 = vunpack.c.h.bf16 %v924_v41  ;;  %v829_v56 = vunpack.c.l.bf16 %v918_v46  ;;  %v830_v57 = vunpack.c.h.bf16 %v918_v46 }
  0x20   : > { %980 = vpow2.f32 %v763_v47  ;;  %v1204_v59 = vadd.f32 %v857_v54, %v369_v49  ;;  %v861_v60 = vunpack.c.l.bf16 %v925_v51  ;;  %v862_v61 = vunpack.c.h.bf16 %v925_v51 }
  0x21   : > { %982 = vpow2.f32 %v764_v48  ;;  %v1206_v62 = vadd.f32 %v858_v55, %v370_v50  ;;  %v348_v63 = vmul.f32 %v829_v56, %v1155_v0  ;;  %v349_v1 = vmul.f32 %v830_v57, %v1155_v0 }
  0x22   : > { %984 = vpow2.f32 %v765_v52  ;;  %v767_v3 = vmul.f32 -1.442695, %v1204_v59  ;;  %v833_v4 = vunpack.c.l.bf16 %v919_v58  ;;  %v834_v5 = vunpack.c.h.bf16 %v919_v58 }
  0x23   : > { %986 = vpow2.f32 %v766_v53  ;;  %v768_v6 = vmul.f32 -1.442695, %v1206_v62  ;;  %v371_v7 = vadd.f32 %v1163_v11, %v348_v63  ;;  %v372_v8 = vadd.f32 %v1163_v11, %v349_v1 }
  0x24   : > { %988 = vpow2.f32 %v767_v3  ;;  %v350_v10 = vmul.f32 %v833_v4, %v1155_v0  ;;  %v351_v12 = vmul.f32 %v834_v5, %v1155_v0  ;;  %v865_v13 = vunpack.c.l.bf16 %v926_v2 }
  0x25   : > { %990 = vpow2.f32 %v768_v6  ;;  %v1218_v14 = vadd.f32 %v861_v60, %v371_v7  ;;  %v1220_v15 = vadd.f32 %v862_v61, %v372_v8  ;;  %v866_v16 = vunpack.c.h.bf16 %v926_v2 }
  0x26   : > { %v373_v17 = vadd.f32 %v1163_v11, %v350_v10  ;;  %v374_v18 = vadd.f32 %v1163_v11, %v351_v12  ;;  %v837_v19 = vunpack.c.l.bf16 %v920_v9  ;;  %v838_v20 = vunpack.c.h.bf16 %v920_v9 }
  0x27   : > { %v769_v23 = vmul.f32 -1.442695, %v1218_v14  ;;  %v770_v24 = vmul.f32 -1.442695, %v1220_v15  ;;  %v869_v29 = vunpack.c.l.bf16 %v927_v21  ;;  %v841_v30 = vunpack.c.l.bf16 %v921_v22 }
  0x28   : > { %v1228_v25 = vadd.f32 %v865_v13, %v373_v17  ;;  %v1230_v26 = vadd.f32 %v866_v16, %v374_v18  ;;  %v352_v27 = vmul.f32 %v837_v19, %v1155_v0  ;;  %v353_v28 = vmul.f32 %v838_v20, %v1155_v0 }
  0x29   : > { %992 = vpow2.f32 %v769_v23  ;;  %v842_v31 = vunpack.c.h.bf16 %v921_v22  ;;  %v870_v42 = vunpack.c.h.bf16 %v927_v21  ;;  %v354_v43 = vmul.f32 %v841_v30, %v1155_v0 }
  0x2a   : > { %994 = vpow2.f32 %v770_v24  ;;  %v771_v35 = vmul.f32 -1.442695, %v1228_v25  ;;  %v772_v36 = vmul.f32 -1.442695, %v1230_v26  ;;  %v375_v39 = vadd.f32 %v1163_v11, %v352_v27 }
  0x2b   : > { %v977_v40 = vpop.eup %976  ;;  %v376_v41 = vadd.f32 %v1163_v11, %v353_v28  ;;  %v355_v46 = vmul.f32 %v842_v31, %v1155_v0  ;;  %v873_v49 = vunpack.c.l.bf16 %v928_v32  ;;  %v377_v52 = vadd.f32 %v1163_v11, %v354_v43 }
  0x2c   : > { %v979_v47 = vpop.eup %978  ;;  %v475_v48 = vadd.f32 1.0, %v977_v40  ;;  %996 = vpow2.f32 %v771_v35  ;;  %v1242_v55 = vadd.f32 %v869_v29, %v375_v39  ;;  %v874_v56 = vunpack.c.h.bf16 %v928_v32 }
  0x2d   : > { %v981_v50 = vpop.eup %980  ;;  %v476_v51 = vadd.f32 1.0, %v979_v47  ;;  %998 = vpow2.f32 %v772_v36  ;;  %v1244_v60 = vadd.f32 %v870_v42, %v376_v41  ;;  %v378_v0 = vadd.f32 %v1163_v11, %v355_v46 }
  0x2e   : > { %v983_v53 = vpop.eup %982  ;;  %1000 = vrcp.f32 %v475_v48  ;;  %v477_v54 = vadd.f32 1.0, %v981_v50  ;;  %v1247_v1 = vadd.f32 %v873_v49, %v377_v52  ;;  %v773_v6 = vmul.f32 -1.442695, %v1242_v55 }
  0x2f   : > { %v985_v57 = vpop.eup %984  ;;  %1002 = vrcp.f32 %v476_v51  ;;  %v478_v58 = vadd.f32 1.0, %v983_v53  ;;  %v774_v8 = vmul.f32 -1.442695, %v1244_v60  ;;  %v1251_v9 = vadd.f32 %v874_v56, %v378_v0 }
  0x30   : > { %v987_v61 = vpop.eup %986  ;;  %1004 = vrcp.f32 %v477_v54  ;;  %v479_v63 = vadd.f32 1.0, %v985_v57  ;;  %v775_v11 = vmul.f32 -1.442695, %v1247_v1 }
  0x31   : > { %v989_v2 = vpop.eup %988  ;;  %1006 = vrcp.f32 %v478_v58  ;;  %v480_v3 = vadd.f32 1.0, %v987_v61  ;;  %v776_v16 = vmul.f32 -1.442695, %v1251_v9 }
  0x32   : > { %v991_v4 = vpop.eup %990  ;;  %1008 = vrcp.f32 %v479_v63  ;;  %v481_v5 = vadd.f32 1.0, %v989_v2 }
  0x33   : > { %1010 = vrcp.f32 %v480_v3  ;;  %v482_v7 = vadd.f32 1.0, %v991_v4 }
  0x34   : > { %1012 = vrcp.f32 %v481_v5 }
  0x35   : > { %1014 = vrcp.f32 %v482_v7 }
  0x36   : > { %v993_v10 = vpop.eup %992  ;;  %1016 = vpow2.f32 %v773_v6 }
  0x37   : > { %v995_v12 = vpop.eup %994  ;;  %v483_v13 = vadd.f32 1.0, %v993_v10  ;;  %1018 = vpow2.f32 %v774_v8 }
  0x38   : > { %v484_v17 = vadd.f32 1.0, %v995_v12  ;;  %1020 = vpow2.f32 %v775_v11 }
  0x39   : > { %v997_v18 = vpop.eup %996  ;;  %1022 = vrcp.f32 %v483_v13 }
  0x3a   : > { %v999_v19 = vpop.eup %998  ;;  %1024 = vrcp.f32 %v484_v17  ;;  %v485_v20 = vadd.f32 1.0, %v997_v18 }
  0x3b   : > { %v1001_v21 = vpop.eup %1000  ;;  %v486_v22 = vadd.f32 1.0, %v999_v19  ;;  %1026 = vpow2.f32 %v776_v16 }
  0x3c   : > { %v1003_v23 = vpop.eup %1002  ;;  %v523_v24 = vmul.f32 %v1001_v21, %v1176_v33  ;;  %1028 = vrcp.f32 %v485_v20 }
  0x3d   : > { %v1005_v27 = vpop.eup %1004  ;;  %v524_v28 = vmul.f32 %v1003_v23, %v1178_v34  ;;  %1030 = vrcp.f32 %v486_v22 }
  0x3e   : > { %v1007_v29 = vpop.eup %1006  ;;  %v525_v30 = vmul.f32 %v1005_v27, %v1182_v37 }
  0x3f   : > { %v1009_v31 = vpop.eup %1008  ;;  %v878_v32 = vpack.c.bf16 %v524_v28, %v523_v24  ;;  %v526_v35 = vmul.f32 %v1007_v29, %v1184_v38 }
  0x40   : > { %v1011_v33 = vpop.eup %1010  ;;  %v527_v36 = vmul.f32 %v1009_v31, %v1191_v44 }
  0x41   : > { %v1013_v34 = vpop.eup %1012  ;;  %879 = vst [vmem:[%s1261_s14] sm:$0xff] %v878_v32   ;;  %v883_v39 = vpack.c.bf16 %v526_v35, %v525_v30  ;;  %v528_v40 = vmul.f32 %v1011_v33, %v1193_v45 }
  0x42   : > { %v1015_v41 = vpop.eup %1014  ;;  %v529_v42 = vmul.f32 %v1013_v34, %v1204_v59 }
  0x43   : > { %v1017_v43 = vpop.eup %1016  ;;  %929 = vst [vmem:[%s1261_s14 + $0x8] sm:$0xff] %v883_v39   ;;  %v888_v37 = vpack.c.bf16 %v528_v40, %v527_v36  ;;  %v530_v46 = vmul.f32 %v1015_v41, %v1206_v62 }
  0x44   : > { %v1019_v47 = vpop.eup %1018  ;;  %v487_v38 = vadd.f32 1.0, %v1017_v43 }
  0x45   : > { %v1021_v48 = vpop.eup %1020  ;;  %930 = vst [vmem:[%s1261_s14 + $0x10] sm:$0xff] %v888_v37   ;;  %v893_v49 = vpack.c.bf16 %v530_v46, %v529_v42  ;;  %v488_v44 = vadd.f32 1.0, %v1019_v47 }
  0x46   : > { %v1023_v50 = vpop.eup %1022  ;;  %1032 = vrcp.f32 %v487_v38  ;;  %v489_v51 = vadd.f32 1.0, %v1021_v48 }
  0x47   : > { %v1025_v45 = vpop.eup %1024  ;;  %931 = vst [vmem:[%s1261_s14 + $0x18] sm:$0xff] %v893_v49   ;;  %v531_v59 = vmul.f32 %v1023_v50, %v1218_v14  ;;  %1034 = vrcp.f32 %v488_v44 }
  0x48   : > { %v1027_v52 = vpop.eup %1026  ;;  %v532_v53 = vmul.f32 %v1025_v45, %v1220_v15  ;;  %1036 = vrcp.f32 %v489_v51 }
  0x49   : > { %v1029_v62 = vpop.eup %1028  ;;  %v490_v54 = vadd.f32 1.0, %v1027_v52 }
  0x4a   : > { %v1031_v56 = vpop.eup %1030  ;;  %v898_v57 = vpack.c.bf16 %v532_v53, %v531_v59  ;;  %v533_v58 = vmul.f32 %v1029_v62, %v1228_v25 }
  0x4b   : > { %v534_v0 = vmul.f32 %v1031_v56, %v1230_v26  ;;  %1038 = vrcp.f32 %v490_v54 }
  0x4c   : > { %932 = vst [vmem:[%s1261_s14 + $0x20] sm:$0xff] %v898_v57  }
  0x4d   : > { %v903_v61 = vpack.c.bf16 %v534_v0, %v533_v58 }
  0x4f   : > { %933 = vst [vmem:[%s1261_s14 + $0x28] sm:$0xff] %v903_v61  }
  0x53   : > { %v1033_v14 = vpop.eup %1032 }
  0x54   : > { %v1035_v63 = vpop.eup %1034  ;;  %v535_v2 = vmul.f32 %v1033_v14, %v1242_v55 }
  0x55   : > { %v1037_v15 = vpop.eup %1036  ;;  %v536_v3 = vmul.f32 %v1035_v63, %v1244_v60 }
  0x56   : > { %v537_v5 = vmul.f32 %v1037_v15, %v1247_v1 }
  0x57   : > { %v908_v4 = vpack.c.bf16 %v536_v3, %v535_v2 }
  0x58   : > { %v1039_v6 = vpop.eup %1038 }
  0x59   : > { %934 = vst [vmem:[%s1261_s14 + $0x30] sm:$0xff] %v908_v4   ;;  %v538_v25 = vmul.f32 %v1039_v6, %v1251_v9 }
  0x5b   : > { %v913_v26 = vpack.c.bf16 %v538_v25, %v537_v5 }
  0x5d   : > { %935 = vst [vmem:[%s1261_s14 + $0x38] sm:$0xff] %v913_v26  }
  0x5e PF: > { %s14_s19 = sadd.s32 1, %s1078_s19   ;;  %s1305_s15 = smov %s1070_s17 }
  0x5f   : > { %p11_p7 = scmp.ge.s32.totalorder %s14_s19, 6   ;;  %s1306_s16 = smov %s1074_s18 }
  0x60   : > { %s1307_s17 = smov %s1310_s20  ;;  %s1308_s18 = smov %s1314_s21 }
  0x61   :  { %13 = sbr.rel (!%p11_p7) target bundleno = 3 (0x3), region = 75 }

</bundles_post_ra>
